<compile_context>
chip_gen: v5e
topology: v5e:2x2
jax: 0.10.0
libtpu: 0.0.40
codegen_flags: <defaults>
</compile_context>

<pallas_src>
import functools

import numpy as np
import jax
import jax.numpy as jnp
from jax.experimental import pallas as pl
from jax.experimental.pallas import tpu as pltpu


def _mix_rbf_blocks_kernel(xi_ref, xj_ref, yi_ref, yj_ref,
                           nxc_ref, nxr_ref, nyc_ref, nyr_ref,
                           kxx_ref, kxy_ref, kyy_ref,
                           *, coef, powers, anchor, gammas):
    """Writes the (i, j) tiles of K_XX, K_XY, K_YY for one grid step.

    K_*[a, b] = sum_s exp(gamma_s * ||z_a - z_b||^2).

    Fast path (powers is not None): row norms were pre-scaled by gamma_base in the
    wrapper and coef = -2 * gamma_base, so arg = gamma_base * ||z_a - z_b||^2 is formed
    with one mul + two adds; one exp per anchor, all other gamma terms come from
    repeated squaring on the VPU (4 VALU slots carry the work, the single EUP slot
    stays un-saturated).
    """
    xi = xi_ref[...]
    xj = xj_ref[...]
    yi = yi_ref[...]
    yj = yj_ref[...]
    nxc = nxc_ref[...]
    nxr = nxr_ref[...]
    nyc = nyc_ref[...]
    nyr = nyr_ref[...]

    def rbf_tile(zi, zj, ncol, nrow):
        # Gram tile on the MXU, f32 accumulation.  Contraction is A . B^T; the
        # d-deep contraction is tiny, so a pre-transposed Z^T input is only worth it
        # if a bundle dump actually shows a per-tile RHS relayout (perf-review item).
        zzt = jax.lax.dot_general(zi, zj, (((1,), (1,)), ((), ())),
                                  preferred_element_type=jnp.float32)
        if powers is not None:
            # arg = gamma_base * ||zi - zj||^2 <= 0; clamp diagonal rounding noise.
            arg = jnp.minimum(ncol + coef * zzt + nrow, 0.0)

            def chain(cur, cur_p, plist, acc):
                for p in plist:
                    while cur_p < p:
                        cur = cur * cur          # VPU squaring; EUP stays free
                        cur_p *= 2
                    acc = cur if acc is None else acc + cur
                return acc

            low = [p for p in powers if p < anchor]
            high = [p for p in powers if p >= anchor]
            acc = None
            if low:
                acc = chain(jnp.exp(arg), 1, low, acc)
            if high:
                start = jnp.exp(arg * float(anchor)) if anchor > 1 else jnp.exp(arg)
                acc = chain(start, anchor, high, acc)
            return acc

        # General fallback: one exp per sigma (coef == -2.0, raw norms).
        expo = jnp.maximum(ncol + coef * zzt + nrow, 0.0)
        acc = None
        for g in gammas:
            t = jnp.exp(expo * g)
            acc = t if acc is None else acc + t
        return acc

    kxx_ref[...] = rbf_tile(xi, xj, nxc, nxr)
    kxy_ref[...] = rbf_tile(xi, yj, nxc, nyr)
    kyy_ref[...] = rbf_tile(yi, yj, nyc, nyr)


def _analyze_sigmas(sigma_list, max_power=256):
    """Host-side: gammas, plus (gamma_base, sorted power-of-two ratios, anchor) when the
    repeated-squaring fast path applies.  max_power capped at 256 (error ~ chain * ulp);
    with the second anchor the longest chain is <= log2(sqrt(max_power)) squarings."""
    sig = np.asarray(sigma_list, dtype=np.float64).reshape(-1)
    assert sig.size > 0
    gammas = -1.0 / (2.0 * sig * sig)
    gamma_base = gammas[int(np.argmin(np.abs(gammas)))]
    ratios = gammas / gamma_base
    powers = np.rint(ratios).astype(np.int64)
    ok = (
        np.all(np.abs(ratios - powers) <= 1e-9 * np.abs(ratios))
        and np.all(powers >= 1)
        and np.all((powers & (powers - 1)) == 0)   # each ratio a power of two
        and int(powers.max()) <= max_power
    )
    if not ok:
        return gammas, None, None, 1
    powers = tuple(int(p) for p in np.sort(powers))
    # Pick the second anchor that minimizes total VPU squarings (+1 mul for the anchor).
    best_a, best_cost = 1, None
    for a in (1 << k for k in range(int(np.log2(max(powers))) + 1)):
        cost = (sum(int(np.log2(p)) for p in powers if p < a)
                + sum(int(np.log2(p // a)) for p in powers if p >= a)
                + (1 if a > 1 else 0))
        if best_cost is None or cost < best_cost:
            best_a, best_cost = a, cost
    return gammas, float(gamma_base), powers, int(best_a)


def _pad_rows(a, rows):
    m = a.shape[0]
    if m == rows:
        return a
    return jnp.concatenate([a, jnp.zeros((rows - m, a.shape[1]), a.dtype)], axis=0)


def mix_rbf_kernel(X, Y, sigma_list, *, tile=512):
    """Pallas equivalent of mix_rbf_kernel_class.forward.

    Returns (K_XX, K_XY, K_YY, len(sigma_list)).
    sigma_list must be host-side values (Python list / numpy array)."""
    assert X.shape[0] == Y.shape[0]
    assert X.shape[1] == Y.shape[1]
    m, d = X.shape
    X = X.astype(jnp.float32)
    Y = Y.astype(jnp.float32)

    gammas, gamma_base, powers, anchor = _analyze_sigmas(sigma_list)

    # Pad the quadrant side to a multiple of 128 (never a single odd full-size block).
    mp = max(128, ((m + 127) // 128) * 128)

    def blk_bytes(t):
        # double-buffered: 3 output tiles + 4 Z row blocks + 4 norm blocks, f32.
        return 2 * 4 * (3 * t * t + 4 * t * d + 4 * t)

    cands = [t for t in (tile, 512, 256, 128)
             if isinstance(t, int) and 128 <= t <= mp and mp % t == 0 and t % 128 == 0]
    cands = cands or [128]
    T = next((t for t in cands if blk_bytes(t) <= (40 << 20)), cands[-1])
    nt = mp // T

    Xp = _pad_rows(X, mp)
    Yp = _pad_rows(Y, mp)
    nx = jnp.sum(Xp * Xp, axis=1, dtype=jnp.float32)      # (mp,)
    ny = jnp.sum(Yp * Yp, axis=1, dtype=jnp.float32)

    if powers is not None:
        scale = jnp.float32(gamma_base)                    # fold gamma_base into norms
        nx_s, ny_s = nx * scale, ny * scale
        coef = -2.0 * float(gamma_base)
    else:
        nx_s, ny_s = nx, ny
        coef = -2.0
    nxc, nxr = nx_s[:, None], nx_s[None, :]                # (mp,1) / (1,mp)
    nyc, nyr = ny_s[:, None], ny_s[None, :]

    kernel_fn = functools.partial(
        _mix_rbf_blocks_kernel,
        coef=coef,
        powers=powers,
        anchor=anchor,
        gammas=tuple(float(g) for g in gammas),
    )

    zspec_i = pl.BlockSpec((T, d), lambda i, j: (i, 0))    # X_i / Y_i: constant over j
    zspec_j = pl.BlockSpec((T, d), lambda i, j: (j, 0))
    ncol_i = pl.BlockSpec((T, 1), lambda i, j: (i, 0))
    nrow_j = pl.BlockSpec((1, T), lambda i, j: (0, j))
    out_spec = pl.BlockSpec((T, T), lambda i, j: (i, j))

    # vmem_limit ~3x the per-step footprint (a few MiB) — no defensive 48 MiB cap.
    vmem_limit = int(min(max(3 * blk_bytes(T), 24 << 20), 56 << 20))

    kxx, kxy, kyy = pl.pallas_call(
        kernel_fn,
        out_shape=(
            jax.ShapeDtypeStruct((mp, mp), jnp.float32),
            jax.ShapeDtypeStruct((mp, mp), jnp.float32),
            jax.ShapeDtypeStruct((mp, mp), jnp.float32),
        ),
        grid_spec=pltpu.PrefetchScalarGridSpec(
            num_scalar_prefetch=0,
            grid=(nt, nt),                                 # i outer, j inner (fast axis)
            in_specs=[zspec_i, zspec_j, zspec_i, zspec_j,
                      ncol_i, nrow_j, ncol_i, nrow_j],
            out_specs=[out_spec, out_spec, out_spec],
        ),
        compiler_params=pltpu.CompilerParams(
            dimension_semantics=("parallel", "parallel"),
            vmem_limit_bytes=vmem_limit,
        ),
    )(Xp, Xp, Yp, Yp, nxc, nxr, nyc, nyr)

    if mp != m:
        kxx, kxy, kyy = kxx[:m, :m], kxy[:m, :m], kyy[:m, :m]
    return kxx, kxy, kyy, int(gammas.shape[0])


def _reference(X, Y, sigma_list):
    """Pure-JAX reference mirroring the PyTorch module."""
    m = X.shape[0]
    Z = jnp.concatenate([X, Y], axis=0).astype(jnp.float32)
    ZZT = Z @ Z.T
    diag = jnp.diag(ZZT)[:, None]
    exponent = diag - 2.0 * ZZT + diag.T
    gammas = -1.0 / (2.0 * jnp.asarray(sigma_list, jnp.float32) ** 2)
    K = jnp.sum(jnp.exp(exponent[None, :, :] * gammas[:, None, None]), axis=0)
    return K[:m, :m], K[:m, m:], K[m:, m:], int(gammas.shape[0])


if __name__ == "__main__":
    key = jax.random.PRNGKey(0)
    k = jax.random.split(key, 6)

    def _check(m, d, sigmas, kx, ky):
        X = jax.random.normal(kx, (m, d), dtype=jnp.float32)
        Y = jax.random.normal(ky, (m, d), dtype=jnp.float32)
        k_xx, k_xy, k_yy, n_sigma = mix_rbf_kernel(X, Y, sigmas)
        jax.block_until_ready((k_xx, k_xy, k_yy))
        r_xx, r_xy, r_yy, r_n = _reference(X, Y, sigmas)
        assert n_sigma == r_n
        assert k_xx.shape == (m, m) and k_xy.shape == (m, m) and k_yy.shape == (m, m)
        assert jnp.allclose(k_xx, r_xx, atol=3e-4, rtol=2e-4)
        assert jnp.allclose(k_xy, r_xy, atol=3e-4, rtol=2e-4)
        assert jnp.allclose(k_yy, r_yy, atol=3e-4, rtol=2e-4)

    # Geometric sigma list -> repeated-squaring fast path with two exp anchors;
    # aligned m, single 256x256 tile per quadrant.
    _check(256, 32, [1.0, 2.0, 4.0, 8.0, 16.0], k[0], k[1])
    # Non-geometric sigma list -> per-sigma exp fallback; m not a multiple of 128
    # (exercises the zero-padding + output-slicing path).
    _check(192, 48, [1.0, 2.5, 7.0], k[2], k[3])
    # Fast path with two direct anchors, unaligned m, multi-tile 3x3 grid (mp=384, T=128).
    _check(320, 16, [2.0, 8.0], k[4], k[5])

    print("KERNEL_OK")
</pallas_src>

<mosaic_0001>
module attributes {stable_mosaic.version = 11 : i64} {
  func.func @_mix_rbf_blocks_kernel(%arg0: i32, %arg1: i32, %arg2: memref<256x32xf32, #tpu.memory_space<vmem>>, %arg3: memref<256x32xf32, #tpu.memory_space<vmem>>, %arg4: memref<256x32xf32, #tpu.memory_space<vmem>>, %arg5: memref<256x32xf32, #tpu.memory_space<vmem>>, %arg6: memref<256x1xf32, #tpu.memory_space<vmem>>, %arg7: memref<1x256xf32, #tpu.memory_space<vmem>>, %arg8: memref<256x1xf32, #tpu.memory_space<vmem>>, %arg9: memref<1x256xf32, #tpu.memory_space<vmem>>, %arg10: memref<256x256xf32, #tpu.memory_space<vmem>>, %arg11: memref<256x256xf32, #tpu.memory_space<vmem>>, %arg12: memref<256x256xf32, #tpu.memory_space<vmem>>) attributes {dimension_semantics = [#tpu.dimension_semantics<parallel>, #tpu.dimension_semantics<parallel>], iteration_bounds = array<i64: 1, 1>, scalar_prefetch = 0 : i64, scratch_operands = 0 : i64, tpu.core_type = #tpu.core_type<tc>, window_params = [{transform_indices = @transform_0, window_bounds = array<i64: 256, 32>}, {transform_indices = @transform_1, window_bounds = array<i64: 256, 32>}, {transform_indices = @transform_2, window_bounds = array<i64: 256, 32>}, {transform_indices = @transform_3, window_bounds = array<i64: 256, 32>}, {transform_indices = @transform_4, window_bounds = array<i64: 256, 1>}, {transform_indices = @transform_5, window_bounds = array<i64: 1, 256>}, {transform_indices = @transform_6, window_bounds = array<i64: 256, 1>}, {transform_indices = @transform_7, window_bounds = array<i64: 1, 256>}, {transform_indices = @transform_8, window_bounds = array<i64: 256, 256>}, {transform_indices = @transform_9, window_bounds = array<i64: 256, 256>}, {transform_indices = @transform_10, window_bounds = array<i64: 256, 256>}]} {
    %c0 = arith.constant 0 : index
    %c0_0 = arith.constant 0 : index
    %0 = vector.load %arg2[%c0, %c0_0] : memref<256x32xf32, #tpu.memory_space<vmem>>, vector<256x32xf32>
    %c0_1 = arith.constant 0 : index
    %c0_2 = arith.constant 0 : index
    %1 = vector.load %arg3[%c0_1, %c0_2] : memref<256x32xf32, #tpu.memory_space<vmem>>, vector<256x32xf32>
    %c0_3 = arith.constant 0 : index
    %c0_4 = arith.constant 0 : index
    %2 = vector.load %arg4[%c0_3, %c0_4] : memref<256x32xf32, #tpu.memory_space<vmem>>, vector<256x32xf32>
    %c0_5 = arith.constant 0 : index
    %c0_6 = arith.constant 0 : index
    %3 = vector.load %arg5[%c0_5, %c0_6] : memref<256x32xf32, #tpu.memory_space<vmem>>, vector<256x32xf32>
    %c0_7 = arith.constant 0 : index
    %c0_8 = arith.constant 0 : index
    %4 = vector.load %arg6[%c0_7, %c0_8] : memref<256x1xf32, #tpu.memory_space<vmem>>, vector<256x1xf32>
    %c0_9 = arith.constant 0 : index
    %c0_10 = arith.constant 0 : index
    %5 = vector.load %arg7[%c0_9, %c0_10] : memref<1x256xf32, #tpu.memory_space<vmem>>, vector<1x256xf32>
    %c0_11 = arith.constant 0 : index
    %c0_12 = arith.constant 0 : index
    %6 = vector.load %arg8[%c0_11, %c0_12] : memref<256x1xf32, #tpu.memory_space<vmem>>, vector<256x1xf32>
    %c0_13 = arith.constant 0 : index
    %c0_14 = arith.constant 0 : index
    %7 = vector.load %arg9[%c0_13, %c0_14] : memref<1x256xf32, #tpu.memory_space<vmem>>, vector<1x256xf32>
    %cst = arith.constant dense<0.000000e+00> : vector<256x256xf32>
    %8 = tpu.matmul %0, %1, %cst {dimension_numbers = #tpu.dot_dimension_numbers<[1], [1], [0], [0], [0, 0, 1, 0], [], []>} : vector<256x32xf32>, vector<256x32xf32>, vector<256x256xf32> -> vector<256x256xf32>
    %cst_15 = arith.constant 3.906250e-03 : f32
    %9 = vector.broadcast %cst_15 : f32 to vector<256x256xf32>
    %10 = arith.mulf %9, %8 : vector<256x256xf32>
    %11 = vector.broadcast %4 : vector<256x1xf32> to vector<256x256xf32>
    %12 = arith.addf %11, %10 : vector<256x256xf32>
    %13 = vector.broadcast %5 : vector<1x256xf32> to vector<256x256xf32>
    %14 = arith.addf %12, %13 : vector<256x256xf32>
    %cst_16 = arith.constant 0.000000e+00 : f32
    %15 = vector.broadcast %cst_16 : f32 to vector<256x256xf32>
    %16 = arith.minimumf %14, %15 : vector<256x256xf32>
    %17 = math.exp %16 : vector<256x256xf32>
    %18 = arith.mulf %17, %17 : vector<256x256xf32>
    %19 = arith.mulf %18, %18 : vector<256x256xf32>
    %20 = arith.addf %17, %19 : vector<256x256xf32>
    %cst_17 = arith.constant 1.600000e+01 : f32
    %21 = vector.broadcast %cst_17 : f32 to vector<256x256xf32>
    %22 = arith.mulf %16, %21 : vector<256x256xf32>
    %23 = math.exp %22 : vector<256x256xf32>
    %24 = arith.addf %20, %23 : vector<256x256xf32>
    %25 = arith.mulf %23, %23 : vector<256x256xf32>
    %26 = arith.mulf %25, %25 : vector<256x256xf32>
    %27 = arith.addf %24, %26 : vector<256x256xf32>
    %28 = arith.mulf %26, %26 : vector<256x256xf32>
    %29 = arith.mulf %28, %28 : vector<256x256xf32>
    %30 = arith.addf %27, %29 : vector<256x256xf32>
    %c0_18 = arith.constant 0 : index
    %c0_19 = arith.constant 0 : index
    %31 = vector.load %arg10[%c0_18, %c0_19] : memref<256x256xf32, #tpu.memory_space<vmem>>, vector<256x256xf32>
    tpu.vector_store %arg10[%c0_18, %c0_19], %30 {strides = array<i32>} : memref<256x256xf32, #tpu.memory_space<vmem>>, vector<256x256xf32>,
    %cst_20 = arith.constant dense<0.000000e+00> : vector<256x256xf32>
    %32 = tpu.matmul %0, %3, %cst_20 {dimension_numbers = #tpu.dot_dimension_numbers<[1], [1], [0], [0], [0, 0, 1, 0], [], []>} : vector<256x32xf32>, vector<256x32xf32>, vector<256x256xf32> -> vector<256x256xf32>
    %cst_21 = arith.constant 3.906250e-03 : f32
    %33 = vector.broadcast %cst_21 : f32 to vector<256x256xf32>
    %34 = arith.mulf %33, %32 : vector<256x256xf32>
    %35 = vector.broadcast %4 : vector<256x1xf32> to vector<256x256xf32>
    %36 = arith.addf %35, %34 : vector<256x256xf32>
    %37 = vector.broadcast %7 : vector<1x256xf32> to vector<256x256xf32>
    %38 = arith.addf %36, %37 : vector<256x256xf32>
    %cst_22 = arith.constant 0.000000e+00 : f32
    %39 = vector.broadcast %cst_22 : f32 to vector<256x256xf32>
    %40 = arith.minimumf %38, %39 : vector<256x256xf32>
    %41 = math.exp %40 : vector<256x256xf32>
    %42 = arith.mulf %41, %41 : vector<256x256xf32>
    %43 = arith.mulf %42, %42 : vector<256x256xf32>
    %44 = arith.addf %41, %43 : vector<256x256xf32>
    %cst_23 = arith.constant 1.600000e+01 : f32
    %45 = vector.broadcast %cst_23 : f32 to vector<256x256xf32>
    %46 = arith.mulf %40, %45 : vector<256x256xf32>
    %47 = math.exp %46 : vector<256x256xf32>
    %48 = arith.addf %44, %47 : vector<256x256xf32>
    %49 = arith.mulf %47, %47 : vector<256x256xf32>
    %50 = arith.mulf %49, %49 : vector<256x256xf32>
    %51 = arith.addf %48, %50 : vector<256x256xf32>
    %52 = arith.mulf %50, %50 : vector<256x256xf32>
    %53 = arith.mulf %52, %52 : vector<256x256xf32>
    %54 = arith.addf %51, %53 : vector<256x256xf32>
    %c0_24 = arith.constant 0 : index
    %c0_25 = arith.constant 0 : index
    %55 = vector.load %arg11[%c0_24, %c0_25] : memref<256x256xf32, #tpu.memory_space<vmem>>, vector<256x256xf32>
    tpu.vector_store %arg11[%c0_24, %c0_25], %54 {strides = array<i32>} : memref<256x256xf32, #tpu.memory_space<vmem>>, vector<256x256xf32>,
    %cst_26 = arith.constant dense<0.000000e+00> : vector<256x256xf32>
    %56 = tpu.matmul %2, %3, %cst_26 {dimension_numbers = #tpu.dot_dimension_numbers<[1], [1], [0], [0], [0, 0, 1, 0], [], []>} : vector<256x32xf32>, vector<256x32xf32>, vector<256x256xf32> -> vector<256x256xf32>
    %cst_27 = arith.constant 3.906250e-03 : f32
    %57 = vector.broadcast %cst_27 : f32 to vector<256x256xf32>
    %58 = arith.mulf %57, %56 : vector<256x256xf32>
    %59 = vector.broadcast %6 : vector<256x1xf32> to vector<256x256xf32>
    %60 = arith.addf %59, %58 : vector<256x256xf32>
    %61 = vector.broadcast %7 : vector<1x256xf32> to vector<256x256xf32>
    %62 = arith.addf %60, %61 : vector<256x256xf32>
    %cst_28 = arith.constant 0.000000e+00 : f32
    %63 = vector.broadcast %cst_28 : f32 to vector<256x256xf32>
    %64 = arith.minimumf %62, %63 : vector<256x256xf32>
    %65 = math.exp %64 : vector<256x256xf32>
    %66 = arith.mulf %65, %65 : vector<256x256xf32>
    %67 = arith.mulf %66, %66 : vector<256x256xf32>
    %68 = arith.addf %65, %67 : vector<256x256xf32>
    %cst_29 = arith.constant 1.600000e+01 : f32
    %69 = vector.broadcast %cst_29 : f32 to vector<256x256xf32>
    %70 = arith.mulf %64, %69 : vector<256x256xf32>
    %71 = math.exp %70 : vector<256x256xf32>
    %72 = arith.addf %68, %71 : vector<256x256xf32>
    %73 = arith.mulf %71, %71 : vector<256x256xf32>
    %74 = arith.mulf %73, %73 : vector<256x256xf32>
    %75 = arith.addf %72, %74 : vector<256x256xf32>
    %76 = arith.mulf %74, %74 : vector<256x256xf32>
    %77 = arith.mulf %76, %76 : vector<256x256xf32>
    %78 = arith.addf %75, %77 : vector<256x256xf32>
    %c0_30 = arith.constant 0 : index
    %c0_31 = arith.constant 0 : index
    %79 = vector.load %arg12[%c0_30, %c0_31] : memref<256x256xf32, #tpu.memory_space<vmem>>, vector<256x256xf32>
    tpu.vector_store %arg12[%c0_30, %c0_31], %78 {strides = array<i32>} : memref<256x256xf32, #tpu.memory_space<vmem>>, vector<256x256xf32>,
    return
  }
  func.func @transform_0(%arg0: i32, %arg1: i32) -> (i32, i32) {
    %c0_i32 = arith.constant 0 : i32
    %c0_i32_0 = arith.constant 0 : i32
    return %arg0, %c0_i32 : i32, i32
  }
  func.func @transform_1(%arg0: i32, %arg1: i32) -> (i32, i32) {
    %c0_i32 = arith.constant 0 : i32
    %c0_i32_0 = arith.constant 0 : i32
    return %arg1, %c0_i32 : i32, i32
  }
  func.func @transform_2(%arg0: i32, %arg1: i32) -> (i32, i32) {
    %c0_i32 = arith.constant 0 : i32
    %c0_i32_0 = arith.constant 0 : i32
    return %arg0, %c0_i32 : i32, i32
  }
  func.func @transform_3(%arg0: i32, %arg1: i32) -> (i32, i32) {
    %c0_i32 = arith.constant 0 : i32
    %c0_i32_0 = arith.constant 0 : i32
    return %arg1, %c0_i32 : i32, i32
  }
  func.func @transform_4(%arg0: i32, %arg1: i32) -> (i32, i32) {
    %c0_i32 = arith.constant 0 : i32
    %c0_i32_0 = arith.constant 0 : i32
    return %arg0, %c0_i32 : i32, i32
  }
  func.func @transform_5(%arg0: i32, %arg1: i32) -> (i32, i32) {
    %c0_i32 = arith.constant 0 : i32
    %c0_i32_0 = arith.constant 0 : i32
    return %c0_i32, %arg1 : i32, i32
  }
  func.func @transform_6(%arg0: i32, %arg1: i32) -> (i32, i32) {
    %c0_i32 = arith.constant 0 : i32
    %c0_i32_0 = arith.constant 0 : i32
    return %arg0, %c0_i32 : i32, i32
  }
  func.func @transform_7(%arg0: i32, %arg1: i32) -> (i32, i32) {
    %c0_i32 = arith.constant 0 : i32
    %c0_i32_0 = arith.constant 0 : i32
    return %c0_i32, %arg1 : i32, i32
  }
  func.func @transform_8(%arg0: i32, %arg1: i32) -> (i32, i32) {
    %c0_i32 = arith.constant 0 : i32
    return %arg0, %arg1 : i32, i32
  }
  func.func @transform_9(%arg0: i32, %arg1: i32) -> (i32, i32) {
    %c0_i32 = arith.constant 0 : i32
    return %arg0, %arg1 : i32, i32
  }
  func.func @transform_10(%arg0: i32, %arg1: i32) -> (i32, i32) {
    %c0_i32 = arith.constant 0 : i32
    return %arg0, %arg1 : i32, i32
  }
}

</mosaic_0001>

<bundles_post_ra>
// kernel: tpu_custom_call.1
= control target key start
LH: loop header
LB: loop body
LE: loop exit
PB: predicated region body
PF: predicated region fallthrough
CT: control target
= control target key end

     0   :  { %16 = vsyncpa [#allocation3], 0  ;;  %vm228_vm0 = vcmask 261120   ;;  %s8405_s0 = inlined_call_operand.vmem [shape: f32[256,32], index: 0, kind: input, shape index: {}]   ;;  %s8406_s1 = inlined_call_operand.vmem [shape: f32[256,32], index: 1, kind: input, shape index: {}]   ;;  %s8407_s2 = inlined_call_operand.vmem [shape: f32[256,32], index: 2, kind: input, shape index: {}]   ;;  %s8408_s3 = inlined_call_operand.vmem [shape: f32[256,32], index: 3, kind: input, shape index: {}]   ;;  %s8409_s4 = inlined_call_operand.vmem [shape: f32[256,1], index: 4, kind: input, shape index: {}]   ;;  %s8410_s5 = inlined_call_operand.vmem [shape: f32[1,256], index: 5, kind: input, shape index: {}]   ;;  %s8411_s6 = inlined_call_operand.vmem [shape: f32[256,1], index: 6, kind: input, shape index: {}]   ;;  %s8412_s7 = inlined_call_operand.vmem [shape: f32[1,256], index: 7, kind: input, shape index: {}]   ;;  %s8413_s8 = inlined_call_operand.hbm [shape: f32[256,256], index: 8, kind: output, shape index: {0}]   ;;  %s8414_s9 = inlined_call_operand.hbm [shape: f32[256,256], index: 9, kind: output, shape index: {1}]   ;;  %s8415_s10 = inlined_call_operand.hbm [shape: f32[256,256], index: 10, kind: output, shape index: {2}]  }
   0x1   :  { %v81_v0 = vld [vmem:[%s8406_s1 + $0x78] sm:$0xff]  ;;  %v80_v2 = vld [vmem:[%s8406_s1 + $0x70] sm:$0xff]  ;;  %v79_v4 = vld [vmem:[%s8406_s1 + $0x68] sm:$0xff] }
   0x2   :  { %v97_v1 = vld [vmem:[%s8406_s1 + $0xf8] sm:$0xff]  ;;  %5514 = vmatpush.xpose.msk.msra.mxu0 %vm228_vm0, %v81_v0  ;;  %5802 = vmatpush.xpose.msk.msra.mxu2 %vm228_vm0, %v81_v0  ;;  %v96_v3 = vld [vmem:[%s8406_s1 + $0xf0] sm:$0xff]  ;;  %v95_v5 = vld [vmem:[%s8406_s1 + $0xe8] sm:$0xff] }
   0x3   :  { %5562 = vmatpush.xpose.msk.msra.mxu1 %vm228_vm0, %v97_v1  ;;  %5818 = vmatpush.xpose.msk.msra.mxu3 %vm228_vm0, %v97_v1 }
   0x6   :  { %5515 = vmatpush.xpose.msk.msra.mxu0 %vm228_vm0, %v80_v2  ;;  %5803 = vmatpush.xpose.msk.msra.mxu2 %vm228_vm0, %v80_v2 }
   0x7   :  { %5563 = vmatpush.xpose.msk.msra.mxu1 %vm228_vm0, %v96_v3  ;;  %5819 = vmatpush.xpose.msk.msra.mxu3 %vm228_vm0, %v96_v3 }
   0x8   :  { %17 = vsyncpa [#allocation5], 0  ;;  %v78_v6 = vld [vmem:[%s8406_s1 + $0x60] sm:$0xff]  ;;  %v164_v7 = vld [vmem:[%s8409_s4 + $0x10] sm:$0xff]  ;;  %v6709_v9 = vmov 0   ;;  %s5467_s22 = sshll.u32 %s8413_s8, 4  ;;  %s5468_s22 = int_to_ptr.hbm [resolvable:$true] %s5467_s22 }
   0x9   :  { %v94_v8 = vld [vmem:[%s8406_s1 + $0xe0] sm:$0xff]  ;;  %5841 = vset.pattern.permute.xlu1 %v6709_v9  ;;  %5840 = vset.pattern.permute.xlu0 %v6709_v9  ;;  %v77_v10 = vld [vmem:[%s8406_s1 + $0x58] sm:$0xff]  ;;  %v76_v12 = vld [vmem:[%s8406_s1 + $0x50] sm:$0xff]  ;;  %s6710_s23 = smov [#allocation2]   ;;  %s6711_s25 = smov 256  }
   0xa   :  { %5516 = vmatpush.xpose.msk.msra.mxu0 %vm228_vm0, %v79_v4  ;;  %5804 = vmatpush.xpose.msk.msra.mxu2 %vm228_vm0, %v79_v4  ;;  %v93_v11 = vld [vmem:[%s8406_s1 + $0xd8] sm:$0xff]  ;;  %v162_v14 = vld [vmem:[%s8409_s4] sm:$0xff]  ;;  %v92_v15 = vld [vmem:[%s8406_s1 + $0xd0] sm:$0xff]  ;;  %s5465_s24 = sshll.u32 %s6710_s23, 4  ;;  %s6712_s8 = smov 16   ;;  %s5466_s24 = int_to_ptr.vmem [resolvable:$true] %s5465_s24 }
   0xb   :  { %5564 = vmatpush.xpose.msk.msra.mxu1 %vm228_vm0, %v95_v5  ;;  %5820 = vmatpush.xpose.msk.msra.mxu3 %vm228_vm0, %v95_v5  ;;  %v165_v13 = vld [vmem:[%s8409_s4 + $0x18] sm:$0xff]  ;;  %v75_v16 = vld [vmem:[%s8406_s1 + $0x48] sm:$0xff]  ;;  %v74_v18 = vld [vmem:[%s8406_s1 + $0x40] sm:$0xff]  ;;  %s5480_s28 = sshll.u32 %s8414_s9, 4  ;;  %s6714_s29 = smov [#allocation6]   ;;  %s5481_s28 = int_to_ptr.hbm [resolvable:$true] %s5480_s28 }
   0xc   :  { %723 = vperm.xlu1 %5841, %v164_v7   ;;  %5842 = vset.pattern.permute.xlu2 %v6709_v9  ;;  %v91_v17 = vld [vmem:[%s8406_s1 + $0xc8] sm:$0xff]  ;;  %v169_v19 = vld [vmem:[%s8409_s4 + $0x38] sm:$0xff]  ;;  %v90_v21 = vld [vmem:[%s8406_s1 + $0xc0] sm:$0xff] }
   0xd   :  { %713 = vperm.xlu0 %5840, %v162_v14   ;;  %v163_v20 = vld [vmem:[%s8409_s4 + $0x8] sm:$0xff]  ;;  %v73_v22 = vld [vmem:[%s8406_s1 + $0x38] sm:$0xff]  ;;  %v172_v24 = vld [vmem:[%s8409_s4 + $0x50] sm:$0xff] }
   0xe   :  { %5517 = vmatpush.xpose.msk.msra.mxu0 %vm228_vm0, %v78_v6  ;;  %5805 = vmatpush.xpose.msk.msra.mxu2 %vm228_vm0, %v78_v6  ;;  %v89_v23 = vld [vmem:[%s8406_s1 + $0xb8] sm:$0xff]  ;;  %v72_v25 = vld [vmem:[%s8406_s1 + $0x30] sm:$0xff]  ;;  %v71_v28 = vld [vmem:[%s8406_s1 + $0x28] sm:$0xff] }
   0xf   :  { %5565 = vmatpush.xpose.msk.msra.mxu1 %vm228_vm0, %v94_v8  ;;  %5821 = vmatpush.xpose.msk.msra.mxu3 %vm228_vm0, %v94_v8  ;;  %v168_v26 = vld [vmem:[%s8409_s4 + $0x30] sm:$0xff]  ;;  %v87_v29 = vld [vmem:[%s8406_s1 + $0xa8] sm:$0xff]  ;;  %v166_v30 = vld [vmem:[%s8409_s4 + $0x20] sm:$0xff] }
  0x10   :  { %v88_v27 = vld [vmem:[%s8406_s1 + $0xb0] sm:$0xff]  ;;  %v70_v31 = vld [vmem:[%s8406_s1 + $0x20] sm:$0xff]  ;;  %v175_v32 = vld [vmem:[%s8409_s4 + $0x68] sm:$0xff]  ;;  %733 = vperm.xlu2 %5842, %v166_v30  }
  0x11   :  { %v171_v33 = vld [vmem:[%s8409_s4 + $0x48] sm:$0xff]  ;;  %v86_v34 = vld [vmem:[%s8406_s1 + $0xa0] sm:$0xff]  ;;  %v69_v35 = vld [vmem:[%s8406_s1 + $0x18] sm:$0xff] }
  0x12   :  { %5518 = vmatpush.xpose.msk.msra.mxu0 %vm228_vm0, %v77_v10  ;;  %5806 = vmatpush.xpose.msk.msra.mxu2 %vm228_vm0, %v77_v10  ;;  %v85_v36 = vld [vmem:[%s8406_s1 + $0x98] sm:$0xff]  ;;  %v167_v37 = vld [vmem:[%s8409_s4 + $0x28] sm:$0xff]  ;;  %v68_v38 = vld [vmem:[%s8406_s1 + $0x10] sm:$0xff] }
  0x13   :  { %5566 = vmatpush.xpose.msk.msra.mxu1 %vm228_vm0, %v93_v11  ;;  %5822 = vmatpush.xpose.msk.msra.mxu3 %vm228_vm0, %v93_v11  ;;  %v178_v39 = vld [vmem:[%s8409_s4 + $0x80] sm:$0xff]  ;;  %v84_v41 = vld [vmem:[%s8406_s1 + $0x90] sm:$0xff]  ;;  %v67_v42 = vld [vmem:[%s8406_s1 + $0x8] sm:$0xff] }
  0x14   :  { %728 = vperm.xlu1 %5841, %v165_v13   ;;  %v174_v40 = vld [vmem:[%s8409_s4 + $0x60] sm:$0xff]  ;;  %v83_v43 = vld [vmem:[%s8406_s1 + $0x88] sm:$0xff]  ;;  %v177_v46 = vld [vmem:[%s8409_s4 + $0x78] sm:$0xff] }
  0x15   :  { %718 = vperm.xlu0 %5840, %v163_v20   ;;  %v170_v44 = vld [vmem:[%s8409_s4 + $0x40] sm:$0xff]  ;;  %v145_v48 = vld [vmem:[%s8408_s3 + $0x78] sm:$0xff]  ;;  %v144_v52 = vld [vmem:[%s8408_s3 + $0x70] sm:$0xff] }
  0x16   :  { %5519 = vmatpush.xpose.msk.msra.mxu0 %vm228_vm0, %v76_v12  ;;  %5807 = vmatpush.xpose.msk.msra.mxu2 %vm228_vm0, %v76_v12  ;;  %v66_v45 = vld [vmem:[%s8406_s1] sm:$0xff]  ;;  %v161_v49 = vld [vmem:[%s8408_s3 + $0xf8] sm:$0xff]  ;;  %v160_v53 = vld [vmem:[%s8408_s3 + $0xf0] sm:$0xff] }
  0x17   :  { %5567 = vmatpush.xpose.msk.msra.mxu1 %vm228_vm0, %v92_v15  ;;  %5823 = vmatpush.xpose.msk.msra.mxu3 %vm228_vm0, %v92_v15  ;;  %v82_v47 = vld [vmem:[%s8406_s1 + $0x80] sm:$0xff]  ;;  %v173_v54 = vld [vmem:[%s8409_s4 + $0x58] sm:$0xff]  ;;  %v180_v55 = vld [vmem:[%s8409_s4 + $0x90] sm:$0xff] }
  0x18   :  { %738 = vperm.xlu2 %5842, %v167_v37   ;;  %v6982_v50 = vld [vmem:[%s8405_s0] sm:$0xff]  ;;  %v143_v56 = vld [vmem:[%s8408_s3 + $0x68] sm:$0xff]  ;;  %v176_v62 = vld [vmem:[%s8409_s4 + $0x70] sm:$0xff] }
  0x19   :  { %v50_v51 = vld [vmem:[%s8405_s0 + $0x80] sm:$0xff]  ;;  %v159_v57 = vld [vmem:[%s8408_s3 + $0xe8] sm:$0xff]  ;;  %v181_v63 = vld [vmem:[%s8409_s4 + $0x98] sm:$0xff] }
  0x1a   :  { %5520 = vmatpush.xpose.msk.msra.mxu0 %vm228_vm0, %v75_v16  ;;  %5808 = vmatpush.xpose.msk.msra.mxu2 %vm228_vm0, %v75_v16  ;;  %v7022_v58 = vld [vmem:[%s8405_s0 + $0x8] sm:$0xff]  ;;  %v142_v60 = vld [vmem:[%s8408_s3 + $0x60] sm:$0xff]  ;;  %v141_v0 = vld [vmem:[%s8408_s3 + $0x58] sm:$0xff] }
  0x1b   :  { %5568 = vmatpush.xpose.msk.msra.mxu1 %vm228_vm0, %v91_v17  ;;  %5824 = vmatpush.xpose.msk.msra.mxu3 %vm228_vm0, %v91_v17  ;;  %v51_v59 = vld [vmem:[%s8405_s0 + $0x88] sm:$0xff]  ;;  %v158_v61 = vld [vmem:[%s8408_s3 + $0xe0] sm:$0xff]  ;;  %v157_v1 = vld [vmem:[%s8408_s3 + $0xd8] sm:$0xff] }
  0x1c   :  { %748 = vperm.xlu1 %5841, %v169_v19   ;;  %v7062_v2 = vld [vmem:[%s8405_s0 + $0x10] sm:$0xff]  ;;  %v179_v6 = vld [vmem:[%s8409_s4 + $0x88] sm:$0xff]  ;;  %v7099_v9 = vld [vmem:[%s8405_s0 + $0x18] sm:$0xff] }
  0x1d   :  { %743 = vperm.xlu0 %5840, %v168_v26   ;;  %v52_v3 = vld [vmem:[%s8405_s0 + $0x90] sm:$0xff]  ;;  %v139_v7 = vld [vmem:[%s8408_s3 + $0x48] sm:$0xff]  ;;  %v53_v10 = vld [vmem:[%s8405_s0 + $0x98] sm:$0xff] }
  0x1e   :  { %5521 = vmatpush.xpose.msk.msra.mxu0 %vm228_vm0, %v74_v18  ;;  %5809 = vmatpush.xpose.msk.msra.mxu2 %vm228_vm0, %v74_v18  ;;  %v140_v4 = vld [vmem:[%s8408_s3 + $0x50] sm:$0xff]  ;;  %v155_v8 = vld [vmem:[%s8408_s3 + $0xc8] sm:$0xff]  ;;  %v138_v11 = vld [vmem:[%s8408_s3 + $0x40] sm:$0xff] }
  0x1f   :  { %5569 = vmatpush.xpose.msk.msra.mxu1 %vm228_vm0, %v90_v21  ;;  %5825 = vmatpush.xpose.msk.msra.mxu3 %vm228_vm0, %v90_v21  ;;  %v156_v5 = vld [vmem:[%s8408_s3 + $0xd0] sm:$0xff]  ;;  %v154_v12 = vld [vmem:[%s8408_s3 + $0xc0] sm:$0xff]  ;;  %v183_v13 = vld [vmem:[%s8409_s4 + $0xa8] sm:$0xff] }
  0x20   :  { %753 = vperm.xlu2 %5842, %v170_v44   ;;  %v7130_v14 = vld [vmem:[%s8405_s0 + $0x20] sm:$0xff]  ;;  %v137_v16 = vld [vmem:[%s8408_s3 + $0x38] sm:$0xff]  ;;  %v184_v18 = vld [vmem:[%s8409_s4 + $0xb0] sm:$0xff] }
  0x21   :  { %v54_v15 = vld [vmem:[%s8405_s0 + $0xa0] sm:$0xff]  ;;  %v153_v17 = vld [vmem:[%s8408_s3 + $0xb8] sm:$0xff]  ;;  %v7159_v19 = vld [vmem:[%s8405_s0 + $0x28] sm:$0xff] }
  0x22   :  { %5522 = vmatpush.xpose.msk.msra.mxu0 %vm228_vm0, %v73_v22  ;;  %5810 = vmatpush.xpose.msk.msra.mxu2 %vm228_vm0, %v73_v22  ;;  %v55_v20 = vld [vmem:[%s8405_s0 + $0xa8] sm:$0xff]  ;;  %v136_v21 = vld [vmem:[%s8408_s3 + $0x30] sm:$0xff]  ;;  %v57_v30 = vld [vmem:[%s8405_s0 + $0xb8] sm:$0xff] }
  0x23   :  { %5570 = vmatpush.xpose.msk.msra.mxu1 %vm228_vm0, %v89_v23  ;;  %5826 = vmatpush.xpose.msk.msra.mxu3 %vm228_vm0, %v89_v23  ;;  %v152_v22 = vld [vmem:[%s8408_s3 + $0xb0] sm:$0xff]  ;;  %v182_v23 = vld [vmem:[%s8409_s4 + $0xa0] sm:$0xff]  ;;  %v135_v26 = vld [vmem:[%s8408_s3 + $0x28] sm:$0xff] }
  0x24   :  { %763 = vperm.xlu1 %5841, %v172_v24   ;;  %v7186_v24 = vld [vmem:[%s8405_s0 + $0x30] sm:$0xff]  ;;  %v149_v37 = vld [vmem:[%s8408_s3 + $0x98] sm:$0xff] }
  0x25   :  { %758 = vperm.xlu0 %5840, %v171_v33   ;;  %v187_v33 = vld [vmem:[%s8409_s4 + $0xc8] sm:$0xff]  ;;  %v7294_v44 = vld [vmem:[%s8405_s0 + $0x50] sm:$0xff] }
  0x26   :  { %5523 = vmatpush.xpose.msk.msra.mxu0 %vm228_vm0, %v72_v25  ;;  %5811 = vmatpush.xpose.msk.msra.mxu2 %vm228_vm0, %v72_v25  ;;  %v56_v25 = vld [vmem:[%s8405_s0 + $0xb0] sm:$0xff] }
  0x27   :  { %5571 = vmatpush.xpose.msk.msra.mxu1 %vm228_vm0, %v88_v27  ;;  %5827 = vmatpush.xpose.msk.msra.mxu3 %vm228_vm0, %v88_v27  ;;  %v151_v27 = vld [vmem:[%s8408_s3 + $0xa8] sm:$0xff] }
  0x28   :  { %768 = vperm.xlu2 %5842, %v173_v54   ;;  %v146_v54 = vld [vmem:[%s8408_s3 + $0x80] sm:$0xff] }
  0x2a   :  { %5524 = vmatpush.xpose.msk.msra.mxu0 %vm228_vm0, %v71_v28  ;;  %5812 = vmatpush.xpose.msk.msra.mxu2 %vm228_vm0, %v71_v28  ;;  %v186_v28 = vld [vmem:[%s8409_s4 + $0xc0] sm:$0xff] }
  0x2b   :  { %5572 = vmatpush.xpose.msk.msra.mxu1 %vm228_vm0, %v87_v29  ;;  %5828 = vmatpush.xpose.msk.msra.mxu3 %vm228_vm0, %v87_v29  ;;  %v7213_v29 = vld [vmem:[%s8405_s0 + $0x38] sm:$0xff] }
  0x2c   :  { %778 = vperm.xlu1 %5841, %v175_v32   ;;  %v150_v32 = vld [vmem:[%s8408_s3 + $0xa0] sm:$0xff] }
  0x2d   :  { %773 = vperm.xlu0 %5840, %v174_v40   ;;  %v59_v40 = vld [vmem:[%s8405_s0 + $0xc8] sm:$0xff] }
  0x2e   :  { %5525 = vmatpush.xpose.msk.msra.mxu0 %vm228_vm0, %v70_v31  ;;  %5813 = vmatpush.xpose.msk.msra.mxu2 %vm228_vm0, %v70_v31  ;;  %v134_v31 = vld [vmem:[%s8408_s3 + $0x20] sm:$0xff] }
  0x2f   :  { %5573 = vmatpush.xpose.msk.msra.mxu1 %vm228_vm0, %v86_v34  ;;  %5829 = vmatpush.xpose.msk.msra.mxu3 %vm228_vm0, %v86_v34  ;;  %v7240_v34 = vld [vmem:[%s8405_s0 + $0x40] sm:$0xff] }
  0x30   :  { %783 = vperm.xlu2 %5842, %v176_v62   ;;  %v47_v62 = vld [vmem:[%s8405_s0 + $0x68] sm:$0xff] }
  0x32   :  { %5526 = vmatpush.xpose.msk.msra.mxu0 %vm228_vm0, %v69_v35  ;;  %5814 = vmatpush.xpose.msk.msra.mxu2 %vm228_vm0, %v69_v35  ;;  %v58_v35 = vld [vmem:[%s8405_s0 + $0xc0] sm:$0xff] }
  0x33   :  { %5574 = vmatpush.xpose.msk.msra.mxu1 %vm228_vm0, %v85_v36  ;;  %5830 = vmatpush.xpose.msk.msra.mxu3 %vm228_vm0, %v85_v36  ;;  %v133_v36 = vld [vmem:[%s8408_s3 + $0x18] sm:$0xff] }
  0x34   :  { %793 = vperm.xlu1 %5841, %v178_v39   ;;  %v7267_v39 = vld [vmem:[%s8405_s0 + $0x48] sm:$0xff] }
  0x35   :  { %788 = vperm.xlu0 %5840, %v177_v46  }
  0x36   :  { %5527 = vmatpush.xpose.msk.msra.mxu0 %vm228_vm0, %v68_v38  ;;  %5815 = vmatpush.xpose.msk.msra.mxu2 %vm228_vm0, %v68_v38  ;;  %v185_v38 = vld [vmem:[%s8409_s4 + $0xb8] sm:$0xff] }
  0x37   :  { %5575 = vmatpush.xpose.msk.msra.mxu1 %vm228_vm0, %v84_v41  ;;  %5831 = vmatpush.xpose.msk.msra.mxu3 %vm228_vm0, %v84_v41  ;;  %v132_v41 = vld [vmem:[%s8408_s3 + $0x10] sm:$0xff] }
  0x38   :  { %798 = vperm.xlu2 %5842, %v179_v6   ;;  %v64_v6 = vld [vmem:[%s8405_s0 + $0xf0] sm:$0xff] }
  0x3a   :  { %5528 = vmatpush.xpose.msk.msra.mxu0 %vm228_vm0, %v67_v42  ;;  %5816 = vmatpush.xpose.msk.msra.mxu2 %vm228_vm0, %v67_v42  ;;  %v148_v42 = vld [vmem:[%s8408_s3 + $0x90] sm:$0xff] }
  0x3b   :  { %5576 = vmatpush.xpose.msk.msra.mxu1 %vm228_vm0, %v83_v43  ;;  %5832 = vmatpush.xpose.msk.msra.mxu3 %vm228_vm0, %v83_v43  ;;  %v189_v43 = vld [vmem:[%s8409_s4 + $0xd8] sm:$0xff] }
  0x3c   :  { %808 = vperm.xlu1 %5841, %v181_v63   ;;  %v63_v63 = vld [vmem:[%s8405_s0 + $0xe8] sm:$0xff] }
  0x3d   :  { %803 = vperm.xlu0 %5840, %v180_v55   ;;  %v188_v55 = vld [vmem:[%s8409_s4 + $0xd0] sm:$0xff] }
  0x3e   :  { %5529 = vmatpush.xpose.msk.msra.mxu0 %vm228_vm0, %v66_v45  ;;  %5817 = vmatpush.xpose.msk.msra.mxu2 %vm228_vm0, %v66_v45  ;;  %v60_v45 = vld [vmem:[%s8405_s0 + $0xd0] sm:$0xff] }
  0x3f   :  { %5577 = vmatpush.xpose.msk.msra.mxu1 %vm228_vm0, %v82_v47  ;;  %5833 = vmatpush.xpose.msk.msra.mxu3 %vm228_vm0, %v82_v47  ;;  %v131_v47 = vld [vmem:[%s8408_s3 + $0x8] sm:$0xff] }
  0x40   :  { %813 = vperm.xlu2 %5842, %v182_v23  }
  0x41   :  { %5530 = vmatmul.msk.f32.vlgmr.msra.gmra.mxu0 %vm228_vm0, %v6982_v50  ;;  %5546 = vmatmul.msk.f32.vlgmr.msra.gmra.mxu2 %vm228_vm0, %v50_v51 }
  0x42   :  { %5610 = vmatpush.xpose.msk.msrb.mxu2 %vm228_vm0, %v145_v48  ;;  %5578 = vmatmul.msk.f32.vlgmr.msra.gmra.mxu1 %vm228_vm0, %v6982_v50 }
  0x43   :  { %5658 = vmatpush.xpose.msk.msrb.mxu3 %vm228_vm0, %v161_v49  ;;  %5706 = vmatpush.xpose.msk.msrb.mxu0 %vm228_vm0, %v145_v48  ;;  %v147_v48 = vld [vmem:[%s8408_s3 + $0x88] sm:$0xff] }
  0x44   :  { %5594 = vmatmul.msk.f32.vlgmr.msra.gmra.mxu3 %vm228_vm0, %v50_v51  ;;  %5754 = vmatpush.xpose.msk.msrb.mxu1 %vm228_vm0, %v161_v49  ;;  %v190_v49 = vld [vmem:[%s8409_s4 + $0xe0] sm:$0xff]  ;;  %v45_v51 = vld [vmem:[%s8405_s0 + $0x58] sm:$0xff] }
  0x45   :  { %818 = vperm.xlu0 %5840, %v183_v13   ;;  %823 = vperm.xlu1 %5841, %v184_v18  }
  0x46   :  { %5611 = vmatpush.xpose.msk.msrb.mxu2 %vm228_vm0, %v144_v52 }
  0x47   :  { %5659 = vmatpush.xpose.msk.msrb.mxu3 %vm228_vm0, %v160_v53  ;;  %5707 = vmatpush.xpose.msk.msrb.mxu0 %vm228_vm0, %v144_v52  ;;  %v61_v52 = vld [vmem:[%s8405_s0 + $0xd8] sm:$0xff] }
  0x48   :  { %5755 = vmatpush.xpose.msk.msrb.mxu1 %vm228_vm0, %v160_v53  ;;  %828 = vperm.xlu2 %5842, %v185_v38   ;;  %v130_v53 = vld [vmem:[%s8408_s3] sm:$0xff] }
  0x49   :  { %5531 = vmatmul.msk.f32.gmra.mxu0 %vm228_vm0, %v7022_v58  ;;  %5547 = vmatmul.msk.f32.gmra.mxu2 %vm228_vm0, %v51_v59 }
  0x4a   :  { %5612 = vmatpush.xpose.msk.msrb.mxu2 %vm228_vm0, %v143_v56  ;;  %5579 = vmatmul.msk.f32.gmra.mxu1 %vm228_vm0, %v7022_v58 }
  0x4b   :  { %5660 = vmatpush.xpose.msk.msrb.mxu3 %vm228_vm0, %v159_v57  ;;  %5708 = vmatpush.xpose.msk.msrb.mxu0 %vm228_vm0, %v143_v56 }
  0x4c   :  { %5595 = vmatmul.msk.f32.gmra.mxu3 %vm228_vm0, %v51_v59  ;;  %5756 = vmatpush.xpose.msk.msrb.mxu1 %vm228_vm0, %v159_v57  ;;  %v46_v59 = vld [vmem:[%s8405_s0 + $0x60] sm:$0xff] }
  0x4d   :  { %833 = vperm.xlu0 %5840, %v186_v28   ;;  %838 = vperm.xlu1 %5841, %v187_v33  }
  0x4e   :  { %5613 = vmatpush.xpose.msk.msrb.mxu2 %vm228_vm0, %v142_v60 }
  0x4f   :  { %5661 = vmatpush.xpose.msk.msrb.mxu3 %vm228_vm0, %v158_v61  ;;  %5709 = vmatpush.xpose.msk.msrb.mxu0 %vm228_vm0, %v142_v60  ;;  %v62_v60 = vld [vmem:[%s8405_s0 + $0xe0] sm:$0xff] }
  0x50   :  { %5757 = vmatpush.xpose.msk.msrb.mxu1 %vm228_vm0, %v158_v61  ;;  %843 = vperm.xlu2 %5842, %v188_v55   ;;  %v192_v61 = vld [vmem:[%s8409_s4 + $0xf0] sm:$0xff] }
  0x51   :  { %5532 = vmatmul.msk.f32.gmra.mxu0 %vm228_vm0, %v7062_v2  ;;  %5548 = vmatmul.msk.f32.gmra.mxu2 %vm228_vm0, %v52_v3 }
  0x52   :  { %5614 = vmatpush.xpose.msk.msrb.mxu2 %vm228_vm0, %v141_v0  ;;  %5580 = vmatmul.msk.f32.gmra.mxu1 %vm228_vm0, %v7062_v2 }
  0x53   :  { %5662 = vmatpush.xpose.msk.msrb.mxu3 %vm228_vm0, %v157_v1  ;;  %5710 = vmatpush.xpose.msk.msrb.mxu0 %vm228_vm0, %v141_v0 }
  0x54   :  { %5596 = vmatmul.msk.f32.gmra.mxu3 %vm228_vm0, %v52_v3  ;;  %5758 = vmatpush.xpose.msk.msrb.mxu1 %vm228_vm0, %v157_v1 }
  0x55   :  { %848 = vperm.xlu0 %5840, %v189_v43   ;;  %853 = vperm.xlu1 %5841, %v190_v49  }
  0x56   :  { %5615 = vmatpush.xpose.msk.msrb.mxu2 %vm228_vm0, %v140_v4 }
  0x57   :  { %5663 = vmatpush.xpose.msk.msrb.mxu3 %vm228_vm0, %v156_v5  ;;  %5711 = vmatpush.xpose.msk.msrb.mxu0 %vm228_vm0, %v140_v4  ;;  %v193_v4 = vld [vmem:[%s8409_s4 + $0xf8] sm:$0xff] }
  0x58   :  { %5759 = vmatpush.xpose.msk.msrb.mxu1 %vm228_vm0, %v156_v5  ;;  %v48_v5 = vld [vmem:[%s8405_s0 + $0x70] sm:$0xff] }
  0x59   :  { %5533 = vmatmul.msk.f32.gmra.mxu0 %vm228_vm0, %v7099_v9  ;;  %5549 = vmatmul.msk.f32.gmra.mxu2 %vm228_vm0, %v53_v10 }
  0x5a   :  { %5616 = vmatpush.xpose.msk.msrb.mxu2 %vm228_vm0, %v139_v7  ;;  %5581 = vmatmul.msk.f32.gmra.mxu1 %vm228_vm0, %v7099_v9 }
  0x5b   :  { %5664 = vmatpush.xpose.msk.msrb.mxu3 %vm228_vm0, %v155_v8  ;;  %5712 = vmatpush.xpose.msk.msrb.mxu0 %vm228_vm0, %v139_v7 }
  0x5c   :  { %5597 = vmatmul.msk.f32.gmra.mxu3 %vm228_vm0, %v53_v10  ;;  %5760 = vmatpush.xpose.msk.msrb.mxu1 %vm228_vm0, %v155_v8 }
  0x5d   :  { %863 = vperm.xlu0 %5840, %v192_v61   ;;  %868 = vperm.xlu1 %5841, %v193_v4  }
  0x5e   :  { %5617 = vmatpush.xpose.msk.msrb.mxu2 %vm228_vm0, %v138_v11 }
  0x5f   :  { %5665 = vmatpush.xpose.msk.msrb.mxu3 %vm228_vm0, %v154_v12  ;;  %5713 = vmatpush.xpose.msk.msrb.mxu0 %vm228_vm0, %v138_v11  ;;  %v49_v11 = vld [vmem:[%s8405_s0 + $0x78] sm:$0xff] }
  0x60   :  { %5761 = vmatpush.xpose.msk.msrb.mxu1 %vm228_vm0, %v154_v12  ;;  %v65_v12 = vld [vmem:[%s8405_s0 + $0xf8] sm:$0xff] }
  0x61   :  { %5534 = vmatmul.msk.f32.gmra.mxu0 %vm228_vm0, %v7130_v14  ;;  %5550 = vmatmul.msk.f32.gmra.mxu2 %vm228_vm0, %v54_v15 }
  0x62   :  { %5582 = vmatmul.msk.f32.gmra.mxu1 %vm228_vm0, %v7130_v14  ;;  %5618 = vmatpush.xpose.msk.msrb.mxu2 %vm228_vm0, %v137_v16 }
  0x63   :  { %5666 = vmatpush.xpose.msk.msrb.mxu3 %vm228_vm0, %v153_v17  ;;  %5714 = vmatpush.xpose.msk.msrb.mxu0 %vm228_vm0, %v137_v16  ;;  %v194_v16 = vld [vmem:[%s8410_s5] sm:$0x3] }
  0x64   :  { %5598 = vmatmul.msk.f32.gmra.mxu3 %vm228_vm0, %v54_v15  ;;  %5762 = vmatpush.xpose.msk.msrb.mxu1 %vm228_vm0, %v153_v17 }
  0x66   :  { %5619 = vmatpush.xpose.msk.msrb.mxu2 %vm228_vm0, %v136_v21 }
  0x67   :  { %5667 = vmatpush.xpose.msk.msrb.mxu3 %vm228_vm0, %v152_v22  ;;  %5715 = vmatpush.xpose.msk.msrb.mxu0 %vm228_vm0, %v136_v21 }
  0x68   :  { %5763 = vmatpush.xpose.msk.msrb.mxu1 %vm228_vm0, %v152_v22  ;;  %v7417_v22 = vperm.slane %v194_v16, 0 }
  0x69   :  { %5535 = vmatmul.msk.f32.gmra.mxu0 %vm228_vm0, %v7159_v19  ;;  %5551 = vmatmul.msk.f32.gmra.mxu2 %vm228_vm0, %v55_v20 }
  0x6a   :  { %5583 = vmatmul.msk.f32.gmra.mxu1 %vm228_vm0, %v7159_v19  ;;  %5620 = vmatpush.xpose.msk.msrb.mxu2 %vm228_vm0, %v135_v26  ;;  %v7344_v57 = vpop.permute.xlu2 %733 }
  0x6b   :  { %5668 = vmatpush.xpose.msk.msrb.mxu3 %vm228_vm0, %v151_v27  ;;  %5716 = vmatpush.xpose.msk.msrb.mxu0 %vm228_vm0, %v135_v26  ;;  %v7419_v26 = vperm.slane %v194_v16, 1 }
  0x6c   :  { %5599 = vmatmul.msk.f32.gmra.mxu3 %vm228_vm0, %v55_v20  ;;  %5764 = vmatpush.xpose.msk.msrb.mxu1 %vm228_vm0, %v151_v27  ;;  %v98_v20 = vld [vmem:[%s8407_s2] sm:$0xff] }
  0x6e   :  { %5621 = vmatpush.xpose.msk.msrb.mxu2 %vm228_vm0, %v134_v31 }
  0x6f   :  { %5669 = vmatpush.xpose.msk.msrb.mxu3 %vm228_vm0, %v150_v32  ;;  %5717 = vmatpush.xpose.msk.msrb.mxu0 %vm228_vm0, %v134_v31 }
  0x70   :  { %5765 = vmatpush.xpose.msk.msrb.mxu1 %vm228_vm0, %v150_v32 }
  0x71   :  { %5536 = vmatmul.msk.f32.gmra.mxu0 %vm228_vm0, %v7186_v24  ;;  %5552 = vmatmul.msk.f32.gmra.mxu2 %vm228_vm0, %v56_v25 }
  0x72   :  { %5584 = vmatmul.msk.f32.gmra.mxu1 %vm228_vm0, %v7186_v24  ;;  %5622 = vmatpush.xpose.msk.msrb.mxu2 %vm228_vm0, %v133_v36  ;;  %v7368_v1 = vpop.permute.xlu2 %738 }
  0x73   :  { %5670 = vmatpush.xpose.msk.msrb.mxu3 %vm228_vm0, %v149_v37  ;;  %5718 = vmatpush.xpose.msk.msrb.mxu0 %vm228_vm0, %v133_v36 }
  0x74   :  { %5600 = vmatmul.msk.f32.gmra.mxu3 %vm228_vm0, %v56_v25  ;;  %5766 = vmatpush.xpose.msk.msrb.mxu1 %vm228_vm0, %v149_v37 }
  0x76   :  { %5623 = vmatpush.xpose.msk.msrb.mxu2 %vm228_vm0, %v132_v41 }
  0x77   :  { %5671 = vmatpush.xpose.msk.msrb.mxu3 %vm228_vm0, %v148_v42  ;;  %5719 = vmatpush.xpose.msk.msrb.mxu0 %vm228_vm0, %v132_v41 }
  0x78   :  { %5767 = vmatpush.xpose.msk.msrb.mxu1 %vm228_vm0, %v148_v42 }
  0x79   :  { %5537 = vmatmul.msk.f32.gmra.mxu0 %vm228_vm0, %v7213_v29  ;;  %5553 = vmatmul.msk.f32.gmra.mxu2 %vm228_vm0, %v57_v30 }
  0x7a   :  { %5585 = vmatmul.msk.f32.gmra.mxu1 %vm228_vm0, %v7213_v29  ;;  %5624 = vmatpush.xpose.msk.msrb.mxu2 %vm228_vm0, %v131_v47  ;;  %v7389_v8 = vpop.permute.xlu2 %753 }
  0x7b   :  { %5672 = vmatpush.xpose.msk.msrb.mxu3 %vm228_vm0, %v147_v48  ;;  %5720 = vmatpush.xpose.msk.msrb.mxu0 %vm228_vm0, %v131_v47 }
  0x7c   :  { %5601 = vmatmul.msk.f32.gmra.mxu3 %vm228_vm0, %v57_v30  ;;  %5768 = vmatpush.xpose.msk.msrb.mxu1 %vm228_vm0, %v147_v48 }
  0x7e   :  { %v7305_v46 = vpop.permute.xlu1 %723  ;;  %5625 = vmatpush.xpose.msk.msrb.mxu2 %vm228_vm0, %v130_v53 }
  0x7f   :  { %5673 = vmatpush.xpose.msk.msrb.mxu3 %vm228_vm0, %v146_v54  ;;  %5721 = vmatpush.xpose.msk.msrb.mxu0 %vm228_vm0, %v130_v53  ;;  %v7370_v3 = vpop.permute.xlu0 %713 }
  0x80   :  { %5769 = vmatpush.xpose.msk.msrb.mxu1 %vm228_vm0, %v146_v54 }
  0x81   :  { %5538 = vmatmul.msk.f32.gmra.mxu0 %vm228_vm0, %v7240_v34  ;;  %5554 = vmatmul.msk.f32.gmra.mxu2 %vm228_vm0, %v58_v35 }
  0x82   :  { %5586 = vmatmul.msk.f32.gmra.mxu1 %vm228_vm0, %v7240_v34  ;;  %v7407_v15 = vpop.permute.xlu2 %768 }
  0x84   :  { %5602 = vmatmul.msk.f32.gmra.mxu3 %vm228_vm0, %v58_v35 }
  0x86   :  { %v7341_v56 = vpop.permute.xlu1 %728 }
  0x87   :  { %v7393_v10 = vpop.permute.xlu0 %718 }
  0x89   :  { %5539 = vmatmul.msk.f32.gmra.mxu0 %vm228_vm0, %v7267_v39  ;;  %5555 = vmatmul.msk.f32.gmra.mxu2 %vm228_vm0, %v59_v40 }
  0x8a   :  { %5587 = vmatmul.msk.f32.gmra.mxu1 %vm228_vm0, %v7267_v39  ;;  %v7433_v38 = vpop.permute.xlu2 %783 }
  0x8c   :  { %5603 = vmatmul.msk.f32.gmra.mxu3 %vm228_vm0, %v59_v40 }
  0x8e   :  { %v7366_v0 = vpop.permute.xlu1 %748 }
  0x8f   :  { %v7412_v17 = vpop.permute.xlu0 %743 }
  0x91   :  { %5540 = vmatmul.msk.f32.gmra.mxu0 %vm228_vm0, %v7294_v44  ;;  %5556 = vmatmul.msk.f32.gmra.mxu2 %vm228_vm0, %v60_v45 }
  0x92   :  { %5588 = vmatmul.msk.f32.gmra.mxu1 %vm228_vm0, %v7294_v44 }
  0x94   :  { %5604 = vmatmul.msk.f32.gmra.mxu3 %vm228_vm0, %v60_v45 }
  0x96   :  { %v7385_v7 = vpop.permute.xlu1 %763 }
  0x97   :  { %v7438_v43 = vpop.permute.xlu0 %758 }
  0x99   :  { %5541 = vmatmul.msk.f32.gmra.mxu0 %vm228_vm0, %v45_v51  ;;  %5557 = vmatmul.msk.f32.gmra.mxu2 %vm228_vm0, %v61_v52 }
  0x9a   :  { %5589 = vmatmul.msk.f32.gmra.mxu1 %vm228_vm0, %v45_v51 }
  0x9c   :  { %5605 = vmatmul.msk.f32.gmra.mxu3 %vm228_vm0, %v61_v52  ;;  %v191_v52 = vld [vmem:[%s8409_s4 + $0xe8] sm:$0xff]  ;;  %s6713_s4 = smov [#allocation4]  }
  0x9d   :  { %858 = vperm.xlu2 %5842, %v191_v52   ;;  %s5478_s26 = sshll.u32 %s6713_s4, 4  ;;  %s5479_s26 = int_to_ptr.vmem [resolvable:$true] %s5478_s26 }
  0x9e   :  { %v7405_v13 = vpop.permute.xlu1 %778 }
  0x9f   :  { %v7465_v52 = vpop.permute.xlu0 %773 }
  0xa1   :  { %5542 = vmatmul.msk.f32.gmra.mxu0 %vm228_vm0, %v46_v59  ;;  %5558 = vmatmul.msk.f32.gmra.mxu2 %vm228_vm0, %v62_v60 }
  0xa2   :  { %5590 = vmatmul.msk.f32.gmra.mxu1 %vm228_vm0, %v46_v59 }
  0xa4   :  { %5606 = vmatmul.msk.f32.gmra.mxu3 %vm228_vm0, %v62_v60  ;;  %v196_v60 = vld [vmem:[%s8411_s6 + $0x8] sm:$0xff] }
  0xa5   :  { %4092 = vperm.xlu0 %5840, %v196_v60  }
  0xa6   :  { %v7431_v33 = vpop.permute.xlu1 %793 }
  0xa9   :  { %5543 = vmatmul.msk.f32.gmra.mxu0 %vm228_vm0, %v47_v62  ;;  %5559 = vmatmul.msk.f32.gmra.mxu2 %vm228_vm0, %v63_v63 }
  0xaa   :  { %5591 = vmatmul.msk.f32.gmra.mxu1 %vm228_vm0, %v47_v62 }
  0xac   :  { %5607 = vmatmul.msk.f32.gmra.mxu3 %vm228_vm0, %v63_v63 }
  0xb1   :  { %5544 = vmatmul.msk.f32.gmra.mxu0 %vm228_vm0, %v48_v5  ;;  %5560 = vmatmul.msk.f32.gmra.mxu2 %vm228_vm0, %v64_v6 }
  0xb2   :  { %5592 = vmatmul.msk.f32.gmra.mxu1 %vm228_vm0, %v48_v5 }
  0xb4   :  { %5608 = vmatmul.msk.f32.gmra.mxu3 %vm228_vm0, %v64_v6 }
  0xb9   :  { %5545 = vmatmul.msk.f32.gmra.mxu0 %vm228_vm0, %v49_v11  ;;  %5561 = vmatmul.msk.f32.gmra.mxu2 %vm228_vm0, %v65_v12 }
  0xba   :  { %5593 = vmatmul.msk.f32.gmra.mxu1 %vm228_vm0, %v49_v11 }
  0xbc   :  { %5609 = vmatmul.msk.f32.gmra.mxu3 %vm228_vm0, %v65_v12 }
  0xbe   :  { %v438_v18 = vpop.f32.mrf.mxu0 }
  0xbf   :  { %v647_v21 = vmul.f32 0.00390625, %v438_v18  ;;  %v551_v23 = vpop.f32.mrf.mxu1 }
  0xc0   :  { %v648_v25 = vmul.f32 0.00390625, %v551_v23 }
  0xc1   :  { %v871_v27 = vadd.f32 %v7370_v3, %v647_v21  ;;  %5626 = vmatmul.msk.f32.vlgmr.msrb.gmra.mxu2 %vm228_vm0, %v6982_v50  ;;  %5722 = vmatmul.msk.f32.vlgmr.msrb.gmra.mxu0 %vm228_vm0, %v98_v20 }
  0xc2   :  { %v872_v28 = vadd.f32 %v7370_v3, %v648_v25  ;;  %5770 = vmatmul.msk.f32.vlgmr.msrb.gmra.mxu1 %vm228_vm0, %v98_v20 }
  0xc3   :  { %v940_v30 = vadd.f32 %v7417_v22, %v871_v27 }
  0xc4   :  { %5674 = vmatmul.msk.f32.vlgmr.msrb.gmra.mxu3 %vm228_vm0, %v6982_v50  ;;  %v941_v31 = vadd.f32 %v7419_v26, %v872_v28  ;;  %v486_v32 = vpop.f32.mrf.mxu2  ;;  %v99_v50 = vld [vmem:[%s8407_s2 + $0x8] sm:$0xff] }
  0xc5   :  { %v1004_v35 = vmin.f32 %v940_v30, 0.0  ;;  %v679_v36 = vmul.f32 0.00390625, %v486_v32 }
  0xc6   :  { %v1005_v40 = vmin.f32 %v941_v31, 0.0  ;;  %v441_v42 = vpop.f32.mrf.mxu0 }
  0xc7   :  { %v599_v37 = vpop.f32.mrf.mxu3  ;;  %v1068_v45 = vmul.f32 1.442695, %v1004_v35  ;;  %v1388_v47 = vmul.f32 16.0, %v1004_v35  ;;  %v903_v48 = vadd.f32 %v7431_v33, %v679_v36  ;;  %v649_v49 = vmul.f32 0.00390625, %v441_v42  ;;  %v554_v51 = vpop.f32.mrf.mxu1  ;;  %v100_v35 = vld [vmem:[%s8407_s2 + $0x10] sm:$0xff] }
  0xc8   :  { %v680_v41 = vmul.f32 0.00390625, %v599_v37  ;;  %v1070_v53 = vmul.f32 1.442695, %v1005_v40  ;;  %v1389_v54 = vmul.f32 16.0, %v1005_v40  ;;  %v650_v59 = vmul.f32 0.00390625, %v554_v51  ;;  %v7463_v42 = vpop.permute.xlu2 %798 }
  0xc9   :  { %5843 = vpow2.f32 %v1068_v45  ;;  %v1452_v61 = vmul.f32 1.442695, %v1388_v47  ;;  %v972_v62 = vadd.f32 %v7417_v22, %v903_v48  ;;  %v873_v63 = vadd.f32 %v7393_v10, %v649_v49  ;;  %5627 = vmatmul.msk.f32.gmra.mxu2 %vm228_vm0, %v7022_v58  ;;  %5723 = vmatmul.msk.f32.gmra.mxu0 %vm228_vm0, %v99_v50 }
  0xca   :  { %v904_v55 = vadd.f32 %v7431_v33, %v680_v41  ;;  %5845 = vpow2.f32 %v1070_v53  ;;  %v1454_v4 = vmul.f32 1.442695, %v1389_v54  ;;  %v874_v6 = vadd.f32 %v7393_v10, %v650_v59  ;;  %5771 = vmatmul.msk.f32.gmra.mxu1 %vm228_vm0, %v99_v50 }
  0xcb   :  { %5847 = vpow2.f32 %v1452_v61  ;;  %v1036_v11 = vmin.f32 %v972_v62, 0.0  ;;  %v942_v12 = vadd.f32 %v7417_v22, %v873_v63 }
  0xcc   :  { %v973_v5 = vadd.f32 %v7419_v26, %v904_v55  ;;  %5675 = vmatmul.msk.f32.gmra.mxu3 %vm228_vm0, %v7022_v58  ;;  %5849 = vpow2.f32 %v1454_v4  ;;  %v943_v18 = vadd.f32 %v7419_v26, %v874_v6  ;;  %v489_v20 = vpop.f32.mrf.mxu2 }
  0xcd   :  { %v1132_v21 = vmul.f32 1.442695, %v1036_v11  ;;  %v1420_v23 = vmul.f32 16.0, %v1036_v11  ;;  %v1006_v25 = vmin.f32 %v942_v12, 0.0  ;;  %v681_v27 = vmul.f32 0.00390625, %v489_v20 }
  0xce   :  { %v1037_v16 = vmin.f32 %v973_v5, 0.0  ;;  %v1007_v58 = vmin.f32 %v943_v18, 0.0 }
  0xcf   :  { %v602_v28 = vpop.f32.mrf.mxu3  ;;  %v5844_v36 = vpop.eup %5843  ;;  %5851 = vpow2.f32 %v1132_v21  ;;  %v1516_v37 = vmul.f32 1.442695, %v1420_v23  ;;  %v1072_v40 = vmul.f32 1.442695, %v1006_v25  ;;  %v1390_v41 = vmul.f32 16.0, %v1006_v25 }
  0xd0   :  { %v1134_v30 = vmul.f32 1.442695, %v1037_v16  ;;  %v1421_v31 = vmul.f32 16.0, %v1037_v16  ;;  %v682_v32 = vmul.f32 0.00390625, %v602_v28  ;;  %v5846_v50 = vpop.eup %5845  ;;  %v1196_v45 = vmul.f32 %v5844_v36, %v5844_v36 }
  0xd1   :  { %v1074_v48 = vmul.f32 1.442695, %v1007_v58  ;;  %v5848_v49 = vpop.eup %5847  ;;  %v1197_v51 = vmul.f32 %v5846_v50, %v5846_v50  ;;  %v1456_v53 = vmul.f32 1.442695, %v1390_v41  ;;  %v1391_v54 = vmul.f32 16.0, %v1007_v58  ;;  %5628 = vmatmul.msk.f32.gmra.mxu2 %vm228_vm0, %v7062_v2  ;;  %5724 = vmatmul.msk.f32.gmra.mxu0 %vm228_vm0, %v100_v35  ;;  %v101_v41 = vld [vmem:[%s8407_s2 + $0x18] sm:$0xff] }
  0xd2   :  { %5853 = vpow2.f32 %v1134_v30  ;;  %v1518_v47 = vmul.f32 1.442695, %v1421_v31  ;;  %v5850_v55 = vpop.eup %5849  ;;  %v1260_v59 = vmul.f32 %v1196_v45, %v1196_v45  ;;  %v1644_v60 = vmul.f32 %v5848_v49, %v5848_v49  ;;  %5772 = vmatmul.msk.f32.gmra.mxu1 %vm228_vm0, %v100_v35 }
  0xd3   :  { %5855 = vpow2.f32 %v1516_v37  ;;  %v905_v61 = vadd.f32 %v7463_v42, %v681_v27  ;;  %v1261_v62 = vmul.f32 %v1197_v51, %v1197_v51  ;;  %v1645_v63 = vmul.f32 %v5850_v55, %v5850_v55 }
  0xd4   :  { %5857 = vpow2.f32 %v1518_v47  ;;  %5676 = vmatmul.msk.f32.gmra.mxu3 %vm228_vm0, %v7062_v2  ;;  %v1458_v4 = vmul.f32 1.442695, %v1391_v54  ;;  %v1324_v5 = vadd.f32 %v5844_v36, %v1260_v59  ;;  %v1708_v6 = vmul.f32 %v1644_v60, %v1644_v60 }
  0xd5   :  { %5859 = vpow2.f32 %v1072_v40  ;;  %v906_v11 = vadd.f32 %v7463_v42, %v682_v32  ;;  %v5852_v12 = vpop.eup %5851  ;;  %v1325_v16 = vadd.f32 %v5846_v50, %v1261_v62  ;;  %v1709_v18 = vmul.f32 %v1645_v63, %v1645_v63 }
  0xd6   :  { %5861 = vpow2.f32 %v1456_v53  ;;  %v7476_v20 = vadd.f32 %v7417_v22, %v905_v61  ;;  %v1580_v2 = vadd.f32 %v5848_v49, %v1324_v5  ;;  %v1836_v23 = vmul.f32 %v1708_v6, %v1708_v6  ;;  %v7488_v5 = vpop.permute.xlu0 %788 }
  0xd7   :  { %5863 = vpow2.f32 %v1074_v48  ;;  %v1228_v25 = vmul.f32 %v5852_v12, %v5852_v12  ;;  %v1581_v28 = vadd.f32 %v5850_v55, %v1325_v16  ;;  %v1837_v30 = vmul.f32 %v1709_v18, %v1709_v18 }
  0xd8   :  { %v5854_v21 = vpop.eup %5853  ;;  %5865 = vpow2.f32 %v1458_v4  ;;  %v7479_v58 = vadd.f32 %v7419_v26, %v906_v11  ;;  %v1772_v35 = vadd.f32 %v1708_v6, %v1580_v2  ;;  %v1900_v36 = vmul.f32 %v1836_v23, %v1836_v23  ;;  %v492_v6 = vpop.f32.mrf.mxu2 }
  0xd9   :  { %v5856_v27 = vpop.eup %5855  ;;  %v1229_v31 = vmul.f32 %v5854_v21, %v5854_v21  ;;  %v1292_v37 = vmul.f32 %v1228_v25, %v1228_v25  ;;  %v1773_v45 = vadd.f32 %v1709_v18, %v1581_v28  ;;  %v1901_v47 = vmul.f32 %v1837_v30, %v1837_v30  ;;  %5629 = vmatmul.msk.f32.gmra.mxu2 %vm228_vm0, %v7099_v9  ;;  %v444_v23 = vpop.f32.mrf.mxu0 }
  0xda   :  { %v5858_v32 = vpop.eup %5857  ;;  %v1676_v40 = vmul.f32 %v5856_v27, %v5856_v27  ;;  %v1964_v53 = vadd.f32 %v1900_v36, %v1772_v35  ;;  %5725 = vmatmul.msk.f32.gmra.mxu0 %vm228_vm0, %v101_v41  ;;  %v605_v25 = vpop.f32.mrf.mxu3  ;;  %5773 = vmatmul.msk.f32.gmra.mxu1 %vm228_vm0, %v101_v41 }
  0xdb   :  { %v5860_v50 = vpop.eup %5859  ;;  %v1293_v48 = vmul.f32 %v1229_v31, %v1229_v31  ;;  %v1677_v49 = vmul.f32 %v5858_v32, %v5858_v32  ;;  %v1356_v54 = vadd.f32 %v5852_v12, %v1292_v37  ;;  %v1965_v61 = vadd.f32 %v1901_v47, %v1773_v45  ;;  %v557_v35 = vpop.f32.mrf.mxu1 }
  0xdc   :  { %v5862_v51 = vpop.eup %5861  ;;  %v1740_v55 = vmul.f32 %v1676_v40, %v1676_v40  ;;  %v1198_v59 = vmul.f32 %v5860_v50, %v5860_v50  ;;  %5677 = vmatmul.msk.f32.gmra.mxu3 %vm228_vm0, %v7099_v9  ;;  %2028 = vst [vmem:[#allocation2] sm:$0xff] %v1964_v53  ;;  %v199_v9 = vld [vmem:[%s8411_s6 + $0x20] sm:$0xff] }
  0xdd   :  { %v5864_v60 = vpop.eup %5863  ;;  %v1357_v62 = vadd.f32 %v5854_v21, %v1293_v48  ;;  %v1741_v63 = vmul.f32 %v1677_v49, %v1677_v49  ;;  %v1646_v4 = vmul.f32 %v5862_v51, %v5862_v51  ;;  %v1612_v16 = vadd.f32 %v5856_v27, %v1356_v54  ;;  %2029 = vst [vmem:[#allocation2 + $0x8] sm:$0xff] %v1965_v61 }
  0xde   :  { %v5866_v11 = vpop.eup %5865  ;;  %v1868_v18 = vmul.f32 %v1740_v55, %v1740_v55  ;;  %v1262_v12 = vmul.f32 %v1198_v59, %v1198_v59  ;;  %v1199_v2 = vmul.f32 %v5864_v60, %v5864_v60  ;;  %4107 = vperm.xlu0 %5840, %v199_v9  }
  0xdf   :  { %v1613_v21 = vadd.f32 %v5858_v32, %v1357_v62  ;;  %v1869_v28 = vmul.f32 %v1741_v63, %v1741_v63  ;;  %v1710_v30 = vmul.f32 %v1646_v4, %v1646_v4  ;;  %v1647_v31 = vmul.f32 %v5866_v11, %v5866_v11 }
  0xe0   :  { %v1804_v36 = vadd.f32 %v1740_v55, %v1612_v16  ;;  %v1932_v37 = vmul.f32 %v1868_v18, %v1868_v18  ;;  %v1326_v40 = vadd.f32 %v5860_v50, %v1262_v12  ;;  %v1263_v45 = vmul.f32 %v1199_v2, %v1199_v2 }
  0xe1   :  { %v1805_v27 = vadd.f32 %v1741_v63, %v1613_v21  ;;  %v1933_v47 = vmul.f32 %v1869_v28, %v1869_v28  ;;  %v1838_v48 = vmul.f32 %v1710_v30, %v1710_v30  ;;  %v1711_v49 = vmul.f32 %v1647_v31, %v1647_v31  ;;  %5630 = vmatmul.msk.f32.gmra.mxu2 %vm228_vm0, %v7130_v14 }
  0xe2   :  { %v1996_v53 = vadd.f32 %v1932_v37, %v1804_v36  ;;  %v1582_v54 = vadd.f32 %v5862_v51, %v1326_v40  ;;  %v1327_v59 = vadd.f32 %v5864_v60, %v1263_v45  ;;  %v1038_v32 = vmin.f32 %v7476_v20, 0.0  ;;  %v447_v37 = vpop.f32.mrf.mxu0  ;;  %v608_v40 = vpop.f32.mrf.mxu3 }
  0xe3   :  { %v1997_v61 = vadd.f32 %v1933_v47, %v1805_v27  ;;  %v1902_v62 = vmul.f32 %v1838_v48, %v1838_v48  ;;  %v1839_v4 = vmul.f32 %v1711_v49, %v1711_v49  ;;  %v1039_v55 = vmin.f32 %v7479_v58, 0.0  ;;  %v560_v47 = vpop.f32.mrf.mxu1  ;;  %v7506_v48 = vpop.permute.xlu1 %808 }
  0xe4   :  { %2060 = vst [vmem:[#allocation2 + $0x100] sm:$0xff] %v1996_v53  ;;  %v1774_v41 = vadd.f32 %v1710_v30, %v1582_v54  ;;  %v1583_v50 = vadd.f32 %v5866_v11, %v1327_v59  ;;  %v1136_v63 = vmul.f32 1.442695, %v1038_v32  ;;  %v1422_v16 = vmul.f32 16.0, %v1038_v32  ;;  %5678 = vmatmul.msk.f32.gmra.mxu3 %vm228_vm0, %v7130_v14  ;;  %v7502_v11 = vpop.permute.xlu0 %803  ;;  %v495_v30 = vpop.f32.mrf.mxu2 }
  0xe5   :  { %2061 = vst [vmem:[#allocation2 + $0x108] sm:$0xff] %v1997_v61  ;;  %v1903_v51 = vmul.f32 %v1839_v4, %v1839_v4  ;;  %v1138_v60 = vmul.f32 1.442695, %v1039_v55  ;;  %v1423_v20 = vmul.f32 16.0, %v1039_v55  ;;  %v651_v18 = vmul.f32 0.00390625, %v444_v23 }
  0xe6   :  { %v1966_v12 = vadd.f32 %v1902_v62, %v1774_v41  ;;  %v1775_v2 = vadd.f32 %v1711_v49, %v1583_v50  ;;  %5867 = vpow2.f32 %v1136_v63  ;;  %v1520_v58 = vmul.f32 1.442695, %v1422_v16 }
  0xe7   :  { %5869 = vpow2.f32 %v1138_v60  ;;  %v1522_v9 = vmul.f32 1.442695, %v1423_v20  ;;  %v875_v21 = vadd.f32 %v7305_v46, %v651_v18  ;;  %v652_v28 = vmul.f32 0.00390625, %v557_v35  ;;  %v197_v35 = vld [vmem:[%s8411_s6 + $0x10] sm:$0xff] }
  0xe8   :  { %2030 = vst [vmem:[#allocation2 + $0x10] sm:$0xff] %v1966_v12  ;;  %v1967_v31 = vadd.f32 %v1903_v51, %v1775_v2  ;;  %5871 = vpow2.f32 %v1520_v58  ;;  %v683_v14 = vmul.f32 0.00390625, %v492_v6  ;;  %v684_v36 = vmul.f32 0.00390625, %v605_v25  ;;  %v102_v6 = vld [vmem:[%s8407_s2 + $0x20] sm:$0xff]  ;;  %4097 = vperm.xlu1 %5841, %v197_v35   ;;  %v202_v12 = vld [vmem:[%s8411_s6 + $0x38] sm:$0xff] }
  0xe9   :  { %5873 = vpow2.f32 %v1522_v9  ;;  %v944_v23 = vadd.f32 %v7417_v22, %v875_v21  ;;  %v876_v45 = vadd.f32 %v7305_v46, %v652_v28  ;;  %v653_v27 = vmul.f32 0.00390625, %v447_v37  ;;  %5726 = vmatmul.msk.f32.gmra.mxu0 %vm228_vm0, %v102_v6  ;;  %5774 = vmatmul.msk.f32.gmra.mxu1 %vm228_vm0, %v102_v6 }
  0xea   :  { %2031 = vst [vmem:[#allocation2 + $0x18] sm:$0xff] %v1967_v31  ;;  %v907_v25 = vadd.f32 %v7502_v11, %v683_v14  ;;  %v908_v49 = vadd.f32 %v7502_v11, %v684_v36  ;;  %v654_v53 = vmul.f32 0.00390625, %v560_v47  ;;  %v685_v54 = vmul.f32 0.00390625, %v495_v30  ;;  %5631 = vmatmul.msk.f32.gmra.mxu2 %vm228_vm0, %v7159_v19  ;;  %4122 = vperm.xlu0 %5840, %v202_v12  }
  0xeb   :  { %v1008_v59 = vmin.f32 %v944_v23, 0.0  ;;  %v945_v32 = vadd.f32 %v7419_v26, %v876_v45  ;;  %v877_v61 = vadd.f32 %v7341_v56, %v653_v27  ;;  %v7519_v62 = vmul.f32 0.00390625, %v608_v40 }
  0xec   :  { %v5868_v4 = vpop.eup %5867  ;;  %v976_v55 = vadd.f32 %v7417_v22, %v907_v25  ;;  %v977_v41 = vadd.f32 %v7419_v26, %v908_v49  ;;  %v878_v50 = vadd.f32 %v7341_v56, %v654_v53  ;;  %v7528_v63 = vadd.f32 %v7506_v48, %v685_v54  ;;  %5679 = vmatmul.msk.f32.gmra.mxu3 %vm228_vm0, %v7159_v19 }
  0xed   :  { %v5870_v16 = vpop.eup %5869  ;;  %v1230_v51 = vmul.f32 %v5868_v4, %v5868_v4  ;;  %v1076_v60 = vmul.f32 1.442695, %v1008_v59  ;;  %v1392_v20 = vmul.f32 16.0, %v1008_v59  ;;  %v1009_v18 = vmin.f32 %v945_v32, 0.0 }
  0xee   :  { %v5872_v2 = vpop.eup %5871  ;;  %v1231_v58 = vmul.f32 %v5870_v16, %v5870_v16  ;;  %v1040_v9 = vmin.f32 %v976_v55, 0.0  ;;  %v1041_v21 = vmin.f32 %v977_v41, 0.0  ;;  %v946_v28 = vadd.f32 %v7417_v22, %v877_v61 }
  0xef   :  { %v5874_v30 = vpop.eup %5873  ;;  %v1294_v31 = vmul.f32 %v1230_v51, %v1230_v51  ;;  %v1678_v14 = vmul.f32 %v5872_v2, %v5872_v2  ;;  %5875 = vpow2.f32 %v1076_v60  ;;  %v1460_v19 = vmul.f32 1.442695, %v1392_v20 }
  0xf0   :  { %v1295_v36 = vmul.f32 %v1231_v58, %v1231_v58  ;;  %v1679_v37 = vmul.f32 %v5874_v30, %v5874_v30  ;;  %v1078_v40 = vmul.f32 1.442695, %v1009_v18  ;;  %v1393_v23 = vmul.f32 16.0, %v1009_v18 }
  0xf1   :  { %v1358_v45 = vadd.f32 %v5868_v4, %v1294_v31  ;;  %v1742_v27 = vmul.f32 %v1678_v14, %v1678_v14  ;;  %5877 = vpow2.f32 %v1460_v19  ;;  %v1140_v47 = vmul.f32 1.442695, %v1040_v9 }
  0xf2   :  { %v1359_v35 = vadd.f32 %v5870_v16, %v1295_v36  ;;  %v1743_v6 = vmul.f32 %v1679_v37, %v1679_v37  ;;  %5879 = vpow2.f32 %v1078_v40  ;;  %v1462_v25 = vmul.f32 1.442695, %v1393_v23  ;;  %5632 = vmatmul.msk.f32.gmra.mxu2 %vm228_vm0, %v7186_v24 }
  0xf3   :  { %v1614_v49 = vadd.f32 %v5872_v2, %v1358_v45  ;;  %v1870_v53 = vmul.f32 %v1742_v27, %v1742_v27  ;;  %5881 = vpow2.f32 %v1140_v47  ;;  %v1142_v54 = vmul.f32 1.442695, %v1041_v21 }
  0xf4   :  { %v1615_v59 = vadd.f32 %v5874_v30, %v1359_v35  ;;  %v1871_v32 = vmul.f32 %v1743_v6, %v1743_v6  ;;  %5883 = vpow2.f32 %v1462_v25  ;;  %v1424_v61 = vmul.f32 16.0, %v1040_v9  ;;  %5680 = vmatmul.msk.f32.gmra.mxu3 %vm228_vm0, %v7186_v24 }
  0xf5   :  { %v5876_v4 = vpop.eup %5875  ;;  %v1806_v55 = vadd.f32 %v1742_v27, %v1614_v49  ;;  %v1934_v41 = vmul.f32 %v1870_v53, %v1870_v53  ;;  %5885 = vpow2.f32 %v1142_v54  ;;  %v1425_v16 = vmul.f32 16.0, %v1041_v21  ;;  %v195_v49 = vld [vmem:[%s8411_s6] sm:$0xff]  ;;  %v103_v53 = vld [vmem:[%s8407_s2 + $0x28] sm:$0xff] }
  0xf6   :  { %v1807_v51 = vadd.f32 %v1743_v6, %v1615_v59  ;;  %v1935_v60 = vmul.f32 %v1871_v32, %v1871_v32  ;;  %v1200_v20 = vmul.f32 %v5876_v4, %v5876_v4  ;;  %v1524_v18 = vmul.f32 1.442695, %v1424_v61  ;;  %4087 = vperm.xlu2 %5842, %v195_v49   ;;  %5727 = vmatmul.msk.f32.gmra.mxu0 %vm228_vm0, %v103_v53 }
  0xf7   :  { %v5878_v12 = vpop.eup %5877  ;;  %v1998_v2 = vadd.f32 %v1934_v41, %v1806_v55  ;;  %v1526_v58 = vmul.f32 1.442695, %v1425_v16  ;;  %v1010_v31 = vmin.f32 %v946_v28, 0.0  ;;  %v947_v30 = vadd.f32 %v7419_v26, %v878_v50  ;;  %5775 = vmatmul.msk.f32.gmra.mxu1 %vm228_vm0, %v103_v53 }
  0xf8   :  { %v5880_v14 = vpop.eup %5879  ;;  %v1999_v9 = vadd.f32 %v1935_v60, %v1807_v51  ;;  %v1264_v19 = vmul.f32 %v1200_v20, %v1200_v20  ;;  %v1648_v36 = vmul.f32 %v5878_v12, %v5878_v12  ;;  %5887 = vpow2.f32 %v1524_v18 }
  0xf9   :  { %v5882_v24 = vpop.eup %5881  ;;  %2062 = vst [vmem:[#allocation2 + $0x110] sm:$0xff] %v1998_v2  ;;  %v1201_v37 = vmul.f32 %v5880_v14, %v5880_v14  ;;  %5889 = vpow2.f32 %v1526_v58  ;;  %v1080_v21 = vmul.f32 1.442695, %v1010_v31  ;;  %v1394_v40 = vmul.f32 16.0, %v1010_v31 }
  0xfa   :  { %v5884_v23 = vpop.eup %5883  ;;  %2063 = vst [vmem:[#allocation2 + $0x118] sm:$0xff] %v1999_v9  ;;  %v1328_v45 = vadd.f32 %v5876_v4, %v1264_v19  ;;  %v1712_v27 = vmul.f32 %v1648_v36, %v1648_v36  ;;  %v1232_v47 = vmul.f32 %v5882_v24, %v5882_v24  ;;  %v1011_v35 = vmin.f32 %v947_v30, 0.0  ;;  %5633 = vmatmul.msk.f32.gmra.mxu2 %vm228_vm0, %v7213_v29 }
  0xfb   :  { %v5886_v28 = vpop.eup %5885  ;;  %v1265_v6 = vmul.f32 %v1201_v37, %v1201_v37  ;;  %v1649_v50 = vmul.f32 %v5884_v23, %v5884_v23  ;;  %5891 = vpow2.f32 %v1080_v21  ;;  %v1464_v25 = vmul.f32 1.442695, %v1394_v40 }
  0xfc   :  { %v1584_v54 = vadd.f32 %v5878_v12, %v1328_v45  ;;  %v1840_v59 = vmul.f32 %v1712_v27, %v1712_v27  ;;  %v1233_v32 = vmul.f32 %v5886_v28, %v5886_v28  ;;  %v1296_v61 = vmul.f32 %v1232_v47, %v1232_v47  ;;  %5681 = vmatmul.msk.f32.gmra.mxu3 %vm228_vm0, %v7213_v29 }
  0xfd   :  { %v1329_v4 = vadd.f32 %v5880_v14, %v1265_v6  ;;  %v1713_v55 = vmul.f32 %v1649_v50, %v1649_v50  ;;  %5893 = vpow2.f32 %v1464_v25  ;;  %v1082_v41 = vmul.f32 1.442695, %v1011_v35 }
  0xfe   :  { %v5888_v16 = vpop.eup %5887  ;;  %v1776_v51 = vadd.f32 %v1712_v27, %v1584_v54  ;;  %v1904_v60 = vmul.f32 %v1840_v59, %v1840_v59  ;;  %v1297_v20 = vmul.f32 %v1233_v32, %v1233_v32  ;;  %v1360_v18 = vadd.f32 %v5882_v24, %v1296_v61 }
  0xff   :  { %v5890_v12 = vpop.eup %5889  ;;  %v1585_v2 = vadd.f32 %v5884_v23, %v1329_v4  ;;  %v1841_v58 = vmul.f32 %v1713_v55, %v1713_v55  ;;  %v1680_v31 = vmul.f32 %v5888_v16, %v5888_v16  ;;  %5895 = vpow2.f32 %v1082_v41 }
 0x100   :  { %v1968_v30 = vadd.f32 %v1904_v60, %v1776_v51  ;;  %v1361_v14 = vadd.f32 %v5886_v28, %v1297_v20  ;;  %v1616_v9 = vadd.f32 %v5888_v16, %v1360_v18  ;;  %v1681_v19 = vmul.f32 %v5890_v12, %v5890_v12  ;;  %v450_v28 = vpop.f32.mrf.mxu0 }
 0x101   :  { %v5892_v36 = vpop.eup %5891  ;;  %v1777_v37 = vadd.f32 %v1713_v55, %v1585_v2  ;;  %v1905_v21 = vmul.f32 %v1841_v58, %v1841_v58  ;;  %v1744_v40 = vmul.f32 %v1680_v31, %v1680_v31  ;;  %v1395_v45 = vmul.f32 16.0, %v1011_v35  ;;  %v200_v2 = vld [vmem:[%s8411_s6 + $0x28] sm:$0xff] }
 0x102   :  { %2032 = vst [vmem:[#allocation2 + $0x20] sm:$0xff] %v1968_v30  ;;  %v1617_v27 = vadd.f32 %v5890_v12, %v1361_v14  ;;  %v1745_v24 = vmul.f32 %v1681_v19, %v1681_v19  ;;  %v1202_v47 = vmul.f32 %v5892_v36, %v5892_v36  ;;  %v910_v29 = vadd.f32 %v7506_v48, %v7519_v62 }
 0x103   :  { %v5894_v23 = vpop.eup %5893  ;;  %v1969_v6 = vadd.f32 %v1905_v21, %v1777_v37  ;;  %v1808_v50 = vadd.f32 %v1744_v40, %v1616_v9  ;;  %v1872_v25 = vmul.f32 %v1744_v40, %v1744_v40  ;;  %v1466_v49 = vmul.f32 1.442695, %v1395_v45  ;;  %5634 = vmatmul.msk.f32.gmra.mxu2 %vm228_vm0, %v7240_v34  ;;  %4112 = vperm.xlu1 %5841, %v200_v2  }
 0x104   :  { %v1809_v53 = vadd.f32 %v1745_v24, %v1617_v27  ;;  %v1873_v54 = vmul.f32 %v1745_v24, %v1745_v24  ;;  %v1266_v59 = vmul.f32 %v1202_v47, %v1202_v47  ;;  %v1650_v35 = vmul.f32 %v5894_v23, %v5894_v23  ;;  %5682 = vmatmul.msk.f32.gmra.mxu3 %vm228_vm0, %v7240_v34  ;;  %v563_v27 = vpop.f32.mrf.mxu1 }
 0x105   :  { %v5896_v32 = vpop.eup %5895  ;;  %2033 = vst [vmem:[#allocation2 + $0x28] sm:$0xff] %v1969_v6  ;;  %v1936_v61 = vmul.f32 %v1872_v25, %v1872_v25  ;;  %5897 = vpow2.f32 %v1466_v49  ;;  %v978_v62 = vadd.f32 %v7417_v22, %v7528_v63  ;;  %v979_v4 = vadd.f32 %v7419_v26, %v910_v29  ;;  %v205_v63 = vld [vmem:[%s8411_s6 + $0x50] sm:$0xff]  ;;  %v498_v6 = vpop.f32.mrf.mxu2 }
 0x106   :  { %v1937_v55 = vmul.f32 %v1873_v54, %v1873_v54  ;;  %v1330_v41 = vadd.f32 %v5892_v36, %v1266_v59  ;;  %v1714_v16 = vmul.f32 %v1650_v35, %v1650_v35  ;;  %v1203_v51 = vmul.f32 %v5896_v32, %v5896_v32  ;;  %4137 = vperm.xlu0 %5840, %v205_v63   ;;  %v7573_v35 = vpop.permute.xlu2 %813 }
 0x107   :  { %v2000_v60 = vadd.f32 %v1936_v61, %v1808_v50  ;;  %v1042_v20 = vmin.f32 %v978_v62, 0.0  ;;  %v1043_v18 = vmin.f32 %v979_v4, 0.0  ;;  %v655_v12 = vmul.f32 0.00390625, %v450_v28  ;;  %v611_v50 = vpop.f32.mrf.mxu3 }
 0x108   :  { %v2001_v58 = vadd.f32 %v1937_v55, %v1809_v53  ;;  %v1586_v31 = vadd.f32 %v5894_v23, %v1330_v41  ;;  %v1842_v30 = vmul.f32 %v1714_v16, %v1714_v16  ;;  %v1267_v14 = vmul.f32 %v1203_v51, %v1203_v51 }
 0x109   :  { %2064 = vst [vmem:[#allocation2 + $0x120] sm:$0xff] %v2000_v60  ;;  %v1144_v9 = vmul.f32 1.442695, %v1042_v20  ;;  %v1146_v34 = vmul.f32 1.442695, %v1043_v18  ;;  %v1426_v19 = vmul.f32 16.0, %v1042_v20  ;;  %v879_v36 = vadd.f32 %v7344_v57, %v655_v12 }
 0x10a   :  { %2065 = vst [vmem:[#allocation2 + $0x128] sm:$0xff] %v2001_v58  ;;  %v1778_v37 = vadd.f32 %v1714_v16, %v1586_v31  ;;  %v1906_v21 = vmul.f32 %v1842_v30, %v1842_v30  ;;  %v1331_v40 = vadd.f32 %v5896_v32, %v1267_v14  ;;  %v1427_v45 = vmul.f32 16.0, %v1043_v18  ;;  %v453_v32 = vpop.f32.mrf.mxu0  ;;  %v104_v60 = vld [vmem:[%s8407_s2 + $0x30] sm:$0xff] }
 0x10b   :  { %v5898_v24 = vpop.eup %5897  ;;  %5899 = vpow2.f32 %v1144_v9  ;;  %v1528_v47 = vmul.f32 1.442695, %v1426_v19  ;;  %v948_v29 = vadd.f32 %v7417_v22, %v879_v36  ;;  %v656_v23 = vmul.f32 0.00390625, %v563_v27  ;;  %5635 = vmatmul.msk.f32.gmra.mxu2 %vm228_vm0, %v7267_v39  ;;  %5728 = vmatmul.msk.f32.gmra.mxu0 %vm228_vm0, %v104_v60 }
 0x10c   :  { %v1970_v25 = vadd.f32 %v1906_v21, %v1778_v37  ;;  %v1587_v49 = vadd.f32 %v5898_v24, %v1331_v40  ;;  %v1651_v28 = vmul.f32 %v5898_v24, %v5898_v24  ;;  %5901 = vpow2.f32 %v1146_v34  ;;  %5683 = vmatmul.msk.f32.gmra.mxu3 %vm228_vm0, %v7267_v39  ;;  %5776 = vmatmul.msk.f32.gmra.mxu1 %vm228_vm0, %v104_v60 }
 0x10d   :  { %5903 = vpow2.f32 %v1528_v47  ;;  %v1530_v53 = vmul.f32 1.442695, %v1427_v45  ;;  %v1012_v54 = vmin.f32 %v948_v29, 0.0  ;;  %v880_v59 = vadd.f32 %v7344_v57, %v656_v23 }
 0x10e   :  { %2034 = vst [vmem:[#allocation2 + $0x30] sm:$0xff] %v1970_v25  ;;  %v1715_v61 = vmul.f32 %v1651_v28, %v1651_v28  ;;  %v687_v62 = vmul.f32 0.00390625, %v498_v6  ;;  %v688_v4 = vmul.f32 0.00390625, %v611_v50  ;;  %v657_v55 = vmul.f32 0.00390625, %v453_v32  ;;  %v203_v25 = vld [vmem:[%s8411_s6 + $0x40] sm:$0xff] }
 0x10f   :  { %5905 = vpow2.f32 %v1530_v53  ;;  %v1084_v41 = vmul.f32 1.442695, %v1012_v54  ;;  %v1396_v16 = vmul.f32 16.0, %v1012_v54  ;;  %v949_v51 = vadd.f32 %v7419_v26, %v880_v59  ;;  %4127 = vperm.xlu1 %5841, %v203_v25  }
 0x110   :  { %v1779_v20 = vadd.f32 %v1715_v61, %v1587_v49  ;;  %v1843_v18 = vmul.f32 %v1715_v61, %v1715_v61  ;;  %v911_v12 = vadd.f32 %v7573_v35, %v687_v62  ;;  %v912_v2 = vadd.f32 %v7573_v35, %v688_v4  ;;  %v208_v49 = vld [vmem:[%s8411_s6 + $0x68] sm:$0xff]  ;;  %v6611_v4 = vld [vmem:[%s8405_s0 + $0x50] sm:$0xff] }
 0x111   :  { %v5900_v63 = vpop.eup %5899  ;;  %5907 = vpow2.f32 %v1084_v41  ;;  %v1468_v39 = vmul.f32 1.442695, %v1396_v16  ;;  %v1013_v58 = vmin.f32 %v949_v51, 0.0  ;;  %v7585_v31 = vadd.f32 %v7368_v1, %v657_v55  ;;  %4152 = vperm.xlu0 %5840, %v208_v49  }
 0x112   :  { %v5902_v30 = vpop.eup %5901  ;;  %v1907_v14 = vmul.f32 %v1843_v18, %v1843_v18  ;;  %v1234_v9 = vmul.f32 %v5900_v63, %v5900_v63  ;;  %v980_v34 = vadd.f32 %v7417_v22, %v911_v12  ;;  %v981_v19 = vadd.f32 %v7419_v26, %v912_v2 }
 0x113   :  { %v5904_v36 = vpop.eup %5903  ;;  %v1235_v37 = vmul.f32 %v5902_v30, %v5902_v30  ;;  %5909 = vpow2.f32 %v1468_v39  ;;  %v1086_v21 = vmul.f32 1.442695, %v1013_v58  ;;  %v1397_v40 = vmul.f32 16.0, %v1013_v58  ;;  %5636 = vmatmul.msk.f32.gmra.mxu2 %vm228_vm0, %v7294_v44 }
 0x114   :  { %v1971_v45 = vadd.f32 %v1907_v14, %v1779_v20  ;;  %v1298_v27 = vmul.f32 %v1234_v9, %v1234_v9  ;;  %v1682_v24 = vmul.f32 %v5904_v36, %v5904_v36  ;;  %v1044_v47 = vmin.f32 %v980_v34, 0.0  ;;  %5684 = vmatmul.msk.f32.gmra.mxu3 %vm228_vm0, %v6611_v4 }
 0x115   :  { %v5906_v29 = vpop.eup %5905  ;;  %v1299_v23 = vmul.f32 %v1235_v37, %v1235_v37  ;;  %5911 = vpow2.f32 %v1086_v21  ;;  %v1470_v6 = vmul.f32 1.442695, %v1397_v40  ;;  %v1045_v50 = vmin.f32 %v981_v19, 0.0  ;;  %v6612_v19 = vld [vmem:[%s8405_s0 + $0x58] sm:$0xff] }
 0x116   :  { %2035 = vst [vmem:[#allocation2 + $0x38] sm:$0xff] %v1971_v45  ;;  %v1362_v28 = vadd.f32 %v5900_v63, %v1298_v27  ;;  %v1683_v44 = vmul.f32 %v5906_v29, %v5906_v29  ;;  %v1746_v53 = vmul.f32 %v1682_v24, %v1682_v24  ;;  %v1148_v54 = vmul.f32 1.442695, %v1044_v47  ;;  %v566_v45 = vpop.f32.mrf.mxu1 }
 0x117   :  { %v5908_v59 = vpop.eup %5907  ;;  %v1363_v32 = vadd.f32 %v5902_v30, %v1299_v23  ;;  %5913 = vpow2.f32 %v1470_v6  ;;  %v1150_v61 = vmul.f32 1.442695, %v1045_v50  ;;  %v1428_v62 = vmul.f32 16.0, %v1044_v47 }
 0x118   :  { %v1618_v55 = vadd.f32 %v5904_v36, %v1362_v28  ;;  %v1747_v41 = vmul.f32 %v1683_v44, %v1683_v44  ;;  %v1874_v16 = vmul.f32 %v1746_v53, %v1746_v53  ;;  %v1204_v51 = vmul.f32 %v5908_v59, %v5908_v59 }
 0x119   :  { %v5910_v60 = vpop.eup %5909  ;;  %v1619_v20 = vadd.f32 %v5906_v29, %v1363_v32  ;;  %5915 = vpow2.f32 %v1148_v54  ;;  %v1429_v18 = vmul.f32 16.0, %v1045_v50  ;;  %v1532_v12 = vmul.f32 1.442695, %v1428_v62 }
 0x11a   :  { %v1810_v2 = vadd.f32 %v1746_v53, %v1618_v55  ;;  %v1875_v63 = vmul.f32 %v1747_v41, %v1747_v41  ;;  %v1938_v39 = vmul.f32 %v1874_v16, %v1874_v16  ;;  %v1268_v58 = vmul.f32 %v1204_v51, %v1204_v51 }
 0x11b   :  { %v5912_v30 = vpop.eup %5911  ;;  %v1811_v14 = vadd.f32 %v1747_v41, %v1619_v20  ;;  %v1652_v9 = vmul.f32 %v5910_v60, %v5910_v60  ;;  %5917 = vpow2.f32 %v1150_v61  ;;  %v1534_v34 = vmul.f32 1.442695, %v1429_v18  ;;  %5637 = vmatmul.msk.f32.gmra.mxu2 %vm228_vm0, %v6612_v19  ;;  %v105_v18 = vld [vmem:[%s8407_s2 + $0x38] sm:$0xff] }
 0x11c   :  { %v1939_v36 = vmul.f32 %v1875_v63, %v1875_v63  ;;  %v2002_v37 = vadd.f32 %v1938_v39, %v1810_v2  ;;  %v1332_v21 = vadd.f32 %v5908_v59, %v1268_v58  ;;  %v1205_v40 = vmul.f32 %v5912_v30, %v5912_v30  ;;  %5685 = vmatmul.msk.f32.gmra.mxu3 %vm228_vm0, %v6612_v19  ;;  %v6613_v19 = vld [vmem:[%s8405_s0 + $0x60] sm:$0xff] }
 0x11d   :  { %v5914_v27 = vpop.eup %5913  ;;  %v1716_v24 = vmul.f32 %v1652_v9, %v1652_v9  ;;  %5919 = vpow2.f32 %v1532_v12  ;;  %v950_v47 = vadd.f32 %v7417_v22, %v7585_v31  ;;  %v658_v29 = vmul.f32 0.00390625, %v566_v45  ;;  %5729 = vmatmul.msk.f32.gmra.mxu0 %vm228_vm0, %v105_v18  ;;  %5777 = vmatmul.msk.f32.gmra.mxu1 %vm228_vm0, %v105_v18  ;;  %v614_v45 = vpop.f32.mrf.mxu3 }
 0x11e   :  { %v2003_v23 = vadd.f32 %v1939_v36, %v1811_v14  ;;  %2066 = vst [vmem:[#allocation2 + $0x130] sm:$0xff] %v2002_v37  ;;  %v1588_v6 = vadd.f32 %v5910_v60, %v1332_v21  ;;  %v1269_v50 = vmul.f32 %v1205_v40, %v1205_v40  ;;  %v1653_v25 = vmul.f32 %v5914_v27, %v5914_v27 }
 0x11f   :  { %v5916_v49 = vpop.eup %5915  ;;  %v1844_v28 = vmul.f32 %v1716_v24, %v1716_v24  ;;  %5921 = vpow2.f32 %v1534_v34  ;;  %v1014_v44 = vmin.f32 %v950_v47, 0.0  ;;  %v882_v53 = vadd.f32 %v7368_v1, %v658_v29  ;;  %v501_v34 = vpop.f32.mrf.mxu2 }
 0x120   :  { %2067 = vst [vmem:[#allocation2 + $0x138] sm:$0xff] %v2003_v23  ;;  %v1780_v54 = vadd.f32 %v1716_v24, %v1588_v6  ;;  %v1333_v59 = vadd.f32 %v5912_v30, %v1269_v50  ;;  %v1717_v32 = vmul.f32 %v1653_v25, %v1653_v25  ;;  %v1236_v61 = vmul.f32 %v5916_v49, %v5916_v49  ;;  %v7620_v23 = vpop.permute.xlu0 %818 }
 0x121   :  { %v5918_v31 = vpop.eup %5917  ;;  %v1908_v62 = vmul.f32 %v1844_v28, %v1844_v28  ;;  %v1088_v4 = vmul.f32 1.442695, %v1014_v44  ;;  %v1398_v55 = vmul.f32 16.0, %v1014_v44  ;;  %v951_v41 = vadd.f32 %v7419_v26, %v882_v53 }
 0x122   :  { %v1589_v16 = vadd.f32 %v5914_v27, %v1333_v59  ;;  %v1845_v51 = vmul.f32 %v1717_v32, %v1717_v32  ;;  %v1237_v60 = vmul.f32 %v5918_v31, %v5918_v31  ;;  %v1300_v20 = vmul.f32 %v1236_v61, %v1236_v61  ;;  %v198_v59 = vld [vmem:[%s8411_s6 + $0x18] sm:$0xff]  ;;  %v211_v61 = vld [vmem:[%s8411_s6 + $0x80] sm:$0xff] }
 0x123   :  { %v5920_v12 = vpop.eup %5919  ;;  %v1972_v2 = vadd.f32 %v1908_v62, %v1780_v54  ;;  %5923 = vpow2.f32 %v1088_v4  ;;  %v1472_v63 = vmul.f32 1.442695, %v1398_v55  ;;  %v1015_v39 = vmin.f32 %v951_v41, 0.0  ;;  %5638 = vmatmul.msk.f32.gmra.mxu2 %vm228_vm0, %v6613_v19  ;;  %4102 = vperm.xlu2 %5842, %v198_v59  }
 0x124   :  { %v1781_v58 = vadd.f32 %v1717_v32, %v1589_v16  ;;  %v1909_v30 = vmul.f32 %v1845_v51, %v1845_v51  ;;  %v1301_v14 = vmul.f32 %v1237_v60, %v1237_v60  ;;  %v1364_v9 = vadd.f32 %v5916_v49, %v1300_v20  ;;  %v456_v49 = vpop.f32.mrf.mxu0  ;;  %5686 = vmatmul.msk.f32.gmra.mxu3 %vm228_vm0, %v6613_v19  ;;  %v206_v32 = vld [vmem:[%s8411_s6 + $0x58] sm:$0xff]  ;;  %v569_v20 = vpop.f32.mrf.mxu1 }
 0x125   :  { %v5922_v36 = vpop.eup %5921  ;;  %2036 = vst [vmem:[#allocation2 + $0x40] sm:$0xff] %v1972_v2  ;;  %v1684_v37 = vmul.f32 %v5920_v12, %v5920_v12  ;;  %5925 = vpow2.f32 %v1472_v63  ;;  %v1090_v21 = vmul.f32 1.442695, %v1015_v39  ;;  %v1399_v40 = vmul.f32 16.0, %v1015_v39  ;;  %4142 = vperm.xlu1 %5841, %v206_v32   ;;  %4167 = vperm.xlu0 %5840, %v211_v61  }
 0x126   :  { %v1973_v27 = vadd.f32 %v1909_v30, %v1781_v58  ;;  %v1365_v24 = vadd.f32 %v5918_v31, %v1301_v14  ;;  %v1620_v47 = vadd.f32 %v5920_v12, %v1364_v9  ;;  %v1685_v29 = vmul.f32 %v5922_v36, %v5922_v36 }
 0x127   :  { %v1748_v6 = vmul.f32 %v1684_v37, %v1684_v37  ;;  %5927 = vpow2.f32 %v1090_v21  ;;  %v1474_v50 = vmul.f32 1.442695, %v1399_v40  ;;  %v689_v25 = vmul.f32 0.00390625, %v501_v34  ;;  %v6614_v34 = vld [vmem:[%s8405_s0 + $0x68] sm:$0xff] }
 0x128   :  { %2037 = vst [vmem:[#allocation2 + $0x48] sm:$0xff] %v1973_v27  ;;  %v1621_v28 = vadd.f32 %v5922_v36, %v1365_v24  ;;  %v1749_v44 = vmul.f32 %v1685_v29, %v1685_v29  ;;  %v690_v53 = vmul.f32 0.00390625, %v614_v45  ;;  %v659_v54 = vmul.f32 0.00390625, %v456_v49 }
 0x129   :  { %v5924_v31 = vpop.eup %5923  ;;  %v1812_v62 = vadd.f32 %v1748_v6, %v1620_v47  ;;  %v1876_v4 = vmul.f32 %v1748_v6, %v1748_v6  ;;  %5929 = vpow2.f32 %v1474_v50  ;;  %v913_v55 = vadd.f32 %v7620_v23, %v689_v25 }
 0x12a   :  { %v1813_v41 = vadd.f32 %v1749_v44, %v1621_v28  ;;  %v1877_v16 = vmul.f32 %v1749_v44, %v1749_v44  ;;  %v1206_v51 = vmul.f32 %v5924_v31, %v5924_v31  ;;  %v914_v60 = vadd.f32 %v7620_v23, %v690_v53  ;;  %v504_v28 = vpop.f32.mrf.mxu2 }
 0x12b   :  { %v5926_v18 = vpop.eup %5925  ;;  %v1940_v12 = vmul.f32 %v1876_v4, %v1876_v4  ;;  %v982_v2 = vadd.f32 %v7417_v22, %v913_v55  ;;  %v883_v63 = vadd.f32 %v7412_v17, %v659_v54  ;;  %v660_v39 = vmul.f32 0.00390625, %v569_v20  ;;  %5639 = vmatmul.msk.f32.gmra.mxu2 %vm228_vm0, %v6614_v34 }
 0x12c   :  { %v1941_v58 = vmul.f32 %v1877_v16, %v1877_v16  ;;  %v1270_v30 = vmul.f32 %v1206_v51, %v1206_v51  ;;  %v1654_v14 = vmul.f32 %v5926_v18, %v5926_v18  ;;  %v983_v9 = vadd.f32 %v7419_v26, %v914_v60  ;;  %5687 = vmatmul.msk.f32.gmra.mxu3 %vm228_vm0, %v6614_v34 }
 0x12d   :  { %v5928_v19 = vpop.eup %5927  ;;  %v2004_v36 = vadd.f32 %v1940_v12, %v1812_v62  ;;  %v1046_v37 = vmin.f32 %v982_v2, 0.0  ;;  %v952_v21 = vadd.f32 %v7417_v22, %v883_v63  ;;  %v884_v40 = vadd.f32 %v7412_v17, %v660_v39  ;;  %v617_v62 = vpop.f32.mrf.mxu3  ;;  %v6615_v39 = vld [vmem:[%s8405_s0 + $0x70] sm:$0xff] }
 0x12e   :  { %v2005_v45 = vadd.f32 %v1941_v58, %v1813_v41  ;;  %v1334_v27 = vadd.f32 %v5924_v31, %v1270_v30  ;;  %v1718_v24 = vmul.f32 %v1654_v14, %v1654_v14  ;;  %v1207_v47 = vmul.f32 %v5928_v19, %v5928_v19 }
 0x12f   :  { %v5930_v29 = vpop.eup %5929  ;;  %2068 = vst [vmem:[#allocation2 + $0x140] sm:$0xff] %v2004_v36  ;;  %v1047_v6 = vmin.f32 %v983_v9, 0.0  ;;  %v1152_v50 = vmul.f32 1.442695, %v1046_v37  ;;  %v1430_v25 = vmul.f32 16.0, %v1046_v37  ;;  %v1016_v49 = vmin.f32 %v952_v21, 0.0  ;;  %v459_v37 = vpop.f32.mrf.mxu0 }
 0x130   :  { %2069 = vst [vmem:[#allocation2 + $0x148] sm:$0xff] %v2005_v45  ;;  %v1590_v44 = vadd.f32 %v5926_v18, %v1334_v27  ;;  %v1846_v53 = vmul.f32 %v1718_v24, %v1718_v24  ;;  %v1271_v54 = vmul.f32 %v1207_v47, %v1207_v47  ;;  %v1655_v59 = vmul.f32 %v5930_v29, %v5930_v29  ;;  %v7644_v18 = vpop.permute.xlu1 %823  ;;  %v106_v9 = vld [vmem:[%s8407_s2 + $0x40] sm:$0xff] }
 0x131   :  { %5931 = vpow2.f32 %v1152_v50  ;;  %v1154_v32 = vmul.f32 1.442695, %v1047_v6  ;;  %v1431_v61 = vmul.f32 16.0, %v1047_v6  ;;  %v1536_v31 = vmul.f32 1.442695, %v1430_v25  ;;  %5730 = vmatmul.msk.f32.gmra.mxu0 %vm228_vm0, %v106_v9  ;;  %5778 = vmatmul.msk.f32.gmra.mxu1 %vm228_vm0, %v106_v9 }
 0x132   :  { %v1782_v4 = vadd.f32 %v1718_v24, %v1590_v44  ;;  %v1910_v55 = vmul.f32 %v1846_v53, %v1846_v53  ;;  %v1335_v41 = vadd.f32 %v5928_v19, %v1271_v54  ;;  %v1719_v16 = vmul.f32 %v1655_v59, %v1655_v59  ;;  %v572_v24 = vpop.f32.mrf.mxu1  ;;  %v7663_v54 = vpop.f32.mrf.mxu2  ;;  %v201_v59 = vld [vmem:[%s8411_s6 + $0x30] sm:$0xff] }
 0x133   :  { %5933 = vpow2.f32 %v1154_v32  ;;  %v1538_v51 = vmul.f32 1.442695, %v1431_v61  ;;  %v1092_v60 = vmul.f32 1.442695, %v1016_v49  ;;  %v1400_v20 = vmul.f32 16.0, %v1016_v49  ;;  %5640 = vmatmul.msk.f32.gmra.mxu2 %vm228_vm0, %v6615_v39  ;;  %v209_v32 = vld [vmem:[%s8411_s6 + $0x70] sm:$0xff]  ;;  %4117 = vperm.xlu2 %5842, %v201_v59  }
 0x134   :  { %v1974_v12 = vadd.f32 %v1910_v55, %v1782_v4  ;;  %v1591_v2 = vadd.f32 %v5930_v29, %v1335_v41  ;;  %v1847_v63 = vmul.f32 %v1719_v16, %v1719_v16  ;;  %5935 = vpow2.f32 %v1536_v31  ;;  %5688 = vmatmul.msk.f32.gmra.mxu3 %vm228_vm0, %v6615_v39  ;;  %v214_v61 = vld [vmem:[%s8411_s6 + $0x98] sm:$0xff]  ;;  %4157 = vperm.xlu1 %5841, %v209_v32  }
 0x135   :  { %5937 = vpow2.f32 %v1538_v51  ;;  %v1476_v58 = vmul.f32 1.442695, %v1400_v20  ;;  %v953_v30 = vadd.f32 %v7419_v26, %v884_v40  ;;  %v691_v14 = vmul.f32 0.00390625, %v504_v28  ;;  %4182 = vperm.xlu0 %5840, %v214_v61  }
 0x136   :  { %2038 = vst [vmem:[#allocation2 + $0x50] sm:$0xff] %v1974_v12  ;;  %v1783_v34 = vadd.f32 %v1719_v16, %v1591_v2  ;;  %v1911_v19 = vmul.f32 %v1847_v63, %v1847_v63  ;;  %5939 = vpow2.f32 %v1092_v60  ;;  %v692_v36 = vmul.f32 0.00390625, %v617_v62  ;;  %v7678_v12 = vpop.f32.mrf.mxu3 }
 0x137   :  { %v5932_v21 = vpop.eup %5931  ;;  %5941 = vpow2.f32 %v1476_v58  ;;  %v1017_v45 = vmin.f32 %v953_v30, 0.0  ;;  %v915_v40 = vadd.f32 %v7644_v18, %v691_v14  ;;  %v661_v27 = vmul.f32 0.00390625, %v459_v37  ;;  %v6616_v14 = vld [vmem:[%s8405_s0 + $0x78] sm:$0xff] }
 0x138   :  { %v1975_v47 = vadd.f32 %v1911_v19, %v1783_v34  ;;  %v1238_v29 = vmul.f32 %v5932_v21, %v5932_v21  ;;  %v916_v6 = vadd.f32 %v7644_v18, %v692_v36  ;;  %v662_v50 = vmul.f32 0.00390625, %v572_v24 }
 0x139   :  { %v5934_v25 = vpop.eup %5933  ;;  %v1094_v49 = vmul.f32 1.442695, %v1017_v45  ;;  %v1401_v28 = vmul.f32 16.0, %v1017_v45  ;;  %v984_v44 = vadd.f32 %v7417_v22, %v915_v40  ;;  %v7661_v53 = vadd.f32 %v7366_v0, %v661_v27 }
 0x13a   :  { %v5936_v31 = vpop.eup %5935  ;;  %2039 = vst [vmem:[#allocation2 + $0x58] sm:$0xff] %v1975_v47  ;;  %v1239_v62 = vmul.f32 %v5934_v25, %v5934_v25  ;;  %v1302_v4 = vmul.f32 %v1238_v29, %v1238_v29  ;;  %v985_v55 = vadd.f32 %v7419_v26, %v916_v6  ;;  %v7676_v41 = vadd.f32 %v7366_v0, %v662_v50 }
 0x13b   :  { %v5938_v16 = vpop.eup %5937  ;;  %v1686_v51 = vmul.f32 %v5936_v31, %v5936_v31  ;;  %5943 = vpow2.f32 %v1094_v49  ;;  %v1478_v60 = vmul.f32 1.442695, %v1401_v28  ;;  %v1048_v20 = vmin.f32 %v984_v44, 0.0  ;;  %5641 = vmatmul.msk.f32.gmra.mxu2 %vm228_vm0, %v6616_v14 }
 0x13c   :  { %v5940_v2 = vpop.eup %5939  ;;  %v1303_v63 = vmul.f32 %v1239_v62, %v1239_v62  ;;  %v1366_v39 = vadd.f32 %v5932_v21, %v1302_v4  ;;  %v1687_v58 = vmul.f32 %v5938_v16, %v5938_v16  ;;  %v1049_v30 = vmin.f32 %v985_v55, 0.0  ;;  %5689 = vmatmul.msk.f32.gmra.mxu3 %vm228_vm0, %v6616_v14 }
 0x13d   :  { %v5942_v9 = vpop.eup %5941  ;;  %v1750_v34 = vmul.f32 %v1686_v51, %v1686_v51  ;;  %v1208_v19 = vmul.f32 %v5940_v2, %v5940_v2  ;;  %5945 = vpow2.f32 %v1478_v60  ;;  %v1156_v36 = vmul.f32 1.442695, %v1048_v20 }
 0x13e   :  { %v1367_v37 = vadd.f32 %v5934_v25, %v1303_v63  ;;  %v1622_v45 = vadd.f32 %v5936_v31, %v1366_v39  ;;  %v1751_v40 = vmul.f32 %v1687_v58, %v1687_v58  ;;  %v1656_v27 = vmul.f32 %v5942_v9, %v5942_v9  ;;  %v7685_v39 = vpop.f32.mrf.mxu2 }
 0x13f   :  { %v1878_v24 = vmul.f32 %v1750_v34, %v1750_v34  ;;  %v1272_v21 = vmul.f32 %v1208_v19, %v1208_v19  ;;  %5947 = vpow2.f32 %v1156_v36  ;;  %v1158_v47 = vmul.f32 1.442695, %v1049_v30 }
 0x140   :  { %v1623_v29 = vadd.f32 %v5938_v16, %v1367_v37  ;;  %v1814_v6 = vadd.f32 %v1750_v34, %v1622_v45  ;;  %v1879_v50 = vmul.f32 %v1751_v40, %v1751_v40  ;;  %v1720_v49 = vmul.f32 %v1656_v27, %v1656_v27 }
 0x141   :  { %v5944_v28 = vpop.eup %5943  ;;  %v1942_v44 = vmul.f32 %v1878_v24, %v1878_v24  ;;  %v1336_v59 = vadd.f32 %v5940_v2, %v1272_v21  ;;  %5949 = vpow2.f32 %v1158_v47  ;;  %v1432_v32 = vmul.f32 16.0, %v1048_v20  ;;  %v6617_v2 = vld [vmem:[%s8405_s0 + $0x80] sm:$0xff] }
 0x142   :  { %v1815_v61 = vadd.f32 %v1751_v40, %v1623_v29  ;;  %v1943_v25 = vmul.f32 %v1879_v50, %v1879_v50  ;;  %v1848_v31 = vmul.f32 %v1720_v49, %v1720_v49  ;;  %v1209_v62 = vmul.f32 %v5944_v28, %v5944_v28 }
 0x143   :  { %v5946_v4 = vpop.eup %5945  ;;  %v2006_v55 = vadd.f32 %v1942_v44, %v1814_v6  ;;  %v1592_v51 = vadd.f32 %v5942_v9, %v1336_v59  ;;  %v1433_v60 = vmul.f32 16.0, %v1049_v30  ;;  %v1540_v63 = vmul.f32 1.442695, %v1432_v32  ;;  %5642 = vmatmul.msk.f32.gmra.mxu2 %vm228_vm0, %v6617_v2  ;;  %v7693_v9 = vpop.f32.mrf.mxu3 }
 0x144   :  { %v2007_v16 = vadd.f32 %v1943_v25, %v1815_v61  ;;  %v1912_v58 = vmul.f32 %v1848_v31, %v1848_v31  ;;  %v1273_v14 = vmul.f32 %v1209_v62, %v1209_v62  ;;  %v1657_v34 = vmul.f32 %v5946_v4, %v5946_v4  ;;  %5690 = vmatmul.msk.f32.gmra.mxu3 %vm228_vm0, %v6617_v2  ;;  %v7700_v62 = vpop.permute.xlu2 %828 }
 0x145   :  { %v5948_v20 = vpop.eup %5947  ;;  %2070 = vst [vmem:[#allocation2 + $0x150] sm:$0xff] %v2006_v55  ;;  %v1784_v19 = vadd.f32 %v1720_v49, %v1592_v51  ;;  %5951 = vpow2.f32 %v1540_v63  ;;  %v1542_v36 = vmul.f32 1.442695, %v1433_v60  ;;  %v954_v30 = vadd.f32 %v7417_v22, %v7661_v53 }
 0x146   :  { %2071 = vst [vmem:[#allocation2 + $0x158] sm:$0xff] %v2007_v16  ;;  %v1337_v37 = vadd.f32 %v5944_v28, %v1273_v14  ;;  %v1721_v45 = vmul.f32 %v1657_v34, %v1657_v34  ;;  %v1240_v40 = vmul.f32 %v5948_v20, %v5948_v20  ;;  %v955_v27 = vadd.f32 %v7419_v26, %v7676_v41 }
 0x147   :  { %v5950_v24 = vpop.eup %5949  ;;  %v1976_v21 = vadd.f32 %v1912_v58, %v1784_v19  ;;  %5953 = vpow2.f32 %v1542_v36  ;;  %v1018_v47 = vmin.f32 %v954_v30, 0.0  ;;  %v693_v29 = vmul.f32 0.00390625, %v7663_v54  ;;  %v107_v54 = vld [vmem:[%s8407_s2 + $0x48] sm:$0xff]  ;;  %v7709_v19 = vpop.f32.mrf.mxu2 }
 0x148   :  { %v1593_v6 = vadd.f32 %v5946_v4, %v1337_v37  ;;  %v1849_v50 = vmul.f32 %v1721_v45, %v1721_v45  ;;  %v1241_v53 = vmul.f32 %v5950_v24, %v5950_v24  ;;  %v1304_v49 = vmul.f32 %v1240_v40, %v1240_v40  ;;  %5731 = vmatmul.msk.f32.gmra.mxu0 %vm228_vm0, %v107_v54  ;;  %v6618_v36 = vld [vmem:[%s8405_s0 + $0x88] sm:$0xff]  ;;  %v462_v40 = vpop.f32.mrf.mxu0 }
 0x149   :  { %2040 = vst [vmem:[#allocation2 + $0x60] sm:$0xff] %v1976_v21  ;;  %v1096_v44 = vmul.f32 1.442695, %v1018_v47  ;;  %v1402_v28 = vmul.f32 16.0, %v1018_v47  ;;  %v1019_v59 = vmin.f32 %v955_v27, 0.0  ;;  %v694_v32 = vmul.f32 0.00390625, %v7678_v12  ;;  %5779 = vmatmul.msk.f32.gmra.mxu1 %vm228_vm0, %v107_v54  ;;  %v575_v47 = vpop.f32.mrf.mxu1 }
 0x14a   :  { %v1785_v61 = vadd.f32 %v1721_v45, %v1593_v6  ;;  %v1913_v41 = vmul.f32 %v1849_v50, %v1849_v50  ;;  %v1305_v25 = vmul.f32 %v1241_v53, %v1241_v53  ;;  %v1368_v31 = vadd.f32 %v5948_v20, %v1304_v49  ;;  %v204_v6 = vld [vmem:[%s8411_s6 + $0x48] sm:$0xff]  ;;  %v217_v53 = vld [vmem:[%s8411_s6 + $0xb0] sm:$0xff] }
 0x14b   :  { %v5952_v4 = vpop.eup %5951  ;;  %5955 = vpow2.f32 %v1096_v44  ;;  %v1480_v55 = vmul.f32 1.442695, %v1402_v28  ;;  %v1098_v51 = vmul.f32 1.442695, %v1019_v59  ;;  %v1403_v60 = vmul.f32 16.0, %v1019_v59  ;;  %5643 = vmatmul.msk.f32.gmra.mxu2 %vm228_vm0, %v6618_v36  ;;  %v212_v50 = vld [vmem:[%s8411_s6 + $0x88] sm:$0xff]  ;;  %4132 = vperm.xlu2 %5842, %v204_v6  }
 0x14c   :  { %v1977_v12 = vadd.f32 %v1913_v41, %v1785_v61  ;;  %v1369_v63 = vadd.f32 %v5950_v24, %v1305_v25  ;;  %v1624_v16 = vadd.f32 %v5952_v4, %v1368_v31  ;;  %v1688_v58 = vmul.f32 %v5952_v4, %v5952_v4  ;;  %4172 = vperm.xlu1 %5841, %v212_v50  }
 0x14d   :  { %v5954_v14 = vpop.eup %5953  ;;  %5957 = vpow2.f32 %v1480_v55  ;;  %v1482_v34 = vmul.f32 1.442695, %v1403_v60  ;;  %v917_v2 = vadd.f32 %v7700_v62, %v693_v29  ;;  %v918_v20 = vadd.f32 %v7700_v62, %v694_v32  ;;  %v7717_v29 = vpop.f32.mrf.mxu3  ;;  %5691 = vmatmul.msk.f32.gmra.mxu3 %vm228_vm0, %v6618_v36  ;;  %4197 = vperm.xlu0 %5840, %v217_v53  }
 0x14e   :  { %2041 = vst [vmem:[#allocation2 + $0x68] sm:$0xff] %v1977_v12  ;;  %v1625_v30 = vadd.f32 %v5954_v14, %v1369_v63  ;;  %v1689_v37 = vmul.f32 %v5954_v14, %v5954_v14  ;;  %v1752_v45 = vmul.f32 %v1688_v58, %v1688_v58  ;;  %5959 = vpow2.f32 %v1098_v51 }
 0x14f   :  { %5961 = vpow2.f32 %v1482_v34  ;;  %v986_v27 = vadd.f32 %v7417_v22, %v917_v2  ;;  %v987_v24 = vadd.f32 %v7419_v26, %v918_v20  ;;  %v663_v21 = vmul.f32 0.00390625, %v462_v40 }
 0x150   :  { %v1753_v49 = vmul.f32 %v1689_v37, %v1689_v37  ;;  %v1816_v44 = vadd.f32 %v1752_v45, %v1624_v16  ;;  %v1880_v28 = vmul.f32 %v1752_v45, %v1752_v45  ;;  %v664_v59 = vmul.f32 0.00390625, %v575_v47 }
 0x151   :  { %v5956_v32 = vpop.eup %5955  ;;  %v1050_v61 = vmin.f32 %v986_v27, 0.0  ;;  %v1051_v41 = vmin.f32 %v987_v24, 0.0  ;;  %v887_v25 = vadd.f32 %v7389_v8, %v663_v21  ;;  %v695_v31 = vmul.f32 0.00390625, %v7685_v39 }
 0x152   :  { %v1817_v54 = vadd.f32 %v1753_v49, %v1625_v30  ;;  %v1881_v4 = vmul.f32 %v1753_v49, %v1753_v49  ;;  %v1944_v55 = vmul.f32 %v1880_v28, %v1880_v28  ;;  %v1210_v51 = vmul.f32 %v5956_v32, %v5956_v32 }
 0x153   :  { %v5958_v60 = vpop.eup %5957  ;;  %v1160_v12 = vmul.f32 1.442695, %v1050_v61  ;;  %v1162_v63 = vmul.f32 1.442695, %v1051_v41  ;;  %v1434_v16 = vmul.f32 16.0, %v1050_v61  ;;  %v1435_v58 = vmul.f32 16.0, %v1051_v41 }
 0x154   :  { %v5960_v14 = vpop.eup %5959  ;;  %v1945_v34 = vmul.f32 %v1881_v4, %v1881_v4  ;;  %v2008_v2 = vadd.f32 %v1944_v55, %v1816_v44  ;;  %v1274_v20 = vmul.f32 %v1210_v51, %v1210_v51  ;;  %v1658_v36 = vmul.f32 %v5958_v60, %v5958_v60 }
 0x155   :  { %v5962_v37 = vpop.eup %5961  ;;  %v1211_v45 = vmul.f32 %v5960_v14, %v5960_v14  ;;  %5963 = vpow2.f32 %v1160_v12  ;;  %v1544_v40 = vmul.f32 1.442695, %v1434_v16  ;;  %v1546_v39 = vmul.f32 1.442695, %v1435_v58 }
 0x156   :  { %v2009_v27 = vadd.f32 %v1945_v34, %v1817_v54  ;;  %2072 = vst [vmem:[#allocation2 + $0x160] sm:$0xff] %v2008_v2  ;;  %v1338_v30 = vadd.f32 %v5956_v32, %v1274_v20  ;;  %v1722_v24 = vmul.f32 %v1658_v36, %v1658_v36  ;;  %v1659_v21 = vmul.f32 %v5962_v37, %v5962_v37  ;;  %v7734_v54 = vpop.permute.xlu0 %833  ;;  %v108_v32 = vld [vmem:[%s8407_s2 + $0x50] sm:$0xff] }
 0x157   :  { %v1275_v47 = vmul.f32 %v1211_v45, %v1211_v45  ;;  %5965 = vpow2.f32 %v1162_v63  ;;  %v956_v6 = vadd.f32 %v7417_v22, %v887_v25  ;;  %v888_v50 = vadd.f32 %v7389_v8, %v664_v59  ;;  %5732 = vmatmul.msk.f32.gmra.mxu0 %vm228_vm0, %v108_v32  ;;  %5780 = vmatmul.msk.f32.gmra.mxu1 %vm228_vm0, %v108_v32 }
 0x158   :  { %2073 = vst [vmem:[#allocation2 + $0x168] sm:$0xff] %v2009_v27  ;;  %v1594_v53 = vadd.f32 %v5958_v60, %v1338_v30  ;;  %v1850_v49 = vmul.f32 %v1722_v24, %v1722_v24  ;;  %v1723_v44 = vmul.f32 %v1659_v21, %v1659_v21  ;;  %5967 = vpow2.f32 %v1544_v40  ;;  %v7750_v21 = vpop.f32.mrf.mxu3 }
 0x159   :  { %v1339_v28 = vadd.f32 %v5960_v14, %v1275_v47  ;;  %5969 = vpow2.f32 %v1546_v39  ;;  %v1020_v61 = vmin.f32 %v956_v6, 0.0  ;;  %v957_v41 = vadd.f32 %v7419_v26, %v888_v50  ;;  %v6619_v39 = vld [vmem:[%s8405_s0 + $0x90] sm:$0xff] }
 0x15a   :  { %v1786_v4 = vadd.f32 %v1722_v24, %v1594_v53  ;;  %v1914_v25 = vmul.f32 %v1850_v49, %v1850_v49  ;;  %v1851_v55 = vmul.f32 %v1723_v44, %v1723_v44  ;;  %v696_v59 = vmul.f32 0.00390625, %v7693_v9  ;;  %v7743_v9 = vpop.f32.mrf.mxu2  ;;  %5644 = vmatmul.msk.f32.gmra.mxu2 %vm228_vm0, %v6619_v39  ;;  %5692 = vmatmul.msk.f32.gmra.mxu3 %vm228_vm0, %v6619_v39 }
 0x15b   :  { %v5964_v51 = vpop.eup %5963  ;;  %v1595_v60 = vadd.f32 %v5962_v37, %v1339_v28  ;;  %v1100_v12 = vmul.f32 1.442695, %v1020_v61  ;;  %v1404_v63 = vmul.f32 16.0, %v1020_v61  ;;  %v1021_v16 = vmin.f32 %v957_v41, 0.0 }
 0x15c   :  { %v1978_v58 = vadd.f32 %v1914_v25, %v1786_v4  ;;  %v1915_v14 = vmul.f32 %v1851_v55, %v1851_v55  ;;  %v1242_v34 = vmul.f32 %v5964_v51, %v5964_v51  ;;  %v919_v2 = vadd.f32 %v7734_v54, %v695_v31  ;;  %v465_v25 = vpop.f32.mrf.mxu0 }
 0x15d   :  { %v5966_v20 = vpop.eup %5965  ;;  %v1787_v36 = vadd.f32 %v1723_v44, %v1595_v60  ;;  %5971 = vpow2.f32 %v1100_v12  ;;  %v1484_v45 = vmul.f32 1.442695, %v1404_v63  ;;  %v1102_v40 = vmul.f32 1.442695, %v1021_v16 }
 0x15e   :  { %v5968_v37 = vpop.eup %5967  ;;  %2042 = vst [vmem:[#allocation2 + $0x70] sm:$0xff] %v1978_v58  ;;  %v1243_v27 = vmul.f32 %v5966_v20, %v5966_v20  ;;  %v1306_v30 = vmul.f32 %v1242_v34, %v1242_v34  ;;  %v1405_v24 = vmul.f32 16.0, %v1021_v16  ;;  %v920_v31 = vadd.f32 %v7734_v54, %v696_v59 }
 0x15f   :  { %v5970_v47 = vpop.eup %5969  ;;  %v1979_v6 = vadd.f32 %v1915_v14, %v1787_v36  ;;  %v1690_v50 = vmul.f32 %v5968_v37, %v5968_v37  ;;  %5973 = vpow2.f32 %v1484_v45  ;;  %v988_v53 = vadd.f32 %v7417_v22, %v919_v2  ;;  %v207_v45 = vld [vmem:[%s8411_s6 + $0x60] sm:$0xff] }
 0x160   :  { %v1307_v49 = vmul.f32 %v1243_v27, %v1243_v27  ;;  %v1370_v44 = vadd.f32 %v5964_v51, %v1306_v30  ;;  %v1691_v28 = vmul.f32 %v5970_v47, %v5970_v47  ;;  %5975 = vpow2.f32 %v1102_v40  ;;  %v220_v40 = vld [vmem:[%s8411_s6 + $0xc8] sm:$0xff]  ;;  %4147 = vperm.xlu2 %5842, %v207_v45  }
 0x161   :  { %2043 = vst [vmem:[#allocation2 + $0x78] sm:$0xff] %v1979_v6  ;;  %v1754_v61 = vmul.f32 %v1690_v50, %v1690_v50  ;;  %v1486_v41 = vmul.f32 1.442695, %v1405_v24  ;;  %v989_v32 = vadd.f32 %v7419_v26, %v920_v31  ;;  %v1052_v4 = vmin.f32 %v988_v53, 0.0  ;;  %4212 = vperm.xlu0 %5840, %v220_v40  }
 0x162   :  { %v1371_v55 = vadd.f32 %v5966_v20, %v1307_v49  ;;  %v1626_v59 = vadd.f32 %v5968_v37, %v1370_v44  ;;  %v1755_v60 = vmul.f32 %v1691_v28, %v1691_v28  ;;  %v665_v12 = vmul.f32 0.00390625, %v465_v25  ;;  %v215_v20 = vld [vmem:[%s8411_s6 + $0xa0] sm:$0xff]  ;;  %v578_v25 = vpop.f32.mrf.mxu1 }
 0x163   :  { %v5972_v63 = vpop.eup %5971  ;;  %v1882_v16 = vmul.f32 %v1754_v61, %v1754_v61  ;;  %5977 = vpow2.f32 %v1486_v41  ;;  %v1053_v58 = vmin.f32 %v989_v32, 0.0  ;;  %v1164_v14 = vmul.f32 1.442695, %v1052_v4  ;;  %4187 = vperm.xlu1 %5841, %v215_v20  }
 0x164   :  { %v1627_v34 = vadd.f32 %v5970_v47, %v1371_v55  ;;  %v1818_v51 = vadd.f32 %v1754_v61, %v1626_v59  ;;  %v1883_v2 = vmul.f32 %v1755_v60, %v1755_v60  ;;  %v1212_v36 = vmul.f32 %v5972_v63, %v5972_v63 }
 0x165   :  { %v5974_v39 = vpop.eup %5973  ;;  %v1946_v37 = vmul.f32 %v1882_v16, %v1882_v16  ;;  %5979 = vpow2.f32 %v1164_v14  ;;  %v1166_v27 = vmul.f32 1.442695, %v1053_v58  ;;  %v1436_v30 = vmul.f32 16.0, %v1052_v4 }
 0x166   :  { %v5976_v24 = vpop.eup %5975  ;;  %v1819_v31 = vadd.f32 %v1755_v60, %v1627_v34  ;;  %v1947_v47 = vmul.f32 %v1883_v2, %v1883_v2  ;;  %v1276_v6 = vmul.f32 %v1212_v36, %v1212_v36  ;;  %v1660_v50 = vmul.f32 %v5974_v39, %v5974_v39 }
 0x167   :  { %v2010_v53 = vadd.f32 %v1946_v37, %v1818_v51  ;;  %v1213_v49 = vmul.f32 %v5976_v24, %v5976_v24  ;;  %5981 = vpow2.f32 %v1166_v27  ;;  %v1437_v44 = vmul.f32 16.0, %v1053_v58 }
 0x168   :  { %v2011_v28 = vadd.f32 %v1947_v47, %v1819_v31  ;;  %v1340_v61 = vadd.f32 %v5972_v63, %v1276_v6  ;;  %v1724_v41 = vmul.f32 %v1660_v50, %v1660_v50  ;;  %v1548_v32 = vmul.f32 1.442695, %v1436_v30 }
 0x169   :  { %v5978_v55 = vpop.eup %5977  ;;  %2074 = vst [vmem:[#allocation2 + $0x170] sm:$0xff] %v2010_v53  ;;  %v1277_v4 = vmul.f32 %v1213_v49, %v1213_v49  ;;  %v1550_v59 = vmul.f32 1.442695, %v1437_v44  ;;  %v889_v16 = vadd.f32 %v7438_v43, %v665_v12  ;;  %v666_v60 = vmul.f32 0.00390625, %v578_v25 }
 0x16a   :  { %2075 = vst [vmem:[#allocation2 + $0x178] sm:$0xff] %v2011_v28  ;;  %v1596_v14 = vadd.f32 %v5974_v39, %v1340_v61  ;;  %v1852_v34 = vmul.f32 %v1724_v41, %v1724_v41  ;;  %v1661_v2 = vmul.f32 %v5978_v55, %v5978_v55  ;;  %5983 = vpow2.f32 %v1548_v32 }
 0x16b   :  { %v5980_v51 = vpop.eup %5979  ;;  %v1341_v36 = vadd.f32 %v5976_v24, %v1277_v4  ;;  %5985 = vpow2.f32 %v1550_v59  ;;  %v958_v63 = vadd.f32 %v7417_v22, %v889_v16  ;;  %v890_v58 = vadd.f32 %v7438_v43, %v666_v60  ;;  %v7770_v4 = vpop.permute.xlu1 %838 }
 0x16c   :  { %v1788_v45 = vadd.f32 %v1724_v41, %v1596_v14  ;;  %v1916_v20 = vmul.f32 %v1852_v34, %v1852_v34  ;;  %v1725_v40 = vmul.f32 %v1661_v2, %v1661_v2  ;;  %v1244_v37 = vmul.f32 %v5980_v51, %v5980_v51  ;;  %v109_v14 = vld [vmem:[%s8407_s2 + $0x58] sm:$0xff] }
 0x16d   :  { %v5982_v27 = vpop.eup %5981  ;;  %v1597_v30 = vadd.f32 %v5978_v55, %v1341_v36  ;;  %v1022_v12 = vmin.f32 %v958_v63, 0.0  ;;  %v959_v31 = vadd.f32 %v7419_v26, %v890_v58  ;;  %v697_v39 = vmul.f32 0.00390625, %v7709_v19  ;;  %5733 = vmatmul.msk.f32.gmra.mxu0 %vm228_vm0, %v109_v14  ;;  %5781 = vmatmul.msk.f32.gmra.mxu1 %vm228_vm0, %v109_v14 }
 0x16e   :  { %v1980_v47 = vadd.f32 %v1916_v20, %v1788_v45  ;;  %v1853_v6 = vmul.f32 %v1725_v40, %v1725_v40  ;;  %v1245_v50 = vmul.f32 %v5982_v27, %v5982_v27  ;;  %v1308_v24 = vmul.f32 %v1244_v37, %v1244_v37  ;;  %v468_v37 = vpop.f32.mrf.mxu0 }
 0x16f   :  { %v1789_v53 = vadd.f32 %v1725_v40, %v1597_v30  ;;  %v1104_v49 = vmul.f32 1.442695, %v1022_v12  ;;  %v1406_v44 = vmul.f32 16.0, %v1022_v12  ;;  %v1023_v28 = vmin.f32 %v959_v31, 0.0 }
 0x170   :  { %v5984_v61 = vpop.eup %5983  ;;  %2044 = vst [vmem:[#allocation2 + $0x80] sm:$0xff] %v1980_v47  ;;  %v1917_v41 = vmul.f32 %v1853_v6, %v1853_v6  ;;  %v1309_v32 = vmul.f32 %v1245_v50, %v1245_v50  ;;  %v1372_v25 = vadd.f32 %v5980_v51, %v1308_v24  ;;  %v698_v55 = vmul.f32 0.00390625, %v7717_v29  ;;  %v7780_v47 = vpop.f32.mrf.mxu2  ;;  %v218_v50 = vld [vmem:[%s8411_s6 + $0xb8] sm:$0xff]  ;;  %v223_v24 = vld [vmem:[%s8411_s6 + $0xe0] sm:$0xff] }
 0x171   :  { %v5986_v59 = vpop.eup %5985  ;;  %v1692_v16 = vmul.f32 %v5984_v61, %v5984_v61  ;;  %5987 = vpow2.f32 %v1104_v49  ;;  %v1488_v19 = vmul.f32 1.442695, %v1406_v44  ;;  %v1106_v60 = vmul.f32 1.442695, %v1023_v28  ;;  %v7782_v6 = vpop.f32.mrf.mxu3  ;;  %4202 = vperm.xlu1 %5841, %v218_v50   ;;  %4227 = vperm.xlu0 %5840, %v223_v24  }
 0x172   :  { %v1981_v34 = vadd.f32 %v1917_v41, %v1789_v53  ;;  %v1373_v2 = vadd.f32 %v5982_v27, %v1309_v32  ;;  %v1628_v36 = vadd.f32 %v5984_v61, %v1372_v25  ;;  %v1693_v63 = vmul.f32 %v5986_v59, %v5986_v59  ;;  %v6620_v53 = vld [vmem:[%s8405_s0 + $0x98] sm:$0xff]  ;;  %v581_v41 = vpop.f32.mrf.mxu1 }
 0x173   :  { %v1756_v51 = vmul.f32 %v1692_v16, %v1692_v16  ;;  %5989 = vpow2.f32 %v1488_v19  ;;  %v1407_v29 = vmul.f32 16.0, %v1023_v28  ;;  %v921_v58 = vadd.f32 %v7770_v4, %v697_v39  ;;  %v210_v39 = vld [vmem:[%s8411_s6 + $0x78] sm:$0xff]  ;;  %5645 = vmatmul.msk.f32.gmra.mxu2 %vm228_vm0, %v6620_v53  ;;  %5693 = vmatmul.msk.f32.gmra.mxu3 %vm228_vm0, %v6620_v53 }
 0x174   :  { %2045 = vst [vmem:[#allocation2 + $0x88] sm:$0xff] %v1981_v34  ;;  %v1629_v45 = vadd.f32 %v5986_v59, %v1373_v2  ;;  %v1757_v20 = vmul.f32 %v1693_v63, %v1693_v63  ;;  %5991 = vpow2.f32 %v1106_v60  ;;  %v922_v40 = vadd.f32 %v7770_v4, %v698_v55  ;;  %4162 = vperm.xlu2 %5842, %v210_v39  }
 0x175   :  { %v1820_v30 = vadd.f32 %v1756_v51, %v1628_v36  ;;  %v1884_v27 = vmul.f32 %v1756_v51, %v1756_v51  ;;  %v1490_v12 = vmul.f32 1.442695, %v1407_v29  ;;  %v990_v31 = vadd.f32 %v7417_v22, %v921_v58 }
 0x176   :  { %v1821_v49 = vadd.f32 %v1757_v20, %v1629_v45  ;;  %v1885_v44 = vmul.f32 %v1757_v20, %v1757_v20  ;;  %v991_v28 = vadd.f32 %v7419_v26, %v922_v40  ;;  %v667_v61 = vmul.f32 0.00390625, %v468_v37 }
 0x177   :  { %v5988_v32 = vpop.eup %5987  ;;  %v1948_v25 = vmul.f32 %v1884_v27, %v1884_v27  ;;  %5993 = vpow2.f32 %v1490_v12  ;;  %v1054_v55 = vmin.f32 %v990_v31, 0.0  ;;  %v668_v59 = vmul.f32 0.00390625, %v581_v41 }
 0x178   :  { %v1949_v16 = vmul.f32 %v1885_v44, %v1885_v44  ;;  %v1214_v19 = vmul.f32 %v5988_v32, %v5988_v32  ;;  %v1055_v60 = vmin.f32 %v991_v28, 0.0  ;;  %v891_v14 = vadd.f32 %v7385_v7, %v667_v61 }
 0x179   :  { %v5990_v34 = vpop.eup %5989  ;;  %v2012_v2 = vadd.f32 %v1948_v25, %v1820_v30  ;;  %v1168_v36 = vmul.f32 1.442695, %v1054_v55  ;;  %v1438_v63 = vmul.f32 16.0, %v1054_v55  ;;  %v892_v51 = vadd.f32 %v7385_v7, %v668_v59 }
 0x17a   :  { %v5992_v29 = vpop.eup %5991  ;;  %v2013_v58 = vadd.f32 %v1949_v16, %v1821_v49  ;;  %v1278_v45 = vmul.f32 %v1214_v19, %v1214_v19  ;;  %v1662_v20 = vmul.f32 %v5990_v34, %v5990_v34  ;;  %v1170_v40 = vmul.f32 1.442695, %v1055_v60 }
 0x17b   :  { %2076 = vst [vmem:[#allocation2 + $0x180] sm:$0xff] %v2012_v2  ;;  %v1215_v37 = vmul.f32 %v5992_v29, %v5992_v29  ;;  %5995 = vpow2.f32 %v1168_v36  ;;  %v1439_v27 = vmul.f32 16.0, %v1055_v60  ;;  %v1552_v12 = vmul.f32 1.442695, %v1438_v63 }
 0x17c   :  { %2077 = vst [vmem:[#allocation2 + $0x188] sm:$0xff] %v2013_v58  ;;  %v1342_v31 = vadd.f32 %v5988_v32, %v1278_v45  ;;  %v1726_v39 = vmul.f32 %v1662_v20, %v1662_v20  ;;  %5997 = vpow2.f32 %v1170_v40  ;;  %v960_v30 = vadd.f32 %v7417_v22, %v891_v14  ;;  %v7804_v40 = vpop.permute.xlu2 %843 }
 0x17d   :  { %v5994_v50 = vpop.eup %5993  ;;  %v1279_v24 = vmul.f32 %v1215_v37, %v1215_v37  ;;  %5999 = vpow2.f32 %v1552_v12  ;;  %v1554_v53 = vmul.f32 1.442695, %v1439_v27  ;;  %v961_v49 = vadd.f32 %v7419_v26, %v892_v51  ;;  %8426 = vst [vmem:[#allocation9_spill] sm:$0xff] %v7804_v40 }
 0x17e   :  { %v1598_v44 = vadd.f32 %v5990_v34, %v1342_v31  ;;  %v1854_v28 = vmul.f32 %v1726_v39, %v1726_v39  ;;  %v1663_v61 = vmul.f32 %v5994_v50, %v5994_v50  ;;  %v1024_v41 = vmin.f32 %v960_v30, 0.0 }
 0x17f   :  { %v1343_v25 = vadd.f32 %v5992_v29, %v1279_v24  ;;  %6001 = vpow2.f32 %v1554_v53  ;;  %v1025_v55 = vmin.f32 %v961_v49, 0.0  ;;  %v699_v59 = vmul.f32 0.00390625, %v7743_v9 }
 0x180   :  { %v1790_v32 = vadd.f32 %v1726_v39, %v1598_v44  ;;  %v1918_v16 = vmul.f32 %v1854_v28, %v1854_v28  ;;  %v1727_v19 = vmul.f32 %v1663_v61, %v1663_v61  ;;  %v1108_v60 = vmul.f32 1.442695, %v1024_v41  ;;  %v110_v44 = vld [vmem:[%s8407_s2 + $0x60] sm:$0xff] }
 0x181   :  { %v5996_v14 = vpop.eup %5995  ;;  %v1599_v2 = vadd.f32 %v5994_v50, %v1343_v25  ;;  %v1408_v36 = vmul.f32 16.0, %v1024_v41  ;;  %v1110_v63 = vmul.f32 1.442695, %v1025_v55  ;;  %v1409_v58 = vmul.f32 16.0, %v1025_v55  ;;  %5734 = vmatmul.msk.f32.gmra.mxu0 %vm228_vm0, %v110_v44  ;;  %5782 = vmatmul.msk.f32.gmra.mxu1 %vm228_vm0, %v110_v44 }
 0x182   :  { %v5998_v45 = vpop.eup %5997  ;;  %v1982_v51 = vadd.f32 %v1918_v16, %v1790_v32  ;;  %v1855_v34 = vmul.f32 %v1727_v19, %v1727_v19  ;;  %v1246_v20 = vmul.f32 %v5996_v14, %v5996_v14  ;;  %6003 = vpow2.f32 %v1108_v60 }
 0x183   :  { %v6000_v29 = vpop.eup %5999  ;;  %v1791_v37 = vadd.f32 %v1727_v19, %v1599_v2  ;;  %v1247_v27 = vmul.f32 %v5998_v45, %v5998_v45  ;;  %v1492_v9 = vmul.f32 1.442695, %v1408_v36  ;;  %6005 = vpow2.f32 %v1110_v63  ;;  %v471_v19 = vpop.f32.mrf.mxu0 }
 0x184   :  { %2046 = vst [vmem:[#allocation2 + $0x90] sm:$0xff] %v1982_v51  ;;  %v1919_v12 = vmul.f32 %v1855_v34, %v1855_v34  ;;  %v1310_v31 = vmul.f32 %v1246_v20, %v1246_v20  ;;  %v1694_v39 = vmul.f32 %v6000_v29, %v6000_v29  ;;  %v1494_v30 = vmul.f32 1.442695, %v1409_v58  ;;  %v7816_v34 = vpop.f32.mrf.mxu2  ;;  %v7818_v20 = vpop.f32.mrf.mxu3 }
 0x185   :  { %v6002_v50 = vpop.eup %6001  ;;  %v1311_v24 = vmul.f32 %v1247_v27, %v1247_v27  ;;  %6007 = vpow2.f32 %v1492_v9  ;;  %v700_v53 = vmul.f32 0.00390625, %v7750_v21  ;;  %v923_v49 = vadd.f32 %v7804_v40, %v699_v59  ;;  %v226_v27 = vld [vmem:[%s8411_s6 + $0xf8] sm:$0xff]  ;;  %v6621_v9 = vld [vmem:[%s8405_s0 + $0xa0] sm:$0xff] }
 0x186   :  { %v1983_v28 = vadd.f32 %v1919_v12, %v1791_v37  ;;  %v1374_v61 = vadd.f32 %v5996_v14, %v1310_v31  ;;  %v1695_v41 = vmul.f32 %v6002_v50, %v6002_v50  ;;  %v1758_v25 = vmul.f32 %v1694_v39, %v1694_v39  ;;  %v213_v37 = vld [vmem:[%s8411_s6 + $0x90] sm:$0xff]  ;;  %5646 = vmatmul.msk.f32.gmra.mxu2 %vm228_vm0, %v6621_v9 }
 0x187   :  { %v1375_v55 = vadd.f32 %v5998_v45, %v1311_v24  ;;  %6009 = vpow2.f32 %v1494_v30  ;;  %v924_v32 = vadd.f32 %v7804_v40, %v700_v53  ;;  %v992_v16 = vadd.f32 %v7417_v22, %v923_v49  ;;  %5694 = vmatmul.msk.f32.gmra.mxu3 %vm228_vm0, %v6621_v9  ;;  %4177 = vperm.xlu2 %5842, %v213_v37  }
 0x188   :  { %v6004_v21 = vpop.eup %6003  ;;  %2047 = vst [vmem:[#allocation2 + $0x98] sm:$0xff] %v1983_v28  ;;  %v1630_v59 = vadd.f32 %v6000_v29, %v1374_v61  ;;  %v1759_v60 = vmul.f32 %v1695_v41, %v1695_v41  ;;  %v1886_v2 = vmul.f32 %v1758_v25, %v1758_v25  ;;  %v669_v36 = vmul.f32 0.00390625, %v471_v19  ;;  %v221_v29 = vld [vmem:[%s8411_s6 + $0xd0] sm:$0xff]  ;;  %4242 = vperm.xlu0 %5840, %v226_v27  }
 0x189   :  { %v6006_v14 = vpop.eup %6005  ;;  %v1631_v63 = vadd.f32 %v6002_v50, %v1375_v55  ;;  %v1216_v58 = vmul.f32 %v6004_v21, %v6004_v21  ;;  %v993_v51 = vadd.f32 %v7419_v26, %v924_v32  ;;  %v1056_v45 = vmin.f32 %v992_v16, 0.0  ;;  %4217 = vperm.xlu1 %5841, %v221_v29  }
 0x18a   :  { %v1822_v12 = vadd.f32 %v1758_v25, %v1630_v59  ;;  %v1887_v31 = vmul.f32 %v1759_v60, %v1759_v60  ;;  %v1950_v39 = vmul.f32 %v1886_v2, %v1886_v2  ;;  %v1217_v30 = vmul.f32 %v6006_v14, %v6006_v14 }
 0x18b   :  { %v6008_v50 = vpop.eup %6007  ;;  %v1823_v24 = vadd.f32 %v1759_v60, %v1631_v63  ;;  %v1280_v53 = vmul.f32 %v1216_v58, %v1216_v58  ;;  %v1057_v49 = vmin.f32 %v993_v51, 0.0  ;;  %v1172_v44 = vmul.f32 1.442695, %v1056_v45 }
 0x18c   :  { %v1951_v28 = vmul.f32 %v1887_v31, %v1887_v31  ;;  %v2014_v61 = vadd.f32 %v1950_v39, %v1822_v12  ;;  %v1664_v41 = vmul.f32 %v6008_v50, %v6008_v50  ;;  %v1281_v55 = vmul.f32 %v1217_v30, %v1217_v30  ;;  %v584_v31 = vpop.f32.mrf.mxu1 }
 0x18d   :  { %v6010_v32 = vpop.eup %6009  ;;  %v1344_v16 = vadd.f32 %v6004_v21, %v1280_v53  ;;  %6011 = vpow2.f32 %v1172_v44  ;;  %v1174_v19 = vmul.f32 1.442695, %v1057_v49  ;;  %v1440_v25 = vmul.f32 16.0, %v1056_v45 }
 0x18e   :  { %v2015_v59 = vadd.f32 %v1951_v28, %v1823_v24  ;;  %2078 = vst [vmem:[#allocation2 + $0x190] sm:$0xff] %v2014_v61  ;;  %v1728_v2 = vmul.f32 %v1664_v41, %v1664_v41  ;;  %v1345_v37 = vadd.f32 %v6006_v14, %v1281_v55  ;;  %v1665_v9 = vmul.f32 %v6010_v32, %v6010_v32  ;;  %v111_v61 = vld [vmem:[%s8407_s2 + $0x68] sm:$0xff] }
 0x18f   :  { %v1600_v60 = vadd.f32 %v6008_v50, %v1344_v16  ;;  %6013 = vpow2.f32 %v1174_v19  ;;  %v1441_v63 = vmul.f32 16.0, %v1057_v49  ;;  %v1556_v58 = vmul.f32 1.442695, %v1440_v25  ;;  %v7836_v50 = vpop.permute.xlu0 %848  ;;  %v474_v19 = vpop.f32.mrf.mxu0  ;;  %5735 = vmatmul.msk.f32.gmra.mxu0 %vm228_vm0, %v111_v61  ;;  %5783 = vmatmul.msk.f32.gmra.mxu1 %vm228_vm0, %v111_v61 }
 0x190   :  { %2079 = vst [vmem:[#allocation2 + $0x198] sm:$0xff] %v2015_v59  ;;  %v1856_v51 = vmul.f32 %v1728_v2, %v1728_v2  ;;  %v1601_v29 = vadd.f32 %v6010_v32, %v1345_v37  ;;  %v1729_v27 = vmul.f32 %v1665_v9, %v1665_v9  ;;  %v893_v12 = vadd.f32 %v7407_v15, %v669_v36 }
 0x191   :  { %v1792_v21 = vadd.f32 %v1728_v2, %v1600_v60  ;;  %6015 = vpow2.f32 %v1556_v58  ;;  %v1558_v39 = vmul.f32 1.442695, %v1441_v63  ;;  %v670_v45 = vmul.f32 0.00390625, %v584_v31  ;;  %8427 = vst [vmem:[#allocation10_spill] sm:$0xff] %v7836_v50  ;;  %v7851_v31 = vpop.f32.mrf.mxu2 }
 0x192   :  { %v1920_v30 = vmul.f32 %v1856_v51, %v1856_v51  ;;  %v1793_v24 = vadd.f32 %v1729_v27, %v1601_v29  ;;  %v1857_v53 = vmul.f32 %v1729_v27, %v1729_v27  ;;  %v962_v14 = vadd.f32 %v7417_v22, %v893_v12 }
 0x193   :  { %v6012_v49 = vpop.eup %6011  ;;  %6017 = vpow2.f32 %v1558_v39  ;;  %v894_v44 = vadd.f32 %v7407_v15, %v670_v45  ;;  %v701_v28 = vmul.f32 0.00390625, %v7780_v47  ;;  %v702_v36 = vmul.f32 0.00390625, %v7782_v6  ;;  %v216_v39 = vld [vmem:[%s8411_s6 + $0xa8] sm:$0xff] }
 0x194   :  { %v1984_v41 = vadd.f32 %v1920_v30, %v1792_v21  ;;  %v1921_v55 = vmul.f32 %v1857_v53, %v1857_v53  ;;  %v1248_v32 = vmul.f32 %v6012_v49, %v6012_v49  ;;  %v1026_v16 = vmin.f32 %v962_v14, 0.0  ;;  %v7853_v21 = vpop.f32.mrf.mxu3  ;;  %v224_v45 = vld [vmem:[%s8411_s6 + $0xe8] sm:$0xff]  ;;  %4192 = vperm.xlu2 %5842, %v216_v39  }
 0x195   :  { %v6014_v25 = vpop.eup %6013  ;;  %v963_v59 = vadd.f32 %v7419_v26, %v894_v44  ;;  %v925_v47 = vadd.f32 %v7836_v50, %v701_v28  ;;  %v926_v6 = vadd.f32 %v7836_v50, %v702_v36  ;;  %v671_v2 = vmul.f32 0.00390625, %v474_v19  ;;  %v6622_v30 = vld [vmem:[%s8405_s0 + $0xa8] sm:$0xff]  ;;  %4232 = vperm.xlu1 %5841, %v224_v45  }
 0x196   :  { %2048 = vst [vmem:[#allocation2 + $0xa0] sm:$0xff] %v1984_v41  ;;  %v1985_v37 = vadd.f32 %v1921_v55, %v1793_v24  ;;  %v1249_v9 = vmul.f32 %v6014_v25, %v6014_v25  ;;  %v1312_v60 = vmul.f32 %v1248_v32, %v1248_v32  ;;  %v1112_v63 = vmul.f32 1.442695, %v1026_v16  ;;  %5647 = vmatmul.msk.f32.gmra.mxu2 %vm228_vm0, %v6622_v30 }
 0x197   :  { %v6016_v58 = vpop.eup %6015  ;;  %v1410_v51 = vmul.f32 16.0, %v1026_v16  ;;  %v1027_v29 = vmin.f32 %v963_v59, 0.0  ;;  %v994_v27 = vadd.f32 %v7417_v22, %v925_v47  ;;  %v995_v12 = vadd.f32 %v7419_v26, %v926_v6  ;;  %5695 = vmatmul.msk.f32.gmra.mxu3 %vm228_vm0, %v6622_v30 }
 0x198   :  { %2049 = vst [vmem:[#allocation2 + $0xa8] sm:$0xff] %v1985_v37  ;;  %v1313_v24 = vmul.f32 %v1249_v9, %v1249_v9  ;;  %v1376_v53 = vadd.f32 %v6012_v49, %v1312_v60  ;;  %v1696_v14 = vmul.f32 %v6016_v58, %v6016_v58  ;;  %6019 = vpow2.f32 %v1112_v63 }
 0x199   :  { %v6018_v44 = vpop.eup %6017  ;;  %v1496_v28 = vmul.f32 1.442695, %v1410_v51  ;;  %v1114_v36 = vmul.f32 1.442695, %v1027_v29  ;;  %v1411_v61 = vmul.f32 16.0, %v1027_v29  ;;  %v1058_v41 = vmin.f32 %v994_v27, 0.0 }
 0x19a   :  { %v1377_v55 = vadd.f32 %v6014_v25, %v1313_v24  ;;  %v1632_v32 = vadd.f32 %v6016_v58, %v1376_v53  ;;  %v1697_v16 = vmul.f32 %v6018_v44, %v6018_v44  ;;  %v1760_v19 = vmul.f32 %v1696_v14, %v1696_v14 }
 0x19b   :  { %6021 = vpow2.f32 %v1496_v28  ;;  %v1498_v59 = vmul.f32 1.442695, %v1411_v61  ;;  %v1059_v47 = vmin.f32 %v995_v12, 0.0  ;;  %v1176_v6 = vmul.f32 1.442695, %v1058_v41  ;;  %v7867_v28 = vpop.permute.xlu1 %853 }
 0x19c   :  { %v1633_v37 = vadd.f32 %v6018_v44, %v1377_v55  ;;  %v1761_v9 = vmul.f32 %v1697_v16, %v1697_v16  ;;  %v1824_v49 = vadd.f32 %v1760_v19, %v1632_v32  ;;  %v1888_v60 = vmul.f32 %v1760_v19, %v1760_v19  ;;  %v587_v44 = vpop.f32.mrf.mxu1  ;;  %8428 = vst [vmem:[#allocation11_spill] sm:$0xff] %v7867_v28 }
 0x19d   :  { %6023 = vpow2.f32 %v1114_v36  ;;  %v1178_v63 = vmul.f32 1.442695, %v1059_v47  ;;  %v1442_v39 = vmul.f32 16.0, %v1058_v41  ;;  %v1443_v51 = vmul.f32 16.0, %v1059_v47 }
 0x19e   :  { %v6020_v30 = vpop.eup %6019  ;;  %v1825_v29 = vadd.f32 %v1761_v9, %v1633_v37  ;;  %v1889_v27 = vmul.f32 %v1761_v9, %v1761_v9  ;;  %v1952_v45 = vmul.f32 %v1888_v60, %v1888_v60  ;;  %6025 = vpow2.f32 %v1498_v59  ;;  %v477_v9 = vpop.f32.mrf.mxu0 }
 0x19f   :  { %v1218_v25 = vmul.f32 %v6020_v30, %v6020_v30  ;;  %6027 = vpow2.f32 %v1176_v6  ;;  %v1560_v58 = vmul.f32 1.442695, %v1442_v39  ;;  %v1562_v24 = vmul.f32 1.442695, %v1443_v51 }
 0x1a0   :  { %v1953_v53 = vmul.f32 %v1889_v27, %v1889_v27  ;;  %v2016_v12 = vadd.f32 %v1952_v45, %v1824_v49  ;;  %6029 = vpow2.f32 %v1178_v63  ;;  %v895_v14 = vadd.f32 %v7465_v52, %v671_v2 }
 0x1a1   :  { %v6022_v36 = vpop.eup %6021  ;;  %v1282_v61 = vmul.f32 %v1218_v25, %v1218_v25  ;;  %6031 = vpow2.f32 %v1560_v58  ;;  %v672_v41 = vmul.f32 0.00390625, %v587_v44  ;;  %v703_v55 = vmul.f32 0.00390625, %v7816_v34 }
 0x1a2   :  { %v2017_v32 = vadd.f32 %v1953_v53, %v1825_v29  ;;  %2080 = vst [vmem:[#allocation2 + $0x1a0] sm:$0xff] %v2016_v12  ;;  %v1666_v16 = vmul.f32 %v6022_v36, %v6022_v36  ;;  %6033 = vpow2.f32 %v1562_v24  ;;  %v964_v19 = vadd.f32 %v7417_v22, %v895_v14 }
 0x1a3   :  { %v6024_v59 = vpop.eup %6023  ;;  %v1346_v47 = vadd.f32 %v6020_v30, %v1282_v61  ;;  %v896_v6 = vadd.f32 %v7465_v52, %v672_v41  ;;  %v704_v2 = vmul.f32 0.00390625, %v7818_v20  ;;  %v927_v37 = vadd.f32 %v7867_v28, %v703_v55 }
 0x1a4   :  { %v6026_v49 = vpop.eup %6025  ;;  %2081 = vst [vmem:[#allocation2 + $0x1a8] sm:$0xff] %v2017_v32  ;;  %v1730_v60 = vmul.f32 %v1666_v16, %v1666_v16  ;;  %v1219_v63 = vmul.f32 %v6024_v59, %v6024_v59  ;;  %v1028_v34 = vmin.f32 %v964_v19, 0.0  ;;  %v7874_v39 = vmul.f32 0.00390625, %v477_v9 }
 0x1a5   :  { %v6028_v51 = vpop.eup %6027  ;;  %v1602_v29 = vadd.f32 %v6022_v36, %v1346_v47  ;;  %v1667_v27 = vmul.f32 %v6026_v49, %v6026_v49  ;;  %v965_v45 = vadd.f32 %v7419_v26, %v896_v6  ;;  %v928_v30 = vadd.f32 %v7867_v28, %v704_v2  ;;  %v112_v47 = vld [vmem:[%s8407_s2 + $0x70] sm:$0xff] }
 0x1a6   :  { %v6030_v25 = vpop.eup %6029  ;;  %v1858_v58 = vmul.f32 %v1730_v60, %v1730_v60  ;;  %v1283_v20 = vmul.f32 %v1219_v63, %v1219_v63  ;;  %v1250_v24 = vmul.f32 %v6028_v51, %v6028_v51  ;;  %v1116_v53 = vmul.f32 1.442695, %v1028_v34  ;;  %5736 = vmatmul.msk.f32.gmra.mxu0 %vm228_vm0, %v112_v47  ;;  %5784 = vmatmul.msk.f32.gmra.mxu1 %vm228_vm0, %v112_v47 }
 0x1a7   :  { %v6032_v12 = vpop.eup %6031  ;;  %v1794_v14 = vadd.f32 %v1730_v60, %v1602_v29  ;;  %v1731_v44 = vmul.f32 %v1667_v27, %v1667_v27  ;;  %v1251_v61 = vmul.f32 %v6030_v25, %v6030_v25  ;;  %v1412_v41 = vmul.f32 16.0, %v1028_v34 }
 0x1a8   :  { %v6034_v55 = vpop.eup %6033  ;;  %v1922_v32 = vmul.f32 %v1858_v58, %v1858_v58  ;;  %v1347_v16 = vadd.f32 %v6024_v59, %v1283_v20  ;;  %v1314_v19 = vmul.f32 %v1250_v24, %v1250_v24  ;;  %v1698_v36 = vmul.f32 %v6032_v12, %v6032_v12 }
 0x1a9   :  { %v1859_v6 = vmul.f32 %v1731_v44, %v1731_v44  ;;  %v1315_v2 = vmul.f32 %v1251_v61, %v1251_v61  ;;  %v1699_v9 = vmul.f32 %v6034_v55, %v6034_v55  ;;  %6035 = vpow2.f32 %v1116_v53  ;;  %v7883_v61 = vpop.f32.mrf.mxu2  ;;  %v219_v53 = vld [vmem:[%s8411_s6 + $0xc0] sm:$0xff] }
 0x1aa   :  { %v1986_v60 = vadd.f32 %v1922_v32, %v1794_v14  ;;  %v1603_v63 = vadd.f32 %v6026_v49, %v1347_v16  ;;  %v1378_v34 = vadd.f32 %v6028_v51, %v1314_v19  ;;  %v1762_v29 = vmul.f32 %v1698_v36, %v1698_v36  ;;  %v6623_v49 = vld [vmem:[%s8405_s0 + $0xb0] sm:$0xff]  ;;  %4207 = vperm.xlu2 %5842, %v219_v53  }
 0x1ab   :  { %v1923_v27 = vmul.f32 %v1859_v6, %v1859_v6  ;;  %v1379_v59 = vadd.f32 %v6030_v25, %v1315_v2  ;;  %v1763_v58 = vmul.f32 %v1699_v9, %v1699_v9  ;;  %v1500_v20 = vmul.f32 1.442695, %v1412_v41  ;;  %5648 = vmatmul.msk.f32.gmra.mxu2 %vm228_vm0, %v6623_v49 }
 0x1ac   :  { %2050 = vst [vmem:[#allocation2 + $0xb0] sm:$0xff] %v1986_v60  ;;  %v1795_v24 = vadd.f32 %v1731_v44, %v1603_v63  ;;  %v1634_v28 = vadd.f32 %v6032_v12, %v1378_v34  ;;  %v1890_v50 = vmul.f32 %v1762_v29, %v1762_v29  ;;  %v1029_v40 = vmin.f32 %v965_v45, 0.0  ;;  %v7893_v12 = vpop.f32.mrf.mxu3  ;;  %5696 = vmatmul.msk.f32.gmra.mxu3 %vm228_vm0, %v6623_v49 }
 0x1ad   :  { %v1635_v51 = vadd.f32 %v6034_v55, %v1379_v59  ;;  %v1891_v25 = vmul.f32 %v1763_v58, %v1763_v58  ;;  %6037 = vpow2.f32 %v1500_v20  ;;  %v996_v14 = vadd.f32 %v7417_v22, %v927_v37 }
 0x1ae   :  { %v1987_v45 = vadd.f32 %v1923_v27, %v1795_v24  ;;  %v1826_v44 = vadd.f32 %v1762_v29, %v1634_v28  ;;  %v1954_v41 = vmul.f32 %v1890_v50, %v1890_v50  ;;  %v1118_v32 = vmul.f32 1.442695, %v1029_v40  ;;  %v590_v28 = vpop.f32.mrf.mxu1 }
 0x1af   :  { %v6036_v16 = vpop.eup %6035  ;;  %v1827_v19 = vadd.f32 %v1763_v58, %v1635_v51  ;;  %v1955_v36 = vmul.f32 %v1891_v25, %v1891_v25  ;;  %v1413_v47 = vmul.f32 16.0, %v1029_v40  ;;  %v997_v6 = vadd.f32 %v7419_v26, %v928_v30 }
 0x1b0   :  { %2051 = vst [vmem:[#allocation2 + $0xb8] sm:$0xff] %v1987_v45  ;;  %v2018_v55 = vadd.f32 %v1954_v41, %v1826_v44  ;;  %v1220_v2 = vmul.f32 %v6036_v16, %v6036_v16  ;;  %6039 = vpow2.f32 %v1118_v32  ;;  %v1060_v37 = vmin.f32 %v996_v14, 0.0  ;;  %v7902_v32 = vpop.permute.xlu2 %858 }
 0x1b1   :  { %v2019_v9 = vadd.f32 %v1955_v36, %v1827_v19  ;;  %v1502_v60 = vmul.f32 1.442695, %v1413_v47  ;;  %v1061_v63 = vmin.f32 %v997_v6, 0.0  ;;  %v897_v34 = vadd.f32 %v7405_v13, %v7874_v39  ;;  %8429 = vst [vmem:[#allocation12_spill] sm:$0xff] %v7902_v32 }
 0x1b2   :  { %2082 = vst [vmem:[#allocation2 + $0x1b0] sm:$0xff] %v2018_v55  ;;  %v1284_v50 = vmul.f32 %v1220_v2, %v1220_v2  ;;  %v1180_v29 = vmul.f32 1.442695, %v1060_v37  ;;  %v1444_v27 = vmul.f32 16.0, %v1060_v37  ;;  %v674_v59 = vmul.f32 0.00390625, %v590_v28 }
 0x1b3   :  { %v6038_v40 = vpop.eup %6037  ;;  %2083 = vst [vmem:[#allocation2 + $0x1b8] sm:$0xff] %v2019_v9  ;;  %6041 = vpow2.f32 %v1502_v60  ;;  %v1182_v30 = vmul.f32 1.442695, %v1061_v63  ;;  %v1445_v58 = vmul.f32 16.0, %v1061_v63  ;;  %v966_v20 = vadd.f32 %v7417_v22, %v897_v34 }
 0x1b4   :  { %v1348_v24 = vadd.f32 %v6036_v16, %v1284_v50  ;;  %v1668_v53 = vmul.f32 %v6038_v40, %v6038_v40  ;;  %6043 = vpow2.f32 %v1180_v29  ;;  %v1564_v49 = vmul.f32 1.442695, %v1444_v27 }
 0x1b5   :  { %6045 = vpow2.f32 %v1182_v30  ;;  %v1566_v51 = vmul.f32 1.442695, %v1445_v58  ;;  %v1030_v39 = vmin.f32 %v966_v20, 0.0  ;;  %v898_v25 = vadd.f32 %v7405_v13, %v674_v59 }
 0x1b6   :  { %v6040_v14 = vpop.eup %6039  ;;  %v1604_v45 = vadd.f32 %v6038_v40, %v1348_v24  ;;  %v1732_v44 = vmul.f32 %v1668_v53, %v1668_v53  ;;  %6047 = vpow2.f32 %v1564_v49  ;;  %v705_v41 = vmul.f32 0.00390625, %v7851_v31 }
 0x1b7   :  { %v1221_v19 = vmul.f32 %v6040_v14, %v6040_v14  ;;  %6049 = vpow2.f32 %v1566_v51  ;;  %v1120_v36 = vmul.f32 1.442695, %v1030_v39  ;;  %v1414_v16 = vmul.f32 16.0, %v1030_v39 }
 0x1b8   :  { %v1796_v47 = vadd.f32 %v1732_v44, %v1604_v45  ;;  %v1860_v6 = vmul.f32 %v1732_v44, %v1732_v44  ;;  %v967_v55 = vadd.f32 %v7419_v26, %v898_v25  ;;  %v706_v2 = vmul.f32 0.00390625, %v7853_v21  ;;  %v113_v21 = vld [vmem:[%s8407_s2 + $0x78] sm:$0xff] }
 0x1b9   :  { %v6042_v37 = vpop.eup %6041  ;;  %v1285_v9 = vmul.f32 %v1221_v19, %v1221_v19  ;;  %6051 = vpow2.f32 %v1120_v36  ;;  %v1504_v60 = vmul.f32 1.442695, %v1414_v16  ;;  %v929_v63 = vadd.f32 %v7902_v32, %v705_v41  ;;  %5737 = vmatmul.msk.f32.gmra.mxu0 %vm228_vm0, %v113_v21  ;;  %5785 = vmatmul.msk.f32.gmra.mxu1 %vm228_vm0, %v113_v21 }
 0x1ba   :  { %v6044_v34 = vpop.eup %6043  ;;  %v1924_v31 = vmul.f32 %v1860_v6, %v1860_v6  ;;  %v1669_v28 = vmul.f32 %v6042_v37, %v6042_v37  ;;  %v1031_v50 = vmin.f32 %v967_v55, 0.0  ;;  %v930_v29 = vadd.f32 %v7902_v32, %v706_v2  ;;  %v7916_v2 = vpop.f32.mrf.mxu2 }
 0x1bb   :  { %v6046_v27 = vpop.eup %6045  ;;  %v1349_v59 = vadd.f32 %v6040_v14, %v1285_v9  ;;  %v1252_v40 = vmul.f32 %v6044_v34, %v6044_v34  ;;  %6053 = vpow2.f32 %v1504_v60  ;;  %v7909_v30 = vadd.f32 %v7417_v22, %v929_v63  ;;  %v7918_v9 = vpop.f32.mrf.mxu3  ;;  %v6624_v60 = vld [vmem:[%s8405_s0 + $0xb8] sm:$0xff] }
 0x1bc   :  { %v6048_v58 = vpop.eup %6047  ;;  %v1988_v20 = vadd.f32 %v1924_v31, %v1796_v47  ;;  %v1733_v24 = vmul.f32 %v1669_v28, %v1669_v28  ;;  %v1253_v53 = vmul.f32 %v6046_v27, %v6046_v27  ;;  %v1122_v49 = vmul.f32 1.442695, %v1031_v50  ;;  %5649 = vmatmul.msk.f32.gmra.mxu2 %vm228_vm0, %v6624_v60  ;;  %5697 = vmatmul.msk.f32.gmra.mxu3 %vm228_vm0, %v6624_v60 }
 0x1bd   :  { %v6050_v51 = vpop.eup %6049  ;;  %v1605_v39 = vadd.f32 %v6042_v37, %v1349_v59  ;;  %v1316_v25 = vmul.f32 %v1252_v40, %v1252_v40  ;;  %v1700_v14 = vmul.f32 %v6048_v58, %v6048_v58  ;;  %v1415_v45 = vmul.f32 16.0, %v1031_v50  ;;  %v222_v37 = vld [vmem:[%s8411_s6 + $0xd8] sm:$0xff] }
 0x1be   :  { %2052 = vst [vmem:[#allocation2 + $0xc0] sm:$0xff] %v1988_v20  ;;  %v1861_v44 = vmul.f32 %v1733_v24, %v1733_v24  ;;  %v1317_v41 = vmul.f32 %v1253_v53, %v1253_v53  ;;  %v1701_v19 = vmul.f32 %v6050_v51, %v6050_v51  ;;  %6055 = vpow2.f32 %v1122_v49  ;;  %4222 = vperm.xlu2 %5842, %v222_v37  }
 0x1bf   :  { %v6052_v36 = vpop.eup %6051  ;;  %v1797_v16 = vadd.f32 %v1733_v24, %v1605_v39  ;;  %v1380_v47 = vadd.f32 %v6044_v34, %v1316_v25  ;;  %v1764_v6 = vmul.f32 %v1700_v14, %v1700_v14  ;;  %v1506_v55 = vmul.f32 1.442695, %v1415_v45  ;;  %v480_v39 = vpop.f32.mrf.mxu0 }
 0x1c0   :  { %v1925_v63 = vmul.f32 %v1861_v44, %v1861_v44  ;;  %v1381_v34 = vadd.f32 %v6046_v27, %v1317_v41  ;;  %v1765_v31 = vmul.f32 %v1701_v19, %v1701_v19  ;;  %v1222_v28 = vmul.f32 %v6052_v36, %v6052_v36  ;;  %v593_v25 = vpop.f32.mrf.mxu1 }
 0x1c1   :  { %v6054_v50 = vpop.eup %6053  ;;  %v1636_v59 = vadd.f32 %v6048_v58, %v1380_v47  ;;  %v1892_v40 = vmul.f32 %v1764_v6, %v1764_v6  ;;  %6057 = vpow2.f32 %v1506_v55  ;;  %v999_v21 = vadd.f32 %v7419_v26, %v930_v29 }
 0x1c2   :  { %v1989_v20 = vadd.f32 %v1925_v63, %v1797_v16  ;;  %v1637_v24 = vadd.f32 %v6050_v51, %v1381_v34  ;;  %v1893_v53 = vmul.f32 %v1765_v31, %v1765_v31  ;;  %v1286_v49 = vmul.f32 %v1222_v28, %v1222_v28 }
 0x1c3   :  { %v1828_v14 = vadd.f32 %v1764_v6, %v1636_v59  ;;  %v1956_v45 = vmul.f32 %v1892_v40, %v1892_v40  ;;  %v1670_v60 = vmul.f32 %v6054_v50, %v6054_v50  ;;  %v1062_v27 = vmin.f32 %v7909_v30, 0.0 }
 0x1c4   :  { %v6056_v44 = vpop.eup %6055  ;;  %2053 = vst [vmem:[#allocation2 + $0xc8] sm:$0xff] %v1989_v20  ;;  %v1829_v41 = vadd.f32 %v1765_v31, %v1637_v24  ;;  %v1957_v19 = vmul.f32 %v1893_v53, %v1893_v53  ;;  %v1350_v58 = vadd.f32 %v6052_v36, %v1286_v49  ;;  %v1063_v47 = vmin.f32 %v999_v21, 0.0  ;;  %v7930_v49 = vpop.permute.xlu0 %863 }
 0x1c5   :  { %v2020_v55 = vadd.f32 %v1956_v45, %v1828_v14  ;;  %v1734_v37 = vmul.f32 %v1670_v60, %v1670_v60  ;;  %v1223_v29 = vmul.f32 %v6056_v44, %v6056_v44  ;;  %v1184_v16 = vmul.f32 1.442695, %v1062_v27  ;;  %v114_v60 = vld [vmem:[%s8407_s2 + $0x80] sm:$0xff] }
 0x1c6   :  { %v2021_v51 = vadd.f32 %v1957_v19, %v1829_v41  ;;  %v1606_v63 = vadd.f32 %v6054_v50, %v1350_v58  ;;  %v1186_v34 = vmul.f32 1.442695, %v1063_v47  ;;  %v1446_v28 = vmul.f32 16.0, %v1062_v27  ;;  %5738 = vmatmul.msk.f32.gmra.mxu0 %vm228_vm0, %v114_v60  ;;  %5786 = vmatmul.msk.f32.gmra.mxu1 %vm228_vm0, %v114_v60 }
 0x1c7   :  { %v6058_v32 = vpop.eup %6057  ;;  %2084 = vst [vmem:[#allocation2 + $0x1c0] sm:$0xff] %v2020_v55  ;;  %v1862_v6 = vmul.f32 %v1734_v37, %v1734_v37  ;;  %v1287_v59 = vmul.f32 %v1223_v29, %v1223_v29  ;;  %6059 = vpow2.f32 %v1184_v16  ;;  %v1447_v30 = vmul.f32 16.0, %v1063_v47  ;;  %v483_v58 = vpop.f32.mrf.mxu0 }
 0x1c8   :  { %2085 = vst [vmem:[#allocation2 + $0x1c8] sm:$0xff] %v2021_v51  ;;  %v1798_v40 = vadd.f32 %v1734_v37, %v1606_v63  ;;  %v1671_v31 = vmul.f32 %v6058_v32, %v6058_v32  ;;  %6061 = vpow2.f32 %v1186_v34  ;;  %v1568_v36 = vmul.f32 1.442695, %v1446_v28  ;;  %v596_v47 = vpop.f32.mrf.mxu1 }
 0x1c9   :  { %v1926_v21 = vmul.f32 %v1862_v6, %v1862_v6  ;;  %v1351_v20 = vadd.f32 %v6056_v44, %v1287_v59  ;;  %v1570_v24 = vmul.f32 1.442695, %v1447_v30  ;;  %v675_v53 = vmul.f32 0.00390625, %v480_v39 }
 0x1ca   :  { %v1735_v50 = vmul.f32 %v1671_v31, %v1671_v31  ;;  %6063 = vpow2.f32 %v1568_v36  ;;  %v676_v14 = vmul.f32 0.00390625, %v593_v25  ;;  %v707_v45 = vmul.f32 0.00390625, %v7883_v61 }
 0x1cb   :  { %v1990_v27 = vadd.f32 %v1926_v21, %v1798_v40  ;;  %v1607_v41 = vadd.f32 %v6058_v32, %v1351_v20  ;;  %6065 = vpow2.f32 %v1570_v24  ;;  %v899_v19 = vadd.f32 %v7433_v38, %v675_v53 }
 0x1cc   :  { %v1863_v39 = vmul.f32 %v1735_v50, %v1735_v50  ;;  %v900_v44 = vadd.f32 %v7433_v38, %v676_v14  ;;  %v708_v25 = vmul.f32 0.00390625, %v7893_v12  ;;  %v931_v61 = vadd.f32 %v7930_v49, %v707_v45 }
 0x1cd   :  { %v6060_v55 = vpop.eup %6059  ;;  %2054 = vst [vmem:[#allocation2 + $0xd0] sm:$0xff] %v1990_v27  ;;  %v1799_v37 = vadd.f32 %v1735_v50, %v1607_v41  ;;  %v968_v32 = vadd.f32 %v7417_v22, %v899_v19  ;;  %v677_v29 = vmul.f32 0.00390625, %v483_v58  ;;  %v678_v16 = vmul.f32 0.00390625, %v596_v47 }
 0x1ce   :  { %v6062_v51 = vpop.eup %6061  ;;  %v1927_v63 = vmul.f32 %v1863_v39, %v1863_v39  ;;  %v1254_v34 = vmul.f32 %v6060_v55, %v6060_v55  ;;  %v969_v28 = vadd.f32 %v7419_v26, %v900_v44  ;;  %v932_v6 = vadd.f32 %v7930_v49, %v708_v25  ;;  %v7948_v44 = vpop.f32.mrf.mxu2  ;;  %v6625_v25 = vld [vmem:[%s8405_s0 + $0xc0] sm:$0xff] }
 0x1cf   :  { %v1255_v59 = vmul.f32 %v6062_v51, %v6062_v51  ;;  %v1032_v12 = vmin.f32 %v968_v32, 0.0  ;;  %v1000_v30 = vadd.f32 %v7417_v22, %v931_v61  ;;  %v901_v40 = vadd.f32 %v7488_v5, %v677_v29  ;;  %5650 = vmatmul.msk.f32.gmra.mxu2 %vm228_vm0, %v6625_v25 }
 0x1d0   :  { %v6064_v31 = vpop.eup %6063  ;;  %v1991_v36 = vadd.f32 %v1927_v63, %v1799_v37  ;;  %v1318_v21 = vmul.f32 %v1254_v34, %v1254_v34  ;;  %v1033_v20 = vmin.f32 %v969_v28, 0.0  ;;  %v1001_v24 = vadd.f32 %v7419_v26, %v932_v6  ;;  %v225_v6 = vld [vmem:[%s8411_s6 + $0xf0] sm:$0xff] }
 0x1d1   :  { %v6066_v53 = vpop.eup %6065  ;;  %v1319_v50 = vmul.f32 %v1255_v59, %v1255_v59  ;;  %v1702_v14 = vmul.f32 %v6064_v31, %v6064_v31  ;;  %v1124_v45 = vmul.f32 1.442695, %v1032_v12  ;;  %v1416_v60 = vmul.f32 16.0, %v1032_v12  ;;  %4237 = vperm.xlu2 %5842, %v225_v6  }
 0x1d2   :  { %2055 = vst [vmem:[#allocation2 + $0xd8] sm:$0xff] %v1991_v36  ;;  %v1382_v27 = vadd.f32 %v6060_v55, %v1318_v21  ;;  %v1703_v41 = vmul.f32 %v6066_v53, %v6066_v53  ;;  %v1126_v19 = vmul.f32 1.442695, %v1033_v20  ;;  %v1417_v39 = vmul.f32 16.0, %v1033_v20  ;;  %v7954_v55 = vpop.f32.mrf.mxu3  ;;  %5698 = vmatmul.msk.f32.gmra.mxu3 %vm228_vm0, %v6625_v25 }
 0x1d3   :  { %v1383_v61 = vadd.f32 %v6062_v51, %v1319_v50  ;;  %v1766_v58 = vmul.f32 %v1702_v14, %v1702_v14  ;;  %6067 = vpow2.f32 %v1124_v45  ;;  %v1508_v47 = vmul.f32 1.442695, %v1416_v60 }
 0x1d4   :  { %v1638_v37 = vadd.f32 %v6064_v31, %v1382_v27  ;;  %v1767_v32 = vmul.f32 %v1703_v41, %v1703_v41  ;;  %6069 = vpow2.f32 %v1126_v19  ;;  %v1510_v29 = vmul.f32 1.442695, %v1417_v39 }
 0x1d5   :  { %v1639_v63 = vadd.f32 %v6066_v53, %v1383_v61  ;;  %v1894_v34 = vmul.f32 %v1766_v58, %v1766_v58  ;;  %6071 = vpow2.f32 %v1508_v47  ;;  %v1064_v28 = vmin.f32 %v1000_v30, 0.0 }
 0x1d6   :  { %v1830_v51 = vadd.f32 %v1766_v58, %v1638_v37  ;;  %v1895_v59 = vmul.f32 %v1767_v32, %v1767_v32  ;;  %6073 = vpow2.f32 %v1510_v29  ;;  %v1065_v12 = vmin.f32 %v1001_v24, 0.0 }
 0x1d7   :  { %v1831_v31 = vadd.f32 %v1767_v32, %v1639_v63  ;;  %v1958_v36 = vmul.f32 %v1894_v34, %v1894_v34  ;;  %v1188_v21 = vmul.f32 1.442695, %v1064_v28  ;;  %v1448_v20 = vmul.f32 16.0, %v1064_v28 }
 0x1d8   :  { %v1959_v50 = vmul.f32 %v1895_v59, %v1895_v59  ;;  %v1190_v14 = vmul.f32 1.442695, %v1065_v12  ;;  %v1449_v45 = vmul.f32 16.0, %v1065_v12  ;;  %v970_v53 = vadd.f32 %v7417_v22, %v901_v40 }
 0x1d9   :  { %v6068_v60 = vpop.eup %6067  ;;  %v2022_v30 = vadd.f32 %v1958_v36, %v1830_v51  ;;  %6075 = vpow2.f32 %v1188_v21  ;;  %v1572_v27 = vmul.f32 1.442695, %v1448_v20  ;;  %v902_v41 = vadd.f32 %v7488_v5, %v678_v16 }
 0x1da   :  { %v6070_v19 = vpop.eup %6069  ;;  %v2023_v39 = vadd.f32 %v1959_v50, %v1831_v31  ;;  %v1224_v25 = vmul.f32 %v6068_v60, %v6068_v60  ;;  %6077 = vpow2.f32 %v1190_v14  ;;  %v1574_v24 = vmul.f32 1.442695, %v1449_v45 }
 0x1db   :  { %v6072_v61 = vpop.eup %6071  ;;  %2086 = vst [vmem:[#allocation2 + $0x1d0] sm:$0xff] %v2022_v30  ;;  %v1225_v58 = vmul.f32 %v6070_v19, %v6070_v19  ;;  %6079 = vpow2.f32 %v1572_v27  ;;  %v1034_v47 = vmin.f32 %v970_v53, 0.0  ;;  %v971_v37 = vadd.f32 %v7419_v26, %v902_v41 }
 0x1dc   :  { %v6074_v32 = vpop.eup %6073  ;;  %2087 = vst [vmem:[#allocation2 + $0x1d8] sm:$0xff] %v2023_v39  ;;  %v1288_v40 = vmul.f32 %v1224_v25, %v1224_v25  ;;  %v1672_v29 = vmul.f32 %v6072_v61, %v6072_v61  ;;  %6081 = vpow2.f32 %v1574_v24  ;;  %v709_v63 = vmul.f32 0.00390625, %v7916_v2 }
 0x1dd   :  { %v1289_v16 = vmul.f32 %v1225_v58, %v1225_v58  ;;  %v1673_v34 = vmul.f32 %v6074_v32, %v6074_v32  ;;  %v1128_v28 = vmul.f32 1.442695, %v1034_v47  ;;  %v1418_v6 = vmul.f32 16.0, %v1034_v47 }
 0x1de   :  { %v1352_v51 = vadd.f32 %v6068_v60, %v1288_v40  ;;  %v1736_v59 = vmul.f32 %v1672_v29, %v1672_v29  ;;  %v1035_v12 = vmin.f32 %v971_v37, 0.0  ;;  %v710_v31 = vmul.f32 0.00390625, %v7918_v9  ;;  %v115_v60 = vld [vmem:[%s8407_s2 + $0x88] sm:$0xff] }
 0x1df   :  { %v6076_v36 = vpop.eup %6075  ;;  %v1353_v21 = vadd.f32 %v6070_v19, %v1289_v16  ;;  %v1737_v20 = vmul.f32 %v1673_v34, %v1673_v34  ;;  %6083 = vpow2.f32 %v1128_v28  ;;  %v1512_v50 = vmul.f32 1.442695, %v1418_v6  ;;  %5739 = vmatmul.msk.f32.gmra.mxu0 %vm228_vm0, %v115_v60  ;;  %v7969_v16 = vpop.permute.xlu1 %868  ;;  %5787 = vmatmul.msk.f32.gmra.mxu1 %vm228_vm0, %v115_v60 }
 0x1e0   :  { %v6078_v14 = vpop.eup %6077  ;;  %v1608_v45 = vadd.f32 %v6072_v61, %v1352_v51  ;;  %v1864_v53 = vmul.f32 %v1736_v59, %v1736_v59  ;;  %v1256_v30 = vmul.f32 %v6076_v36, %v6076_v36  ;;  %v1130_v27 = vmul.f32 1.442695, %v1035_v12  ;;  %8430 = vst [vmem:[#allocation13_spill] sm:$0xff] %v7969_v16 }
 0x1e1   :  { %v6080_v2 = vpop.eup %6079  ;;  %v1609_v41 = vadd.f32 %v6074_v32, %v1353_v21  ;;  %v1865_v39 = vmul.f32 %v1737_v20, %v1737_v20  ;;  %v1257_v25 = vmul.f32 %v6078_v14, %v6078_v14  ;;  %6085 = vpow2.f32 %v1512_v50 }
 0x1e2   :  { %v6082_v9 = vpop.eup %6081  ;;  %v1800_v24 = vadd.f32 %v1736_v59, %v1608_v45  ;;  %v1928_v19 = vmul.f32 %v1864_v53, %v1864_v53  ;;  %v1320_v58 = vmul.f32 %v1256_v30, %v1256_v30  ;;  %v1704_v47 = vmul.f32 %v6080_v2, %v6080_v2  ;;  %v7972_v45 = vpop.f32.mrf.mxu2 }
 0x1e3   :  { %v1801_v61 = vadd.f32 %v1737_v20, %v1609_v41  ;;  %v1929_v37 = vmul.f32 %v1865_v39, %v1865_v39  ;;  %v1321_v40 = vmul.f32 %v1257_v25, %v1257_v25  ;;  %v1705_v29 = vmul.f32 %v6082_v9, %v6082_v9  ;;  %v6626_v20 = vld [vmem:[%s8405_s0 + $0xc8] sm:$0xff] }
 0x1e4   :  { %v1992_v32 = vadd.f32 %v1928_v19, %v1800_v24  ;;  %v1384_v34 = vadd.f32 %v6076_v36, %v1320_v58  ;;  %v1768_v28 = vmul.f32 %v1704_v47, %v1704_v47  ;;  %6087 = vpow2.f32 %v1130_v27  ;;  %5651 = vmatmul.msk.f32.gmra.mxu2 %vm228_vm0, %v6626_v20  ;;  %v3812_v47 = vpop.f32.mrf.mxu0 }
 0x1e5   :  { %v6084_v6 = vpop.eup %6083  ;;  %v1993_v51 = vadd.f32 %v1929_v37, %v1801_v61  ;;  %v1385_v59 = vadd.f32 %v6078_v14, %v1321_v40  ;;  %v1769_v21 = vmul.f32 %v1705_v29, %v1705_v29  ;;  %v1419_v50 = vmul.f32 16.0, %v1035_v12  ;;  %v3925_v61 = vpop.f32.mrf.mxu1 }
 0x1e6   :  { %2056 = vst [vmem:[#allocation2 + $0xe0] sm:$0xff] %v1992_v32  ;;  %v1640_v53 = vadd.f32 %v6080_v2, %v1384_v34  ;;  %v1896_v30 = vmul.f32 %v1768_v28, %v1768_v28  ;;  %v1226_v41 = vmul.f32 %v6084_v6, %v6084_v6  ;;  %v933_v36 = vadd.f32 %v7969_v16, %v709_v63 }
 0x1e7   :  { %v6086_v27 = vpop.eup %6085  ;;  %2057 = vst [vmem:[#allocation2 + $0xe8] sm:$0xff] %v1993_v51  ;;  %v1641_v39 = vadd.f32 %v6082_v9, %v1385_v59  ;;  %v1897_v14 = vmul.f32 %v1769_v21, %v1769_v21  ;;  %v1514_v25 = vmul.f32 1.442695, %v1419_v50  ;;  %v934_v12 = vadd.f32 %v7969_v16, %v710_v31  ;;  %v227_v31 = vld [vmem:[%s8412_s7] sm:$0x3]  ;;  %s5493_s7 = sshll.u32 %s8415_s10, 4  ;;  %s5494_s7 = int_to_ptr.hbm [resolvable:$true] %s5493_s7 }
 0x1e8   :  { %v1832_v60 = vadd.f32 %v1768_v28, %v1640_v53  ;;  %v1960_v24 = vmul.f32 %v1896_v30, %v1896_v30  ;;  %v1290_v19 = vmul.f32 %v1226_v41, %v1226_v41  ;;  %v1674_v58 = vmul.f32 %v6086_v27, %v6086_v27  ;;  %v7985_v53 = vpop.f32.mrf.mxu3  ;;  %5699 = vmatmul.msk.f32.gmra.mxu3 %vm228_vm0, %v6626_v20 }
 0x1e9   :  { %v1833_v37 = vadd.f32 %v1769_v21, %v1641_v39  ;;  %v1961_v40 = vmul.f32 %v1897_v14, %v1897_v14  ;;  %6089 = vpow2.f32 %v1514_v25  ;;  %v1002_v2 = vadd.f32 %v7417_v22, %v933_v36 }
 0x1ea   :  { %v6088_v29 = vpop.eup %6087  ;;  %v2024_v63 = vadd.f32 %v1960_v24, %v1832_v60  ;;  %v1354_v32 = vadd.f32 %v6084_v6, %v1290_v19  ;;  %v1738_v34 = vmul.f32 %v1674_v58, %v1674_v58  ;;  %v1003_v9 = vadd.f32 %v7419_v26, %v934_v12  ;;  %v4088_v24 = vpop.permute.xlu2 %4087 }
 0x1eb   :  { %v2025_v28 = vadd.f32 %v1961_v40, %v1833_v37  ;;  %v1227_v51 = vmul.f32 %v6088_v29, %v6088_v29  ;;  %v1066_v59 = vmin.f32 %v1002_v2, 0.0  ;;  %v4021_v50 = vmul.f32 0.00390625, %v3812_v47  ;;  %v116_v40 = vld [vmem:[%s8407_s2 + $0x90] sm:$0xff] }
 0x1ec   :  { %2088 = vst [vmem:[#allocation2 + $0x1e0] sm:$0xff] %v2024_v63  ;;  %v1610_v22 = vadd.f32 %v6086_v27, %v1354_v32  ;;  %v1866_v21 = vmul.f32 %v1738_v34, %v1738_v34  ;;  %v1067_v30 = vmin.f32 %v1003_v9, 0.0  ;;  %v4022_v6 = vmul.f32 0.00390625, %v3925_v61  ;;  %5740 = vmatmul.msk.f32.gmra.mxu0 %vm228_vm0, %v116_v40  ;;  %5788 = vmatmul.msk.f32.gmra.mxu1 %vm228_vm0, %v116_v40 }
 0x1ed   :  { %2089 = vst [vmem:[#allocation2 + $0x1e8] sm:$0xff] %v2025_v28  ;;  %v1291_v41 = vmul.f32 %v1227_v51, %v1227_v51  ;;  %v1192_v26 = vmul.f32 1.442695, %v1066_v59  ;;  %v1450_v36 = vmul.f32 16.0, %v1066_v59  ;;  %v7988_v39 = vperm.slane %v227_v31, 0  ;;  %v3928_v28 = vpop.f32.mrf.mxu1 }
 0x1ee   :  { %v1802_v14 = vadd.f32 %v1738_v34, %v1610_v22  ;;  %v1930_v25 = vmul.f32 %v1866_v21, %v1866_v21  ;;  %v1194_v12 = vmul.f32 1.442695, %v1067_v30  ;;  %v1451_v60 = vmul.f32 16.0, %v1067_v30 }
 0x1ef   :  { %v6090_v19 = vpop.eup %6089  ;;  %v1355_v58 = vadd.f32 %v6088_v29, %v1291_v41  ;;  %6091 = vpow2.f32 %v1192_v26  ;;  %v1576_v20 = vmul.f32 1.442695, %v1450_v36  ;;  %v7990_v47 = vperm.slane %v227_v31, 1  ;;  %v3815_v31 = vpop.f32.mrf.mxu0 }
 0x1f0   :  { %v1994_v27 = vadd.f32 %v1930_v25, %v1802_v14  ;;  %v1675_v37 = vmul.f32 %v6090_v19, %v6090_v19  ;;  %6093 = vpow2.f32 %v1194_v12  ;;  %v1578_v61 = vmul.f32 1.442695, %v1451_v60  ;;  %v4093_v26 = vpop.permute.xlu0 %4092  ;;  %v8005_v12 = vpop.f32.mrf.mxu2  ;;  %v6627_v60 = vld [vmem:[%s8405_s0 + $0xd0] sm:$0xff] }
 0x1f1   :  { %v1611_v2 = vadd.f32 %v6090_v19, %v1355_v58  ;;  %6095 = vpow2.f32 %v1576_v20  ;;  %v4245_v63 = vadd.f32 %v4088_v24, %v4021_v50  ;;  %v4246_v32 = vadd.f32 %v4088_v24, %v4022_v6  ;;  %5652 = vmatmul.msk.f32.gmra.mxu2 %vm228_vm0, %v6627_v60 }
 0x1f2   :  { %2058 = vst [vmem:[#allocation2 + $0xf0] sm:$0xff] %v1994_v27  ;;  %v1739_v29 = vmul.f32 %v1675_v37, %v1675_v37  ;;  %6097 = vpow2.f32 %v1578_v61  ;;  %v2414_v34 = vmul.f32 0.00390625, %v7948_v44  ;;  %v2415_v9 = vmul.f32 0.00390625, %v7954_v55  ;;  %v8013_v27 = vpop.f32.mrf.mxu3  ;;  %5700 = vmatmul.msk.f32.gmra.mxu3 %vm228_vm0, %v6627_v60 }
 0x1f3   :  { %v4309_v51 = vadd.f32 %v4245_v63, %v7988_v39  ;;  %v4310_v59 = vadd.f32 %v4246_v32, %v7990_v47  ;;  %v4023_v22 = vmul.f32 0.00390625, %v3815_v31  ;;  %v4024_v50 = vmul.f32 0.00390625, %v3928_v28 }
 0x1f4   :  { %v1803_v21 = vadd.f32 %v1739_v29, %v1611_v2  ;;  %v1867_v30 = vmul.f32 %v1739_v29, %v1739_v29  ;;  %v2478_v6 = vadd.f32 %v2414_v34, %v7370_v3  ;;  %v2479_v41 = vadd.f32 %v2415_v9, %v7370_v3 }
 0x1f5   :  { %v6092_v36 = vpop.eup %6091  ;;  %v4373_v14 = vmin.f32 %v4309_v51, 0.0  ;;  %v4374_v44 = vmin.f32 %v4310_v59, 0.0  ;;  %v4247_v25 = vadd.f32 %v4093_v26, %v4023_v22  ;;  %v8003_v55 = vadd.f32 %v4093_v26, %v4024_v50 }
 0x1f6   :  { %v6094_v24 = vpop.eup %6093  ;;  %v1931_v19 = vmul.f32 %v1867_v30, %v1867_v30  ;;  %v1258_v58 = vmul.f32 %v6092_v36, %v6092_v36  ;;  %v2547_v3 = vadd.f32 %v7988_v39, %v2478_v6  ;;  %v2548_v20 = vadd.f32 %v7990_v47, %v2479_v41 }
 0x1f7   :  { %v6096_v37 = vpop.eup %6095  ;;  %v1259_v61 = vmul.f32 %v6094_v24, %v6094_v24  ;;  %v4437_v40 = vmul.f32 1.442695, %v4373_v14  ;;  %v4439_v2 = vmul.f32 1.442695, %v4374_v44  ;;  %v4757_v63 = vmul.f32 16.0, %v4373_v14 }
 0x1f8   :  { %v6098_v32 = vpop.eup %6097  ;;  %v1995_v29 = vadd.f32 %v1931_v19, %v1803_v21  ;;  %v1322_v34 = vmul.f32 %v1258_v58, %v1258_v58  ;;  %v1706_v9 = vmul.f32 %v6096_v37, %v6096_v37  ;;  %v4758_v31 = vmul.f32 16.0, %v4374_v44 }
 0x1f9   :  { %v1323_v28 = vmul.f32 %v1259_v61, %v1259_v61  ;;  %v1707_v51 = vmul.f32 %v6098_v32, %v6098_v32  ;;  %6099 = vpow2.f32 %v4437_v40  ;;  %v4821_v59 = vmul.f32 1.442695, %v4757_v63 }
 0x1fa   :  { %2059 = vst [vmem:[#allocation2 + $0xf8] sm:$0xff] %v1995_v29  ;;  %v1386_v22 = vadd.f32 %v6092_v36, %v1322_v34  ;;  %v1770_v50 = vmul.f32 %v1706_v9, %v1706_v9  ;;  %6101 = vpow2.f32 %v4439_v2  ;;  %v4823_v30 = vmul.f32 1.442695, %v4758_v31 }
 0x1fb   :  { %v1387_v6 = vadd.f32 %v6094_v24, %v1323_v28  ;;  %v1771_v41 = vmul.f32 %v1707_v51, %v1707_v51  ;;  %6103 = vpow2.f32 %v4821_v59  ;;  %v2611_v26 = vmin.f32 %v2547_v3, 0.0 }
 0x1fc   :  { %v1642_v60 = vadd.f32 %v6096_v37, %v1386_v22  ;;  %v1898_v14 = vmul.f32 %v1770_v50, %v1770_v50  ;;  %6105 = vpow2.f32 %v4823_v30  ;;  %v2612_v21 = vmin.f32 %v2548_v20, 0.0 }
 0x1fd   :  { %v1643_v19 = vadd.f32 %v6098_v32, %v1387_v6  ;;  %v1899_v58 = vmul.f32 %v1771_v41, %v1771_v41  ;;  %v2675_v44 = vmul.f32 1.442695, %v2611_v26  ;;  %v2995_v61 = vmul.f32 16.0, %v2611_v26 }
 0x1fe   :  { %v1834_v16 = vadd.f32 %v1770_v50, %v1642_v60  ;;  %v1962_v40 = vmul.f32 %v1898_v14, %v1898_v14  ;;  %v2677_v63 = vmul.f32 1.442695, %v2612_v21  ;;  %v2996_v29 = vmul.f32 16.0, %v2612_v21 }
 0x1ff   :  { %v6100_v36 = vpop.eup %6099  ;;  %v1835_v34 = vadd.f32 %v1771_v41, %v1643_v19  ;;  %v1963_v2 = vmul.f32 %v1899_v58, %v1899_v58  ;;  %6107 = vpow2.f32 %v2675_v44  ;;  %v3059_v24 = vmul.f32 1.442695, %v2995_v61 }
 0x200   :  { %v6102_v9 = vpop.eup %6101  ;;  %v2026_v31 = vadd.f32 %v1962_v40, %v1834_v16  ;;  %v4565_v3 = vmul.f32 %v6100_v36, %v6100_v36  ;;  %6109 = vpow2.f32 %v2677_v63  ;;  %v3061_v37 = vmul.f32 1.442695, %v2996_v29 }
 0x201   :  { %v6104_v28 = vpop.eup %6103  ;;  %v2027_v20 = vadd.f32 %v1963_v2, %v1835_v34  ;;  %v4566_v32 = vmul.f32 %v6102_v9, %v6102_v9  ;;  %6111 = vpow2.f32 %v3059_v24  ;;  %v4311_v51 = vadd.f32 %v4247_v25, %v7988_v39 }
 0x202   :  { %v6106_v59 = vpop.eup %6105  ;;  %2090 = vst [vmem:[#allocation2 + $0x1f0] sm:$0xff] %v2026_v31  ;;  %v4629_v22 = vmul.f32 %v4565_v3, %v4565_v3  ;;  %v5013_v50 = vmul.f32 %v6104_v28, %v6104_v28  ;;  %6113 = vpow2.f32 %v3061_v37  ;;  %v4312_v30 = vadd.f32 %v8003_v55, %v7990_v47 }
 0x203   :  { %2091 = vst [vmem:[#allocation2 + $0x1f8] sm:$0xff] %v2027_v20  ;;  %v4630_v6 = vmul.f32 %v4566_v32, %v4566_v32  ;;  %v5014_v16 = vmul.f32 %v6106_v59, %v6106_v59  ;;  %v4375_v41 = vmin.f32 %v4311_v51, 0.0  ;;  %v2416_v26 = vmul.f32 0.00390625, %v7972_v45 }
 0x204   :  { %v4693_v60 = vadd.f32 %v6100_v36, %v4629_v22  ;;  %v5077_v14 = vmul.f32 %v5013_v50, %v5013_v50  ;;  %v4376_v21 = vmin.f32 %v4312_v30, 0.0  ;;  %v2417_v19 = vmul.f32 0.00390625, %v7985_v53  ;;  %5473 = dma.vmem_to_hbm [thread:$0]  %s5466_s24, 8192, %s5468_s22, [#allocation3], %s6711_s25, %s6711_s25, %s6712_s8  }
 0x205   :  { %v6108_v25 = vpop.eup %6107  ;;  %v4694_v58 = vadd.f32 %v6102_v9, %v4630_v6  ;;  %v5078_v44 = vmul.f32 %v5014_v16, %v5014_v16  ;;  %v4441_v61 = vmul.f32 1.442695, %v4375_v41  ;;  %v4759_v40 = vmul.f32 16.0, %v4375_v41  ;;  %v117_v9 = vld [vmem:[%s8407_s2 + $0x98] sm:$0xff] }
 0x206   :  { %v6110_v63 = vpop.eup %6109  ;;  %v4949_v29 = vadd.f32 %v6104_v28, %v4693_v60  ;;  %v5205_v34 = vmul.f32 %v5077_v14, %v5077_v14  ;;  %v2803_v55 = vmul.f32 %v6108_v25, %v6108_v25  ;;  %v4443_v2 = vmul.f32 1.442695, %v4376_v21  ;;  %5741 = vmatmul.msk.f32.gmra.mxu0 %vm228_vm0, %v117_v9  ;;  %5789 = vmatmul.msk.f32.gmra.mxu1 %vm228_vm0, %v117_v9 }
 0x207   :  { %v6112_v24 = vpop.eup %6111  ;;  %v4950_v31 = vadd.f32 %v6106_v59, %v4694_v58  ;;  %v5206_v3 = vmul.f32 %v5078_v44, %v5078_v44  ;;  %v2804_v37 = vmul.f32 %v6110_v63, %v6110_v63  ;;  %6115 = vpow2.f32 %v4441_v61 }
 0x208   :  { %v6114_v45 = vpop.eup %6113  ;;  %v5141_v36 = vadd.f32 %v5077_v14, %v4949_v29  ;;  %v5269_v20 = vmul.f32 %v5205_v34, %v5205_v34  ;;  %v2867_v32 = vmul.f32 %v2803_v55, %v2803_v55  ;;  %v3251_v53 = vmul.f32 %v6112_v24, %v6112_v24  ;;  %v8027_v34 = vpop.f32.mrf.mxu2 }
 0x209   :  { %v5142_v51 = vadd.f32 %v5078_v44, %v4950_v31  ;;  %v5270_v22 = vmul.f32 %v5206_v3, %v5206_v3  ;;  %v2868_v28 = vmul.f32 %v2804_v37, %v2804_v37  ;;  %v3252_v50 = vmul.f32 %v6114_v45, %v6114_v45 }
 0x20a   :  { %v5333_v30 = vadd.f32 %v5269_v20, %v5141_v36  ;;  %v2931_v59 = vadd.f32 %v6108_v25, %v2867_v32  ;;  %v3315_v6 = vmul.f32 %v3251_v53, %v3251_v53  ;;  %6117 = vpow2.f32 %v4443_v2  ;;  %v6628_v25 = vld [vmem:[%s8405_s0 + $0xd8] sm:$0xff]  ;;  %v3818_v32 = vpop.f32.mrf.mxu0  ;;  %v4098_v53 = vpop.permute.xlu1 %4097 }
 0x20b   :  { %v5334_v16 = vadd.f32 %v5270_v22, %v5142_v51  ;;  %v2932_v41 = vadd.f32 %v6110_v63, %v2868_v28  ;;  %v3316_v60 = vmul.f32 %v3252_v50, %v3252_v50  ;;  %v4760_v14 = vmul.f32 16.0, %v4376_v21  ;;  %5653 = vmatmul.msk.f32.gmra.mxu2 %vm228_vm0, %v6628_v25  ;;  %v3931_v22 = vpop.f32.mrf.mxu1 }
 0x20c   :  { %5397 = vst [vmem:[#allocation6] sm:$0xff] %v5333_v30  ;;  %v3187_v58 = vadd.f32 %v6112_v24, %v2931_v59  ;;  %v3443_v61 = vmul.f32 %v3315_v6, %v3315_v6  ;;  %v4825_v29 = vmul.f32 1.442695, %v4759_v40  ;;  %v2480_v44 = vadd.f32 %v2416_v26, %v7393_v10  ;;  %v8034_v24 = vpop.f32.mrf.mxu3  ;;  %5701 = vmatmul.msk.f32.gmra.mxu3 %vm228_vm0, %v6628_v25 }
 0x20d   :  { %v6116_v55 = vpop.eup %6115  ;;  %5398 = vst [vmem:[#allocation6 + $0x8] sm:$0xff] %v5334_v16  ;;  %v3188_v2 = vadd.f32 %v6114_v45, %v2932_v41  ;;  %v3444_v63 = vmul.f32 %v3316_v60, %v3316_v60  ;;  %v4827_v31 = vmul.f32 1.442695, %v4760_v14  ;;  %v2481_v21 = vadd.f32 %v2417_v19, %v7393_v10 }
 0x20e   :  { %v3379_v26 = vadd.f32 %v3315_v6, %v3187_v58  ;;  %v3507_v40 = vmul.f32 %v3443_v61, %v3443_v61  ;;  %v4567_v3 = vmul.f32 %v6116_v55, %v6116_v55  ;;  %6119 = vpow2.f32 %v4825_v29 }
 0x20f   :  { %v3380_v37 = vadd.f32 %v3316_v60, %v3188_v2  ;;  %v3508_v36 = vmul.f32 %v3444_v63, %v3444_v63  ;;  %6121 = vpow2.f32 %v4827_v31  ;;  %v2549_v20 = vadd.f32 %v7988_v39, %v2480_v44 }
 0x210   :  { %v6118_v45 = vpop.eup %6117  ;;  %v3571_v9 = vadd.f32 %v3507_v40, %v3379_v26  ;;  %v4631_v51 = vmul.f32 %v4567_v3, %v4567_v3  ;;  %v2550_v10 = vadd.f32 %v7990_v47, %v2481_v21  ;;  %v4025_v19 = vmul.f32 0.00390625, %v3818_v32 }
 0x211   :  { %v3572_v28 = vadd.f32 %v3508_v36, %v3380_v37  ;;  %v4568_v50 = vmul.f32 %v6118_v45, %v6118_v45  ;;  %v2613_v30 = vmin.f32 %v2549_v20, 0.0  ;;  %v4026_v59 = vmul.f32 0.00390625, %v3931_v22 }
 0x212   :  { %3635 = vst [vmem:[#allocation4] sm:$0xff] %v3571_v9  ;;  %v4695_v6 = vadd.f32 %v6116_v55, %v4631_v51  ;;  %v2614_v16 = vmin.f32 %v2550_v10, 0.0  ;;  %v4249_v41 = vadd.f32 %v4098_v53, %v4025_v19  ;;  %v2418_v60 = vmul.f32 0.00390625, %v8005_v12 }
 0x213   :  { %3636 = vst [vmem:[#allocation4 + $0x8] sm:$0xff] %v3572_v28  ;;  %v4632_v14 = vmul.f32 %v4568_v50, %v4568_v50  ;;  %v2679_v58 = vmul.f32 1.442695, %v2613_v30  ;;  %v2997_v61 = vmul.f32 16.0, %v2613_v30  ;;  %v4250_v29 = vadd.f32 %v4098_v53, %v4026_v59 }
 0x214   :  { %v6120_v44 = vpop.eup %6119  ;;  %v2681_v25 = vmul.f32 1.442695, %v2614_v16  ;;  %v2998_v2 = vmul.f32 16.0, %v2614_v16  ;;  %v4313_v63 = vadd.f32 %v4249_v41, %v7988_v39  ;;  %v2482_v31 = vadd.f32 %v2418_v60, %v7305_v46 }
 0x215   :  { %v6122_v21 = vpop.eup %6121  ;;  %v4696_v26 = vadd.f32 %v6118_v45, %v4632_v14  ;;  %v4951_v40 = vadd.f32 %v6120_v44, %v4695_v6  ;;  %v5015_v55 = vmul.f32 %v6120_v44, %v6120_v44  ;;  %6123 = vpow2.f32 %v2679_v58 }
 0x216   :  { %v5016_v3 = vmul.f32 %v6122_v21, %v6122_v21  ;;  %v3063_v37 = vmul.f32 1.442695, %v2997_v61  ;;  %6125 = vpow2.f32 %v2681_v25  ;;  %v3065_v12 = vmul.f32 1.442695, %v2998_v2 }
 0x217   :  { %v4952_v36 = vadd.f32 %v6122_v21, %v4696_v26  ;;  %v5079_v20 = vmul.f32 %v5015_v55, %v5015_v55  ;;  %v4314_v32 = vadd.f32 %v4250_v29, %v7990_v47  ;;  %v4377_v53 = vmin.f32 %v4313_v63, 0.0  ;;  %v118_v63 = vld [vmem:[%s8407_s2 + $0xa0] sm:$0xff] }
 0x218   :  { %v5080_v9 = vmul.f32 %v5016_v3, %v5016_v3  ;;  %6127 = vpow2.f32 %v3063_v37  ;;  %v2551_v51 = vadd.f32 %v7988_v39, %v2482_v31  ;;  %v2419_v10 = vmul.f32 0.00390625, %v8013_v27  ;;  %5742 = vmatmul.msk.f32.gmra.mxu0 %vm228_vm0, %v118_v63  ;;  %5790 = vmatmul.msk.f32.gmra.mxu1 %vm228_vm0, %v118_v63 }
 0x219   :  { %v5143_v19 = vadd.f32 %v5079_v20, %v4951_v40  ;;  %v5207_v45 = vmul.f32 %v5079_v20, %v5079_v20  ;;  %6129 = vpow2.f32 %v3065_v12  ;;  %v4378_v22 = vmin.f32 %v4314_v32, 0.0 }
 0x21a   :  { %v5144_v28 = vadd.f32 %v5080_v9, %v4952_v36  ;;  %v5208_v50 = vmul.f32 %v5080_v9, %v5080_v9  ;;  %v4445_v30 = vmul.f32 1.442695, %v4377_v53  ;;  %v4761_v59 = vmul.f32 16.0, %v4377_v53  ;;  %v3821_v53 = vpop.f32.mrf.mxu0 }
 0x21b   :  { %v6124_v6 = vpop.eup %6123  ;;  %v5271_v16 = vmul.f32 %v5207_v45, %v5207_v45  ;;  %v4447_v41 = vmul.f32 1.442695, %v4378_v22  ;;  %v4762_v60 = vmul.f32 16.0, %v4378_v22  ;;  %v2615_v14 = vmin.f32 %v2551_v51, 0.0  ;;  %v3934_v22 = vpop.f32.mrf.mxu1 }
 0x21c   :  { %v6126_v58 = vpop.eup %6125  ;;  %v5272_v61 = vmul.f32 %v5208_v50, %v5208_v50  ;;  %v2805_v29 = vmul.f32 %v6124_v6, %v6124_v6  ;;  %6131 = vpow2.f32 %v4445_v30  ;;  %v4829_v44 = vmul.f32 1.442695, %v4761_v59  ;;  %v6629_v50 = vld [vmem:[%s8405_s0 + $0xe0] sm:$0xff] }
 0x21d   :  { %v5335_v25 = vadd.f32 %v5271_v16, %v5143_v19  ;;  %v2806_v27 = vmul.f32 %v6126_v58, %v6126_v58  ;;  %6133 = vpow2.f32 %v4447_v41  ;;  %v4831_v2 = vmul.f32 1.442695, %v4762_v60 }
 0x21e   :  { %v6128_v31 = vpop.eup %6127  ;;  %v5336_v21 = vadd.f32 %v5272_v61, %v5144_v28  ;;  %v2869_v26 = vmul.f32 %v2805_v29, %v2805_v29  ;;  %6135 = vpow2.f32 %v4829_v44  ;;  %v2683_v40 = vmul.f32 1.442695, %v2615_v14  ;;  %v8051_v28 = vpop.f32.mrf.mxu2  ;;  %5654 = vmatmul.msk.f32.gmra.mxu2 %vm228_vm0, %v6629_v50 }
 0x21f   :  { %v6130_v55 = vpop.eup %6129  ;;  %5399 = vst [vmem:[#allocation6 + $0x10] sm:$0xff] %v5335_v25  ;;  %v3253_v3 = vmul.f32 %v6128_v31, %v6128_v31  ;;  %v2870_v37 = vmul.f32 %v2806_v27, %v2806_v27  ;;  %6137 = vpow2.f32 %v4831_v2  ;;  %v2999_v12 = vmul.f32 16.0, %v2615_v14 }
 0x220   :  { %5400 = vst [vmem:[#allocation6 + $0x18] sm:$0xff] %v5336_v21  ;;  %v2933_v36 = vadd.f32 %v6124_v6, %v2869_v26  ;;  %v3254_v20 = vmul.f32 %v6130_v55, %v6130_v55  ;;  %6139 = vpow2.f32 %v2683_v40  ;;  %v2483_v32 = vadd.f32 %v2419_v10, %v7305_v46  ;;  %v8058_v10 = vpop.f32.mrf.mxu3  ;;  %5702 = vmatmul.msk.f32.gmra.mxu3 %vm228_vm0, %v6629_v50 }
 0x221   :  { %v3317_v9 = vmul.f32 %v3253_v3, %v3253_v3  ;;  %v2934_v51 = vadd.f32 %v6126_v58, %v2870_v37  ;;  %v3067_v19 = vmul.f32 1.442695, %v2999_v12  ;;  %v4027_v45 = vmul.f32 0.00390625, %v3821_v53 }
 0x222   :  { %v6132_v30 = vpop.eup %6131  ;;  %v3189_v59 = vadd.f32 %v6128_v31, %v2933_v36  ;;  %v3318_v6 = vmul.f32 %v3254_v20, %v3254_v20  ;;  %v2552_v16 = vadd.f32 %v7990_v47, %v2483_v32  ;;  %v4028_v46 = vmul.f32 0.00390625, %v3934_v22 }
 0x223   :  { %v6134_v41 = vpop.eup %6133  ;;  %v3445_v60 = vmul.f32 %v3317_v9, %v3317_v9  ;;  %v3190_v14 = vadd.f32 %v6130_v55, %v2934_v51  ;;  %v4569_v58 = vmul.f32 %v6132_v30, %v6132_v30  ;;  %6141 = vpow2.f32 %v3067_v19 }
 0x224   :  { %v6136_v61 = vpop.eup %6135  ;;  %v3381_v29 = vadd.f32 %v3317_v9, %v3189_v59  ;;  %v3446_v44 = vmul.f32 %v3318_v6, %v3318_v6  ;;  %v4570_v25 = vmul.f32 %v6134_v41, %v6134_v41  ;;  %v2616_v27 = vmin.f32 %v2552_v16, 0.0 }
 0x225   :  { %v6138_v2 = vpop.eup %6137  ;;  %v3509_v63 = vmul.f32 %v3445_v60, %v3445_v60  ;;  %v3382_v31 = vadd.f32 %v3318_v6, %v3190_v14  ;;  %v4633_v21 = vmul.f32 %v4569_v58, %v4569_v58  ;;  %v5017_v26 = vmul.f32 %v6136_v61, %v6136_v61  ;;  %v4103_v60 = vpop.permute.xlu2 %4102 }
 0x226   :  { %v6140_v40 = vpop.eup %6139  ;;  %v3510_v3 = vmul.f32 %v3446_v44, %v3446_v44  ;;  %v4634_v37 = vmul.f32 %v4570_v25, %v4570_v25  ;;  %v5018_v12 = vmul.f32 %v6138_v2, %v6138_v2  ;;  %v2685_v36 = vmul.f32 1.442695, %v2616_v27 }
 0x227   :  { %v3573_v20 = vadd.f32 %v3509_v63, %v3381_v29  ;;  %v4697_v32 = vadd.f32 %v6132_v30, %v4633_v21  ;;  %v5081_v55 = vmul.f32 %v5017_v26, %v5017_v26  ;;  %v2807_v53 = vmul.f32 %v6140_v40, %v6140_v40 }
 0x228   :  { %v3574_v51 = vadd.f32 %v3510_v3, %v3382_v31  ;;  %v4698_v19 = vadd.f32 %v6134_v41, %v4634_v37  ;;  %v5082_v9 = vmul.f32 %v5018_v12, %v5018_v12  ;;  %6143 = vpow2.f32 %v2685_v36 }
 0x229   :  { %v6142_v22 = vpop.eup %6141  ;;  %3637 = vst [vmem:[#allocation4 + $0x10] sm:$0xff] %v3573_v20  ;;  %v4953_v50 = vadd.f32 %v6136_v61, %v4697_v32  ;;  %v5209_v59 = vmul.f32 %v5081_v55, %v5081_v55  ;;  %v2871_v6 = vmul.f32 %v2807_v53, %v2807_v53  ;;  %v3000_v16 = vmul.f32 16.0, %v2616_v27  ;;  %v119_v61 = vld [vmem:[%s8407_s2 + $0xa8] sm:$0xff] }
 0x22a   :  { %3638 = vst [vmem:[#allocation4 + $0x18] sm:$0xff] %v3574_v51  ;;  %v4954_v14 = vadd.f32 %v6138_v2, %v4698_v19  ;;  %v5210_v58 = vmul.f32 %v5082_v9, %v5082_v9  ;;  %v3255_v44 = vmul.f32 %v6142_v22, %v6142_v22  ;;  %v4251_v25 = vadd.f32 %v4103_v60, %v4027_v45  ;;  %v3824_v51 = vpop.f32.mrf.mxu0 }
 0x22b   :  { %v5145_v29 = vadd.f32 %v5081_v55, %v4953_v50  ;;  %v5273_v30 = vmul.f32 %v5209_v59, %v5209_v59  ;;  %v2935_v63 = vadd.f32 %v6140_v40, %v2871_v6  ;;  %v3069_v21 = vmul.f32 1.442695, %v3000_v16  ;;  %5743 = vmatmul.msk.f32.gmra.mxu0 %vm228_vm0, %v119_v61  ;;  %5791 = vmatmul.msk.f32.gmra.mxu1 %vm228_vm0, %v119_v61  ;;  %v8071_v59 = vpop.f32.mrf.mxu2  ;;  %v6630_v6 = vld [vmem:[%s8405_s0 + $0xe8] sm:$0xff] }
 0x22c   :  { %v5146_v31 = vadd.f32 %v5082_v9, %v4954_v14  ;;  %v5274_v41 = vmul.f32 %v5210_v58, %v5210_v58  ;;  %v3319_v26 = vmul.f32 %v3255_v44, %v3255_v44  ;;  %v4252_v3 = vadd.f32 %v4103_v60, %v4028_v46  ;;  %5655 = vmatmul.msk.f32.gmra.mxu2 %vm228_vm0, %v6630_v6  ;;  %v8078_v14 = vpop.f32.mrf.mxu3 }
 0x22d   :  { %v5337_v37 = vadd.f32 %v5273_v30, %v5145_v29  ;;  %v3191_v27 = vadd.f32 %v6142_v22, %v2935_v63  ;;  %6145 = vpow2.f32 %v3069_v21  ;;  %v4315_v2 = vadd.f32 %v4251_v25, %v7988_v39  ;;  %5703 = vmatmul.msk.f32.gmra.mxu3 %vm228_vm0, %v6630_v6 }
 0x22e   :  { %v6144_v45 = vpop.eup %6143  ;;  %v5338_v40 = vadd.f32 %v5274_v41, %v5146_v31  ;;  %v3447_v12 = vmul.f32 %v3319_v26, %v3319_v26  ;;  %v4316_v36 = vadd.f32 %v4252_v3, %v7990_v47  ;;  %v2420_v46 = vmul.f32 0.00390625, %v8027_v34  ;;  %v4108_v41 = vpop.permute.xlu0 %4107 }
 0x22f   :  { %5401 = vst [vmem:[#allocation6 + $0x20] sm:$0xff] %v5337_v37  ;;  %v3383_v20 = vadd.f32 %v3319_v26, %v3191_v27  ;;  %v2808_v32 = vmul.f32 %v6144_v45, %v6144_v45  ;;  %v4379_v55 = vmin.f32 %v4315_v2, 0.0  ;;  %v2421_v53 = vmul.f32 0.00390625, %v8034_v24 }
 0x230   :  { %5402 = vst [vmem:[#allocation6 + $0x28] sm:$0xff] %v5338_v40  ;;  %v3511_v19 = vmul.f32 %v3447_v12, %v3447_v12  ;;  %v4380_v9 = vmin.f32 %v4316_v36, 0.0  ;;  %v2484_v22 = vadd.f32 %v2420_v46, %v7341_v56  ;;  %v4029_v50 = vmul.f32 0.00390625, %v3824_v51  ;;  %v3937_v36 = vpop.f32.mrf.mxu1 }
 0x231   :  { %v2872_v34 = vmul.f32 %v2808_v32, %v2808_v32  ;;  %v4449_v16 = vmul.f32 1.442695, %v4379_v55  ;;  %v4763_v60 = vmul.f32 16.0, %v4379_v55  ;;  %v2485_v24 = vadd.f32 %v2421_v53, %v7341_v56 }
 0x232   :  { %v3575_v58 = vadd.f32 %v3511_v19, %v3383_v20  ;;  %v4451_v44 = vmul.f32 1.442695, %v4380_v9  ;;  %v4764_v25 = vmul.f32 16.0, %v4380_v9  ;;  %v2553_v29 = vadd.f32 %v7988_v39, %v2484_v22 }
 0x233   :  { %v6146_v30 = vpop.eup %6145  ;;  %v2936_v63 = vadd.f32 %v6144_v45, %v2872_v34  ;;  %6147 = vpow2.f32 %v4449_v16  ;;  %v4833_v21 = vmul.f32 1.442695, %v4763_v60  ;;  %v2554_v31 = vadd.f32 %v7990_v47, %v2485_v24 }
 0x234   :  { %3639 = vst [vmem:[#allocation4 + $0x20] sm:$0xff] %v3575_v58  ;;  %v3256_v26 = vmul.f32 %v6146_v30, %v6146_v30  ;;  %6149 = vpow2.f32 %v4451_v44  ;;  %v4835_v56 = vmul.f32 1.442695, %v4764_v25  ;;  %v2617_v3 = vmin.f32 %v2553_v29, 0.0 }
 0x235   :  { %v3192_v61 = vadd.f32 %v6146_v30, %v2936_v63  ;;  %6151 = vpow2.f32 %v4833_v21  ;;  %v2618_v37 = vmin.f32 %v2554_v31, 0.0  ;;  %v4253_v27 = vadd.f32 %v4108_v41, %v4029_v50 }
 0x236   :  { %v3320_v2 = vmul.f32 %v3256_v26, %v3256_v26  ;;  %6153 = vpow2.f32 %v4835_v56  ;;  %v2687_v40 = vmul.f32 1.442695, %v2617_v3  ;;  %v3001_v12 = vmul.f32 16.0, %v2617_v3 }
 0x237   :  { %v2689_v45 = vmul.f32 1.442695, %v2618_v37  ;;  %v3002_v46 = vmul.f32 16.0, %v2618_v37  ;;  %v4317_v20 = vadd.f32 %v4253_v27, %v7988_v39  ;;  %v4030_v32 = vmul.f32 0.00390625, %v3937_v36 }
 0x238   :  { %v3384_v55 = vadd.f32 %v3320_v2, %v3192_v61  ;;  %v3448_v53 = vmul.f32 %v3320_v2, %v3320_v2  ;;  %6155 = vpow2.f32 %v2687_v40  ;;  %v3071_v51 = vmul.f32 1.442695, %v3001_v12 }
 0x239   :  { %v6148_v19 = vpop.eup %6147  ;;  %6157 = vpow2.f32 %v2689_v45  ;;  %v3073_v9 = vmul.f32 1.442695, %v3002_v46  ;;  %v4381_v22 = vmin.f32 %v4317_v20, 0.0  ;;  %v4254_v6 = vadd.f32 %v4108_v41, %v4030_v32 }
 0x23a   :  { %v6150_v50 = vpop.eup %6149  ;;  %v3512_v34 = vmul.f32 %v3448_v53, %v3448_v53  ;;  %v4571_v16 = vmul.f32 %v6148_v19, %v6148_v19  ;;  %6159 = vpow2.f32 %v3071_v51  ;;  %v2422_v60 = vmul.f32 0.00390625, %v8051_v28 }
 0x23b   :  { %v6152_v24 = vpop.eup %6151  ;;  %v4572_v58 = vmul.f32 %v6150_v50, %v6150_v50  ;;  %6161 = vpow2.f32 %v3073_v9  ;;  %v4453_v44 = vmul.f32 1.442695, %v4381_v22  ;;  %v4765_v25 = vmul.f32 16.0, %v4381_v22 }
 0x23c   :  { %v6154_v29 = vpop.eup %6153  ;;  %v3576_v30 = vadd.f32 %v3512_v34, %v3384_v55  ;;  %v4635_v63 = vmul.f32 %v4571_v16, %v4571_v16  ;;  %v5019_v21 = vmul.f32 %v6152_v24, %v6152_v24  ;;  %v4318_v31 = vadd.f32 %v4254_v6, %v7990_v47 }
 0x23d   :  { %v4636_v26 = vmul.f32 %v4572_v58, %v4572_v58  ;;  %v5020_v56 = vmul.f32 %v6154_v29, %v6154_v29  ;;  %6163 = vpow2.f32 %v4453_v44  ;;  %v4837_v41 = vmul.f32 1.442695, %v4765_v25 }
 0x23e   :  { %v6156_v3 = vpop.eup %6155  ;;  %3640 = vst [vmem:[#allocation4 + $0x28] sm:$0xff] %v3576_v30  ;;  %v4699_v61 = vadd.f32 %v6148_v19, %v4635_v63  ;;  %v5083_v37 = vmul.f32 %v5019_v21, %v5019_v21  ;;  %v4382_v28 = vmin.f32 %v4318_v31, 0.0  ;;  %v2486_v27 = vadd.f32 %v2422_v60, %v7344_v57 }
 0x23f   :  { %v6158_v2 = vpop.eup %6157  ;;  %v4700_v40 = vadd.f32 %v6150_v50, %v4636_v26  ;;  %v5084_v12 = vmul.f32 %v5020_v56, %v5020_v56  ;;  %v2809_v36 = vmul.f32 %v6156_v3, %v6156_v3  ;;  %6165 = vpow2.f32 %v4837_v41 }
 0x240   :  { %v6160_v45 = vpop.eup %6159  ;;  %v4955_v46 = vadd.f32 %v6152_v24, %v4699_v61  ;;  %v5211_v20 = vmul.f32 %v5083_v37, %v5083_v37  ;;  %v2810_v32 = vmul.f32 %v6158_v2, %v6158_v2  ;;  %v4455_v55 = vmul.f32 1.442695, %v4382_v28  ;;  %v3827_v61 = vpop.f32.mrf.mxu0 }
 0x241   :  { %v6162_v53 = vpop.eup %6161  ;;  %v4956_v51 = vadd.f32 %v6154_v29, %v4700_v40  ;;  %v5212_v9 = vmul.f32 %v5084_v12, %v5084_v12  ;;  %v2873_v22 = vmul.f32 %v2809_v36, %v2809_v36  ;;  %v3257_v6 = vmul.f32 %v6160_v45, %v6160_v45 }
 0x242   :  { %v5147_v19 = vadd.f32 %v5083_v37, %v4955_v46  ;;  %v5275_v34 = vmul.f32 %v5211_v20, %v5211_v20  ;;  %v2874_v16 = vmul.f32 %v2810_v32, %v2810_v32  ;;  %v3258_v58 = vmul.f32 %v6162_v53, %v6162_v53  ;;  %v120_v37 = vld [vmem:[%s8407_s2 + $0xb0] sm:$0xff] }
 0x243   :  { %v6164_v60 = vpop.eup %6163  ;;  %v5148_v44 = vadd.f32 %v5084_v12, %v4956_v51  ;;  %v5276_v50 = vmul.f32 %v5212_v9, %v5212_v9  ;;  %v2937_v25 = vadd.f32 %v6156_v3, %v2873_v22  ;;  %v3321_v30 = vmul.f32 %v3257_v6, %v3257_v6  ;;  %5744 = vmatmul.msk.f32.gmra.mxu0 %vm228_vm0, %v120_v37 }
 0x244   :  { %v5339_v63 = vadd.f32 %v5275_v34, %v5147_v19  ;;  %v2938_v21 = vadd.f32 %v6158_v2, %v2874_v16  ;;  %v3322_v24 = vmul.f32 %v3258_v58, %v3258_v58  ;;  %v4573_v31 = vmul.f32 %v6164_v60, %v6164_v60  ;;  %5792 = vmatmul.msk.f32.gmra.mxu1 %vm228_vm0, %v120_v37  ;;  %v8094_v34 = vpop.f32.mrf.mxu2  ;;  %v8096_v16 = vpop.f32.mrf.mxu3 }
 0x245   :  { %v6166_v26 = vpop.eup %6165  ;;  %v5340_v56 = vadd.f32 %v5276_v50, %v5148_v44  ;;  %v3193_v41 = vadd.f32 %v6160_v45, %v2937_v25  ;;  %v3449_v29 = vmul.f32 %v3321_v30, %v3321_v30  ;;  %6167 = vpow2.f32 %v4455_v55 }
 0x246   :  { %5403 = vst [vmem:[#allocation6 + $0x30] sm:$0xff] %v5339_v63  ;;  %v3194_v40 = vadd.f32 %v6162_v53, %v2938_v21  ;;  %v3450_v12 = vmul.f32 %v3322_v24, %v3322_v24  ;;  %v4637_v36 = vmul.f32 %v4573_v31, %v4573_v31  ;;  %v5021_v3 = vmul.f32 %v6166_v26, %v6166_v26 }
 0x247   :  { %5404 = vst [vmem:[#allocation6 + $0x38] sm:$0xff] %v5340_v56  ;;  %v3385_v46 = vadd.f32 %v3321_v30, %v3193_v41  ;;  %v3513_v2 = vmul.f32 %v3449_v29, %v3449_v29  ;;  %v4766_v20 = vmul.f32 16.0, %v4382_v28  ;;  %v2555_v32 = vadd.f32 %v7988_v39, %v2486_v27  ;;  %v6631_v28 = vld [vmem:[%s8405_s0 + $0xf0] sm:$0xff]  ;;  %v3940_v41 = vpop.f32.mrf.mxu1 }
 0x248   :  { %v3386_v45 = vadd.f32 %v3322_v24, %v3194_v40  ;;  %v3514_v55 = vmul.f32 %v3450_v12, %v3450_v12  ;;  %v4701_v51 = vadd.f32 %v6164_v60, %v4637_v36  ;;  %v5085_v9 = vmul.f32 %v5021_v3, %v5021_v3  ;;  %5656 = vmatmul.msk.f32.gmra.mxu2 %vm228_vm0, %v6631_v28 }
 0x249   :  { %v3577_v22 = vadd.f32 %v3513_v2, %v3385_v46  ;;  %v4839_v6 = vmul.f32 1.442695, %v4766_v20  ;;  %v2619_v53 = vmin.f32 %v2555_v32, 0.0  ;;  %v2423_v19 = vmul.f32 0.00390625, %v8058_v10  ;;  %5704 = vmatmul.msk.f32.gmra.mxu3 %vm228_vm0, %v6631_v28  ;;  %v4113_v10 = vpop.permute.xlu1 %4112  ;;  %v3830_v2 = vpop.f32.mrf.mxu0 }
 0x24a   :  { %v3578_v27 = vadd.f32 %v3514_v55, %v3386_v45  ;;  %v4957_v58 = vadd.f32 %v6166_v26, %v4701_v51  ;;  %v5213_v60 = vmul.f32 %v5085_v9, %v5085_v9  ;;  %v4031_v44 = vmul.f32 0.00390625, %v3827_v61 }
 0x24b   :  { %v6168_v50 = vpop.eup %6167  ;;  %3641 = vst [vmem:[#allocation4 + $0x30] sm:$0xff] %v3577_v22  ;;  %6169 = vpow2.f32 %v4839_v6  ;;  %v2691_v25 = vmul.f32 1.442695, %v2619_v53  ;;  %v3003_v30 = vmul.f32 16.0, %v2619_v53  ;;  %v2487_v63 = vadd.f32 %v2423_v19, %v7344_v57 }
 0x24c   :  { %3642 = vst [vmem:[#allocation4 + $0x38] sm:$0xff] %v3578_v27  ;;  %v5149_v21 = vadd.f32 %v5085_v9, %v4957_v58  ;;  %v5277_v24 = vmul.f32 %v5213_v60, %v5213_v60  ;;  %v4574_v31 = vmul.f32 %v6168_v50, %v6168_v50  ;;  %v4255_v56 = vadd.f32 %v4113_v10, %v4031_v44 }
 0x24d   :  { %6171 = vpow2.f32 %v2691_v25  ;;  %v3075_v29 = vmul.f32 1.442695, %v3003_v30  ;;  %v2556_v26 = vadd.f32 %v7990_v47, %v2487_v63  ;;  %v4032_v37 = vmul.f32 0.00390625, %v3940_v41 }
 0x24e   :  { %v5341_v61 = vadd.f32 %v5277_v24, %v5149_v21  ;;  %v4638_v40 = vmul.f32 %v4574_v31, %v4574_v31  ;;  %v4319_v12 = vadd.f32 %v4255_v56, %v7988_v39  ;;  %v2424_v36 = vmul.f32 0.00390625, %v8071_v59 }
 0x24f   :  { %6173 = vpow2.f32 %v3075_v29  ;;  %v2620_v3 = vmin.f32 %v2556_v26, 0.0  ;;  %v4256_v57 = vadd.f32 %v4113_v10, %v4032_v37  ;;  %v2425_v46 = vmul.f32 0.00390625, %v8078_v14  ;;  %v121_v29 = vld [vmem:[%s8407_s2 + $0xb8] sm:$0xff] }
 0x250   :  { %5405 = vst [vmem:[#allocation6 + $0x40] sm:$0xff] %v5341_v61  ;;  %v4702_v20 = vadd.f32 %v6168_v50, %v4638_v40  ;;  %v4383_v32 = vmin.f32 %v4319_v12, 0.0  ;;  %v2488_v45 = vadd.f32 %v2424_v36, %v7368_v1  ;;  %v4033_v55 = vmul.f32 0.00390625, %v3830_v2  ;;  %5745 = vmatmul.msk.f32.gmra.mxu0 %vm228_vm0, %v121_v29  ;;  %5793 = vmatmul.msk.f32.gmra.mxu1 %vm228_vm0, %v121_v29  ;;  %v8117_v12 = vpop.permute.xlu2 %4117 }
 0x251   :  { %v6170_v51 = vpop.eup %6169  ;;  %v2693_v9 = vmul.f32 1.442695, %v2620_v3  ;;  %v3004_v22 = vmul.f32 16.0, %v2620_v3  ;;  %v4320_v6 = vadd.f32 %v4256_v57, %v7990_v47  ;;  %v2489_v53 = vadd.f32 %v2425_v46, %v7368_v1 }
 0x252   :  { %v4958_v59 = vadd.f32 %v6170_v51, %v4702_v20  ;;  %v5022_v19 = vmul.f32 %v6170_v51, %v6170_v51  ;;  %v4457_v28 = vmul.f32 1.442695, %v4383_v32  ;;  %v4767_v27 = vmul.f32 16.0, %v4383_v32 }
 0x253   :  { %v6172_v58 = vpop.eup %6171  ;;  %6175 = vpow2.f32 %v2693_v9  ;;  %v3077_v14 = vmul.f32 1.442695, %v3004_v22  ;;  %v4384_v60 = vmin.f32 %v4320_v6, 0.0  ;;  %v2557_v44 = vadd.f32 %v7988_v39, %v2488_v45  ;;  %v8121_v6 = vpop.f32.mrf.mxu2 }
 0x254   :  { %v5086_v50 = vmul.f32 %v5022_v19, %v5022_v19  ;;  %v2811_v10 = vmul.f32 %v6172_v58, %v6172_v58  ;;  %6177 = vpow2.f32 %v4457_v28  ;;  %v4841_v25 = vmul.f32 1.442695, %v4767_v27 }
 0x255   :  { %v6174_v30 = vpop.eup %6173  ;;  %6179 = vpow2.f32 %v3077_v14  ;;  %v4459_v63 = vmul.f32 1.442695, %v4384_v60  ;;  %v4768_v21 = vmul.f32 16.0, %v4384_v60  ;;  %v2621_v24 = vmin.f32 %v2557_v44, 0.0 }
 0x256   :  { %v5150_v1 = vadd.f32 %v5086_v50, %v4958_v59  ;;  %v5214_v31 = vmul.f32 %v5086_v50, %v5086_v50  ;;  %v2875_v56 = vmul.f32 %v2811_v10, %v2811_v10  ;;  %v3259_v41 = vmul.f32 %v6174_v30, %v6174_v30  ;;  %v6632_v59 = vld [vmem:[%s8405_s0 + $0xf8] sm:$0xff]  ;;  %s5491_s0 = sshll.u32 %s6714_s29, 4  ;;  %s5492_s0 = int_to_ptr.vmem [resolvable:$true] %s5491_s0 }
 0x257   :  { %6181 = vpow2.f32 %v4841_v25  ;;  %v4843_v26 = vmul.f32 1.442695, %v4768_v21  ;;  %v2695_v37 = vmul.f32 1.442695, %v2621_v24  ;;  %v3005_v61 = vmul.f32 16.0, %v2621_v24  ;;  %5657 = vmatmul.msk.f32.gmra.mxu2 %vm228_vm0, %v6632_v59 }
 0x258   :  { %v5278_v40 = vmul.f32 %v5214_v31, %v5214_v31  ;;  %v2939_v36 = vadd.f32 %v6172_v58, %v2875_v56  ;;  %v3323_v3 = vmul.f32 %v3259_v41, %v3259_v41  ;;  %6183 = vpow2.f32 %v4459_v63 }
 0x259   :  { %v6176_v57 = vpop.eup %6175  ;;  %6185 = vpow2.f32 %v4843_v26  ;;  %v3079_v46 = vmul.f32 1.442695, %v3005_v61  ;;  %v2558_v2 = vadd.f32 %v7990_v47, %v2489_v53  ;;  %v4257_v20 = vadd.f32 %v8117_v12, %v4033_v55  ;;  %v8128_v55 = vpop.f32.mrf.mxu3  ;;  %5705 = vmatmul.msk.f32.gmra.mxu3 %vm228_vm0, %v6632_v59 }
 0x25a   :  { %v6178_v32 = vpop.eup %6177  ;;  %v5342_v45 = vadd.f32 %v5278_v40, %v5150_v1  ;;  %v3195_v51 = vadd.f32 %v6174_v30, %v2939_v36  ;;  %v3451_v9 = vmul.f32 %v3323_v3, %v3323_v3  ;;  %v2812_v22 = vmul.f32 %v6176_v57, %v6176_v57 }
 0x25b   :  { %v6180_v19 = vpop.eup %6179  ;;  %v4575_v28 = vmul.f32 %v6178_v32, %v6178_v32  ;;  %6187 = vpow2.f32 %v2695_v37  ;;  %v2622_v27 = vmin.f32 %v2558_v2, 0.0  ;;  %v4321_v53 = vadd.f32 %v4257_v20, %v7988_v39 }
 0x25c   :  { %5406 = vst [vmem:[#allocation6 + $0x48] sm:$0xff] %v5342_v45  ;;  %v3387_v58 = vadd.f32 %v3323_v3, %v3195_v51  ;;  %v3515_v14 = vmul.f32 %v3451_v9, %v3451_v9  ;;  %v2876_v60 = vmul.f32 %v2812_v22, %v2812_v22  ;;  %v3260_v44 = vmul.f32 %v6180_v19, %v6180_v19 }
 0x25d   :  { %v6182_v50 = vpop.eup %6181  ;;  %v4639_v10 = vmul.f32 %v4575_v28, %v4575_v28  ;;  %6189 = vpow2.f32 %v3079_v46  ;;  %v2697_v25 = vmul.f32 1.442695, %v2622_v27  ;;  %v3006_v30 = vmul.f32 16.0, %v2622_v27 }
 0x25e   :  { %v6184_v63 = vpop.eup %6183  ;;  %v3579_v21 = vadd.f32 %v3515_v14, %v3387_v58  ;;  %v2940_v24 = vadd.f32 %v6176_v57, %v2876_v60  ;;  %v3324_v1 = vmul.f32 %v3260_v44, %v3260_v44  ;;  %v5023_v31 = vmul.f32 %v6182_v50, %v6182_v50  ;;  %v122_v44 = vld [vmem:[%s8407_s2 + $0xc0] sm:$0xff] }
 0x25f   :  { %v6186_v56 = vpop.eup %6185  ;;  %v4703_v41 = vadd.f32 %v6178_v32, %v4639_v10  ;;  %v4576_v29 = vmul.f32 %v6184_v63, %v6184_v63  ;;  %6191 = vpow2.f32 %v2697_v25  ;;  %v3081_v26 = vmul.f32 1.442695, %v3006_v30  ;;  %5746 = vmatmul.msk.f32.gmra.mxu0 %vm228_vm0, %v122_v44  ;;  %5794 = vmatmul.msk.f32.gmra.mxu1 %vm228_vm0, %v122_v44 }
 0x260   :  { %3643 = vst [vmem:[#allocation4 + $0x40] sm:$0xff] %v3579_v21  ;;  %v3196_v37 = vadd.f32 %v6180_v19, %v2940_v24  ;;  %v3452_v61 = vmul.f32 %v3324_v1, %v3324_v1  ;;  %v5087_v40 = vmul.f32 %v5023_v31, %v5023_v31  ;;  %v5024_v36 = vmul.f32 %v6186_v56, %v6186_v56 }
 0x261   :  { %v6188_v3 = vpop.eup %6187  ;;  %v4959_v2 = vadd.f32 %v6182_v50, %v4703_v41  ;;  %v4640_v46 = vmul.f32 %v4576_v29, %v4576_v29  ;;  %6193 = vpow2.f32 %v3081_v26  ;;  %v4385_v20 = vmin.f32 %v4321_v53, 0.0 }
 0x262   :  { %v3388_v45 = vadd.f32 %v3324_v1, %v3196_v37  ;;  %v3516_v51 = vmul.f32 %v3452_v61, %v3452_v61  ;;  %v5215_v57 = vmul.f32 %v5087_v40, %v5087_v40  ;;  %v5088_v9 = vmul.f32 %v5024_v36, %v5024_v36  ;;  %v3943_v1 = vpop.f32.mrf.mxu1 }
 0x263   :  { %v6190_v22 = vpop.eup %6189  ;;  %v5151_v59 = vadd.f32 %v5087_v40, %v4959_v2  ;;  %v4704_v32 = vadd.f32 %v6184_v63, %v4640_v46  ;;  %v2813_v28 = vmul.f32 %v6188_v3, %v6188_v3  ;;  %v4461_v27 = vmul.f32 1.442695, %v4385_v20 }
 0x264   :  { %v3580_v58 = vadd.f32 %v3516_v51, %v3388_v45  ;;  %v5279_v14 = vmul.f32 %v5215_v57, %v5215_v57  ;;  %v5216_v19 = vmul.f32 %v5088_v9, %v5088_v9  ;;  %v3261_v60 = vmul.f32 %v6190_v22, %v6190_v22 }
 0x265   :  { %v6192_v50 = vpop.eup %6191  ;;  %v4960_v10 = vadd.f32 %v6186_v56, %v4704_v32  ;;  %v2877_v53 = vmul.f32 %v2813_v28, %v2813_v28  ;;  %6195 = vpow2.f32 %v4461_v27  ;;  %v4769_v25 = vmul.f32 16.0, %v4385_v20 }
 0x266   :  { %3644 = vst [vmem:[#allocation4 + $0x48] sm:$0xff] %v3580_v58  ;;  %v5343_v30 = vadd.f32 %v5279_v14, %v5151_v59  ;;  %v5280_v63 = vmul.f32 %v5216_v19, %v5216_v19  ;;  %v3325_v21 = vmul.f32 %v3261_v60, %v3261_v60  ;;  %v2814_v24 = vmul.f32 %v6192_v50, %v6192_v50 }
 0x267   :  { %v6194_v31 = vpop.eup %6193  ;;  %v5152_v41 = vadd.f32 %v5088_v9, %v4960_v10  ;;  %v2941_v29 = vadd.f32 %v6188_v3, %v2877_v53  ;;  %v4845_v26 = vmul.f32 1.442695, %v4769_v25  ;;  %v4034_v37 = vmul.f32 0.00390625, %v3943_v1  ;;  %v3833_v9 = vpop.f32.mrf.mxu0 }
 0x268   :  { %5407 = vst [vmem:[#allocation6 + $0x50] sm:$0xff] %v5343_v30  ;;  %v3453_v56 = vmul.f32 %v3325_v21, %v3325_v21  ;;  %v2878_v61 = vmul.f32 %v2814_v24, %v2814_v24  ;;  %v3262_v40 = vmul.f32 %v6194_v31, %v6194_v31  ;;  %v2426_v36 = vmul.f32 0.00390625, %v8094_v34  ;;  %v4123_v34 = vpop.permute.xlu0 %4122 }
 0x269   :  { %v5344_v2 = vadd.f32 %v5280_v63, %v5152_v41  ;;  %v3197_v46 = vadd.f32 %v6190_v22, %v2941_v29  ;;  %6197 = vpow2.f32 %v4845_v26  ;;  %v4258_v20 = vadd.f32 %v8117_v12, %v4034_v37 }
 0x26a   :  { %v3517_v45 = vmul.f32 %v3453_v56, %v3453_v56  ;;  %v2942_v51 = vadd.f32 %v6192_v50, %v2878_v61  ;;  %v3326_v57 = vmul.f32 %v3262_v40, %v3262_v40  ;;  %v2490_v59 = vadd.f32 %v2426_v36, %v7412_v17  ;;  %v3946_v56 = vpop.f32.mrf.mxu1 }
 0x26b   :  { %v6196_v3 = vpop.eup %6195  ;;  %5408 = vst [vmem:[#allocation6 + $0x58] sm:$0xff] %v5344_v2  ;;  %v3389_v32 = vadd.f32 %v3325_v21, %v3197_v46  ;;  %v4322_v28 = vadd.f32 %v4258_v20, %v7990_v47  ;;  %v2427_v27 = vmul.f32 0.00390625, %v8096_v16  ;;  %v4035_v58 = vmul.f32 0.00390625, %v3833_v9 }
 0x26c   :  { %v3198_v14 = vadd.f32 %v6194_v31, %v2942_v51  ;;  %v3454_v22 = vmul.f32 %v3326_v57, %v3326_v57  ;;  %v4577_v19 = vmul.f32 %v6196_v3, %v6196_v3  ;;  %v2559_v12 = vadd.f32 %v7988_v39, %v2490_v59 }
 0x26d   :  { %v3581_v60 = vadd.f32 %v3517_v45, %v3389_v32  ;;  %v4386_v44 = vmin.f32 %v4322_v28, 0.0  ;;  %v2491_v50 = vadd.f32 %v2427_v27, %v7412_v17  ;;  %v4259_v10 = vadd.f32 %v4123_v34, %v4035_v58 }
 0x26e   :  { %v3390_v53 = vadd.f32 %v3326_v57, %v3198_v14  ;;  %v3518_v25 = vmul.f32 %v3454_v22, %v3454_v22  ;;  %v4641_v30 = vmul.f32 %v4577_v19, %v4577_v19  ;;  %v2623_v63 = vmin.f32 %v2559_v12, 0.0 }
 0x26f   :  { %v6198_v21 = vpop.eup %6197  ;;  %3645 = vst [vmem:[#allocation4 + $0x50] sm:$0xff] %v3581_v60  ;;  %v4463_v24 = vmul.f32 1.442695, %v4386_v44  ;;  %v4770_v16 = vmul.f32 16.0, %v4386_v44  ;;  %v2560_v1 = vadd.f32 %v7990_v47, %v2491_v50  ;;  %v4323_v31 = vadd.f32 %v4259_v10, %v7988_v39  ;;  %v3836_v19 = vpop.f32.mrf.mxu0 }
 0x270   :  { %v3582_v41 = vadd.f32 %v3518_v25, %v3390_v53  ;;  %v4705_v29 = vadd.f32 %v6196_v3, %v4641_v30  ;;  %v5025_v26 = vmul.f32 %v6198_v21, %v6198_v21  ;;  %v2699_v37 = vmul.f32 1.442695, %v2623_v63 }
 0x271   :  { %6199 = vpow2.f32 %v4463_v24  ;;  %v4847_v17 = vmul.f32 1.442695, %v4770_v16  ;;  %v3007_v61 = vmul.f32 16.0, %v2623_v63  ;;  %v2624_v40 = vmin.f32 %v2560_v1, 0.0 }
 0x272   :  { %3646 = vst [vmem:[#allocation4 + $0x58] sm:$0xff] %v3582_v41  ;;  %v4961_v36 = vadd.f32 %v6198_v21, %v4705_v29  ;;  %v5089_v2 = vmul.f32 %v5025_v26, %v5025_v26  ;;  %6201 = vpow2.f32 %v2699_v37  ;;  %v4387_v46 = vmin.f32 %v4323_v31, 0.0  ;;  %v3949_v41 = vpop.f32.mrf.mxu1 }
 0x273   :  { %6203 = vpow2.f32 %v4847_v17  ;;  %v3083_v20 = vmul.f32 1.442695, %v3007_v61  ;;  %v2701_v45 = vmul.f32 1.442695, %v2624_v40  ;;  %v3008_v51 = vmul.f32 16.0, %v2624_v40 }
 0x274   :  { %v5153_v57 = vadd.f32 %v5089_v2, %v4961_v36  ;;  %v5217_v59 = vmul.f32 %v5089_v2, %v5089_v2  ;;  %v4465_v9 = vmul.f32 1.442695, %v4387_v46  ;;  %v4771_v3 = vmul.f32 16.0, %v4387_v46 }
 0x275   :  { %6205 = vpow2.f32 %v3083_v20  ;;  %v3085_v32 = vmul.f32 1.442695, %v3008_v51  ;;  %v4036_v28 = vmul.f32 0.00390625, %v3946_v56  ;;  %v2428_v27 = vmul.f32 0.00390625, %v8121_v6  ;;  %v8149_v6 = vpop.permute.xlu1 %4127 }
 0x276   :  { %v5281_v58 = vmul.f32 %v5217_v59, %v5217_v59  ;;  %6207 = vpow2.f32 %v2701_v45  ;;  %v4849_v14 = vmul.f32 1.442695, %v4771_v3  ;;  %v2429_v22 = vmul.f32 0.00390625, %v8128_v55 }
 0x277   :  { %v6200_v12 = vpop.eup %6199  ;;  %6209 = vpow2.f32 %v3085_v32  ;;  %v4260_v60 = vadd.f32 %v4123_v34, %v4036_v28  ;;  %v2492_v44 = vadd.f32 %v2428_v27, %v7366_v0  ;;  %v4037_v50 = vmul.f32 0.00390625, %v3836_v19  ;;  %v123_v34 = vld [vmem:[%s8407_s2 + $0xc8] sm:$0xff] }
 0x278   :  { %v6202_v10 = vpop.eup %6201  ;;  %v5345_v53 = vadd.f32 %v5281_v58, %v5153_v57  ;;  %v4578_v25 = vmul.f32 %v6200_v12, %v6200_v12  ;;  %6211 = vpow2.f32 %v4465_v9  ;;  %v2493_v30 = vadd.f32 %v2429_v22, %v7366_v0  ;;  %5747 = vmatmul.msk.f32.gmra.mxu0 %vm228_vm0, %v123_v34  ;;  %5795 = vmatmul.msk.f32.gmra.mxu1 %vm228_vm0, %v123_v34 }
 0x279   :  { %v6204_v63 = vpop.eup %6203  ;;  %v2815_v21 = vmul.f32 %v6202_v10, %v6202_v10  ;;  %6213 = vpow2.f32 %v4849_v14  ;;  %v4324_v55 = vadd.f32 %v4260_v60, %v7990_v47  ;;  %v2561_v24 = vadd.f32 %v7988_v39, %v2492_v44 }
 0x27a   :  { %5409 = vst [vmem:[#allocation6 + $0x60] sm:$0xff] %v5345_v53  ;;  %v4642_v16 = vmul.f32 %v4578_v25, %v4578_v25  ;;  %v5026_v1 = vmul.f32 %v6204_v63, %v6204_v63  ;;  %v2562_v31 = vadd.f32 %v7990_v47, %v2493_v30  ;;  %v8158_v0 = vadd.f32 %v8149_v6, %v4037_v50 }
 0x27b   :  { %v6206_v29 = vpop.eup %6205  ;;  %v2879_v26 = vmul.f32 %v2815_v21, %v2815_v21  ;;  %v4388_v37 = vmin.f32 %v4324_v55, 0.0  ;;  %v2625_v56 = vmin.f32 %v2561_v24, 0.0  ;;  %v8160_v17 = vmul.f32 0.00390625, %v3949_v41 }
 0x27c   :  { %v6208_v61 = vpop.eup %6207  ;;  %v4706_v40 = vadd.f32 %v6200_v12, %v4642_v16  ;;  %v5090_v36 = vmul.f32 %v5026_v1, %v5026_v1  ;;  %v3263_v2 = vmul.f32 %v6206_v29, %v6206_v29  ;;  %v2626_v46 = vmin.f32 %v2562_v31, 0.0 }
 0x27d   :  { %v6210_v20 = vpop.eup %6209  ;;  %v2943_v45 = vadd.f32 %v6202_v10, %v2879_v26  ;;  %v2816_v51 = vmul.f32 %v6208_v61, %v6208_v61  ;;  %v4467_v57 = vmul.f32 1.442695, %v4388_v37  ;;  %v4772_v59 = vmul.f32 16.0, %v4388_v37 }
 0x27e   :  { %v6212_v9 = vpop.eup %6211  ;;  %v4962_v3 = vadd.f32 %v6204_v63, %v4706_v40  ;;  %v5218_v32 = vmul.f32 %v5090_v36, %v5090_v36  ;;  %v3327_v28 = vmul.f32 %v3263_v2, %v3263_v2  ;;  %v3264_v27 = vmul.f32 %v6210_v20, %v6210_v20 }
 0x27f   :  { %v6214_v58 = vpop.eup %6213  ;;  %v3199_v14 = vadd.f32 %v6206_v29, %v2943_v45  ;;  %v2880_v22 = vmul.f32 %v2816_v51, %v2816_v51  ;;  %v4579_v19 = vmul.f32 %v6212_v9, %v6212_v9  ;;  %6215 = vpow2.f32 %v4467_v57 }
 0x280   :  { %v5154_v60 = vadd.f32 %v5090_v36, %v4962_v3  ;;  %v5282_v12 = vmul.f32 %v5218_v32, %v5218_v32  ;;  %v3455_v44 = vmul.f32 %v3327_v28, %v3327_v28  ;;  %v3328_v50 = vmul.f32 %v3264_v27, %v3264_v27 }
 0x281   :  { %v3391_v53 = vadd.f32 %v3327_v28, %v3199_v14  ;;  %v2944_v25 = vadd.f32 %v6208_v61, %v2880_v22  ;;  %v4643_v10 = vmul.f32 %v4579_v19, %v4579_v19  ;;  %v5027_v30 = vmul.f32 %v6214_v58, %v6214_v58  ;;  %v2342_v28 = vpop.f32.mrf.mxu3 }
 0x282   :  { %v5346_v21 = vadd.f32 %v5282_v12, %v5154_v60  ;;  %v3519_v55 = vmul.f32 %v3455_v44, %v3455_v44  ;;  %v3456_v24 = vmul.f32 %v3328_v50, %v3328_v50  ;;  %v4851_v63 = vmul.f32 1.442695, %v4772_v59  ;;  %v2229_v59 = vpop.f32.mrf.mxu2 }
 0x283   :  { %v3200_v34 = vadd.f32 %v6210_v20, %v2944_v25  ;;  %v4707_v16 = vadd.f32 %v6212_v9, %v4643_v10  ;;  %v5091_v1 = vmul.f32 %v5027_v30, %v5027_v30  ;;  %v2703_v31 = vmul.f32 1.442695, %v2625_v56 }
 0x284   :  { %5410 = vst [vmem:[#allocation6 + $0x68] sm:$0xff] %v5346_v21  ;;  %v3583_v41 = vadd.f32 %v3519_v55, %v3391_v53  ;;  %v3520_v29 = vmul.f32 %v3456_v24, %v3456_v24  ;;  %6217 = vpow2.f32 %v4851_v63  ;;  %v3009_v26 = vmul.f32 16.0, %v2625_v56 }
 0x285   :  { %v6216_v37 = vpop.eup %6215  ;;  %v3392_v40 = vadd.f32 %v3328_v50, %v3200_v34  ;;  %v4963_v36 = vadd.f32 %v6214_v58, %v4707_v16  ;;  %v5219_v2 = vmul.f32 %v5091_v1, %v5091_v1  ;;  %6219 = vpow2.f32 %v2703_v31 }
 0x286   :  { %3647 = vst [vmem:[#allocation4 + $0x60] sm:$0xff] %v3583_v41  ;;  %v4580_v61 = vmul.f32 %v6216_v37, %v6216_v37  ;;  %v3087_v45 = vmul.f32 1.442695, %v3009_v26  ;;  %v2705_v51 = vmul.f32 1.442695, %v2626_v46  ;;  %v3010_v57 = vmul.f32 16.0, %v2626_v46 }
 0x287   :  { %v3584_v20 = vadd.f32 %v3520_v29, %v3392_v40  ;;  %v5155_v9 = vadd.f32 %v5091_v1, %v4963_v36  ;;  %v5283_v3 = vmul.f32 %v5219_v2, %v5219_v2  ;;  %v4325_v32 = vadd.f32 %v8158_v0, %v7988_v39  ;;  %v124_v0 = vld [vmem:[%s8407_s2 + $0xd0] sm:$0xff] }
 0x288   :  { %v4644_v27 = vmul.f32 %v4580_v61, %v4580_v61  ;;  %6221 = vpow2.f32 %v3087_v45  ;;  %v3089_v56 = vmul.f32 1.442695, %v3010_v57  ;;  %v4262_v58 = vadd.f32 %v8149_v6, %v8160_v17  ;;  %5748 = vmatmul.msk.f32.gmra.mxu0 %vm228_vm0, %v124_v0  ;;  %5796 = vmatmul.msk.f32.gmra.mxu1 %vm228_vm0, %v124_v0 }
 0x289   :  { %3648 = vst [vmem:[#allocation4 + $0x68] sm:$0xff] %v3584_v20  ;;  %v5347_v14 = vadd.f32 %v5283_v3, %v5155_v9  ;;  %6223 = vpow2.f32 %v2705_v51  ;;  %v4389_v22 = vmin.f32 %v4325_v32, 0.0  ;;  %v2430_v19 = vmul.f32 0.00390625, %v2229_v59 }
 0x28a   :  { %v6218_v46 = vpop.eup %6217  ;;  %v4708_v60 = vadd.f32 %v6216_v37, %v4644_v27  ;;  %6225 = vpow2.f32 %v3089_v56  ;;  %v4326_v12 = vadd.f32 %v4262_v58, %v7990_v47  ;;  %v2431_v44 = vmul.f32 0.00390625, %v2342_v28 }
 0x28b   :  { %v6220_v50 = vpop.eup %6219  ;;  %5411 = vst [vmem:[#allocation6 + $0x70] sm:$0xff] %v5347_v14  ;;  %v5028_v53 = vmul.f32 %v6218_v46, %v6218_v46  ;;  %v4469_v25 = vmul.f32 1.442695, %v4389_v22  ;;  %v4773_v6 = vmul.f32 16.0, %v4389_v22  ;;  %v2494_v17 = vadd.f32 %v2430_v19, %v7389_v8 }
 0x28c   :  { %v4964_v10 = vadd.f32 %v6218_v46, %v4708_v60  ;;  %v2817_v30 = vmul.f32 %v6220_v50, %v6220_v50  ;;  %v4390_v21 = vmin.f32 %v4326_v12, 0.0  ;;  %v2495_v55 = vadd.f32 %v2431_v44, %v7389_v8 }
 0x28d   :  { %v5092_v24 = vmul.f32 %v5028_v53, %v5028_v53  ;;  %6227 = vpow2.f32 %v4469_v25  ;;  %v4853_v63 = vmul.f32 1.442695, %v4773_v6  ;;  %v2563_v34 = vadd.f32 %v7988_v39, %v2494_v17 }
 0x28e   :  { %v6222_v16 = vpop.eup %6221  ;;  %v2881_v1 = vmul.f32 %v2817_v30, %v2817_v30  ;;  %v4471_v31 = vmul.f32 1.442695, %v4390_v21  ;;  %v4774_v41 = vmul.f32 16.0, %v4390_v21  ;;  %v2564_v29 = vadd.f32 %v7990_v47, %v2495_v55 }
 0x28f   :  { %v6224_v26 = vpop.eup %6223  ;;  %v5156_v37 = vadd.f32 %v5092_v24, %v4964_v10  ;;  %v5220_v40 = vmul.f32 %v5092_v24, %v5092_v24  ;;  %v3265_v36 = vmul.f32 %v6222_v16, %v6222_v16  ;;  %6229 = vpow2.f32 %v4853_v63 }
 0x290   :  { %v6226_v2 = vpop.eup %6225  ;;  %v2945_v61 = vadd.f32 %v6220_v50, %v2881_v1  ;;  %v2818_v45 = vmul.f32 %v6224_v26, %v6224_v26  ;;  %6231 = vpow2.f32 %v4471_v31  ;;  %v4855_v8 = vmul.f32 1.442695, %v4774_v41  ;;  %v3839_v1 = vpop.f32.mrf.mxu0 }
 0x291   :  { %v5284_v51 = vmul.f32 %v5220_v40, %v5220_v40  ;;  %v3329_v57 = vmul.f32 %v3265_v36, %v3265_v36  ;;  %v3266_v59 = vmul.f32 %v6226_v2, %v6226_v2  ;;  %v2627_v20 = vmin.f32 %v2563_v34, 0.0  ;;  %v4133_v40 = vpop.permute.xlu2 %4132 }
 0x292   :  { %v3201_v9 = vadd.f32 %v6222_v16, %v2945_v61  ;;  %v2882_v3 = vmul.f32 %v2818_v45, %v2818_v45  ;;  %6233 = vpow2.f32 %v4855_v8  ;;  %v2628_v32 = vmin.f32 %v2564_v29, 0.0  ;;  %v2232_v8 = vpop.f32.mrf.mxu2 }
 0x293   :  { %v6228_v28 = vpop.eup %6227  ;;  %v5348_v27 = vadd.f32 %v5284_v51, %v5156_v37  ;;  %v3457_v56 = vmul.f32 %v3329_v57, %v3329_v57  ;;  %v3330_v58 = vmul.f32 %v3266_v59, %v3266_v59  ;;  %v2707_v14 = vmul.f32 1.442695, %v2627_v20  ;;  %v3952_v37 = vpop.f32.mrf.mxu1 }
 0x294   :  { %v3393_v22 = vadd.f32 %v3329_v57, %v3201_v9  ;;  %v2946_v19 = vadd.f32 %v6224_v26, %v2882_v3  ;;  %v4581_v46 = vmul.f32 %v6228_v28, %v6228_v28  ;;  %v3011_v60 = vmul.f32 16.0, %v2627_v20 }
 0x295   :  { %v6230_v12 = vpop.eup %6229  ;;  %5412 = vst [vmem:[#allocation6 + $0x78] sm:$0xff] %v5348_v27  ;;  %v3521_v44 = vmul.f32 %v3457_v56, %v3457_v56  ;;  %v3458_v0 = vmul.f32 %v3330_v58, %v3330_v58  ;;  %6235 = vpow2.f32 %v2707_v14  ;;  %v2709_v50 = vmul.f32 1.442695, %v2628_v32 }
 0x296   :  { %v6232_v53 = vpop.eup %6231  ;;  %v3202_v25 = vadd.f32 %v6226_v2, %v2946_v19  ;;  %v4645_v6 = vmul.f32 %v4581_v46, %v4581_v46  ;;  %v5029_v17 = vmul.f32 %v6230_v12, %v6230_v12  ;;  %v3091_v10 = vmul.f32 1.442695, %v3011_v60 }
 0x297   :  { %v3585_v30 = vadd.f32 %v3521_v44, %v3393_v22  ;;  %v3522_v21 = vmul.f32 %v3458_v0, %v3458_v0  ;;  %v4582_v55 = vmul.f32 %v6232_v53, %v6232_v53  ;;  %6237 = vpow2.f32 %v2709_v50 }
 0x298   :  { %v6234_v24 = vpop.eup %6233  ;;  %v3394_v63 = vadd.f32 %v3330_v58, %v3202_v25  ;;  %v4709_v34 = vadd.f32 %v6228_v28, %v4645_v6  ;;  %v5093_v16 = vmul.f32 %v5029_v17, %v5029_v17  ;;  %6239 = vpow2.f32 %v3091_v10 }
 0x299   :  { %3649 = vst [vmem:[#allocation4 + $0x70] sm:$0xff] %v3585_v30  ;;  %v4646_v31 = vmul.f32 %v4582_v55, %v4582_v55  ;;  %v5030_v41 = vmul.f32 %v6234_v24, %v6234_v24  ;;  %v3012_v29 = vmul.f32 16.0, %v2628_v32  ;;  %v4039_v26 = vmul.f32 0.00390625, %v3839_v1 }
 0x29a   :  { %v3586_v36 = vadd.f32 %v3522_v21, %v3394_v63  ;;  %v4965_v2 = vadd.f32 %v6230_v12, %v4709_v34  ;;  %v5221_v61 = vmul.f32 %v5093_v16, %v5093_v16  ;;  %v4040_v45 = vmul.f32 0.00390625, %v3952_v37  ;;  %v125_v21 = vld [vmem:[%s8407_s2 + $0xd8] sm:$0xff] }
 0x29b   :  { %v6236_v51 = vpop.eup %6235  ;;  %v4710_v57 = vadd.f32 %v6232_v53, %v4646_v31  ;;  %v5094_v59 = vmul.f32 %v5030_v41, %v5030_v41  ;;  %v3093_v20 = vmul.f32 1.442695, %v3012_v29  ;;  %v4263_v9 = vadd.f32 %v4133_v40, %v4039_v26  ;;  %5749 = vmatmul.msk.f32.gmra.mxu0 %vm228_vm0, %v125_v21  ;;  %5797 = vmatmul.msk.f32.gmra.mxu1 %vm228_vm0, %v125_v21 }
 0x29c   :  { %3650 = vst [vmem:[#allocation4 + $0x78] sm:$0xff] %v3586_v36  ;;  %v5157_v3 = vadd.f32 %v5093_v16, %v4965_v2  ;;  %v5285_v28 = vmul.f32 %v5221_v61, %v5221_v61  ;;  %v2819_v27 = vmul.f32 %v6236_v51, %v6236_v51  ;;  %v4264_v56 = vadd.f32 %v4133_v40, %v4040_v45  ;;  %v2345_v36 = vpop.f32.mrf.mxu3 }
 0x29d   :  { %v6238_v58 = vpop.eup %6237  ;;  %v4966_v32 = vadd.f32 %v6234_v24, %v4710_v57  ;;  %v5222_v14 = vmul.f32 %v5094_v59, %v5094_v59  ;;  %6241 = vpow2.f32 %v3093_v20  ;;  %v4327_v22 = vadd.f32 %v4263_v9, %v7988_v39  ;;  %v3842_v20 = vpop.f32.mrf.mxu0 }
 0x29e   :  { %v6240_v19 = vpop.eup %6239  ;;  %v5349_v46 = vadd.f32 %v5285_v28, %v5157_v3  ;;  %v2883_v60 = vmul.f32 %v2819_v27, %v2819_v27  ;;  %v2820_v12 = vmul.f32 %v6238_v58, %v6238_v58  ;;  %v4328_v44 = vadd.f32 %v4264_v56, %v7990_v47  ;;  %v3955_v9 = vpop.f32.mrf.mxu1 }
 0x29f   :  { %v5158_v0 = vadd.f32 %v5094_v59, %v4966_v32  ;;  %v5286_v50 = vmul.f32 %v5222_v14, %v5222_v14  ;;  %v3267_v53 = vmul.f32 %v6240_v19, %v6240_v19  ;;  %v4391_v25 = vmin.f32 %v4327_v22, 0.0 }
 0x2a0   :  { %5413 = vst [vmem:[#allocation6 + $0x80] sm:$0xff] %v5349_v46  ;;  %v2947_v6 = vadd.f32 %v6236_v51, %v2883_v60  ;;  %v2884_v17 = vmul.f32 %v2820_v12, %v2820_v12  ;;  %v4392_v10 = vmin.f32 %v4328_v44, 0.0  ;;  %v2432_v30 = vmul.f32 0.00390625, %v2232_v8  ;;  %v2235_v8 = vpop.f32.mrf.mxu2 }
 0x2a1   :  { %v5350_v55 = vadd.f32 %v5286_v50, %v5158_v0  ;;  %v3331_v24 = vmul.f32 %v3267_v53, %v3267_v53  ;;  %v4473_v63 = vmul.f32 1.442695, %v4391_v25  ;;  %v4775_v34 = vmul.f32 16.0, %v4391_v25 }
 0x2a2   :  { %v3203_v16 = vadd.f32 %v6240_v19, %v2947_v6  ;;  %v2948_v1 = vadd.f32 %v6238_v58, %v2884_v17  ;;  %v4475_v31 = vmul.f32 1.442695, %v4392_v10  ;;  %v4776_v41 = vmul.f32 16.0, %v4392_v10  ;;  %v4138_v58 = vpop.permute.xlu0 %4137 }
 0x2a3   :  { %v6242_v29 = vpop.eup %6241  ;;  %5414 = vst [vmem:[#allocation6 + $0x88] sm:$0xff] %v5350_v55  ;;  %v3459_v26 = vmul.f32 %v3331_v24, %v3331_v24  ;;  %6243 = vpow2.f32 %v4473_v63  ;;  %v4857_v37 = vmul.f32 1.442695, %v4775_v34  ;;  %v2496_v40 = vadd.f32 %v2432_v30, %v7438_v43 }
 0x2a4   :  { %v3395_v2 = vadd.f32 %v3331_v24, %v3203_v16  ;;  %v3204_v61 = vadd.f32 %v6242_v29, %v2948_v1  ;;  %v3268_v45 = vmul.f32 %v6242_v29, %v6242_v29  ;;  %6245 = vpow2.f32 %v4475_v31 }
 0x2a5   :  { %v3523_v51 = vmul.f32 %v3459_v26, %v3459_v26  ;;  %6247 = vpow2.f32 %v4857_v37  ;;  %v4859_v57 = vmul.f32 1.442695, %v4776_v41  ;;  %v2565_v59 = vadd.f32 %v7988_v39, %v2496_v40 }
 0x2a6   :  { %v3332_v3 = vmul.f32 %v3268_v45, %v3268_v45  ;;  %v2433_v28 = vmul.f32 0.00390625, %v2345_v36  ;;  %v4041_v27 = vmul.f32 0.00390625, %v3842_v20  ;;  %v4042_v56 = vmul.f32 0.00390625, %v3955_v9 }
 0x2a7   :  { %v3587_v32 = vadd.f32 %v3523_v51, %v3395_v2  ;;  %6249 = vpow2.f32 %v4859_v57  ;;  %v2629_v14 = vmin.f32 %v2565_v59, 0.0  ;;  %v2434_v22 = vmul.f32 0.00390625, %v2235_v8 }
 0x2a8   :  { %v3396_v19 = vadd.f32 %v3332_v3, %v3204_v61  ;;  %v3460_v46 = vmul.f32 %v3332_v3, %v3332_v3  ;;  %v2497_v60 = vadd.f32 %v2433_v28, %v7438_v43  ;;  %v4265_v12 = vadd.f32 %v4138_v58, %v4041_v27 }
 0x2a9   :  { %v6244_v44 = vpop.eup %6243  ;;  %3651 = vst [vmem:[#allocation4 + $0x80] sm:$0xff] %v3587_v32  ;;  %v2711_v0 = vmul.f32 1.442695, %v2629_v14  ;;  %v3013_v50 = vmul.f32 16.0, %v2629_v14  ;;  %v4266_v53 = vadd.f32 %v4138_v58, %v4042_v56  ;;  %v2498_v25 = vadd.f32 %v2434_v22, %v7385_v7 }
 0x2aa   :  { %v6246_v6 = vpop.eup %6245  ;;  %v3524_v17 = vmul.f32 %v3460_v46, %v3460_v46  ;;  %v4583_v10 = vmul.f32 %v6244_v44, %v6244_v44  ;;  %v2566_v30 = vadd.f32 %v7990_v47, %v2497_v60  ;;  %v4329_v21 = vadd.f32 %v4265_v12, %v7988_v39 }
 0x2ab   :  { %v6248_v55 = vpop.eup %6247  ;;  %v4584_v24 = vmul.f32 %v6246_v6, %v6246_v6  ;;  %6251 = vpow2.f32 %v2711_v0  ;;  %v3095_v63 = vmul.f32 1.442695, %v3013_v50  ;;  %v4330_v43 = vadd.f32 %v4266_v53, %v7990_v47  ;;  %v126_v0 = vld [vmem:[%s8407_s2 + $0xe0] sm:$0xff] }
 0x2ac   :  { %v3588_v34 = vadd.f32 %v3524_v17, %v3396_v19  ;;  %v4647_v16 = vmul.f32 %v4583_v10, %v4583_v10  ;;  %v5031_v1 = vmul.f32 %v6248_v55, %v6248_v55  ;;  %v2630_v31 = vmin.f32 %v2566_v30, 0.0  ;;  %v2348_v19 = vpop.f32.mrf.mxu3  ;;  %5750 = vmatmul.msk.f32.gmra.mxu0 %vm228_vm0, %v126_v0  ;;  %5798 = vmatmul.msk.f32.gmra.mxu1 %vm228_vm0, %v126_v0 }
 0x2ad   :  { %v6250_v41 = vpop.eup %6249  ;;  %v4648_v29 = vmul.f32 %v4584_v24, %v4584_v24  ;;  %6253 = vpow2.f32 %v3095_v63  ;;  %v4393_v26 = vmin.f32 %v4329_v21, 0.0  ;;  %v4394_v37 = vmin.f32 %v4330_v43, 0.0 }
 0x2ae   :  { %3652 = vst [vmem:[#allocation4 + $0x88] sm:$0xff] %v3588_v34  ;;  %v4711_v40 = vadd.f32 %v6244_v44, %v4647_v16  ;;  %v5095_v36 = vmul.f32 %v5031_v1, %v5031_v1  ;;  %v5032_v2 = vmul.f32 %v6250_v41, %v6250_v41  ;;  %v2713_v61 = vmul.f32 1.442695, %v2630_v31 }
 0x2af   :  { %v4712_v45 = vadd.f32 %v6246_v6, %v4648_v29  ;;  %v3014_v8 = vmul.f32 16.0, %v2630_v31  ;;  %v4477_v51 = vmul.f32 1.442695, %v4393_v26  ;;  %v4777_v57 = vmul.f32 16.0, %v4393_v26 }
 0x2b0   :  { %v4967_v59 = vadd.f32 %v6248_v55, %v4711_v40  ;;  %v5223_v20 = vmul.f32 %v5095_v36, %v5095_v36  ;;  %v5096_v9 = vmul.f32 %v5032_v2, %v5032_v2  ;;  %6255 = vpow2.f32 %v2713_v61 }
 0x2b1   :  { %v6252_v3 = vpop.eup %6251  ;;  %v4968_v28 = vadd.f32 %v6250_v41, %v4712_v45  ;;  %v3097_v27 = vmul.f32 1.442695, %v3014_v8  ;;  %6257 = vpow2.f32 %v4477_v51  ;;  %v4861_v56 = vmul.f32 1.442695, %v4777_v57  ;;  %v3845_v41 = vpop.f32.mrf.mxu0 }
 0x2b2   :  { %v5159_v58 = vadd.f32 %v5095_v36, %v4967_v59  ;;  %v5287_v32 = vmul.f32 %v5223_v20, %v5223_v20  ;;  %v5224_v14 = vmul.f32 %v5096_v9, %v5096_v9  ;;  %v2821_v22 = vmul.f32 %v6252_v3, %v6252_v3 }
 0x2b3   :  { %v6254_v46 = vpop.eup %6253  ;;  %v5160_v60 = vadd.f32 %v5096_v9, %v4968_v28  ;;  %6259 = vpow2.f32 %v3097_v27  ;;  %v4479_v12 = vmul.f32 1.442695, %v4394_v37  ;;  %v4778_v44 = vmul.f32 16.0, %v4394_v37 }
 0x2b4   :  { %v5351_v50 = vadd.f32 %v5287_v32, %v5159_v58  ;;  %v5288_v53 = vmul.f32 %v5224_v14, %v5224_v14  ;;  %v2885_v6 = vmul.f32 %v2821_v22, %v2821_v22  ;;  %v3269_v17 = vmul.f32 %v6254_v46, %v6254_v46 }
 0x2b5   :  { %6261 = vpow2.f32 %v4861_v56  ;;  %v4863_v10 = vmul.f32 1.442695, %v4778_v44  ;;  %v2567_v30 = vadd.f32 %v7988_v39, %v2498_v25  ;;  %v2435_v21 = vmul.f32 0.00390625, %v2348_v19 }
 0x2b6   :  { %v6256_v55 = vpop.eup %6255  ;;  %5415 = vst [vmem:[#allocation6 + $0x90] sm:$0xff] %v5351_v50  ;;  %v5352_v24 = vadd.f32 %v5288_v53, %v5160_v60  ;;  %v2949_v63 = vadd.f32 %v6252_v3, %v2885_v6  ;;  %v3333_v43 = vmul.f32 %v3269_v17, %v3269_v17  ;;  %6263 = vpow2.f32 %v4479_v12  ;;  %v4143_v17 = vpop.permute.xlu1 %4142 }
 0x2b7   :  { %v6258_v34 = vpop.eup %6257  ;;  %v2822_v16 = vmul.f32 %v6256_v55, %v6256_v55  ;;  %6265 = vpow2.f32 %v4863_v10  ;;  %v2631_v1 = vmin.f32 %v2567_v30, 0.0  ;;  %v2499_v31 = vadd.f32 %v2435_v21, %v7385_v7 }
 0x2b8   :  { %5416 = vst [vmem:[#allocation6 + $0x98] sm:$0xff] %v5352_v24  ;;  %v3205_v29 = vadd.f32 %v6254_v46, %v2949_v63  ;;  %v3461_v26 = vmul.f32 %v3333_v43, %v3333_v43  ;;  %v4585_v25 = vmul.f32 %v6258_v34, %v6258_v34  ;;  %v4043_v37 = vmul.f32 0.00390625, %v3845_v41  ;;  %v3958_v24 = vpop.f32.mrf.mxu1 }
 0x2b9   :  { %v6260_v40 = vpop.eup %6259  ;;  %v2886_v36 = vmul.f32 %v2822_v16, %v2822_v16  ;;  %v2715_v2 = vmul.f32 1.442695, %v2631_v1  ;;  %v3015_v61 = vmul.f32 16.0, %v2631_v1  ;;  %v2568_v45 = vadd.f32 %v7990_v47, %v2499_v31  ;;  %v2238_v31 = vpop.f32.mrf.mxu2 }
 0x2ba   :  { %v3397_v8 = vadd.f32 %v3333_v43, %v3205_v29  ;;  %v3525_v51 = vmul.f32 %v3461_v26, %v3461_v26  ;;  %v3270_v57 = vmul.f32 %v6260_v40, %v6260_v40  ;;  %v4649_v59 = vmul.f32 %v4585_v25, %v4585_v25 }
 0x2bb   :  { %v6262_v20 = vpop.eup %6261  ;;  %v2950_v9 = vadd.f32 %v6256_v55, %v2886_v36  ;;  %6267 = vpow2.f32 %v2715_v2  ;;  %v3099_v7 = vmul.f32 1.442695, %v3015_v61  ;;  %v2632_v3 = vmin.f32 %v2568_v45, 0.0  ;;  %v2351_v45 = vpop.f32.mrf.mxu3 }
 0x2bc   :  { %v6264_v28 = vpop.eup %6263  ;;  %v3589_v27 = vadd.f32 %v3525_v51, %v3397_v8  ;;  %v3334_v56 = vmul.f32 %v3270_v57, %v3270_v57  ;;  %v4713_v58 = vadd.f32 %v6258_v34, %v4649_v59  ;;  %v5033_v32 = vmul.f32 %v6262_v20, %v6262_v20 }
 0x2bd   :  { %v6266_v14 = vpop.eup %6265  ;;  %v3206_v22 = vadd.f32 %v6260_v40, %v2950_v9  ;;  %v4586_v19 = vmul.f32 %v6264_v28, %v6264_v28  ;;  %6269 = vpow2.f32 %v3099_v7  ;;  %v2717_v46 = vmul.f32 1.442695, %v2632_v3 }
 0x2be   :  { %3653 = vst [vmem:[#allocation4 + $0x90] sm:$0xff] %v3589_v27  ;;  %v3462_v60 = vmul.f32 %v3334_v56, %v3334_v56  ;;  %v4969_v12 = vadd.f32 %v6262_v20, %v4713_v58  ;;  %v5097_v44 = vmul.f32 %v5033_v32, %v5033_v32  ;;  %v5034_v0 = vmul.f32 %v6266_v14, %v6266_v14 }
 0x2bf   :  { %v3398_v50 = vadd.f32 %v3334_v56, %v3206_v22  ;;  %v4650_v53 = vmul.f32 %v4586_v19, %v4586_v19  ;;  %6271 = vpow2.f32 %v2717_v46  ;;  %v3016_v6 = vmul.f32 16.0, %v2632_v3 }
 0x2c0   :  { %v3526_v10 = vmul.f32 %v3462_v60, %v3462_v60  ;;  %v5161_v30 = vadd.f32 %v5097_v44, %v4969_v12  ;;  %v5225_v21 = vmul.f32 %v5097_v44, %v5097_v44  ;;  %v5098_v55 = vmul.f32 %v5034_v0, %v5034_v0 }
 0x2c1   :  { %v6268_v63 = vpop.eup %6267  ;;  %v4714_v43 = vadd.f32 %v6264_v28, %v4650_v53  ;;  %v3101_v34 = vmul.f32 1.442695, %v3016_v6  ;;  %v4267_v16 = vadd.f32 %v4143_v17, %v4043_v37  ;;  %v4044_v1 = vmul.f32 0.00390625, %v3958_v24  ;;  %v127_v24 = vld [vmem:[%s8407_s2 + $0xe8] sm:$0xff] }
 0x2c2   :  { %v3590_v41 = vadd.f32 %v3526_v10, %v3398_v50  ;;  %v5289_v29 = vmul.f32 %v5225_v21, %v5225_v21  ;;  %v5226_v26 = vmul.f32 %v5098_v55, %v5098_v55  ;;  %v2823_v25 = vmul.f32 %v6268_v63, %v6268_v63  ;;  %5751 = vmatmul.msk.f32.gmra.mxu0 %vm228_vm0, %v127_v24 }
 0x2c3   :  { %v6270_v40 = vpop.eup %6269  ;;  %v4970_v36 = vadd.f32 %v6266_v14, %v4714_v43  ;;  %6273 = vpow2.f32 %v3101_v34  ;;  %v4331_v2 = vadd.f32 %v4267_v16, %v7988_v39  ;;  %v4268_v61 = vadd.f32 %v4143_v17, %v4044_v1  ;;  %v3961_v16 = vpop.f32.mrf.mxu1  ;;  %5799 = vmatmul.msk.f32.gmra.mxu1 %vm228_vm0, %v127_v24 }
 0x2c4   :  { %3654 = vst [vmem:[#allocation4 + $0x98] sm:$0xff] %v3590_v41  ;;  %v5353_v8 = vadd.f32 %v5289_v29, %v5161_v30  ;;  %v5290_v51 = vmul.f32 %v5226_v26, %v5226_v26  ;;  %v2887_v57 = vmul.f32 %v2823_v25, %v2823_v25  ;;  %v3271_v59 = vmul.f32 %v6270_v40, %v6270_v40  ;;  %v2241_v1 = vpop.f32.mrf.mxu2 }
 0x2c5   :  { %v6272_v20 = vpop.eup %6271  ;;  %v5162_v37 = vadd.f32 %v5098_v55, %v4970_v36  ;;  %v4395_v9 = vmin.f32 %v4331_v2, 0.0  ;;  %v4332_v7 = vadd.f32 %v4268_v61, %v7990_v47  ;;  %v2436_v3 = vmul.f32 0.00390625, %v2238_v31  ;;  %v3848_v55 = vpop.f32.mrf.mxu0 }
 0x2c6   :  { %5417 = vst [vmem:[#allocation6 + $0xa0] sm:$0xff] %v5353_v8  ;;  %v2951_v28 = vadd.f32 %v6268_v63, %v2887_v57  ;;  %v3335_v27 = vmul.f32 %v3271_v59, %v3271_v59  ;;  %v2824_v56 = vmul.f32 %v6272_v20, %v6272_v20  ;;  %v2437_v58 = vmul.f32 0.00390625, %v2351_v45  ;;  %v4148_v36 = vpop.permute.xlu2 %4147 }
 0x2c7   :  { %v5354_v32 = vadd.f32 %v5290_v51, %v5162_v37  ;;  %v4481_v14 = vmul.f32 1.442695, %v4395_v9  ;;  %v4779_v22 = vmul.f32 16.0, %v4395_v9  ;;  %v4396_v19 = vmin.f32 %v4332_v7, 0.0 }
 0x2c8   :  { %v3207_v46 = vadd.f32 %v6270_v40, %v2951_v28  ;;  %v3463_v60 = vmul.f32 %v3335_v27, %v3335_v27  ;;  %v2888_v12 = vmul.f32 %v2824_v56, %v2824_v56  ;;  %v2500_v44 = vadd.f32 %v2436_v3, %v7407_v15 }
 0x2c9   :  { %v6274_v0 = vpop.eup %6273  ;;  %5418 = vst [vmem:[#allocation6 + $0xa8] sm:$0xff] %v5354_v32  ;;  %6275 = vpow2.f32 %v4481_v14  ;;  %v4865_v50 = vmul.f32 1.442695, %v4779_v22  ;;  %v4483_v53 = vmul.f32 1.442695, %v4396_v19  ;;  %v4780_v6 = vmul.f32 16.0, %v4396_v19 }
 0x2ca   :  { %v3399_v17 = vadd.f32 %v3335_v27, %v3207_v46  ;;  %v3527_v10 = vmul.f32 %v3463_v60, %v3463_v60  ;;  %v2952_v30 = vadd.f32 %v6272_v20, %v2888_v12  ;;  %v3272_v21 = vmul.f32 %v6274_v0, %v6274_v0 }
 0x2cb   :  { %6277 = vpow2.f32 %v4865_v50  ;;  %v4867_v63 = vmul.f32 1.442695, %v4780_v6  ;;  %v2569_v43 = vadd.f32 %v7988_v39, %v2500_v44  ;;  %v2501_v34 = vadd.f32 %v2437_v58, %v7407_v15 }
 0x2cc   :  { %v3591_v31 = vadd.f32 %v3527_v10, %v3399_v17  ;;  %v3208_v41 = vadd.f32 %v6274_v0, %v2952_v30  ;;  %v3336_v29 = vmul.f32 %v3272_v21, %v3272_v21  ;;  %6279 = vpow2.f32 %v4483_v53 }
 0x2cd   :  { %6281 = vpow2.f32 %v4867_v63  ;;  %v2633_v26 = vmin.f32 %v2569_v43, 0.0  ;;  %v2570_v25 = vadd.f32 %v7990_v47, %v2501_v34  ;;  %v4045_v40 = vmul.f32 0.00390625, %v3848_v55 }
 0x2ce   :  { %3655 = vst [vmem:[#allocation4 + $0xa0] sm:$0xff] %v3591_v31  ;;  %v3400_v2 = vadd.f32 %v3336_v29, %v3208_v41  ;;  %v3464_v61 = vmul.f32 %v3336_v29, %v3336_v29  ;;  %v4046_v15 = vmul.f32 0.00390625, %v3961_v16  ;;  %v2438_v45 = vmul.f32 0.00390625, %v2241_v1 }
 0x2cf   :  { %v6276_v8 = vpop.eup %6275  ;;  %v2719_v51 = vmul.f32 1.442695, %v2633_v26  ;;  %v3017_v57 = vmul.f32 16.0, %v2633_v26  ;;  %v2634_v59 = vmin.f32 %v2570_v25, 0.0  ;;  %v4269_v20 = vadd.f32 %v4148_v36, %v4045_v40  ;;  %v128_v40 = vld [vmem:[%s8407_s2 + $0xf0] sm:$0xff] }
 0x2d0   :  { %v3528_v37 = vmul.f32 %v3464_v61, %v3464_v61  ;;  %v4587_v9 = vmul.f32 %v6276_v8, %v6276_v8  ;;  %v4270_v7 = vadd.f32 %v4148_v36, %v4046_v15  ;;  %v2502_v3 = vadd.f32 %v2438_v45, %v7465_v52  ;;  %5752 = vmatmul.msk.f32.gmra.mxu0 %vm228_vm0, %v128_v40 }
 0x2d1   :  { %v6278_v28 = vpop.eup %6277  ;;  %6283 = vpow2.f32 %v2719_v51  ;;  %v3103_v27 = vmul.f32 1.442695, %v3017_v57  ;;  %v2721_v56 = vmul.f32 1.442695, %v2634_v59  ;;  %v3018_v58 = vmul.f32 16.0, %v2634_v59  ;;  %5800 = vmatmul.msk.f32.gmra.mxu1 %vm228_vm0, %v128_v40 }
 0x2d2   :  { %v6280_v32 = vpop.eup %6279  ;;  %v3592_v14 = vadd.f32 %v3528_v37, %v3400_v2  ;;  %v4651_v22 = vmul.f32 %v4587_v9, %v4587_v9  ;;  %v5035_v19 = vmul.f32 %v6278_v28, %v6278_v28  ;;  %v4333_v46 = vadd.f32 %v4269_v20, %v7988_v39 }
 0x2d3   :  { %v6282_v60 = vpop.eup %6281  ;;  %v4588_v12 = vmul.f32 %v6280_v32, %v6280_v32  ;;  %6285 = vpow2.f32 %v3103_v27  ;;  %v3105_v44 = vmul.f32 1.442695, %v3018_v58  ;;  %v4334_v0 = vadd.f32 %v4270_v7, %v7990_v47  ;;  %v3851_v58 = vpop.f32.mrf.mxu0 }
 0x2d4   :  { %3656 = vst [vmem:[#allocation4 + $0xa8] sm:$0xff] %v3592_v14  ;;  %v4715_v50 = vadd.f32 %v6276_v8, %v4651_v22  ;;  %v5099_v53 = vmul.f32 %v5035_v19, %v5035_v19  ;;  %v5036_v6 = vmul.f32 %v6282_v60, %v6282_v60  ;;  %6287 = vpow2.f32 %v2721_v56 }
 0x2d5   :  { %v4652_v17 = vmul.f32 %v4588_v12, %v4588_v12  ;;  %6289 = vpow2.f32 %v3105_v44  ;;  %v4397_v10 = vmin.f32 %v4333_v46, 0.0  ;;  %v4398_v30 = vmin.f32 %v4334_v0, 0.0 }
 0x2d6   :  { %v4971_v21 = vadd.f32 %v6278_v28, %v4715_v50  ;;  %v5227_v55 = vmul.f32 %v5099_v53, %v5099_v53  ;;  %v5100_v24 = vmul.f32 %v5036_v6, %v5036_v6  ;;  %v2571_v63 = vadd.f32 %v7988_v39, %v2502_v3  ;;  %v2354_v3 = vpop.f32.mrf.mxu3 }
 0x2d7   :  { %v6284_v43 = vpop.eup %6283  ;;  %v4716_v34 = vadd.f32 %v6280_v32, %v4652_v17  ;;  %v4485_v16 = vmul.f32 1.442695, %v4397_v10  ;;  %v4781_v1 = vmul.f32 16.0, %v4397_v10  ;;  %v4487_v31 = vmul.f32 1.442695, %v4398_v30 }
 0x2d8   :  { %v5163_v41 = vadd.f32 %v5099_v53, %v4971_v21  ;;  %v5291_v29 = vmul.f32 %v5227_v55, %v5227_v55  ;;  %v5228_v26 = vmul.f32 %v5100_v24, %v5100_v24  ;;  %v2825_v25 = vmul.f32 %v6284_v43, %v6284_v43 }
 0x2d9   :  { %v6286_v36 = vpop.eup %6285  ;;  %v4972_v2 = vadd.f32 %v6282_v60, %v4716_v34  ;;  %6291 = vpow2.f32 %v4485_v16  ;;  %v4869_v61 = vmul.f32 1.442695, %v4781_v1  ;;  %v4782_v15 = vmul.f32 16.0, %v4398_v30 }
 0x2da   :  { %v6288_v45 = vpop.eup %6287  ;;  %v5355_v8 = vadd.f32 %v5291_v29, %v5163_v41  ;;  %v5292_v51 = vmul.f32 %v5228_v26, %v5228_v26  ;;  %v2889_v57 = vmul.f32 %v2825_v25, %v2825_v25  ;;  %v3273_v59 = vmul.f32 %v6286_v36, %v6286_v36  ;;  %v3964_v29 = vpop.f32.mrf.mxu1 }
 0x2db   :  { %v6290_v20 = vpop.eup %6289  ;;  %v5164_v37 = vadd.f32 %v5100_v24, %v4972_v2  ;;  %v2826_v9 = vmul.f32 %v6288_v45, %v6288_v45  ;;  %6293 = vpow2.f32 %v4869_v61  ;;  %v4871_v7 = vmul.f32 1.442695, %v4782_v15  ;;  %v4153_v25 = vpop.permute.xlu0 %4152 }
 0x2dc   :  { %5419 = vst [vmem:[#allocation6 + $0xb0] sm:$0xff] %v5355_v8  ;;  %v2953_v28 = vadd.f32 %v6284_v43, %v2889_v57  ;;  %v3337_v27 = vmul.f32 %v3273_v59, %v3273_v59  ;;  %v3274_v56 = vmul.f32 %v6290_v20, %v6290_v20  ;;  %6295 = vpow2.f32 %v4487_v31 }
 0x2dd   :  { %v5356_v32 = vadd.f32 %v5292_v51, %v5164_v37  ;;  %v2890_v14 = vmul.f32 %v2826_v9, %v2826_v9  ;;  %6297 = vpow2.f32 %v4871_v7  ;;  %v2635_v22 = vmin.f32 %v2571_v63, 0.0 }
 0x2de   :  { %v3209_v19 = vadd.f32 %v6286_v36, %v2953_v28  ;;  %v3465_v46 = vmul.f32 %v3337_v27, %v3337_v27  ;;  %v3338_v60 = vmul.f32 %v3274_v56, %v3274_v56  ;;  %v2439_v12 = vmul.f32 0.00390625, %v2354_v3 }
 0x2df   :  { %v6292_v44 = vpop.eup %6291  ;;  %5420 = vst [vmem:[#allocation6 + $0xb8] sm:$0xff] %v5356_v32  ;;  %v2954_v0 = vadd.f32 %v6288_v45, %v2890_v14  ;;  %v2723_v50 = vmul.f32 1.442695, %v2635_v22  ;;  %v3019_v53 = vmul.f32 16.0, %v2635_v22  ;;  %v4047_v6 = vmul.f32 0.00390625, %v3851_v58 }
 0x2e0   :  { %v3401_v17 = vadd.f32 %v3337_v27, %v3209_v19  ;;  %v3529_v10 = vmul.f32 %v3465_v46, %v3465_v46  ;;  %v3466_v30 = vmul.f32 %v3338_v60, %v3338_v60  ;;  %v4589_v21 = vmul.f32 %v6292_v44, %v6292_v44 }
 0x2e1   :  { %v6294_v55 = vpop.eup %6293  ;;  %v3210_v24 = vadd.f32 %v6290_v20, %v2954_v0  ;;  %6299 = vpow2.f32 %v2723_v50  ;;  %v3107_v43 = vmul.f32 1.442695, %v3019_v53  ;;  %v2503_v63 = vadd.f32 %v2439_v12, %v7465_v52  ;;  %v2244_v0 = vpop.f32.mrf.mxu2 }
 0x2e2   :  { %v6296_v34 = vpop.eup %6295  ;;  %v3593_v16 = vadd.f32 %v3529_v10, %v3401_v17  ;;  %v3530_v1 = vmul.f32 %v3466_v30, %v3466_v30  ;;  %v4653_v31 = vmul.f32 %v4589_v21, %v4589_v21  ;;  %v5037_v41 = vmul.f32 %v6294_v55, %v6294_v55  ;;  %v2357_v10 = vpop.f32.mrf.mxu3 }
 0x2e3   :  { %v6298_v26 = vpop.eup %6297  ;;  %v3402_v40 = vadd.f32 %v3338_v60, %v3210_v24  ;;  %v4590_v36 = vmul.f32 %v6296_v34, %v6296_v34  ;;  %6301 = vpow2.f32 %v3107_v43  ;;  %v2572_v2 = vadd.f32 %v7990_v47, %v2503_v63 }
 0x2e4   :  { %3657 = vst [vmem:[#allocation4 + $0xb0] sm:$0xff] %v3593_v16  ;;  %v4717_v61 = vadd.f32 %v6292_v44, %v4653_v31  ;;  %v5101_v15 = vmul.f32 %v5037_v41, %v5037_v41  ;;  %v5038_v45 = vmul.f32 %v6298_v26, %v6298_v26  ;;  %v4271_v8 = vadd.f32 %v4153_v25, %v4047_v6  ;;  %v3854_v16 = vpop.f32.mrf.mxu0 }
 0x2e5   :  { %v3594_v51 = vadd.f32 %v3530_v1, %v3402_v40  ;;  %v4654_v52 = vmul.f32 %v4590_v36, %v4590_v36  ;;  %v2636_v57 = vmin.f32 %v2572_v2, 0.0  ;;  %v4048_v59 = vmul.f32 0.00390625, %v3964_v29  ;;  %v3967_v1 = vpop.f32.mrf.mxu1 }
 0x2e6   :  { %v4973_v20 = vadd.f32 %v6294_v55, %v4717_v61  ;;  %v5229_v37 = vmul.f32 %v5101_v15, %v5101_v15  ;;  %v5102_v9 = vmul.f32 %v5038_v45, %v5038_v45  ;;  %v4335_v7 = vadd.f32 %v4271_v8, %v7988_v39  ;;  %v129_v8 = vld [vmem:[%s8407_s2 + $0xf8] sm:$0xff] }
 0x2e7   :  { %v6300_v3 = vpop.eup %6299  ;;  %3658 = vst [vmem:[#allocation4 + $0xb8] sm:$0xff] %v3594_v51  ;;  %v4718_v28 = vadd.f32 %v6296_v34, %v4654_v52  ;;  %v2725_v27 = vmul.f32 1.442695, %v2636_v57  ;;  %v3020_v56 = vmul.f32 16.0, %v2636_v57  ;;  %v4272_v58 = vadd.f32 %v4153_v25, %v4048_v59  ;;  %v4158_v51 = vpop.permute.xlu1 %4157  ;;  %5753 = vmatmul.msk.f32.gmra.mxu0 %vm228_vm0, %v129_v8  ;;  %5801 = vmatmul.msk.f32.gmra.mxu1 %vm228_vm0, %v129_v8 }
 0x2e8   :  { %v5165_v32 = vadd.f32 %v5101_v15, %v4973_v20  ;;  %v5293_v14 = vmul.f32 %v5229_v37, %v5229_v37  ;;  %v5230_v22 = vmul.f32 %v5102_v9, %v5102_v9  ;;  %v2827_v19 = vmul.f32 %v6300_v3, %v6300_v3 }
 0x2e9   :  { %v6302_v46 = vpop.eup %6301  ;;  %v4974_v60 = vadd.f32 %v6298_v26, %v4718_v28  ;;  %6303 = vpow2.f32 %v2725_v27  ;;  %v3109_v12 = vmul.f32 1.442695, %v3020_v56  ;;  %v4399_v44 = vmin.f32 %v4335_v7, 0.0 }
 0x2ea   :  { %v5357_v50 = vadd.f32 %v5293_v14, %v5165_v32  ;;  %v5294_v53 = vmul.f32 %v5230_v22, %v5230_v22  ;;  %v2891_v6 = vmul.f32 %v2827_v19, %v2827_v19  ;;  %v3275_v17 = vmul.f32 %v6302_v46, %v6302_v46 }
 0x2eb   :  { %v5166_v30 = vadd.f32 %v5102_v9, %v4974_v60  ;;  %6305 = vpow2.f32 %v3109_v12  ;;  %v4489_v21 = vmul.f32 1.442695, %v4399_v44  ;;  %v4783_v55 = vmul.f32 16.0, %v4399_v44 }
 0x2ec   :  { %5421 = vst [vmem:[#allocation6 + $0xc0] sm:$0xff] %v5357_v50  ;;  %v2955_v24 = vadd.f32 %v6300_v3, %v2891_v6  ;;  %v3339_v43 = vmul.f32 %v3275_v17, %v3275_v17  ;;  %v4336_v63 = vadd.f32 %v4272_v58, %v7990_v47  ;;  %v2440_v34 = vmul.f32 0.00390625, %v2244_v0 }
 0x2ed   :  { %v5358_v31 = vadd.f32 %v5294_v53, %v5166_v30  ;;  %6307 = vpow2.f32 %v4489_v21  ;;  %v4873_v41 = vmul.f32 1.442695, %v4783_v55  ;;  %v2441_v29 = vmul.f32 0.00390625, %v2357_v10 }
 0x2ee   :  { %v3211_v26 = vadd.f32 %v6302_v46, %v2955_v24  ;;  %v3467_v25 = vmul.f32 %v3339_v43, %v3339_v43  ;;  %v4400_v40 = vmin.f32 %v4336_v63, 0.0  ;;  %v2504_v36 = vadd.f32 %v2440_v34, %v7405_v13 }
 0x2ef   :  { %v6304_v2 = vpop.eup %6303  ;;  %5422 = vst [vmem:[#allocation6 + $0xc8] sm:$0xff] %v5358_v31  ;;  %6309 = vpow2.f32 %v4873_v41  ;;  %v2505_v61 = vadd.f32 %v2441_v29, %v7405_v13  ;;  %v4049_v15 = vmul.f32 0.00390625, %v3854_v16  ;;  %v4050_v45 = vmul.f32 0.00390625, %v3967_v1 }
 0x2f0   :  { %v3403_v52 = vadd.f32 %v3339_v43, %v3211_v26  ;;  %v3531_v57 = vmul.f32 %v3467_v25, %v3467_v25  ;;  %v2828_v59 = vmul.f32 %v6304_v2, %v6304_v2  ;;  %v4491_v20 = vmul.f32 1.442695, %v4400_v40 }
 0x2f1   :  { %v6306_v37 = vpop.eup %6305  ;;  %v4784_v9 = vmul.f32 16.0, %v4400_v40  ;;  %v2573_v7 = vadd.f32 %v7988_v39, %v2504_v36  ;;  %v2574_v13 = vadd.f32 %v7990_v47, %v2505_v61  ;;  %v4273_v3 = vadd.f32 %v4158_v51, %v4049_v15 }
 0x2f2   :  { %v3595_v28 = vadd.f32 %v3531_v57, %v3403_v52  ;;  %v2892_v27 = vmul.f32 %v2828_v59, %v2828_v59  ;;  %v3276_v56 = vmul.f32 %v6306_v37, %v6306_v37  ;;  %6311 = vpow2.f32 %v4491_v20 }
 0x2f3   :  { %v6308_v58 = vpop.eup %6307  ;;  %v4875_v32 = vmul.f32 1.442695, %v4784_v9  ;;  %v2637_v14 = vmin.f32 %v2573_v7, 0.0  ;;  %v2638_v22 = vmin.f32 %v2574_v13, 0.0  ;;  %v4337_v19 = vadd.f32 %v4273_v3, %v7988_v39 }
 0x2f4   :  { %3659 = vst [vmem:[#allocation4 + $0xc0] sm:$0xff] %v3595_v28  ;;  %v2956_v46 = vadd.f32 %v6304_v2, %v2892_v27  ;;  %v3340_v60 = vmul.f32 %v3276_v56, %v3276_v56  ;;  %v4591_v12 = vmul.f32 %v6308_v58, %v6308_v58  ;;  %v4274_v44 = vadd.f32 %v4158_v51, %v4050_v45  ;;  %v2247_v2 = vpop.f32.mrf.mxu2  ;;  %v2360_v51 = vpop.f32.mrf.mxu3 }
 0x2f5   :  { %v6310_v0 = vpop.eup %6309  ;;  %6313 = vpow2.f32 %v4875_v32  ;;  %v2727_v50 = vmul.f32 1.442695, %v2637_v14  ;;  %v3021_v53 = vmul.f32 16.0, %v2637_v14  ;;  %v2729_v6 = vmul.f32 1.442695, %v2638_v22 }
 0x2f6   :  { %v3212_v17 = vadd.f32 %v6306_v37, %v2956_v46  ;;  %v3468_v10 = vmul.f32 %v3340_v60, %v3340_v60  ;;  %v4655_v30 = vmul.f32 %v4591_v12, %v4591_v12  ;;  %v5039_v21 = vmul.f32 %v6310_v0, %v6310_v0 }
 0x2f7   :  { %6315 = vpow2.f32 %v2727_v50  ;;  %v3111_v55 = vmul.f32 1.442695, %v3021_v53  ;;  %v3022_v24 = vmul.f32 16.0, %v2638_v22  ;;  %v4401_v43 = vmin.f32 %v4337_v19, 0.0 }
 0x2f8   :  { %v6312_v63 = vpop.eup %6311  ;;  %v3404_v34 = vadd.f32 %v3340_v60, %v3212_v17  ;;  %v3532_v16 = vmul.f32 %v3468_v10, %v3468_v10  ;;  %v4719_v1 = vadd.f32 %v6308_v58, %v4655_v30  ;;  %v5103_v31 = vmul.f32 %v5039_v21, %v5039_v21 }
 0x2f9   :  { %v4592_v41 = vmul.f32 %v6312_v63, %v6312_v63  ;;  %6317 = vpow2.f32 %v3111_v55  ;;  %v3113_v29 = vmul.f32 1.442695, %v3022_v24  ;;  %v4493_v26 = vmul.f32 1.442695, %v4401_v43 }
 0x2fa   :  { %v3596_v25 = vadd.f32 %v3532_v16, %v3404_v34  ;;  %v4975_v40 = vadd.f32 %v6310_v0, %v4719_v1  ;;  %v5231_v36 = vmul.f32 %v5103_v31, %v5103_v31  ;;  %6319 = vpow2.f32 %v2729_v6 }
 0x2fb   :  { %v6314_v61 = vpop.eup %6313  ;;  %v4656_v15 = vmul.f32 %v4592_v41, %v4592_v41  ;;  %6321 = vpow2.f32 %v3113_v29  ;;  %v4785_v45 = vmul.f32 16.0, %v4401_v43  ;;  %v4338_v8 = vadd.f32 %v4274_v44, %v7990_v47 }
 0x2fc   :  { %3660 = vst [vmem:[#allocation4 + $0xc8] sm:$0xff] %v3596_v25  ;;  %v5167_v52 = vadd.f32 %v5103_v31, %v4975_v40  ;;  %v5295_v57 = vmul.f32 %v5231_v36, %v5231_v36  ;;  %v5040_v59 = vmul.f32 %v6314_v61, %v6314_v61  ;;  %6323 = vpow2.f32 %v4493_v26 }
 0x2fd   :  { %v6316_v20 = vpop.eup %6315  ;;  %v4720_v37 = vadd.f32 %v6312_v63, %v4656_v15  ;;  %v4877_v9 = vmul.f32 1.442695, %v4785_v45  ;;  %v4402_v7 = vmin.f32 %v4338_v8, 0.0  ;;  %v2442_v13 = vmul.f32 0.00390625, %v2247_v2 }
 0x2fe   :  { %v5359_v3 = vadd.f32 %v5295_v57, %v5167_v52  ;;  %v5104_v28 = vmul.f32 %v5040_v59, %v5040_v59  ;;  %v2829_v27 = vmul.f32 %v6316_v20, %v6316_v20  ;;  %v2443_v56 = vmul.f32 0.00390625, %v2360_v51 }
 0x2ff   :  { %v6318_v58 = vpop.eup %6317  ;;  %v4976_v32 = vadd.f32 %v6314_v61, %v4720_v37  ;;  %6325 = vpow2.f32 %v4877_v9  ;;  %v4495_v14 = vmul.f32 1.442695, %v4402_v7  ;;  %v4786_v22 = vmul.f32 16.0, %v4402_v7  ;;  %v3857_v7 = vpop.f32.mrf.mxu0 }
 0x300   :  { %v6320_v19 = vpop.eup %6319  ;;  %5423 = vst [vmem:[#allocation6 + $0xd0] sm:$0xff] %v5359_v3  ;;  %v5232_v46 = vmul.f32 %v5104_v28, %v5104_v28  ;;  %v2893_v60 = vmul.f32 %v2829_v27, %v2829_v27  ;;  %v3277_v12 = vmul.f32 %v6318_v58, %v6318_v58  ;;  %v2506_v44 = vadd.f32 %v2442_v13, %v7433_v38  ;;  %v3970_v27 = vpop.f32.mrf.mxu1 }
 0x301   :  { %v6322_v0 = vpop.eup %6321  ;;  %v5168_v50 = vadd.f32 %v5104_v28, %v4976_v32  ;;  %v2830_v53 = vmul.f32 %v6320_v19, %v6320_v19  ;;  %6327 = vpow2.f32 %v4495_v14  ;;  %v4879_v6 = vmul.f32 1.442695, %v4786_v22  ;;  %v2250_v22 = vpop.f32.mrf.mxu2 }
 0x302   :  { %v6324_v17 = vpop.eup %6323  ;;  %v5296_v10 = vmul.f32 %v5232_v46, %v5232_v46  ;;  %v2957_v30 = vadd.f32 %v6316_v20, %v2893_v60  ;;  %v3341_v21 = vmul.f32 %v3277_v12, %v3277_v12  ;;  %v3278_v55 = vmul.f32 %v6322_v0, %v6322_v0 }
 0x303   :  { %v2894_v24 = vmul.f32 %v2830_v53, %v2830_v53  ;;  %v4593_v43 = vmul.f32 %v6324_v17, %v6324_v17  ;;  %6329 = vpow2.f32 %v4879_v6  ;;  %v2575_v63 = vadd.f32 %v7988_v39, %v2506_v44  ;;  %v4163_v44 = vpop.permute.xlu2 %4162 }
 0x304   :  { %v5360_v34 = vadd.f32 %v5296_v10, %v5168_v50  ;;  %v3213_v16 = vadd.f32 %v6318_v58, %v2957_v30  ;;  %v3469_v1 = vmul.f32 %v3341_v21, %v3341_v21  ;;  %v3342_v31 = vmul.f32 %v3278_v55, %v3278_v55 }
 0x305   :  { %v6326_v41 = vpop.eup %6325  ;;  %v2958_v29 = vadd.f32 %v6320_v19, %v2894_v24  ;;  %v4657_v26 = vmul.f32 %v4593_v43, %v4593_v43  ;;  %v2639_v25 = vmin.f32 %v2575_v63, 0.0  ;;  %v2507_v40 = vadd.f32 %v2443_v56, %v7433_v38  ;;  %v2363_v19 = vpop.f32.mrf.mxu3 }
 0x306   :  { %5424 = vst [vmem:[#allocation6 + $0xd8] sm:$0xff] %v5360_v34  ;;  %v3405_v36 = vadd.f32 %v3341_v21, %v3213_v16  ;;  %v3533_v2 = vmul.f32 %v3469_v1, %v3469_v1  ;;  %v3470_v61 = vmul.f32 %v3342_v31, %v3342_v31  ;;  %v5041_v15 = vmul.f32 %v6326_v41, %v6326_v41 }
 0x307   :  { %v6328_v45 = vpop.eup %6327  ;;  %v3214_v8 = vadd.f32 %v6322_v0, %v2958_v29  ;;  %v4721_v51 = vadd.f32 %v6324_v17, %v4657_v26  ;;  %v2731_v52 = vmul.f32 1.442695, %v2639_v25  ;;  %v3023_v57 = vmul.f32 16.0, %v2639_v25 }
 0x308   :  { %v3597_v59 = vadd.f32 %v3533_v2, %v3405_v36  ;;  %v3534_v20 = vmul.f32 %v3470_v61, %v3470_v61  ;;  %v5105_v37 = vmul.f32 %v5041_v15, %v5041_v15  ;;  %v4594_v9 = vmul.f32 %v6328_v45, %v6328_v45 }
 0x309   :  { %v6330_v13 = vpop.eup %6329  ;;  %v3406_v3 = vadd.f32 %v3342_v31, %v3214_v8  ;;  %v4977_v28 = vadd.f32 %v6326_v41, %v4721_v51  ;;  %6331 = vpow2.f32 %v2731_v52  ;;  %v3115_v38 = vmul.f32 1.442695, %v3023_v57 }
 0x30a   :  { %3661 = vst [vmem:[#allocation4 + $0xd0] sm:$0xff] %v3597_v59  ;;  %v5233_v56 = vmul.f32 %v5105_v37, %v5105_v37  ;;  %v4658_v58 = vmul.f32 %v4594_v9, %v4594_v9  ;;  %v5042_v32 = vmul.f32 %v6330_v13, %v6330_v13  ;;  %v2576_v14 = vadd.f32 %v7990_v47, %v2507_v40 }
 0x30b   :  { %v3598_v46 = vadd.f32 %v3534_v20, %v3406_v3  ;;  %v5169_v60 = vadd.f32 %v5105_v37, %v4977_v28  ;;  %6333 = vpow2.f32 %v3115_v38  ;;  %v4051_v12 = vmul.f32 0.00390625, %v3857_v7 }
 0x30c   :  { %v5297_v0 = vmul.f32 %v5233_v56, %v5233_v56  ;;  %v4722_v50 = vadd.f32 %v6328_v45, %v4658_v58  ;;  %v5106_v53 = vmul.f32 %v5042_v32, %v5042_v32  ;;  %v2640_v6 = vmin.f32 %v2576_v14, 0.0 }
 0x30d   :  { %3662 = vst [vmem:[#allocation4 + $0xd8] sm:$0xff] %v3598_v46  ;;  %v4275_v17 = vadd.f32 %v4163_v44, %v4051_v12  ;;  %v4052_v10 = vmul.f32 0.00390625, %v3970_v27  ;;  %v2444_v30 = vmul.f32 0.00390625, %v2250_v22  ;;  %v2445_v21 = vmul.f32 0.00390625, %v2363_v19  ;;  %v3860_v46 = vpop.f32.mrf.mxu0 }
 0x30e   :  { %v5361_v55 = vadd.f32 %v5297_v0, %v5169_v60  ;;  %v4978_v24 = vadd.f32 %v6330_v13, %v4722_v50  ;;  %v5234_v43 = vmul.f32 %v5106_v53, %v5106_v53  ;;  %v2733_v63 = vmul.f32 1.442695, %v2640_v6  ;;  %v3973_v0 = vpop.f32.mrf.mxu1 }
 0x30f   :  { %v6332_v34 = vpop.eup %6331  ;;  %v3024_v16 = vmul.f32 16.0, %v2640_v6  ;;  %v4339_v1 = vadd.f32 %v4275_v17, %v7988_v39  ;;  %v4276_v31 = vadd.f32 %v4163_v44, %v4052_v10  ;;  %v2508_v41 = vadd.f32 %v2444_v30, %v7488_v5 }
 0x310   :  { %5425 = vst [vmem:[#allocation6 + $0xe0] sm:$0xff] %v5361_v55  ;;  %v5170_v29 = vadd.f32 %v5106_v53, %v4978_v24  ;;  %v5298_v26 = vmul.f32 %v5234_v43, %v5234_v43  ;;  %v2831_v25 = vmul.f32 %v6332_v34, %v6332_v34  ;;  %6335 = vpow2.f32 %v2733_v63  ;;  %v2253_v55 = vpop.f32.mrf.mxu2  ;;  %v4168_v43 = vpop.permute.xlu0 %4167 }
 0x311   :  { %v6334_v40 = vpop.eup %6333  ;;  %v3117_v36 = vmul.f32 1.442695, %v3024_v16  ;;  %v4403_v2 = vmin.f32 %v4339_v1, 0.0  ;;  %v4340_v61 = vadd.f32 %v4276_v31, %v7990_v47  ;;  %v2577_v15 = vadd.f32 %v7988_v39, %v2508_v41 }
 0x312   :  { %v5362_v45 = vadd.f32 %v5298_v26, %v5170_v29  ;;  %v2895_v8 = vmul.f32 %v2831_v25, %v2831_v25  ;;  %v3279_v51 = vmul.f32 %v6334_v40, %v6334_v40  ;;  %v2509_v52 = vadd.f32 %v2445_v21, %v7488_v5 }
 0x313   :  { %6337 = vpow2.f32 %v3117_v36  ;;  %v4497_v57 = vmul.f32 1.442695, %v4403_v2  ;;  %v4787_v59 = vmul.f32 16.0, %v4403_v2  ;;  %v4404_v20 = vmin.f32 %v4340_v61, 0.0 }
 0x314   :  { %5426 = vst [vmem:[#allocation6 + $0xe8] sm:$0xff] %v5362_v45  ;;  %v2959_v37 = vadd.f32 %v6332_v34, %v2895_v8  ;;  %v3343_v9 = vmul.f32 %v3279_v51, %v3279_v51  ;;  %v2641_v7 = vmin.f32 %v2577_v15, 0.0  ;;  %v2578_v13 = vadd.f32 %v7990_v47, %v2509_v52 }
 0x315   :  { %6339 = vpow2.f32 %v4497_v57  ;;  %v4881_v3 = vmul.f32 1.442695, %v4787_v59  ;;  %v4499_v28 = vmul.f32 1.442695, %v4404_v20  ;;  %v4788_v38 = vmul.f32 16.0, %v4404_v20 }
 0x316   :  { %v6336_v27 = vpop.eup %6335  ;;  %v3215_v56 = vadd.f32 %v6334_v40, %v2959_v37  ;;  %v3471_v58 = vmul.f32 %v3343_v9, %v3343_v9  ;;  %v2735_v32 = vmul.f32 1.442695, %v2641_v7  ;;  %v3025_v14 = vmul.f32 16.0, %v2641_v7 }
 0x317   :  { %v2832_v5 = vmul.f32 %v6336_v27, %v6336_v27  ;;  %6341 = vpow2.f32 %v4881_v3  ;;  %v4883_v22 = vmul.f32 1.442695, %v4788_v38  ;;  %v2642_v19 = vmin.f32 %v2578_v13, 0.0 }
 0x318   :  { %v3407_v60 = vadd.f32 %v3343_v9, %v3215_v56  ;;  %v3535_v12 = vmul.f32 %v3471_v58, %v3471_v58  ;;  %6343 = vpow2.f32 %v4499_v28  ;;  %v3119_v44 = vmul.f32 1.442695, %v3025_v14  ;;  %v2366_v58 = vpop.f32.mrf.mxu3 }
 0x319   :  { %v6338_v50 = vpop.eup %6337  ;;  %v2896_v53 = vmul.f32 %v2832_v5, %v2832_v5  ;;  %6345 = vpow2.f32 %v4883_v22  ;;  %v2737_v6 = vmul.f32 1.442695, %v2642_v19  ;;  %v3026_v17 = vmul.f32 16.0, %v2642_v19 }
 0x31a   :  { %v3599_v10 = vadd.f32 %v3535_v12, %v3407_v60  ;;  %v3280_v30 = vmul.f32 %v6338_v50, %v6338_v50  ;;  %6347 = vpow2.f32 %v2735_v32  ;;  %v4053_v21 = vmul.f32 0.00390625, %v3860_v46 }
 0x31b   :  { %v6340_v24 = vpop.eup %6339  ;;  %v2960_v63 = vadd.f32 %v6336_v27, %v2896_v53  ;;  %6349 = vpow2.f32 %v3119_v44  ;;  %v3121_v34 = vmul.f32 1.442695, %v3026_v17  ;;  %v4054_v16 = vmul.f32 0.00390625, %v3973_v0 }
 0x31c   :  { %3663 = vst [vmem:[#allocation4 + $0xe0] sm:$0xff] %v3599_v10  ;;  %v3344_v1 = vmul.f32 %v3280_v30, %v3280_v30  ;;  %v4595_v31 = vmul.f32 %v6340_v24, %v6340_v24  ;;  %6351 = vpow2.f32 %v2737_v6  ;;  %v4277_v41 = vadd.f32 %v4168_v43, %v4053_v21 }
 0x31d   :  { %v6342_v29 = vpop.eup %6341  ;;  %v3216_v26 = vadd.f32 %v6338_v50, %v2960_v63  ;;  %6353 = vpow2.f32 %v3121_v34  ;;  %v4278_v25 = vadd.f32 %v4168_v43, %v4054_v16  ;;  %v2446_v40 = vmul.f32 0.00390625, %v2253_v55 }
 0x31e   :  { %v6344_v36 = vpop.eup %6343  ;;  %v3472_v2 = vmul.f32 %v3344_v1, %v3344_v1  ;;  %v4659_v61 = vmul.f32 %v4595_v31, %v4595_v31  ;;  %v5043_v15 = vmul.f32 %v6342_v29, %v6342_v29  ;;  %v4341_v45 = vadd.f32 %v4277_v41, %v7988_v39 }
 0x31f   :  { %v6346_v8 = vpop.eup %6345  ;;  %v3408_v51 = vadd.f32 %v3344_v1, %v3216_v26  ;;  %v4596_v52 = vmul.f32 %v6344_v36, %v6344_v36  ;;  %v4342_v57 = vadd.f32 %v4278_v25, %v7990_v47  ;;  %v2510_v59 = vadd.f32 %v2446_v40, %v7431_v33 }
 0x320   :  { %v6348_v20 = vpop.eup %6347  ;;  %v3536_v37 = vmul.f32 %v3472_v2, %v3472_v2  ;;  %v4723_v9 = vadd.f32 %v6340_v24, %v4659_v61  ;;  %v5107_v7 = vmul.f32 %v5043_v15, %v5043_v15  ;;  %v5044_v13 = vmul.f32 %v6346_v8, %v6346_v8  ;;  %v3863_v15 = vpop.f32.mrf.mxu0 }
 0x321   :  { %v6350_v3 = vpop.eup %6349  ;;  %v4660_v28 = vmul.f32 %v4596_v52, %v4596_v52  ;;  %v2833_v38 = vmul.f32 %v6348_v20, %v6348_v20  ;;  %v4405_v27 = vmin.f32 %v4341_v45, 0.0  ;;  %v4406_v56 = vmin.f32 %v4342_v57, 0.0  ;;  %v3976_v45 = vpop.f32.mrf.mxu1 }
 0x322   :  { %v6352_v32 = vpop.eup %6351  ;;  %v3600_v14 = vadd.f32 %v3536_v37, %v3408_v51  ;;  %v4979_v5 = vadd.f32 %v6342_v29, %v4723_v9  ;;  %v5235_v22 = vmul.f32 %v5107_v7, %v5107_v7  ;;  %v5108_v19 = vmul.f32 %v5044_v13, %v5044_v13  ;;  %v2256_v57 = vpop.f32.mrf.mxu2 }
 0x323   :  { %v6354_v46 = vpop.eup %6353  ;;  %v4724_v60 = vadd.f32 %v6344_v36, %v4660_v28  ;;  %v2897_v12 = vmul.f32 %v2833_v38, %v2833_v38  ;;  %v3281_v44 = vmul.f32 %v6350_v3, %v6350_v3  ;;  %v2834_v0 = vmul.f32 %v6352_v32, %v6352_v32  ;;  %v2369_v13 = vpop.f32.mrf.mxu3 }
 0x324   :  { %3664 = vst [vmem:[#allocation4 + $0xe8] sm:$0xff] %v3600_v14  ;;  %v5171_v50 = vadd.f32 %v5107_v7, %v4979_v5  ;;  %v5299_v53 = vmul.f32 %v5235_v22, %v5235_v22  ;;  %v5236_v6 = vmul.f32 %v5108_v19, %v5108_v19  ;;  %v3282_v17 = vmul.f32 %v6354_v46, %v6354_v46 }
 0x325   :  { %v4980_v10 = vadd.f32 %v6346_v8, %v4724_v60  ;;  %v2961_v30 = vadd.f32 %v6348_v20, %v2897_v12  ;;  %v3345_v21 = vmul.f32 %v3281_v44, %v3281_v44  ;;  %v2898_v55 = vmul.f32 %v2834_v0, %v2834_v0 }
 0x326   :  { %v5363_v24 = vadd.f32 %v5299_v53, %v5171_v50  ;;  %v5300_v43 = vmul.f32 %v5236_v6, %v5236_v6  ;;  %v3346_v63 = vmul.f32 %v3282_v17, %v3282_v17  ;;  %v4501_v34 = vmul.f32 1.442695, %v4405_v27 }
 0x327   :  { %v5172_v16 = vadd.f32 %v5108_v19, %v4980_v10  ;;  %v3217_v1 = vadd.f32 %v6350_v3, %v2961_v30  ;;  %v3473_v31 = vmul.f32 %v3345_v21, %v3345_v21  ;;  %v2962_v41 = vadd.f32 %v6352_v32, %v2898_v55 }
 0x328   :  { %5427 = vst [vmem:[#allocation6 + $0xf0] sm:$0xff] %v5363_v24  ;;  %v3474_v29 = vmul.f32 %v3346_v63, %v3346_v63  ;;  %6355 = vpow2.f32 %v4501_v34  ;;  %v4789_v26 = vmul.f32 16.0, %v4405_v27  ;;  %v4503_v25 = vmul.f32 1.442695, %v4406_v56  ;;  %v4173_v27 = vpop.permute.xlu1 %4172 }
 0x329   :  { %v5364_v40 = vadd.f32 %v5300_v43, %v5172_v16  ;;  %v3409_v36 = vadd.f32 %v3345_v21, %v3217_v1  ;;  %v3537_v2 = vmul.f32 %v3473_v31, %v3473_v31  ;;  %v3218_v61 = vadd.f32 %v6354_v46, %v2962_v41 }
 0x32a   :  { %v3538_v8 = vmul.f32 %v3474_v29, %v3474_v29  ;;  %v4885_v51 = vmul.f32 1.442695, %v4789_v26  ;;  %6357 = vpow2.f32 %v4503_v25  ;;  %v4790_v52 = vmul.f32 16.0, %v4406_v56 }
 0x32b   :  { %5428 = vst [vmem:[#allocation6 + $0xf8] sm:$0xff] %v5364_v40  ;;  %v3601_v20 = vadd.f32 %v3537_v2, %v3409_v36  ;;  %v3410_v37 = vadd.f32 %v3346_v63, %v3218_v61  ;;  %v2579_v9 = vadd.f32 %v7988_v39, %v2510_v59  ;;  %v2447_v7 = vmul.f32 0.00390625, %v2366_v58 }
 0x32c   :  { %6359 = vpow2.f32 %v4885_v51  ;;  %v4887_v3 = vmul.f32 1.442695, %v4790_v52  ;;  %v4055_v28 = vmul.f32 0.00390625, %v3863_v15  ;;  %v4056_v38 = vmul.f32 0.00390625, %v3976_v45 }
 0x32d   :  { %3665 = vst [vmem:[#allocation4 + $0xf0] sm:$0xff] %v3601_v20  ;;  %v3602_v32 = vadd.f32 %v3538_v8, %v3410_v37  ;;  %v2643_v14 = vmin.f32 %v2579_v9, 0.0  ;;  %v2511_v5 = vadd.f32 %v2447_v7, %v7431_v33  ;;  %v2448_v22 = vmul.f32 0.00390625, %v2256_v57 }
 0x32e   :  { %v6356_v56 = vpop.eup %6355  ;;  %6361 = vpow2.f32 %v4887_v3  ;;  %v4279_v19 = vadd.f32 %v4173_v27, %v4055_v28  ;;  %v4280_v46 = vadd.f32 %v4173_v27, %v4056_v38  ;;  %v2449_v60 = vmul.f32 0.00390625, %v2369_v13 }
 0x32f   :  { %3666 = vst [vmem:[#allocation4 + $0xf8] sm:$0xff] %v3602_v32  ;;  %v4597_v59 = vmul.f32 %v6356_v56, %v6356_v56  ;;  %v2739_v58 = vmul.f32 1.442695, %v2643_v14  ;;  %v3027_v12 = vmul.f32 16.0, %v2643_v14  ;;  %v2580_v44 = vadd.f32 %v7990_v47, %v2511_v5 }
 0x330   :  { %v6358_v0 = vpop.eup %6357  ;;  %v4343_v50 = vadd.f32 %v4279_v19, %v7988_v39  ;;  %v4344_v53 = vadd.f32 %v4280_v46, %v7990_v47  ;;  %v2512_v6 = vadd.f32 %v2448_v22, %v7463_v42  ;;  %v2513_v33 = vadd.f32 %v2449_v60, %v7463_v42  ;;  %v3866_v19 = vpop.f32.mrf.mxu0 }
 0x331   :  { %v4661_v17 = vmul.f32 %v4597_v59, %v4597_v59  ;;  %v4598_v10 = vmul.f32 %v6358_v0, %v6358_v0  ;;  %6363 = vpow2.f32 %v2739_v58  ;;  %v3123_v30 = vmul.f32 1.442695, %v3027_v12  ;;  %v3979_v12 = vpop.f32.mrf.mxu1 }
 0x332   :  { %v6360_v21 = vpop.eup %6359  ;;  %v2644_v55 = vmin.f32 %v2580_v44, 0.0  ;;  %v4407_v24 = vmin.f32 %v4343_v50, 0.0  ;;  %v4408_v43 = vmin.f32 %v4344_v53, 0.0  ;;  %v2581_v63 = vadd.f32 %v7988_v39, %v2512_v6 }
 0x333   :  { %v4725_v34 = vadd.f32 %v6356_v56, %v4661_v17  ;;  %v5045_v16 = vmul.f32 %v6360_v21, %v6360_v21  ;;  %v4662_v1 = vmul.f32 %v4598_v10, %v4598_v10  ;;  %6365 = vpow2.f32 %v3123_v30 }
 0x334   :  { %v6362_v31 = vpop.eup %6361  ;;  %v2741_v41 = vmul.f32 1.442695, %v2644_v55  ;;  %v3028_v29 = vmul.f32 16.0, %v2644_v55  ;;  %v4505_v26 = vmul.f32 1.442695, %v4407_v24  ;;  %v4791_v25 = vmul.f32 16.0, %v4407_v24 }
 0x335   :  { %v4981_v42 = vadd.f32 %v6360_v21, %v4725_v34  ;;  %v5109_v40 = vmul.f32 %v5045_v16, %v5045_v16  ;;  %v4726_v36 = vadd.f32 %v6358_v0, %v4662_v1  ;;  %v5046_v2 = vmul.f32 %v6362_v31, %v6362_v31 }
 0x336   :  { %6367 = vpow2.f32 %v2741_v41  ;;  %v3125_v61 = vmul.f32 1.442695, %v3028_v29  ;;  %v4889_v15 = vmul.f32 1.442695, %v4791_v25  ;;  %v4507_v45 = vmul.f32 1.442695, %v4408_v43 }
 0x337   :  { %v6364_v8 = vpop.eup %6363  ;;  %v5173_v51 = vadd.f32 %v5109_v40, %v4981_v42  ;;  %v5237_v52 = vmul.f32 %v5109_v40, %v5109_v40  ;;  %v4982_v57 = vadd.f32 %v6362_v31, %v4726_v36  ;;  %v5110_v20 = vmul.f32 %v5046_v2, %v5046_v2 }
 0x338   :  { %v2835_v37 = vmul.f32 %v6364_v8, %v6364_v8  ;;  %6369 = vpow2.f32 %v3125_v61  ;;  %v4792_v9 = vmul.f32 16.0, %v4408_v43  ;;  %v2645_v7 = vmin.f32 %v2581_v63, 0.0 }
 0x339   :  { %v6366_v13 = vpop.eup %6365  ;;  %v5301_v3 = vmul.f32 %v5237_v52, %v5237_v52  ;;  %v5174_v28 = vadd.f32 %v5110_v20, %v4982_v57  ;;  %v5238_v38 = vmul.f32 %v5110_v20, %v5110_v20  ;;  %6371 = vpow2.f32 %v4505_v26 }
 0x33a   :  { %v2899_v27 = vmul.f32 %v2835_v37, %v2835_v37  ;;  %v3283_v32 = vmul.f32 %v6366_v13, %v6366_v13  ;;  %6373 = vpow2.f32 %v4889_v15  ;;  %v4891_v14 = vmul.f32 1.442695, %v4792_v9 }
 0x33b   :  { %v5365_v5 = vadd.f32 %v5301_v3, %v5173_v51  ;;  %v5302_v22 = vmul.f32 %v5238_v38, %v5238_v38  ;;  %6375 = vpow2.f32 %v4507_v45  ;;  %v2743_v56 = vmul.f32 1.442695, %v2645_v7 }
 0x33c   :  { %v6368_v46 = vpop.eup %6367  ;;  %v2963_v60 = vadd.f32 %v6364_v8, %v2899_v27  ;;  %v3347_v59 = vmul.f32 %v3283_v32, %v3283_v32  ;;  %6377 = vpow2.f32 %v4891_v14  ;;  %v3029_v58 = vmul.f32 16.0, %v2645_v7 }
 0x33d   :  { %5429 = vst [vmem:[#allocation6 + $0x100] sm:$0xff] %v5365_v5  ;;  %v5366_v44 = vadd.f32 %v5302_v22, %v5174_v28  ;;  %v2836_v0 = vmul.f32 %v6368_v46, %v6368_v46  ;;  %6379 = vpow2.f32 %v2743_v56  ;;  %v2582_v50 = vadd.f32 %v7990_v47, %v2513_v33 }
 0x33e   :  { %v6370_v53 = vpop.eup %6369  ;;  %v3219_v6 = vadd.f32 %v6366_v13, %v2963_v60  ;;  %v3475_v17 = vmul.f32 %v3347_v59, %v3347_v59  ;;  %v3127_v10 = vmul.f32 1.442695, %v3029_v58  ;;  %v4057_v30 = vmul.f32 0.00390625, %v3866_v19  ;;  %v4178_v60 = vpop.permute.xlu2 %4177 }
 0x33f   :  { %v6372_v21 = vpop.eup %6371  ;;  %5430 = vst [vmem:[#allocation6 + $0x108] sm:$0xff] %v5366_v44  ;;  %v2900_v55 = vmul.f32 %v2836_v0, %v2836_v0  ;;  %v3284_v24 = vmul.f32 %v6370_v53, %v6370_v53  ;;  %v2646_v43 = vmin.f32 %v2582_v50, 0.0  ;;  %v4058_v63 = vmul.f32 0.00390625, %v3979_v12 }
 0x340   :  { %v6374_v34 = vpop.eup %6373  ;;  %v3411_v16 = vadd.f32 %v3347_v59, %v3219_v6  ;;  %v3539_v1 = vmul.f32 %v3475_v17, %v3475_v17  ;;  %v4599_v31 = vmul.f32 %v6372_v21, %v6372_v21  ;;  %6381 = vpow2.f32 %v3127_v10  ;;  %v2372_v6 = vpop.f32.mrf.mxu3 }
 0x341   :  { %v6376_v41 = vpop.eup %6375  ;;  %v2964_v29 = vadd.f32 %v6368_v46, %v2900_v55  ;;  %v3348_v26 = vmul.f32 %v3284_v24, %v3284_v24  ;;  %v5047_v33 = vmul.f32 %v6374_v34, %v6374_v34  ;;  %v2745_v25 = vmul.f32 1.442695, %v2646_v43  ;;  %v2259_v46 = vpop.f32.mrf.mxu2 }
 0x342   :  { %v6378_v42 = vpop.eup %6377  ;;  %v3603_v40 = vadd.f32 %v3539_v1, %v3411_v16  ;;  %v4663_v36 = vmul.f32 %v4599_v31, %v4599_v31  ;;  %v4600_v2 = vmul.f32 %v6376_v41, %v6376_v41  ;;  %v3030_v61 = vmul.f32 16.0, %v2646_v43  ;;  %v3869_v31 = vpop.f32.mrf.mxu0 }
 0x343   :  { %v6380_v15 = vpop.eup %6379  ;;  %v3220_v45 = vadd.f32 %v6370_v53, %v2964_v29  ;;  %v3476_v8 = vmul.f32 %v3348_v26, %v3348_v26  ;;  %v5111_v51 = vmul.f32 %v5047_v33, %v5047_v33  ;;  %v5048_v52 = vmul.f32 %v6378_v42, %v6378_v42 }
 0x344   :  { %3667 = vst [vmem:[#allocation4 + $0x100] sm:$0xff] %v3603_v40  ;;  %v4727_v57 = vadd.f32 %v6372_v21, %v4663_v36  ;;  %v4664_v20 = vmul.f32 %v4600_v2, %v4600_v2  ;;  %v2837_v37 = vmul.f32 %v6380_v15, %v6380_v15  ;;  %6383 = vpow2.f32 %v2745_v25 }
 0x345   :  { %v3412_v9 = vadd.f32 %v3348_v26, %v3220_v45  ;;  %v3540_v7 = vmul.f32 %v3476_v8, %v3476_v8  ;;  %v5239_v13 = vmul.f32 %v5111_v51, %v5111_v51  ;;  %v5112_v3 = vmul.f32 %v5048_v52, %v5048_v52 }
 0x346   :  { %v6382_v28 = vpop.eup %6381  ;;  %v4983_v38 = vadd.f32 %v6374_v34, %v4727_v57  ;;  %v4728_v27 = vadd.f32 %v6376_v41, %v4664_v20  ;;  %v2901_v32 = vmul.f32 %v2837_v37, %v2837_v37  ;;  %v3129_v14 = vmul.f32 1.442695, %v3030_v61  ;;  %v3982_v41 = vpop.f32.mrf.mxu1 }
 0x347   :  { %v3604_v5 = vadd.f32 %v3540_v7, %v3412_v9  ;;  %v5303_v22 = vmul.f32 %v5239_v13, %v5239_v13  ;;  %v5240_v56 = vmul.f32 %v5112_v3, %v5112_v3  ;;  %v3285_v19 = vmul.f32 %v6382_v28, %v6382_v28 }
 0x348   :  { %v5175_v59 = vadd.f32 %v5111_v51, %v4983_v38  ;;  %v4984_v58 = vadd.f32 %v6378_v42, %v4728_v27  ;;  %v2965_v12 = vadd.f32 %v6380_v15, %v2901_v32  ;;  %6385 = vpow2.f32 %v3129_v14  ;;  %v4183_v14 = vpop.permute.xlu0 %4182 }
 0x349   :  { %3668 = vst [vmem:[#allocation4 + $0x108] sm:$0xff] %v3604_v5  ;;  %v5304_v44 = vmul.f32 %v5240_v56, %v5240_v56  ;;  %v3349_v0 = vmul.f32 %v3285_v19, %v3285_v19  ;;  %v4281_v50 = vadd.f32 %v4178_v60, %v4057_v30  ;;  %v4282_v53 = vadd.f32 %v4178_v60, %v4058_v63  ;;  %v2262_v38 = vpop.f32.mrf.mxu2 }
 0x34a   :  { %v6384_v17 = vpop.eup %6383  ;;  %v5367_v10 = vadd.f32 %v5303_v22, %v5175_v59  ;;  %v5176_v21 = vadd.f32 %v5112_v3, %v4984_v58  ;;  %v3221_v55 = vadd.f32 %v6382_v28, %v2965_v12  ;;  %v2450_v24 = vmul.f32 0.00390625, %v2259_v46  ;;  %v2375_v58 = vpop.f32.mrf.mxu3 }
 0x34b   :  { %v3477_v43 = vmul.f32 %v3349_v0, %v3349_v0  ;;  %v2838_v34 = vmul.f32 %v6384_v17, %v6384_v17  ;;  %v4345_v16 = vadd.f32 %v4281_v50, %v7988_v39  ;;  %v4346_v1 = vadd.f32 %v4282_v53, %v7990_v47 }
 0x34c   :  { %5431 = vst [vmem:[#allocation6 + $0x110] sm:$0xff] %v5367_v10  ;;  %v5368_v29 = vadd.f32 %v5304_v44, %v5176_v21  ;;  %v3413_v26 = vadd.f32 %v3349_v0, %v3221_v55  ;;  %v2514_v30 = vadd.f32 %v2450_v24, %v7502_v11  ;;  %v2451_v63 = vmul.f32 0.00390625, %v2372_v6 }
 0x34d   :  { %v3541_v33 = vmul.f32 %v3477_v43, %v3477_v43  ;;  %v2902_v25 = vmul.f32 %v2838_v34, %v2838_v34  ;;  %v4409_v42 = vmin.f32 %v4345_v16, 0.0  ;;  %v4410_v40 = vmin.f32 %v4346_v1, 0.0 }
 0x34e   :  { %v6386_v36 = vpop.eup %6385  ;;  %5432 = vst [vmem:[#allocation6 + $0x118] sm:$0xff] %v5368_v29  ;;  %v2583_v2 = vadd.f32 %v7988_v39, %v2514_v30  ;;  %v2515_v61 = vadd.f32 %v2451_v63, %v7502_v11  ;;  %v4059_v15 = vmul.f32 0.00390625, %v3869_v31  ;;  %v4060_v45 = vmul.f32 0.00390625, %v3982_v41 }
 0x34f   :  { %v3605_v8 = vadd.f32 %v3541_v33, %v3413_v26  ;;  %v2966_v51 = vadd.f32 %v6384_v17, %v2902_v25  ;;  %v3286_v52 = vmul.f32 %v6386_v36, %v6386_v36  ;;  %v4509_v57 = vmul.f32 1.442695, %v4409_v42 }
 0x350   :  { %v4793_v20 = vmul.f32 16.0, %v4409_v42  ;;  %v4511_v37 = vmul.f32 1.442695, %v4410_v40  ;;  %v4794_v9 = vmul.f32 16.0, %v4410_v40  ;;  %v2647_v7 = vmin.f32 %v2583_v2, 0.0 }
 0x351   :  { %3669 = vst [vmem:[#allocation4 + $0x110] sm:$0xff] %v3605_v8  ;;  %v3222_v13 = vadd.f32 %v6386_v36, %v2966_v51  ;;  %v3350_v3 = vmul.f32 %v3286_v52, %v3286_v52  ;;  %6387 = vpow2.f32 %v4509_v57  ;;  %v2584_v28 = vadd.f32 %v7990_v47, %v2515_v61 }
 0x352   :  { %v4893_v27 = vmul.f32 1.442695, %v4793_v20  ;;  %6389 = vpow2.f32 %v4511_v37  ;;  %v4895_v11 = vmul.f32 1.442695, %v4794_v9  ;;  %v2747_v32 = vmul.f32 1.442695, %v2647_v7 }
 0x353   :  { %v3414_v5 = vadd.f32 %v3350_v3, %v3222_v13  ;;  %v3478_v22 = vmul.f32 %v3350_v3, %v3350_v3  ;;  %v3031_v56 = vmul.f32 16.0, %v2647_v7  ;;  %v2648_v19 = vmin.f32 %v2584_v28, 0.0 }
 0x354   :  { %6391 = vpow2.f32 %v4893_v27  ;;  %v4283_v46 = vadd.f32 %v4183_v14, %v4059_v15  ;;  %v4284_v60 = vadd.f32 %v4183_v14, %v4060_v45  ;;  %v2452_v59 = vmul.f32 0.00390625, %v2262_v38 }
 0x355   :  { %v3542_v12 = vmul.f32 %v3478_v22, %v3478_v22  ;;  %6393 = vpow2.f32 %v4895_v11  ;;  %v3131_v44 = vmul.f32 1.442695, %v3031_v56  ;;  %v2749_v0 = vmul.f32 1.442695, %v2648_v19 }
 0x356   :  { %6395 = vpow2.f32 %v2747_v32  ;;  %v3032_v50 = vmul.f32 16.0, %v2648_v19  ;;  %v4347_v53 = vadd.f32 %v4283_v46, %v7988_v39  ;;  %v4348_v6 = vadd.f32 %v4284_v60, %v7990_v47 }
 0x357   :  { %v6388_v17 = vpop.eup %6387  ;;  %v3606_v10 = vadd.f32 %v3542_v12, %v3414_v5  ;;  %6397 = vpow2.f32 %v3131_v44  ;;  %v2516_v21 = vadd.f32 %v2452_v59, %v7506_v48  ;;  %v2453_v55 = vmul.f32 0.00390625, %v2375_v58  ;;  %v3872_v44 = vpop.f32.mrf.mxu0 }
 0x358   :  { %v6390_v24 = vpop.eup %6389  ;;  %v4601_v43 = vmul.f32 %v6388_v17, %v6388_v17  ;;  %6399 = vpow2.f32 %v2749_v0  ;;  %v3133_v34 = vmul.f32 1.442695, %v3032_v50  ;;  %v4411_v16 = vmin.f32 %v4347_v53, 0.0  ;;  %v3985_v0 = vpop.f32.mrf.mxu1 }
 0x359   :  { %3670 = vst [vmem:[#allocation4 + $0x118] sm:$0xff] %v3606_v10  ;;  %v4602_v1 = vmul.f32 %v6390_v24, %v6390_v24  ;;  %v4412_v31 = vmin.f32 %v4348_v6, 0.0  ;;  %v8267_v41 = vadd.f32 %v7988_v39, %v2516_v21  ;;  %v8270_v29 = vadd.f32 %v2453_v55, %v7506_v48 }
 0x35a   :  { %v6392_v26 = vpop.eup %6391  ;;  %v4665_v30 = vmul.f32 %v4601_v43, %v4601_v43  ;;  %6401 = vpow2.f32 %v3133_v34  ;;  %v4513_v63 = vmul.f32 1.442695, %v4411_v16  ;;  %v4795_v33 = vmul.f32 16.0, %v4411_v16 }
 0x35b   :  { %v6394_v25 = vpop.eup %6393  ;;  %v5049_v42 = vmul.f32 %v6392_v26, %v6392_v26  ;;  %v4666_v40 = vmul.f32 %v4602_v1, %v4602_v1  ;;  %v4515_v36 = vmul.f32 1.442695, %v4412_v31  ;;  %v4796_v2 = vmul.f32 16.0, %v4412_v31 }
 0x35c   :  { %v6396_v61 = vpop.eup %6395  ;;  %v4729_v15 = vadd.f32 %v6388_v17, %v4665_v30  ;;  %v5050_v45 = vmul.f32 %v6394_v25, %v6394_v25  ;;  %6403 = vpow2.f32 %v4513_v63  ;;  %v4897_v8 = vmul.f32 1.442695, %v4795_v33 }
 0x35d   :  { %v6398_v51 = vpop.eup %6397  ;;  %v5113_v52 = vmul.f32 %v5049_v42, %v5049_v42  ;;  %v4730_v57 = vadd.f32 %v6390_v24, %v4666_v40  ;;  %v2839_v48 = vmul.f32 %v6396_v61, %v6396_v61  ;;  %6405 = vpow2.f32 %v4515_v36 }
 0x35e   :  { %v6400_v20 = vpop.eup %6399  ;;  %v4985_v37 = vadd.f32 %v6392_v26, %v4729_v15  ;;  %v5114_v9 = vmul.f32 %v5050_v45, %v5050_v45  ;;  %v3287_v7 = vmul.f32 %v6398_v51, %v6398_v51  ;;  %6407 = vpow2.f32 %v4897_v8 }
 0x35f   :  { %v5241_v13 = vmul.f32 %v5113_v52, %v5113_v52  ;;  %v4986_v3 = vadd.f32 %v6394_v25, %v4730_v57  ;;  %v2903_v28 = vmul.f32 %v2839_v48, %v2839_v48  ;;  %v2840_v38 = vmul.f32 %v6400_v20, %v6400_v20 }
 0x360   :  { %v6402_v27 = vpop.eup %6401  ;;  %v5177_v11 = vadd.f32 %v5113_v52, %v4985_v37  ;;  %v5242_v32 = vmul.f32 %v5114_v9, %v5114_v9  ;;  %v3351_v14 = vmul.f32 %v3287_v7, %v3287_v7  ;;  %v4899_v5 = vmul.f32 1.442695, %v4796_v2 }
 0x361   :  { %v5305_v22 = vmul.f32 %v5241_v13, %v5241_v13  ;;  %v5178_v56 = vadd.f32 %v5114_v9, %v4986_v3  ;;  %v2967_v19 = vadd.f32 %v6396_v61, %v2903_v28  ;;  %v2904_v46 = vmul.f32 %v2840_v38, %v2840_v38  ;;  %v2265_v28 = vpop.f32.mrf.mxu2  ;;  %v2378_v38 = vpop.f32.mrf.mxu3 }
 0x362   :  { %v6404_v60 = vpop.eup %6403  ;;  %v5306_v59 = vmul.f32 %v5242_v32, %v5242_v32  ;;  %v3479_v58 = vmul.f32 %v3351_v14, %v3351_v14  ;;  %v3288_v12 = vmul.f32 %v6402_v27, %v6402_v27  ;;  %6409 = vpow2.f32 %v4899_v5  ;;  %v3988_v5 = vpop.f32.mrf.mxu1 }
 0x363   :  { %v6406_v50 = vpop.eup %6405  ;;  %v5369_v53 = vadd.f32 %v5305_v22, %v5177_v11  ;;  %v3223_v6 = vadd.f32 %v6398_v51, %v2967_v19  ;;  %v2968_v17 = vadd.f32 %v6400_v20, %v2904_v46  ;;  %v4603_v10 = vmul.f32 %v6404_v60, %v6404_v60  ;;  %v4188_v22 = vpop.permute.xlu1 %4187 }
 0x364   :  { %v6408_v21 = vpop.eup %6407  ;;  %v5370_v55 = vadd.f32 %v5306_v59, %v5178_v56  ;;  %v3543_v24 = vmul.f32 %v3479_v58, %v3479_v58  ;;  %v3352_v43 = vmul.f32 %v3288_v12, %v3288_v12  ;;  %v4604_v34 = vmul.f32 %v6406_v50, %v6406_v50 }
 0x365   :  { %5433 = vst [vmem:[#allocation6 + $0x120] sm:$0xff] %v5369_v53  ;;  %v3415_v16 = vadd.f32 %v3351_v14, %v3223_v6  ;;  %v3224_v1 = vadd.f32 %v6402_v27, %v2968_v17  ;;  %v4667_v31 = vmul.f32 %v4603_v10, %v4603_v10  ;;  %v5051_v26 = vmul.f32 %v6408_v21, %v6408_v21  ;;  %v3875_v14 = vpop.f32.mrf.mxu0 }
 0x366   :  { %5434 = vst [vmem:[#allocation6 + $0x128] sm:$0xff] %v5370_v55  ;;  %v3480_v30 = vmul.f32 %v3352_v43, %v3352_v43  ;;  %v4668_v63 = vmul.f32 %v4604_v34, %v4604_v34  ;;  %v2649_v33 = vmin.f32 %v8267_v41, 0.0  ;;  %v2586_v25 = vadd.f32 %v7990_v47, %v8270_v29 }
 0x367   :  { %v3607_v42 = vadd.f32 %v3543_v24, %v3415_v16  ;;  %v3416_v40 = vadd.f32 %v3352_v43, %v3224_v1  ;;  %v4731_v36 = vadd.f32 %v6404_v60, %v4667_v31  ;;  %v5115_v2 = vmul.f32 %v5051_v26, %v5051_v26 }
 0x368   :  { %v6410_v61 = vpop.eup %6409  ;;  %v3544_v15 = vmul.f32 %v3480_v30, %v3480_v30  ;;  %v4732_v45 = vadd.f32 %v6406_v50, %v4668_v63  ;;  %v2751_v8 = vmul.f32 1.442695, %v2649_v33  ;;  %v3033_v51 = vmul.f32 16.0, %v2649_v33 }
 0x369   :  { %3671 = vst [vmem:[#allocation4 + $0x120] sm:$0xff] %v3607_v42  ;;  %v4987_v52 = vadd.f32 %v6408_v21, %v4731_v36  ;;  %v5243_v57 = vmul.f32 %v5115_v2, %v5115_v2  ;;  %v5052_v48 = vmul.f32 %v6410_v61, %v6410_v61  ;;  %v2650_v20 = vmin.f32 %v2586_v25, 0.0  ;;  %v4193_v21 = vpop.permute.xlu2 %4192 }
 0x36a   :  { %v3608_v37 = vadd.f32 %v3544_v15, %v3416_v40  ;;  %v4988_v9 = vadd.f32 %v6410_v61, %v4732_v45  ;;  %6411 = vpow2.f32 %v2751_v8  ;;  %v3135_v41 = vmul.f32 1.442695, %v3033_v51 }
 0x36b   :  { %v5179_v7 = vadd.f32 %v5115_v2, %v4987_v52  ;;  %v5307_v29 = vmul.f32 %v5243_v57, %v5243_v57  ;;  %v5116_v13 = vmul.f32 %v5052_v48, %v5052_v48  ;;  %v2753_v3 = vmul.f32 1.442695, %v2650_v20 }
 0x36c   :  { %3672 = vst [vmem:[#allocation4 + $0x128] sm:$0xff] %v3608_v37  ;;  %6413 = vpow2.f32 %v3135_v41  ;;  %v3034_v27 = vmul.f32 16.0, %v2650_v20  ;;  %v4061_v11 = vmul.f32 0.00390625, %v3872_v44  ;;  %v4062_v32 = vmul.f32 0.00390625, %v3985_v0 }
 0x36d   :  { %v5371_v56 = vadd.f32 %v5307_v29, %v5179_v7  ;;  %v5180_v19 = vadd.f32 %v5116_v13, %v4988_v9  ;;  %v5244_v46 = vmul.f32 %v5116_v13, %v5116_v13  ;;  %6415 = vpow2.f32 %v2753_v3 }
 0x36e   :  { %v3137_v60 = vmul.f32 1.442695, %v3034_v27  ;;  %v4285_v59 = vadd.f32 %v4188_v22, %v4061_v11  ;;  %v4286_v58 = vadd.f32 %v4188_v22, %v4062_v32  ;;  %v2454_v12 = vmul.f32 0.00390625, %v2265_v28 }
 0x36f   :  { %5435 = vst [vmem:[#allocation6 + $0x130] sm:$0xff] %v5371_v56  ;;  %v5308_v50 = vmul.f32 %v5244_v46, %v5244_v46  ;;  %v2455_v53 = vmul.f32 0.00390625, %v2378_v38  ;;  %v4063_v6 = vmul.f32 0.00390625, %v3875_v14  ;;  %v4064_v17 = vmul.f32 0.00390625, %v3988_v5 }
 0x370   :  { %v6412_v10 = vpop.eup %6411  ;;  %6417 = vpow2.f32 %v3137_v60  ;;  %v4349_v44 = vadd.f32 %v4285_v59, %v7988_v39  ;;  %v4350_v0 = vadd.f32 %v4286_v58, %v7990_v47  ;;  %v2518_v55 = vadd.f32 %v2454_v12, %v7573_v35 }
 0x371   :  { %v5372_v24 = vadd.f32 %v5308_v50, %v5180_v19  ;;  %v2841_v43 = vmul.f32 %v6412_v10, %v6412_v10  ;;  %v2519_v34 = vadd.f32 %v2455_v53, %v7573_v35  ;;  %v4287_v16 = vadd.f32 %v4193_v21, %v4063_v6 }
 0x372   :  { %v6414_v1 = vpop.eup %6413  ;;  %v4413_v31 = vmin.f32 %v4349_v44, 0.0  ;;  %v4414_v26 = vmin.f32 %v4350_v0, 0.0  ;;  %v2587_v30 = vadd.f32 %v7988_v39, %v2518_v55  ;;  %v4288_v63 = vadd.f32 %v4193_v21, %v4064_v17  ;;  %v2268_v17 = vpop.f32.mrf.mxu2 }
 0x373   :  { %v6416_v33 = vpop.eup %6415  ;;  %5436 = vst [vmem:[#allocation6 + $0x138] sm:$0xff] %v5372_v24  ;;  %v2905_v25 = vmul.f32 %v2841_v43, %v2841_v43  ;;  %v3289_v42 = vmul.f32 %v6414_v1, %v6414_v1  ;;  %v2588_v40 = vadd.f32 %v7990_v47, %v2519_v34  ;;  %v4351_v36 = vadd.f32 %v4287_v16, %v7988_v39 }
 0x374   :  { %v2842_v2 = vmul.f32 %v6416_v33, %v6416_v33  ;;  %v4517_v61 = vmul.f32 1.442695, %v4413_v31  ;;  %v4797_v15 = vmul.f32 16.0, %v4413_v31  ;;  %v4519_v45 = vmul.f32 1.442695, %v4414_v26 }
 0x375   :  { %v2969_v35 = vadd.f32 %v6412_v10, %v2905_v25  ;;  %v3353_v8 = vmul.f32 %v3289_v42, %v3289_v42  ;;  %v4798_v51 = vmul.f32 16.0, %v4414_v26  ;;  %v2651_v52 = vmin.f32 %v2587_v30, 0.0 }
 0x376   :  { %v6418_v57 = vpop.eup %6417  ;;  %v2906_v48 = vmul.f32 %v2842_v2, %v2842_v2  ;;  %6419 = vpow2.f32 %v4517_v61  ;;  %v4901_v20 = vmul.f32 1.442695, %v4797_v15  ;;  %v2652_v37 = vmin.f32 %v2588_v40, 0.0 }
 0x377   :  { %v3225_v9 = vadd.f32 %v6414_v1, %v2969_v35  ;;  %v3481_v41 = vmul.f32 %v3353_v8, %v3353_v8  ;;  %v3290_v7 = vmul.f32 %v6418_v57, %v6418_v57  ;;  %6421 = vpow2.f32 %v4519_v45 }
 0x378   :  { %v2970_v29 = vadd.f32 %v6416_v33, %v2906_v48  ;;  %6423 = vpow2.f32 %v4901_v20  ;;  %v4903_v13 = vmul.f32 1.442695, %v4798_v51  ;;  %v2755_v3 = vmul.f32 1.442695, %v2651_v52 }
 0x379   :  { %v3417_v28 = vadd.f32 %v3353_v8, %v3225_v9  ;;  %v3545_v38 = vmul.f32 %v3481_v41, %v3481_v41  ;;  %v3354_v27 = vmul.f32 %v3290_v7, %v3290_v7  ;;  %v3035_v11 = vmul.f32 16.0, %v2651_v52 }
 0x37a   :  { %v3226_v32 = vadd.f32 %v6418_v57, %v2970_v29  ;;  %6425 = vpow2.f32 %v4903_v13  ;;  %v2757_v14 = vmul.f32 1.442695, %v2652_v37  ;;  %v3036_v5 = vmul.f32 16.0, %v2652_v37 }
 0x37b   :  { %v3609_v22 = vadd.f32 %v3545_v38, %v3417_v28  ;;  %v3482_v56 = vmul.f32 %v3354_v27, %v3354_v27  ;;  %6427 = vpow2.f32 %v2755_v3  ;;  %v3139_v19 = vmul.f32 1.442695, %v3035_v11 }
 0x37c   :  { %v6420_v46 = vpop.eup %6419  ;;  %v3418_v60 = vadd.f32 %v3354_v27, %v3226_v32  ;;  %6429 = vpow2.f32 %v2757_v14  ;;  %v3141_v59 = vmul.f32 1.442695, %v3036_v5  ;;  %v4415_v58 = vmin.f32 %v4351_v36, 0.0  ;;  %v2381_v27 = vpop.f32.mrf.mxu3 }
 0x37d   :  { %v6422_v12 = vpop.eup %6421  ;;  %3673 = vst [vmem:[#allocation4 + $0x130] sm:$0xff] %v3609_v22  ;;  %v3546_v50 = vmul.f32 %v3482_v56, %v3482_v56  ;;  %v4605_v53 = vmul.f32 %v6420_v46, %v6420_v46  ;;  %6431 = vpow2.f32 %v3139_v19  ;;  %v4352_v6 = vadd.f32 %v4288_v63, %v7990_v47 }
 0x37e   :  { %v6424_v10 = vpop.eup %6423  ;;  %v4606_v21 = vmul.f32 %v6422_v12, %v6422_v12  ;;  %6433 = vpow2.f32 %v3141_v59  ;;  %v4521_v44 = vmul.f32 1.442695, %v4415_v58  ;;  %v4799_v0 = vmul.f32 16.0, %v4415_v58 }
 0x37f   :  { %v3610_v55 = vadd.f32 %v3546_v50, %v3418_v60  ;;  %v4669_v24 = vmul.f32 %v4605_v53, %v4605_v53  ;;  %v5053_v43 = vmul.f32 %v6424_v10, %v6424_v10  ;;  %v4416_v34 = vmin.f32 %v4352_v6, 0.0 }
 0x380   :  { %v6426_v16 = vpop.eup %6425  ;;  %v4670_v1 = vmul.f32 %v4606_v21, %v4606_v21  ;;  %6435 = vpow2.f32 %v4521_v44  ;;  %v4905_v31 = vmul.f32 1.442695, %v4799_v0  ;;  %v2456_v26 = vmul.f32 0.00390625, %v2268_v17  ;;  %v3878_v21 = vpop.f32.mrf.mxu0 }
 0x381   :  { %v6428_v30 = vpop.eup %6427  ;;  %3674 = vst [vmem:[#allocation4 + $0x138] sm:$0xff] %v3610_v55  ;;  %v4733_v33 = vadd.f32 %v6420_v46, %v4669_v24  ;;  %v5117_v25 = vmul.f32 %v5053_v43, %v5053_v43  ;;  %v5054_v63 = vmul.f32 %v6426_v16, %v6426_v16  ;;  %v4523_v42 = vmul.f32 1.442695, %v4416_v34  ;;  %v3991_v43 = vpop.f32.mrf.mxu1 }
 0x382   :  { %v6430_v40 = vpop.eup %6429  ;;  %v4734_v36 = vadd.f32 %v6422_v12, %v4670_v1  ;;  %v2843_v2 = vmul.f32 %v6428_v30, %v6428_v30  ;;  %6437 = vpow2.f32 %v4905_v31  ;;  %v4800_v61 = vmul.f32 16.0, %v4416_v34 }
 0x383   :  { %v6432_v15 = vpop.eup %6431  ;;  %v4989_v45 = vadd.f32 %v6424_v10, %v4733_v33  ;;  %v5245_v35 = vmul.f32 %v5117_v25, %v5117_v25  ;;  %v5118_v8 = vmul.f32 %v5054_v63, %v5054_v63  ;;  %v2844_v51 = vmul.f32 %v6430_v40, %v6430_v40 }
 0x384   :  { %v6434_v52 = vpop.eup %6433  ;;  %v4990_v57 = vadd.f32 %v6426_v16, %v4734_v36  ;;  %v2907_v48 = vmul.f32 %v2843_v2, %v2843_v2  ;;  %v3291_v20 = vmul.f32 %v6432_v15, %v6432_v15  ;;  %6439 = vpow2.f32 %v4523_v42  ;;  %v2271_v42 = vpop.f32.mrf.mxu2 }
 0x385   :  { %v5181_v37 = vadd.f32 %v5117_v25, %v4989_v45  ;;  %v5309_v9 = vmul.f32 %v5245_v35, %v5245_v35  ;;  %v5246_v41 = vmul.f32 %v5118_v8, %v5118_v8  ;;  %v2908_v7 = vmul.f32 %v2844_v51, %v2844_v51 }
 0x386   :  { %v6436_v29 = vpop.eup %6435  ;;  %v5182_v13 = vadd.f32 %v5118_v8, %v4990_v57  ;;  %v2971_v3 = vadd.f32 %v6428_v30, %v2907_v48  ;;  %v3355_v28 = vmul.f32 %v3291_v20, %v3291_v20  ;;  %v3292_v38 = vmul.f32 %v6434_v52, %v6434_v52 }
 0x387   :  { %v5373_v11 = vadd.f32 %v5309_v9, %v5181_v37  ;;  %v5310_v32 = vmul.f32 %v5246_v41, %v5246_v41  ;;  %v2972_v14 = vadd.f32 %v6430_v40, %v2908_v7  ;;  %v4607_v5 = vmul.f32 %v6436_v29, %v6436_v29  ;;  %v4198_v40 = vpop.permute.xlu0 %4197  ;;  %v2384_v37 = vpop.f32.mrf.mxu3 }
 0x388   :  { %v6438_v22 = vpop.eup %6437  ;;  %v3227_v56 = vadd.f32 %v6432_v15, %v2971_v3  ;;  %v3483_v19 = vmul.f32 %v3355_v28, %v3355_v28  ;;  %v3356_v46 = vmul.f32 %v3292_v38, %v3292_v38  ;;  %v4907_v60 = vmul.f32 1.442695, %v4800_v61 }
 0x389   :  { %5437 = vst [vmem:[#allocation6 + $0x140] sm:$0xff] %v5373_v11  ;;  %v5374_v59 = vadd.f32 %v5310_v32, %v5182_v13  ;;  %v3228_v58 = vadd.f32 %v6434_v52, %v2972_v14  ;;  %v4671_v12 = vmul.f32 %v4607_v5, %v4607_v5  ;;  %v5055_v50 = vmul.f32 %v6438_v22, %v6438_v22 }
 0x38a   :  { %v6440_v53 = vpop.eup %6439  ;;  %v3419_v6 = vadd.f32 %v3355_v28, %v3227_v56  ;;  %v3547_v17 = vmul.f32 %v3483_v19, %v3483_v19  ;;  %v3484_v10 = vmul.f32 %v3356_v46, %v3356_v46  ;;  %6441 = vpow2.f32 %v4907_v60 }
 0x38b   :  { %5438 = vst [vmem:[#allocation6 + $0x148] sm:$0xff] %v5374_v59  ;;  %v3420_v44 = vadd.f32 %v3356_v46, %v3228_v58  ;;  %v4735_v0 = vadd.f32 %v6436_v29, %v4671_v12  ;;  %v5119_v55 = vmul.f32 %v5055_v50, %v5055_v50  ;;  %v4608_v24 = vmul.f32 %v6440_v53, %v6440_v53  ;;  %v3881_v50 = vpop.f32.mrf.mxu0 }
 0x38c   :  { %v3611_v34 = vadd.f32 %v3547_v17, %v3419_v6  ;;  %v3548_v16 = vmul.f32 %v3484_v10, %v3484_v10  ;;  %v2520_v1 = vadd.f32 %v2456_v26, %v7620_v23  ;;  %v2457_v31 = vmul.f32 0.00390625, %v2381_v27 }
 0x38d   :  { %v4991_v30 = vadd.f32 %v6438_v22, %v4735_v0  ;;  %v5247_v33 = vmul.f32 %v5119_v55, %v5119_v55  ;;  %v4672_v25 = vmul.f32 %v4608_v24, %v4608_v24  ;;  %v4065_v63 = vmul.f32 0.00390625, %v3878_v21 }
 0x38e   :  { %3675 = vst [vmem:[#allocation4 + $0x140] sm:$0xff] %v3611_v34  ;;  %v3612_v36 = vadd.f32 %v3548_v16, %v3420_v44  ;;  %v2589_v2 = vadd.f32 %v7988_v39, %v2520_v1  ;;  %v2521_v61 = vadd.f32 %v2457_v31, %v7620_v23  ;;  %v4066_v15 = vmul.f32 0.00390625, %v3991_v43  ;;  %v3994_v43 = vpop.f32.mrf.mxu1  ;;  %v2274_v34 = vpop.f32.mrf.mxu2 }
 0x38f   :  { %v5183_v45 = vadd.f32 %v5119_v55, %v4991_v30  ;;  %v5311_v35 = vmul.f32 %v5247_v33, %v5247_v33  ;;  %v4736_v8 = vadd.f32 %v6440_v53, %v4672_v25  ;;  %v4289_v51 = vadd.f32 %v4198_v40, %v4065_v63  ;;  %v8293_v1 = vpop.permute.xlu1 %4202 }
 0x390   :  { %v6442_v52 = vpop.eup %6441  ;;  %3676 = vst [vmem:[#allocation4 + $0x148] sm:$0xff] %v3612_v36  ;;  %v2653_v26 = vmin.f32 %v2589_v2, 0.0  ;;  %v2590_v57 = vadd.f32 %v7990_v47, %v2521_v61  ;;  %v4290_v48 = vadd.f32 %v4198_v40, %v4066_v15  ;;  %v2458_v20 = vmul.f32 0.00390625, %v2271_v42 }
 0x391   :  { %v5375_v9 = vadd.f32 %v5311_v35, %v5183_v45  ;;  %v4992_v41 = vadd.f32 %v6442_v52, %v4736_v8  ;;  %v5056_v7 = vmul.f32 %v6442_v52, %v6442_v52  ;;  %v4353_v29 = vadd.f32 %v4289_v51, %v7988_v39 }
 0x392   :  { %v2759_v13 = vmul.f32 1.442695, %v2653_v26  ;;  %v3037_v23 = vmul.f32 16.0, %v2653_v26  ;;  %v2654_v3 = vmin.f32 %v2590_v57, 0.0  ;;  %v4354_v28 = vadd.f32 %v4290_v48, %v7990_v47 }
 0x393   :  { %5439 = vst [vmem:[#allocation6 + $0x150] sm:$0xff] %v5375_v9  ;;  %v5120_v38 = vmul.f32 %v5056_v7, %v5056_v7  ;;  %v4417_v27 = vmin.f32 %v4353_v29, 0.0  ;;  %v2522_v11 = vadd.f32 %v2458_v20, %v7644_v18  ;;  %v2459_v32 = vmul.f32 0.00390625, %v2384_v37 }
 0x394   :  { %6443 = vpow2.f32 %v2759_v13  ;;  %v3143_v14 = vmul.f32 1.442695, %v3037_v23  ;;  %v2761_v5 = vmul.f32 1.442695, %v2654_v3  ;;  %v3038_v22 = vmul.f32 16.0, %v2654_v3 }
 0x395   :  { %v5184_v56 = vadd.f32 %v5120_v38, %v4992_v41  ;;  %v5248_v19 = vmul.f32 %v5120_v38, %v5120_v38  ;;  %v4525_v46 = vmul.f32 1.442695, %v4417_v27  ;;  %v4801_v60 = vmul.f32 16.0, %v4417_v27 }
 0x396   :  { %6445 = vpow2.f32 %v3143_v14  ;;  %v3145_v59 = vmul.f32 1.442695, %v3038_v22  ;;  %v4418_v58 = vmin.f32 %v4354_v28, 0.0  ;;  %v2591_v12 = vadd.f32 %v7988_v39, %v2522_v11 }
 0x397   :  { %v5312_v53 = vmul.f32 %v5248_v19, %v5248_v19  ;;  %6447 = vpow2.f32 %v2761_v5  ;;  %v4909_v6 = vmul.f32 1.442695, %v4801_v60  ;;  %v2523_v17 = vadd.f32 %v2459_v32, %v7644_v18 }
 0x398   :  { %6449 = vpow2.f32 %v3145_v59  ;;  %v4527_v10 = vmul.f32 1.442695, %v4418_v58  ;;  %v4802_v21 = vmul.f32 16.0, %v4418_v58  ;;  %v2655_v44 = vmin.f32 %v2591_v12, 0.0 }
 0x399   :  { %v5376_v0 = vadd.f32 %v5312_v53, %v5184_v56  ;;  %6451 = vpow2.f32 %v4525_v46  ;;  %v2592_v55 = vadd.f32 %v7990_v47, %v2523_v17  ;;  %v4067_v24 = vmul.f32 0.00390625, %v3881_v50 }
 0x39a   :  { %v6444_v16 = vpop.eup %6443  ;;  %6453 = vpow2.f32 %v4909_v6  ;;  %v4911_v31 = vmul.f32 1.442695, %v4802_v21  ;;  %v2763_v30 = vmul.f32 1.442695, %v2655_v44  ;;  %v3039_v33 = vmul.f32 16.0, %v2655_v44 }
 0x39b   :  { %5440 = vst [vmem:[#allocation6 + $0x158] sm:$0xff] %v5376_v0  ;;  %v2845_v18 = vmul.f32 %v6444_v16, %v6444_v16  ;;  %6455 = vpow2.f32 %v4527_v10  ;;  %v2656_v25 = vmin.f32 %v2592_v55, 0.0  ;;  %v4291_v63 = vadd.f32 %v8293_v1, %v4067_v24 }
 0x39c   :  { %v6446_v42 = vpop.eup %6445  ;;  %6457 = vpow2.f32 %v4911_v31  ;;  %v3147_v40 = vmul.f32 1.442695, %v3039_v33  ;;  %v8296_v36 = vmul.f32 0.00390625, %v3994_v43  ;;  %v8298_v2 = vmul.f32 0.00390625, %v2274_v34 }
 0x39d   :  { %v6448_v61 = vpop.eup %6447  ;;  %v2909_v15 = vmul.f32 %v2845_v18, %v2845_v18  ;;  %v3293_v45 = vmul.f32 %v6446_v42, %v6446_v42  ;;  %6459 = vpow2.f32 %v2763_v30  ;;  %v2765_v35 = vmul.f32 1.442695, %v2656_v25 }
 0x39e   :  { %v6450_v8 = vpop.eup %6449  ;;  %v2846_v51 = vmul.f32 %v6448_v61, %v6448_v61  ;;  %6461 = vpow2.f32 %v3147_v40  ;;  %v3040_v52 = vmul.f32 16.0, %v2656_v25  ;;  %v8301_v26 = vadd.f32 %v4291_v63, %v7988_v39 }
 0x39f   :  { %v6452_v57 = vpop.eup %6451  ;;  %v2973_v48 = vadd.f32 %v6444_v16, %v2909_v15  ;;  %v3357_v20 = vmul.f32 %v3293_v45, %v3293_v45  ;;  %v3294_v37 = vmul.f32 %v6450_v8, %v6450_v8  ;;  %6463 = vpow2.f32 %v2765_v35  ;;  %v2387_v35 = vpop.f32.mrf.mxu3 }
 0x3a0   :  { %v6454_v9 = vpop.eup %6453  ;;  %v2910_v41 = vmul.f32 %v2846_v51, %v2846_v51  ;;  %v4609_v7 = vmul.f32 %v6452_v57, %v6452_v57  ;;  %v3149_v29 = vmul.f32 1.442695, %v3040_v52  ;;  %v4419_v13 = vmin.f32 %v8301_v26, 0.0 }
 0x3a1   :  { %v6456_v23 = vpop.eup %6455  ;;  %v3229_v3 = vadd.f32 %v6446_v42, %v2973_v48  ;;  %v3485_v28 = vmul.f32 %v3357_v20, %v3357_v20  ;;  %v3358_v38 = vmul.f32 %v3294_v37, %v3294_v37  ;;  %v5057_v27 = vmul.f32 %v6454_v9, %v6454_v9 }
 0x3a2   :  { %v6458_v11 = vpop.eup %6457  ;;  %v2974_v32 = vadd.f32 %v6448_v61, %v2910_v41  ;;  %v4673_v14 = vmul.f32 %v4609_v7, %v4609_v7  ;;  %v4610_v5 = vmul.f32 %v6456_v23, %v6456_v23  ;;  %6465 = vpow2.f32 %v3149_v29  ;;  %v3884_v29 = vpop.f32.mrf.mxu0 }
 0x3a3   :  { %v6460_v22 = vpop.eup %6459  ;;  %v3421_v56 = vadd.f32 %v3357_v20, %v3229_v3  ;;  %v3549_v19 = vmul.f32 %v3485_v28, %v3485_v28  ;;  %v3486_v46 = vmul.f32 %v3358_v38, %v3358_v38  ;;  %v5121_v60 = vmul.f32 %v5057_v27, %v5057_v27 }
 0x3a4   :  { %v6462_v59 = vpop.eup %6461  ;;  %v3230_v58 = vadd.f32 %v6450_v8, %v2974_v32  ;;  %v4737_v12 = vadd.f32 %v6452_v57, %v4673_v14  ;;  %v4674_v50 = vmul.f32 %v4610_v5, %v4610_v5  ;;  %v5058_v53 = vmul.f32 %v6458_v11, %v6458_v11  ;;  %v3997_v5 = vpop.f32.mrf.mxu1 }
 0x3a5   :  { %v6464_v6 = vpop.eup %6463  ;;  %v3613_v17 = vadd.f32 %v3549_v19, %v3421_v56  ;;  %v3550_v10 = vmul.f32 %v3486_v46, %v3486_v46  ;;  %v5249_v21 = vmul.f32 %v5121_v60, %v5121_v60  ;;  %v2847_v44 = vmul.f32 %v6460_v22, %v6460_v22 }
 0x3a6   :  { %v3422_v0 = vadd.f32 %v3358_v38, %v3230_v58  ;;  %v4993_v55 = vadd.f32 %v6454_v9, %v4737_v12  ;;  %v4738_v24 = vadd.f32 %v6456_v23, %v4674_v50  ;;  %v5122_v43 = vmul.f32 %v5058_v53, %v5058_v53 }
 0x3a7   :  { %3677 = vst [vmem:[#allocation4 + $0x150] sm:$0xff] %v3613_v17  ;;  %v5313_v34 = vmul.f32 %v5249_v21, %v5249_v21  ;;  %v2911_v16 = vmul.f32 %v2847_v44, %v2847_v44  ;;  %v3295_v31 = vmul.f32 %v6462_v59, %v6462_v59  ;;  %v2848_v30 = vmul.f32 %v6464_v6, %v6464_v6 }
 0x3a8   :  { %v6466_v33 = vpop.eup %6465  ;;  %v3614_v18 = vadd.f32 %v3550_v10, %v3422_v0  ;;  %v5185_v25 = vadd.f32 %v5121_v60, %v4993_v55  ;;  %v4994_v63 = vadd.f32 %v6458_v11, %v4738_v24  ;;  %v5250_v42 = vmul.f32 %v5122_v43, %v5122_v43 }
 0x3a9   :  { %v2975_v40 = vadd.f32 %v6460_v22, %v2911_v16  ;;  %v3359_v61 = vmul.f32 %v3295_v31, %v3295_v31  ;;  %v2912_v15 = vmul.f32 %v2848_v30, %v2848_v30  ;;  %v3296_v45 = vmul.f32 %v6466_v33, %v6466_v33  ;;  %v2277_v22 = vpop.f32.mrf.mxu2 }
 0x3aa   :  { %3678 = vst [vmem:[#allocation4 + $0x158] sm:$0xff] %v3614_v18  ;;  %v5377_v8 = vadd.f32 %v5313_v34, %v5185_v25  ;;  %v5186_v51 = vadd.f32 %v5122_v43, %v4994_v63  ;;  %v5314_v52 = vmul.f32 %v5250_v42, %v5250_v42  ;;  %v4529_v26 = vmul.f32 1.442695, %v4419_v13  ;;  %v2390_v43 = vpop.f32.mrf.mxu3 }
 0x3ab   :  { %v3231_v57 = vadd.f32 %v6462_v59, %v2975_v40  ;;  %v3487_v48 = vmul.f32 %v3359_v61, %v3359_v61  ;;  %v2976_v20 = vadd.f32 %v6464_v6, %v2912_v15  ;;  %v3360_v37 = vmul.f32 %v3296_v45, %v3296_v45 }
 0x3ac   :  { %5441 = vst [vmem:[#allocation6 + $0x160] sm:$0xff] %v5377_v8  ;;  %v5378_v9 = vadd.f32 %v5314_v52, %v5186_v51  ;;  %6467 = vpow2.f32 %v4529_v26  ;;  %v4803_v41 = vmul.f32 16.0, %v4419_v13  ;;  %v4292_v7 = vadd.f32 %v8293_v1, %v8296_v36  ;;  %v4208_v1 = vpop.permute.xlu2 %4207 }
 0x3ad   :  { %v3423_v23 = vadd.f32 %v3359_v61, %v3231_v57  ;;  %v3551_v3 = vmul.f32 %v3487_v48, %v3487_v48  ;;  %v3232_v28 = vadd.f32 %v6466_v33, %v2976_v20  ;;  %v3488_v38 = vmul.f32 %v3360_v37, %v3360_v37 }
 0x3ae   :  { %5442 = vst [vmem:[#allocation6 + $0x168] sm:$0xff] %v5378_v9  ;;  %v4913_v27 = vmul.f32 1.442695, %v4803_v41  ;;  %v4356_v11 = vadd.f32 %v4292_v7, %v7990_v47  ;;  %v2524_v32 = vadd.f32 %v8298_v2, %v7700_v62  ;;  %v2461_v14 = vmul.f32 0.00390625, %v2387_v35 }
 0x3af   :  { %v3615_v56 = vadd.f32 %v3551_v3, %v3423_v23  ;;  %v3424_v13 = vadd.f32 %v3360_v37, %v3232_v28  ;;  %v3552_v19 = vmul.f32 %v3488_v38, %v3488_v38  ;;  %v4069_v46 = vmul.f32 0.00390625, %v3884_v29 }
 0x3b0   :  { %6469 = vpow2.f32 %v4913_v27  ;;  %v4420_v36 = vmin.f32 %v4356_v11, 0.0  ;;  %v2593_v60 = vadd.f32 %v7988_v39, %v2524_v32  ;;  %v2525_v59 = vadd.f32 %v2461_v14, %v7700_v62 }
 0x3b1   :  { %3679 = vst [vmem:[#allocation4 + $0x160] sm:$0xff] %v3615_v56  ;;  %v3616_v58 = vadd.f32 %v3552_v19, %v3424_v13  ;;  %v4293_v12 = vadd.f32 %v4208_v1, %v4069_v46  ;;  %v4070_v50 = vmul.f32 0.00390625, %v3997_v5  ;;  %v2462_v53 = vmul.f32 0.00390625, %v2277_v22 }
 0x3b2   :  { %v6468_v2 = vpop.eup %6467  ;;  %v4531_v6 = vmul.f32 1.442695, %v4420_v36  ;;  %v4804_v17 = vmul.f32 16.0, %v4420_v36  ;;  %v2657_v10 = vmin.f32 %v2593_v60, 0.0  ;;  %v2594_v21 = vadd.f32 %v7990_v47, %v2525_v59 }
 0x3b3   :  { %3680 = vst [vmem:[#allocation4 + $0x168] sm:$0xff] %v3616_v58  ;;  %v4611_v44 = vmul.f32 %v6468_v2, %v6468_v2  ;;  %v4357_v0 = vadd.f32 %v4293_v12, %v7988_v39  ;;  %v4294_v55 = vadd.f32 %v4208_v1, %v4070_v50  ;;  %v2526_v24 = vadd.f32 %v2462_v53, %v7734_v54 }
 0x3b4   :  { %6471 = vpow2.f32 %v4531_v6  ;;  %v4915_v62 = vmul.f32 1.442695, %v4804_v17  ;;  %v2767_v34 = vmul.f32 1.442695, %v2657_v10  ;;  %v3041_v16 = vmul.f32 16.0, %v2657_v10 }
 0x3b5   :  { %v4675_v31 = vmul.f32 %v4611_v44, %v4611_v44  ;;  %v2658_v30 = vmin.f32 %v2594_v21, 0.0  ;;  %v4421_v33 = vmin.f32 %v4357_v0, 0.0  ;;  %v4358_v18 = vadd.f32 %v4294_v55, %v7990_v47 }
 0x3b6   :  { %v6470_v25 = vpop.eup %6469  ;;  %6473 = vpow2.f32 %v4915_v62  ;;  %v3151_v63 = vmul.f32 1.442695, %v3041_v16  ;;  %v2595_v42 = vadd.f32 %v7988_v39, %v2526_v24  ;;  %v2463_v40 = vmul.f32 0.00390625, %v2390_v43 }
 0x3b7   :  { %v4739_v61 = vadd.f32 %v6468_v2, %v4675_v31  ;;  %v5059_v15 = vmul.f32 %v6470_v25, %v6470_v25  ;;  %6475 = vpow2.f32 %v2767_v34  ;;  %v2769_v45 = vmul.f32 1.442695, %v2658_v30 }
 0x3b8   :  { %6477 = vpow2.f32 %v3151_v63  ;;  %v3042_v35 = vmul.f32 16.0, %v2658_v30  ;;  %v4533_v8 = vmul.f32 1.442695, %v4421_v33  ;;  %v4805_v51 = vmul.f32 16.0, %v4421_v33  ;;  %v4000_v63 = vpop.f32.mrf.mxu1 }
 0x3b9   :  { %v4995_v52 = vadd.f32 %v6470_v25, %v4739_v61  ;;  %v5123_v26 = vmul.f32 %v5059_v15, %v5059_v15  ;;  %6479 = vpow2.f32 %v2769_v45  ;;  %v4422_v57 = vmin.f32 %v4358_v18, 0.0  ;;  %v3887_v25 = vpop.f32.mrf.mxu0 }
 0x3ba   :  { %v6472_v48 = vpop.eup %6471  ;;  %v3153_v20 = vmul.f32 1.442695, %v3042_v35  ;;  %6481 = vpow2.f32 %v4533_v8  ;;  %v4917_v37 = vmul.f32 1.442695, %v4805_v51  ;;  %v2659_v9 = vmin.f32 %v2595_v42, 0.0 }
 0x3bb   :  { %v5187_v41 = vadd.f32 %v5123_v26, %v4995_v52  ;;  %v5251_v7 = vmul.f32 %v5123_v26, %v5123_v26  ;;  %v4612_v29 = vmul.f32 %v6472_v48, %v6472_v48  ;;  %v4535_v23 = vmul.f32 1.442695, %v4422_v57 }
 0x3bc   :  { %v6474_v3 = vpop.eup %6473  ;;  %6483 = vpow2.f32 %v3153_v20  ;;  %v4806_v28 = vmul.f32 16.0, %v4422_v57  ;;  %v2771_v38 = vmul.f32 1.442695, %v2659_v9  ;;  %v3043_v27 = vmul.f32 16.0, %v2659_v9 }
 0x3bd   :  { %v6476_v11 = vpop.eup %6475  ;;  %v5315_v32 = vmul.f32 %v5251_v7, %v5251_v7  ;;  %v4676_v14 = vmul.f32 %v4612_v29, %v4612_v29  ;;  %v5060_v5 = vmul.f32 %v6474_v3, %v6474_v3  ;;  %6485 = vpow2.f32 %v4917_v37 }
 0x3be   :  { %v6478_v22 = vpop.eup %6477  ;;  %v2849_v56 = vmul.f32 %v6476_v11, %v6476_v11  ;;  %6487 = vpow2.f32 %v4535_v23  ;;  %v4919_v13 = vmul.f32 1.442695, %v4806_v28  ;;  %v3155_v19 = vmul.f32 1.442695, %v3043_v27 }
 0x3bf   :  { %v6480_v46 = vpop.eup %6479  ;;  %v5379_v1 = vadd.f32 %v5315_v32, %v5187_v41  ;;  %v4740_v36 = vadd.f32 %v6472_v48, %v4676_v14  ;;  %v5124_v60 = vmul.f32 %v5060_v5, %v5060_v5  ;;  %v3297_v59 = vmul.f32 %v6478_v22, %v6478_v22  ;;  %v4213_v14 = vpop.permute.xlu0 %4212 }
 0x3c0   :  { %v6482_v58 = vpop.eup %6481  ;;  %v2913_v12 = vmul.f32 %v2849_v56, %v2849_v56  ;;  %v2850_v50 = vmul.f32 %v6480_v46, %v6480_v46  ;;  %6489 = vpow2.f32 %v4919_v13  ;;  %v2527_v53 = vadd.f32 %v2463_v40, %v7734_v54 }
 0x3c1   :  { %5443 = vst [vmem:[#allocation6 + $0x170] sm:$0xff] %v5379_v1  ;;  %v4996_v2 = vadd.f32 %v6474_v3, %v4740_v36  ;;  %v5252_v6 = vmul.f32 %v5124_v60, %v5124_v60  ;;  %v3361_v17 = vmul.f32 %v3297_v59, %v3297_v59  ;;  %v4613_v10 = vmul.f32 %v6482_v58, %v6482_v58 }
 0x3c2   :  { %v6484_v21 = vpop.eup %6483  ;;  %v2977_v44 = vadd.f32 %v6476_v11, %v2913_v12  ;;  %v2914_v0 = vmul.f32 %v2850_v50, %v2850_v50  ;;  %6491 = vpow2.f32 %v2771_v38  ;;  %v2596_v55 = vadd.f32 %v7990_v47, %v2527_v53 }
 0x3c3   :  { %v6486_v24 = vpop.eup %6485  ;;  %v5188_v43 = vadd.f32 %v5124_v60, %v4996_v2  ;;  %v5316_v62 = vmul.f32 %v5252_v6, %v5252_v6  ;;  %v3489_v34 = vmul.f32 %v3361_v17, %v3361_v17  ;;  %v3298_v16 = vmul.f32 %v6484_v21, %v6484_v21  ;;  %v2280_v60 = vpop.f32.mrf.mxu2 }
 0x3c4   :  { %v6488_v31 = vpop.eup %6487  ;;  %v3233_v30 = vadd.f32 %v6478_v22, %v2977_v44  ;;  %v2978_v33 = vadd.f32 %v6480_v46, %v2914_v0  ;;  %v4677_v54 = vmul.f32 %v4613_v10, %v4613_v10  ;;  %v5061_v18 = vmul.f32 %v6486_v24, %v6486_v24  ;;  %v2393_v2 = vpop.f32.mrf.mxu3 }
 0x3c5   :  { %v5380_v42 = vadd.f32 %v5316_v62, %v5188_v43  ;;  %v3553_v40 = vmul.f32 %v3489_v34, %v3489_v34  ;;  %v3362_v61 = vmul.f32 %v3298_v16, %v3298_v16  ;;  %v4614_v15 = vmul.f32 %v6488_v31, %v6488_v31  ;;  %v4003_v44 = vpop.f32.mrf.mxu1 }
 0x3c6   :  { %v6490_v45 = vpop.eup %6489  ;;  %v3425_v35 = vadd.f32 %v3361_v17, %v3233_v30  ;;  %v3234_v8 = vadd.f32 %v6484_v21, %v2978_v33  ;;  %v4741_v51 = vadd.f32 %v6482_v58, %v4677_v54  ;;  %v5125_v52 = vmul.f32 %v5061_v18, %v5061_v18  ;;  %v3890_v21 = vpop.f32.mrf.mxu0 }
 0x3c7   :  { %5444 = vst [vmem:[#allocation6 + $0x178] sm:$0xff] %v5380_v42  ;;  %v3490_v26 = vmul.f32 %v3362_v61, %v3362_v61  ;;  %v4678_v57 = vmul.f32 %v4614_v15, %v4614_v15  ;;  %v5062_v48 = vmul.f32 %v6490_v45, %v6490_v45  ;;  %6493 = vpow2.f32 %v3155_v19  ;;  %v4218_v18 = vpop.permute.xlu1 %4217 }
 0x3c8   :  { %v6492_v20 = vpop.eup %6491  ;;  %v3617_v37 = vadd.f32 %v3553_v40, %v3425_v35  ;;  %v3426_v9 = vadd.f32 %v3362_v61, %v3234_v8  ;;  %v4997_v41 = vadd.f32 %v6486_v24, %v4741_v51  ;;  %v5253_v7 = vmul.f32 %v5125_v52, %v5125_v52 }
 0x3c9   :  { %v3554_v29 = vmul.f32 %v3490_v26, %v3490_v26  ;;  %v4742_v23 = vadd.f32 %v6488_v31, %v4678_v57  ;;  %v5126_v3 = vmul.f32 %v5062_v48, %v5062_v48  ;;  %v2851_v28 = vmul.f32 %v6492_v20, %v6492_v20 }
 0x3ca   :  { %3681 = vst [vmem:[#allocation4 + $0x170] sm:$0xff] %v3617_v37  ;;  %v5189_v38 = vadd.f32 %v5125_v52, %v4997_v41  ;;  %v5317_v27 = vmul.f32 %v5253_v7, %v5253_v7  ;;  %v2660_v11 = vmin.f32 %v2596_v55, 0.0  ;;  %v4071_v32 = vmul.f32 0.00390625, %v3887_v25 }
 0x3cb   :  { %v3618_v5 = vadd.f32 %v3554_v29, %v3426_v9  ;;  %v4998_v22 = vadd.f32 %v6490_v45, %v4742_v23  ;;  %v5254_v56 = vmul.f32 %v5126_v3, %v5126_v3  ;;  %v2915_v13 = vmul.f32 %v2851_v28, %v2851_v28 }
 0x3cc   :  { %v5381_v19 = vadd.f32 %v5317_v27, %v5189_v38  ;;  %v2773_v46 = vmul.f32 1.442695, %v2660_v11  ;;  %v3044_v1 = vmul.f32 16.0, %v2660_v11  ;;  %v4295_v36 = vadd.f32 %v4213_v14, %v4071_v32 }
 0x3cd   :  { %v6494_v59 = vpop.eup %6493  ;;  %3682 = vst [vmem:[#allocation4 + $0x178] sm:$0xff] %v3618_v5  ;;  %v5190_v58 = vadd.f32 %v5126_v3, %v4998_v22  ;;  %v5318_v12 = vmul.f32 %v5254_v56, %v5254_v56  ;;  %v2979_v50 = vadd.f32 %v6492_v20, %v2915_v13  ;;  %v4072_v53 = vmul.f32 0.00390625, %v4000_v63 }
 0x3ce   :  { %5445 = vst [vmem:[#allocation6 + $0x180] sm:$0xff] %v5381_v19  ;;  %v3299_v6 = vmul.f32 %v6494_v59, %v6494_v59  ;;  %6495 = vpow2.f32 %v2773_v46  ;;  %v3157_v17 = vmul.f32 1.442695, %v3044_v1  ;;  %v4359_v10 = vadd.f32 %v4295_v36, %v7988_v39 }
 0x3cf   :  { %v5382_v0 = vadd.f32 %v5318_v12, %v5190_v58  ;;  %v3235_v55 = vadd.f32 %v6494_v59, %v2979_v50  ;;  %v4296_v24 = vadd.f32 %v4213_v14, %v4072_v53  ;;  %v2464_v43 = vmul.f32 0.00390625, %v2280_v60 }
 0x3d0   :  { %v3363_v62 = vmul.f32 %v3299_v6, %v3299_v6  ;;  %6497 = vpow2.f32 %v3157_v17  ;;  %v4423_v34 = vmin.f32 %v4359_v10, 0.0  ;;  %v2465_v16 = vmul.f32 0.00390625, %v2393_v2 }
 0x3d1   :  { %5446 = vst [vmem:[#allocation6 + $0x188] sm:$0xff] %v5382_v0  ;;  %v4360_v31 = vadd.f32 %v4296_v24, %v7990_v47  ;;  %v2528_v30 = vadd.f32 %v2464_v43, %v7770_v4  ;;  %v4073_v33 = vmul.f32 0.00390625, %v3890_v21  ;;  %v4074_v54 = vmul.f32 0.00390625, %v4003_v44 }
 0x3d2   :  { %v3427_v25 = vadd.f32 %v3363_v62, %v3235_v55  ;;  %v3491_v63 = vmul.f32 %v3363_v62, %v3363_v62  ;;  %v4537_v42 = vmul.f32 1.442695, %v4423_v34  ;;  %v4807_v40 = vmul.f32 16.0, %v4423_v34 }
 0x3d3   :  { %v4424_v61 = vmin.f32 %v4360_v31, 0.0  ;;  %v2597_v15 = vadd.f32 %v7988_v39, %v2528_v30  ;;  %v2529_v45 = vadd.f32 %v2465_v16, %v7770_v4  ;;  %v4297_v35 = vadd.f32 %v4218_v18, %v4073_v33 }
 0x3d4   :  { %v6496_v8 = vpop.eup %6495  ;;  %v3555_v51 = vmul.f32 %v3491_v63, %v3491_v63  ;;  %6499 = vpow2.f32 %v4537_v42  ;;  %v4921_v52 = vmul.f32 1.442695, %v4807_v40  ;;  %v4298_v26 = vadd.f32 %v4218_v18, %v4074_v54 }
 0x3d5   :  { %v2852_v57 = vmul.f32 %v6496_v8, %v6496_v8  ;;  %v4539_v48 = vmul.f32 1.442695, %v4424_v61  ;;  %v4808_v20 = vmul.f32 16.0, %v4424_v61  ;;  %v2661_v37 = vmin.f32 %v2597_v15, 0.0 }
 0x3d6   :  { %v6498_v9 = vpop.eup %6497  ;;  %v3619_v41 = vadd.f32 %v3555_v51, %v3427_v25  ;;  %6501 = vpow2.f32 %v4921_v52  ;;  %v2598_v7 = vadd.f32 %v7990_v47, %v2529_v45  ;;  %v4361_v29 = vadd.f32 %v4297_v35, %v7988_v39  ;;  %v2283_v25 = vpop.f32.mrf.mxu2 }
 0x3d7   :  { %v2916_v23 = vmul.f32 %v2852_v57, %v2852_v57  ;;  %v3300_v3 = vmul.f32 %v6498_v9, %v6498_v9  ;;  %6503 = vpow2.f32 %v4539_v48  ;;  %v4923_v4 = vmul.f32 1.442695, %v4808_v20 }
 0x3d8   :  { %3683 = vst [vmem:[#allocation4 + $0x180] sm:$0xff] %v3619_v41  ;;  %v2775_v28 = vmul.f32 1.442695, %v2661_v37  ;;  %v3045_v38 = vmul.f32 16.0, %v2661_v37  ;;  %v2662_v27 = vmin.f32 %v2598_v7, 0.0  ;;  %v4425_v11 = vmin.f32 %v4361_v29, 0.0  ;;  %v2396_v7 = vpop.f32.mrf.mxu3 }
 0x3d9   :  { %v2980_v32 = vadd.f32 %v6496_v8, %v2916_v23  ;;  %v3364_v14 = vmul.f32 %v3300_v3, %v3300_v3  ;;  %6505 = vpow2.f32 %v4923_v4  ;;  %v4362_v5 = vadd.f32 %v4298_v26, %v7990_v47 }
 0x3da   :  { %v6500_v22 = vpop.eup %6499  ;;  %6507 = vpow2.f32 %v2775_v28  ;;  %v3159_v56 = vmul.f32 1.442695, %v3045_v38  ;;  %v2777_v13 = vmul.f32 1.442695, %v2662_v27  ;;  %v3046_v19 = vmul.f32 16.0, %v2662_v27  ;;  %v8431_v28 = vld [vmem:[#allocation9_spill] sm:$0xff]  ;;  %v3893_v27 = vpop.f32.mrf.mxu0 }
 0x3db   :  { %v3236_v46 = vadd.f32 %v6498_v9, %v2980_v32  ;;  %v3492_v1 = vmul.f32 %v3364_v14, %v3364_v14  ;;  %v4615_v36 = vmul.f32 %v6500_v22, %v6500_v22  ;;  %v4541_v60 = vmul.f32 1.442695, %v4425_v11 }
 0x3dc   :  { %v6502_v59 = vpop.eup %6501  ;;  %6509 = vpow2.f32 %v3159_v56  ;;  %v3161_v58 = vmul.f32 1.442695, %v3046_v19  ;;  %v4809_v12 = vmul.f32 16.0, %v4425_v11  ;;  %v4426_v50 = vmin.f32 %v4362_v5, 0.0  ;;  %v4006_v11 = vpop.f32.mrf.mxu1 }
 0x3dd   :  { %v6504_v53 = vpop.eup %6503  ;;  %v3428_v2 = vadd.f32 %v3364_v14, %v3236_v46  ;;  %v3556_v6 = vmul.f32 %v3492_v1, %v3492_v1  ;;  %v4679_v17 = vmul.f32 %v4615_v36, %v4615_v36  ;;  %v5063_v10 = vmul.f32 %v6502_v59, %v6502_v59 }
 0x3de   :  { %v4616_v21 = vmul.f32 %v6504_v53, %v6504_v53  ;;  %6511 = vpow2.f32 %v2777_v13  ;;  %v4925_v44 = vmul.f32 1.442695, %v4809_v12  ;;  %v4543_v0 = vmul.f32 1.442695, %v4426_v50 }
 0x3df   :  { %v6506_v55 = vpop.eup %6505  ;;  %v3620_v24 = vadd.f32 %v3556_v6, %v3428_v2  ;;  %v4743_v43 = vadd.f32 %v6500_v22, %v4679_v17  ;;  %v5127_v62 = vmul.f32 %v5063_v10, %v5063_v10  ;;  %6513 = vpow2.f32 %v3161_v58 }
 0x3e0   :  { %v6508_v34 = vpop.eup %6507  ;;  %v4680_v16 = vmul.f32 %v4616_v21, %v4616_v21  ;;  %v5064_v31 = vmul.f32 %v6506_v55, %v6506_v55  ;;  %6515 = vpow2.f32 %v4541_v60  ;;  %v4810_v30 = vmul.f32 16.0, %v4426_v50 }
 0x3e1   :  { %3684 = vst [vmem:[#allocation4 + $0x188] sm:$0xff] %v3620_v24  ;;  %v4999_v33 = vadd.f32 %v6502_v59, %v4743_v43  ;;  %v5255_v54 = vmul.f32 %v5127_v62, %v5127_v62  ;;  %v2853_v18 = vmul.f32 %v6508_v34, %v6508_v34  ;;  %6517 = vpow2.f32 %v4925_v44 }
 0x3e2   :  { %v6510_v63 = vpop.eup %6509  ;;  %v4744_v42 = vadd.f32 %v6504_v53, %v4680_v16  ;;  %v5128_v40 = vmul.f32 %v5064_v31, %v5064_v31  ;;  %6519 = vpow2.f32 %v4543_v0  ;;  %v4927_v61 = vmul.f32 1.442695, %v4810_v30 }
 0x3e3   :  { %v5191_v15 = vadd.f32 %v5127_v62, %v4999_v33  ;;  %v5319_v45 = vmul.f32 %v5255_v54, %v5255_v54  ;;  %v2917_v35 = vmul.f32 %v2853_v18, %v2853_v18  ;;  %v3301_v8 = vmul.f32 %v6510_v63, %v6510_v63 }
 0x3e4   :  { %v6512_v51 = vpop.eup %6511  ;;  %v5000_v52 = vadd.f32 %v6506_v55, %v4744_v42  ;;  %v5256_v26 = vmul.f32 %v5128_v40, %v5128_v40  ;;  %6521 = vpow2.f32 %v4927_v61  ;;  %v2466_v57 = vmul.f32 0.00390625, %v2283_v25  ;;  %v2286_v25 = vpop.f32.mrf.mxu2 }
 0x3e5   :  { %v6514_v48 = vpop.eup %6513  ;;  %v5383_v20 = vadd.f32 %v5319_v45, %v5191_v15  ;;  %v2981_v37 = vadd.f32 %v6508_v34, %v2917_v35  ;;  %v3365_v9 = vmul.f32 %v3301_v8, %v3301_v8  ;;  %v2854_v41 = vmul.f32 %v6512_v51, %v6512_v51  ;;  %v2399_v15 = vpop.f32.mrf.mxu3 }
 0x3e6   :  { %v6516_v29 = vpop.eup %6515  ;;  %v5192_v23 = vadd.f32 %v5128_v40, %v5000_v52  ;;  %v5320_v3 = vmul.f32 %v5256_v26, %v5256_v26  ;;  %v3302_v4 = vmul.f32 %v6514_v48, %v6514_v48  ;;  %v2530_v38 = vadd.f32 %v2466_v57, %v8431_v28  ;;  %v3896_v52 = vpop.f32.mrf.mxu0 }
 0x3e7   :  { %v6518_v32 = vpop.eup %6517  ;;  %5447 = vst [vmem:[#allocation6 + $0x190] sm:$0xff] %v5383_v20  ;;  %v3237_v14 = vadd.f32 %v6510_v63, %v2981_v37  ;;  %v3493_v5 = vmul.f32 %v3365_v9, %v3365_v9  ;;  %v2918_v22 = vmul.f32 %v2854_v41, %v2854_v41  ;;  %v4617_v56 = vmul.f32 %v6516_v29, %v6516_v29  ;;  %v4009_v26 = vpop.f32.mrf.mxu1 }
 0x3e8   :  { %v6520_v13 = vpop.eup %6519  ;;  %v5384_v19 = vadd.f32 %v5320_v3, %v5192_v23  ;;  %v3366_v46 = vmul.f32 %v3302_v4, %v3302_v4  ;;  %v5065_v1 = vmul.f32 %v6518_v32, %v6518_v32  ;;  %v2599_v36 = vadd.f32 %v7988_v39, %v2530_v38  ;;  %v4223_v57 = vpop.permute.xlu2 %4222  ;;  %v8432_v23 = vld [vmem:[#allocation10_spill] sm:$0xff] }
 0x3e9   :  { %v3429_v60 = vadd.f32 %v3365_v9, %v3237_v14  ;;  %v3557_v59 = vmul.f32 %v3493_v5, %v3493_v5  ;;  %v2982_v58 = vadd.f32 %v6512_v51, %v2918_v22  ;;  %v4681_v12 = vmul.f32 %v4617_v56, %v4617_v56 }
 0x3ea   :  { %v6522_v50 = vpop.eup %6521  ;;  %5448 = vst [vmem:[#allocation6 + $0x198] sm:$0xff] %v5384_v19  ;;  %v3494_v53 = vmul.f32 %v3366_v46, %v3366_v46  ;;  %v5129_v2 = vmul.f32 %v5065_v1, %v5065_v1  ;;  %v4618_v6 = vmul.f32 %v6520_v13, %v6520_v13  ;;  %v2663_v17 = vmin.f32 %v2599_v36, 0.0 }
 0x3eb   :  { %v3621_v10 = vadd.f32 %v3557_v59, %v3429_v60  ;;  %v3238_v21 = vadd.f32 %v6514_v48, %v2982_v58  ;;  %v4745_v44 = vadd.f32 %v6516_v29, %v4681_v12  ;;  %v5066_v0 = vmul.f32 %v6522_v50, %v6522_v50 }
 0x3ec   :  { %v3558_v55 = vmul.f32 %v3494_v53, %v3494_v53  ;;  %v5257_v24 = vmul.f32 %v5129_v2, %v5129_v2  ;;  %v4682_v43 = vmul.f32 %v4618_v6, %v4618_v6  ;;  %v2779_v62 = vmul.f32 1.442695, %v2663_v17 }
 0x3ed   :  { %3685 = vst [vmem:[#allocation4 + $0x190] sm:$0xff] %v3621_v10  ;;  %v3430_v34 = vadd.f32 %v3366_v46, %v3238_v21  ;;  %v5001_v16 = vadd.f32 %v6518_v32, %v4745_v44  ;;  %v5130_v31 = vmul.f32 %v5066_v0, %v5066_v0  ;;  %v3047_v30 = vmul.f32 16.0, %v2663_v17 }
 0x3ee   :  { %v5321_v33 = vmul.f32 %v5257_v24, %v5257_v24  ;;  %v4746_v54 = vadd.f32 %v6520_v13, %v4682_v43  ;;  %6523 = vpow2.f32 %v2779_v62  ;;  %v2467_v18 = vmul.f32 0.00390625, %v2396_v7 }
 0x3ef   :  { %v3622_v63 = vadd.f32 %v3558_v55, %v3430_v34  ;;  %v5193_v42 = vadd.f32 %v5129_v2, %v5001_v16  ;;  %v5258_v40 = vmul.f32 %v5130_v31, %v5130_v31  ;;  %v3163_v61 = vmul.f32 1.442695, %v3047_v30 }
 0x3f0   :  { %v5002_v45 = vadd.f32 %v6522_v50, %v4746_v54  ;;  %v2531_v35 = vadd.f32 %v2467_v18, %v8431_v28  ;;  %v4075_v8 = vmul.f32 0.00390625, %v3893_v27  ;;  %v4076_v51 = vmul.f32 0.00390625, %v4006_v11  ;;  %v4228_v11 = vpop.permute.xlu0 %4227 }
 0x3f1   :  { %3686 = vst [vmem:[#allocation4 + $0x198] sm:$0xff] %v3622_v63  ;;  %v5385_v48 = vadd.f32 %v5321_v33, %v5193_v42  ;;  %v5322_v20 = vmul.f32 %v5258_v40, %v5258_v40  ;;  %6525 = vpow2.f32 %v3163_v61  ;;  %v2468_v37 = vmul.f32 0.00390625, %v2286_v25 }
 0x3f2   :  { %v5194_v9 = vadd.f32 %v5130_v31, %v5002_v45  ;;  %v2600_v41 = vadd.f32 %v7990_v47, %v2531_v35  ;;  %v4299_v7 = vadd.f32 %v4223_v57, %v4075_v8  ;;  %v4300_v29 = vadd.f32 %v4223_v57, %v4076_v51  ;;  %v2289_v51 = vpop.f32.mrf.mxu2 }
 0x3f3   :  { %5449 = vst [vmem:[#allocation6 + $0x1a0] sm:$0xff] %v5385_v48  ;;  %v2532_v3 = vadd.f32 %v2468_v37, %v8432_v23  ;;  %v2469_v4 = vmul.f32 0.00390625, %v2399_v15  ;;  %v4077_v28 = vmul.f32 0.00390625, %v3896_v52  ;;  %v4078_v38 = vmul.f32 0.00390625, %v4009_v26 }
 0x3f4   :  { %v6524_v27 = vpop.eup %6523  ;;  %v5386_v32 = vadd.f32 %v5322_v20, %v5194_v9  ;;  %v2664_v14 = vmin.f32 %v2600_v41, 0.0  ;;  %v4363_v5 = vadd.f32 %v4299_v7, %v7988_v39  ;;  %v4364_v22 = vadd.f32 %v4300_v29, %v7990_v47 }
 0x3f5   :  { %v2855_v56 = vmul.f32 %v6524_v27, %v6524_v27  ;;  %v2601_v13 = vadd.f32 %v7988_v39, %v2532_v3  ;;  %v2533_v19 = vadd.f32 %v2469_v4, %v8432_v23  ;;  %v4301_v46 = vadd.f32 %v4228_v11, %v4077_v28 }
 0x3f6   :  { %5450 = vst [vmem:[#allocation6 + $0x1a8] sm:$0xff] %v5386_v32  ;;  %v2781_v1 = vmul.f32 1.442695, %v2664_v14  ;;  %v3048_v36 = vmul.f32 16.0, %v2664_v14  ;;  %v4427_v60 = vmin.f32 %v4363_v5, 0.0  ;;  %v4428_v59 = vmin.f32 %v4364_v22, 0.0 }
 0x3f7   :  { %v6526_v58 = vpop.eup %6525  ;;  %v2919_v12 = vmul.f32 %v2855_v56, %v2855_v56  ;;  %v2665_v50 = vmin.f32 %v2601_v13, 0.0  ;;  %v2602_v53 = vadd.f32 %v7990_v47, %v2533_v19  ;;  %v4365_v2 = vadd.f32 %v4301_v46, %v7988_v39 }
 0x3f8   :  { %v3303_v6 = vmul.f32 %v6526_v58, %v6526_v58  ;;  %6527 = vpow2.f32 %v2781_v1  ;;  %v3165_v17 = vmul.f32 1.442695, %v3048_v36  ;;  %v4545_v10 = vmul.f32 1.442695, %v4427_v60 }
 0x3f9   :  { %v2983_v21 = vadd.f32 %v6524_v27, %v2919_v12  ;;  %v4811_v44 = vmul.f32 16.0, %v4427_v60  ;;  %v4547_v0 = vmul.f32 1.442695, %v4428_v59  ;;  %v4812_v55 = vmul.f32 16.0, %v4428_v59 }
 0x3fa   :  { %v3367_v24 = vmul.f32 %v3303_v6, %v3303_v6  ;;  %6529 = vpow2.f32 %v3165_v17  ;;  %v2783_v43 = vmul.f32 1.442695, %v2665_v50  ;;  %v3049_v62 = vmul.f32 16.0, %v2665_v50 }
 0x3fb   :  { %v3239_v34 = vadd.f32 %v6526_v58, %v2983_v21  ;;  %6531 = vpow2.f32 %v4545_v10  ;;  %v4929_v16 = vmul.f32 1.442695, %v4811_v44  ;;  %v4931_v31 = vmul.f32 1.442695, %v4812_v55  ;;  %v3899_v55 = vpop.f32.mrf.mxu0 }
 0x3fc   :  { %v3495_v30 = vmul.f32 %v3367_v24, %v3367_v24  ;;  %6533 = vpow2.f32 %v4547_v0  ;;  %v3167_v33 = vmul.f32 1.442695, %v3049_v62  ;;  %v2666_v54 = vmin.f32 %v2602_v53, 0.0  ;;  %v2402_v0 = vpop.f32.mrf.mxu3 }
 0x3fd   :  { %v3431_v18 = vadd.f32 %v3367_v24, %v3239_v34  ;;  %6535 = vpow2.f32 %v4929_v16  ;;  %v4429_v25 = vmin.f32 %v4365_v2, 0.0  ;;  %v4302_v63 = vadd.f32 %v4228_v11, %v4078_v38 }
 0x3fe   :  { %v6528_v42 = vpop.eup %6527  ;;  %v3559_v40 = vmul.f32 %v3495_v30, %v3495_v30  ;;  %6537 = vpow2.f32 %v4931_v31  ;;  %v2785_v61 = vmul.f32 1.442695, %v2666_v54  ;;  %v3050_v15 = vmul.f32 16.0, %v2666_v54 }
 0x3ff   :  { %v2856_v45 = vmul.f32 %v6528_v42, %v6528_v42  ;;  %6539 = vpow2.f32 %v2783_v43  ;;  %v4549_v35 = vmul.f32 1.442695, %v4429_v25  ;;  %v4813_v8 = vmul.f32 16.0, %v4429_v25 }
 0x400   :  { %v6530_v52 = vpop.eup %6529  ;;  %v3623_v26 = vadd.f32 %v3559_v40, %v3431_v18  ;;  %6541 = vpow2.f32 %v3167_v33  ;;  %v3169_v57 = vmul.f32 1.442695, %v3050_v15  ;;  %v8344_v48 = vadd.f32 %v4302_v63, %v7990_v47 }
 0x401   :  { %v6532_v20 = vpop.eup %6531  ;;  %v2920_v37 = vmul.f32 %v2856_v45, %v2856_v45  ;;  %v3304_v9 = vmul.f32 %v6530_v52, %v6530_v52  ;;  %6543 = vpow2.f32 %v2785_v61  ;;  %v4933_v41 = vmul.f32 1.442695, %v4813_v8 }
 0x402   :  { %v6534_v7 = vpop.eup %6533  ;;  %3687 = vst [vmem:[#allocation4 + $0x1a0] sm:$0xff] %v3623_v26  ;;  %v4619_v29 = vmul.f32 %v6532_v20, %v6532_v20  ;;  %6545 = vpow2.f32 %v3169_v57  ;;  %v4430_v23 = vmin.f32 %v8344_v48, 0.0  ;;  %v8347_v3 = vmul.f32 0.00390625, %v2289_v51 }
 0x403   :  { %v6536_v4 = vpop.eup %6535  ;;  %v2984_v28 = vadd.f32 %v6528_v42, %v2920_v37  ;;  %v3368_v38 = vmul.f32 %v3304_v9, %v3304_v9  ;;  %v4620_v27 = vmul.f32 %v6534_v7, %v6534_v7  ;;  %6547 = vpow2.f32 %v4549_v35 }
 0x404   :  { %v6538_v11 = vpop.eup %6537  ;;  %v4683_v32 = vmul.f32 %v4619_v29, %v4619_v29  ;;  %v5067_v14 = vmul.f32 %v6536_v4, %v6536_v4  ;;  %6549 = vpow2.f32 %v4933_v41  ;;  %v4551_v5 = vmul.f32 1.442695, %v4430_v23  ;;  %v2405_v48 = vpop.f32.mrf.mxu3 }
 0x405   :  { %v6540_v22 = vpop.eup %6539  ;;  %v3240_v56 = vadd.f32 %v6530_v52, %v2984_v28  ;;  %v3496_v13 = vmul.f32 %v3368_v38, %v3368_v38  ;;  %v4684_v19 = vmul.f32 %v4620_v27, %v4620_v27  ;;  %v5068_v46 = vmul.f32 %v6538_v11, %v6538_v11 }
 0x406   :  { %v6542_v1 = vpop.eup %6541  ;;  %v4747_v36 = vadd.f32 %v6532_v20, %v4683_v32  ;;  %v5131_v60 = vmul.f32 %v5067_v14, %v5067_v14  ;;  %v2857_v59 = vmul.f32 %v6540_v22, %v6540_v22  ;;  %6551 = vpow2.f32 %v4551_v5  ;;  %v8433_v32 = vld [vmem:[#allocation11_spill] sm:$0xff] }
 0x407   :  { %v6544_v58 = vpop.eup %6543  ;;  %v3432_v12 = vadd.f32 %v3368_v38, %v3240_v56  ;;  %v3560_v50 = vmul.f32 %v3496_v13, %v3496_v13  ;;  %v4748_v53 = vadd.f32 %v6534_v7, %v4684_v19  ;;  %v5132_v2 = vmul.f32 %v5068_v46, %v5068_v46  ;;  %v4012_v19 = vpop.f32.mrf.mxu1 }
 0x408   :  { %v6546_v6 = vpop.eup %6545  ;;  %v5003_v17 = vadd.f32 %v6536_v4, %v4747_v36  ;;  %v5259_v10 = vmul.f32 %v5131_v60, %v5131_v60  ;;  %v2921_v21 = vmul.f32 %v2857_v59, %v2857_v59  ;;  %v3305_v44 = vmul.f32 %v6542_v1, %v6542_v1  ;;  %v2292_v46 = vpop.f32.mrf.mxu2 }
 0x409   :  { %v6548_v24 = vpop.eup %6547  ;;  %v3624_v43 = vadd.f32 %v3560_v50, %v3432_v12  ;;  %v5004_v62 = vadd.f32 %v6538_v11, %v4748_v53  ;;  %v5260_v34 = vmul.f32 %v5132_v2, %v5132_v2  ;;  %v2858_v16 = vmul.f32 %v6544_v58, %v6544_v58  ;;  %v4233_v53 = vpop.permute.xlu1 %4232 }
 0x40a   :  { %v6550_v31 = vpop.eup %6549  ;;  %v5195_v30 = vadd.f32 %v5131_v60, %v5003_v17  ;;  %v5323_v33 = vmul.f32 %v5259_v10, %v5259_v10  ;;  %v2985_v54 = vadd.f32 %v6540_v22, %v2921_v21  ;;  %v3369_v18 = vmul.f32 %v3305_v44, %v3305_v44 }
 0x40b   :  { %3688 = vst [vmem:[#allocation4 + $0x1a8] sm:$0xff] %v3624_v43  ;;  %v5196_v25 = vadd.f32 %v5132_v2, %v5004_v62  ;;  %v5324_v63 = vmul.f32 %v5260_v34, %v5260_v34  ;;  %v2922_v42 = vmul.f32 %v2858_v16, %v2858_v16  ;;  %v3306_v40 = vmul.f32 %v6546_v6, %v6546_v6  ;;  %v8358_v16 = vpop.permute.xlu2 %4237 }
 0x40c   :  { %v6552_v61 = vpop.eup %6551  ;;  %v5387_v15 = vadd.f32 %v5323_v33, %v5195_v30  ;;  %v3241_v45 = vadd.f32 %v6542_v1, %v2985_v54  ;;  %v3497_v35 = vmul.f32 %v3369_v18, %v3369_v18  ;;  %v4621_v8 = vmul.f32 %v6548_v24, %v6548_v24  ;;  %v8434_v30 = vld [vmem:[#allocation12_spill] sm:$0xff] }
 0x40d   :  { %v5388_v51 = vadd.f32 %v5324_v63, %v5196_v25  ;;  %v2986_v52 = vadd.f32 %v6544_v58, %v2922_v42  ;;  %v3370_v26 = vmul.f32 %v3306_v40, %v3306_v40  ;;  %v5069_v57 = vmul.f32 %v6550_v31, %v6550_v31 }
 0x40e   :  { %5451 = vst [vmem:[#allocation6 + $0x1b0] sm:$0xff] %v5387_v15  ;;  %v3433_v20 = vadd.f32 %v3369_v18, %v3241_v45  ;;  %v3561_v37 = vmul.f32 %v3497_v35, %v3497_v35  ;;  %v4685_v9 = vmul.f32 %v4621_v8, %v4621_v8  ;;  %v4622_v41 = vmul.f32 %v6552_v61, %v6552_v61 }
 0x40f   :  { %5452 = vst [vmem:[#allocation6 + $0x1b8] sm:$0xff] %v5388_v51  ;;  %v3242_v7 = vadd.f32 %v6546_v6, %v2986_v52  ;;  %v3498_v29 = vmul.f32 %v3370_v26, %v3370_v26  ;;  %v5133_v4 = vmul.f32 %v5069_v57, %v5069_v57  ;;  %v4814_v28 = vmul.f32 16.0, %v4430_v23  ;;  %v3902_v23 = vpop.f32.mrf.mxu0 }
 0x410   :  { %v3625_v38 = vadd.f32 %v3561_v37, %v3433_v20  ;;  %v4749_v27 = vadd.f32 %v6548_v24, %v4685_v9  ;;  %v4686_v11 = vmul.f32 %v4622_v41, %v4622_v41  ;;  %v2534_v14 = vadd.f32 %v8347_v3, %v8433_v32 }
 0x411   :  { %v3434_v5 = vadd.f32 %v3370_v26, %v3242_v7  ;;  %v3562_v22 = vmul.f32 %v3498_v29, %v3498_v29  ;;  %v5261_v56 = vmul.f32 %v5133_v4, %v5133_v4  ;;  %v4935_v13 = vmul.f32 1.442695, %v4814_v28 }
 0x412   :  { %3689 = vst [vmem:[#allocation4 + $0x1b0] sm:$0xff] %v3625_v38  ;;  %v5005_v1 = vadd.f32 %v6550_v31, %v4749_v27  ;;  %v4750_v36 = vadd.f32 %v6552_v61, %v4686_v11  ;;  %v2603_v60 = vadd.f32 %v7988_v39, %v2534_v14  ;;  %v2471_v59 = vmul.f32 0.00390625, %v2402_v0 }
 0x413   :  { %v3626_v58 = vadd.f32 %v3562_v22, %v3434_v5  ;;  %v5325_v12 = vmul.f32 %v5261_v56, %v5261_v56  ;;  %6553 = vpow2.f32 %v4935_v13  ;;  %v4079_v50 = vmul.f32 0.00390625, %v3899_v55 }
 0x414   :  { %v5197_v3 = vadd.f32 %v5133_v4, %v5005_v1  ;;  %v2667_v2 = vmin.f32 %v2603_v60, 0.0  ;;  %v2535_v6 = vadd.f32 %v2471_v59, %v8433_v32  ;;  %v4080_v17 = vmul.f32 0.00390625, %v4012_v19  ;;  %v4015_v59 = vpop.f32.mrf.mxu1 }
 0x415   :  { %3690 = vst [vmem:[#allocation4 + $0x1b8] sm:$0xff] %v3626_v58  ;;  %v4303_v10 = vadd.f32 %v4233_v53, %v4079_v50  ;;  %v2472_v21 = vmul.f32 0.00390625, %v2292_v46  ;;  %v2473_v44 = vmul.f32 0.00390625, %v2405_v48  ;;  %v4081_v24 = vmul.f32 0.00390625, %v3902_v23 }
 0x416   :  { %v5389_v43 = vadd.f32 %v5325_v12, %v5197_v3  ;;  %v2787_v62 = vmul.f32 1.442695, %v2667_v2  ;;  %v3051_v0 = vmul.f32 16.0, %v2667_v2  ;;  %v2604_v34 = vadd.f32 %v7990_v47, %v2535_v6 }
 0x417   :  { %v4367_v55 = vadd.f32 %v4303_v10, %v7988_v39  ;;  %v4304_v31 = vadd.f32 %v4233_v53, %v4080_v17  ;;  %v2536_v33 = vadd.f32 %v2472_v21, %v8434_v30  ;;  %v2537_v54 = vadd.f32 %v2473_v44, %v8434_v30 }
 0x418   :  { %5453 = vst [vmem:[#allocation6 + $0x1c0] sm:$0xff] %v5389_v43  ;;  %6555 = vpow2.f32 %v2787_v62  ;;  %v3171_v18 = vmul.f32 1.442695, %v3051_v0  ;;  %v2668_v25 = vmin.f32 %v2604_v34, 0.0  ;;  %v4305_v63 = vadd.f32 %v8358_v16, %v4081_v24 }
 0x419   :  { %v6554_v42 = vpop.eup %6553  ;;  %v4431_v40 = vmin.f32 %v4367_v55, 0.0  ;;  %v4368_v61 = vadd.f32 %v4304_v31, %v7990_v47  ;;  %v2605_v15 = vadd.f32 %v7988_v39, %v2536_v33  ;;  %v2606_v45 = vadd.f32 %v7990_v47, %v2537_v54 }
 0x41a   :  { %v5006_v35 = vadd.f32 %v6554_v42, %v4750_v36  ;;  %v5070_v8 = vmul.f32 %v6554_v42, %v6554_v42  ;;  %6557 = vpow2.f32 %v3171_v18  ;;  %v2789_v51 = vmul.f32 1.442695, %v2668_v25 }
 0x41b   :  { %v3052_v52 = vmul.f32 16.0, %v2668_v25  ;;  %v4553_v26 = vmul.f32 1.442695, %v4431_v40  ;;  %v4815_v57 = vmul.f32 16.0, %v4431_v40  ;;  %v4432_v20 = vmin.f32 %v4368_v61, 0.0 }
 0x41c   :  { %v5134_v37 = vmul.f32 %v5070_v8, %v5070_v8  ;;  %6559 = vpow2.f32 %v2789_v51  ;;  %v2669_v9 = vmin.f32 %v2605_v15, 0.0  ;;  %v2670_v41 = vmin.f32 %v2606_v45, 0.0  ;;  %v2295_v51 = vpop.f32.mrf.mxu2 }
 0x41d   :  { %v3173_v7 = vmul.f32 1.442695, %v3052_v52  ;;  %6561 = vpow2.f32 %v4553_v26  ;;  %v4937_v29 = vmul.f32 1.442695, %v4815_v57  ;;  %v4555_v4 = vmul.f32 1.442695, %v4432_v20 }
 0x41e   :  { %v6556_v28 = vpop.eup %6555  ;;  %v5198_v38 = vadd.f32 %v5134_v37, %v5006_v35  ;;  %v5262_v27 = vmul.f32 %v5134_v37, %v5134_v37  ;;  %v4816_v11 = vmul.f32 16.0, %v4432_v20  ;;  %v2791_v32 = vmul.f32 1.442695, %v2669_v9 }
 0x41f   :  { %v2859_v14 = vmul.f32 %v6556_v28, %v6556_v28  ;;  %6563 = vpow2.f32 %v3173_v7  ;;  %v3053_v5 = vmul.f32 16.0, %v2669_v9  ;;  %v2793_v22 = vmul.f32 1.442695, %v2670_v41 }
 0x420   :  { %v6558_v56 = vpop.eup %6557  ;;  %v5326_v13 = vmul.f32 %v5262_v27, %v5262_v27  ;;  %6565 = vpow2.f32 %v4937_v29  ;;  %v4939_v19 = vmul.f32 1.442695, %v4816_v11  ;;  %v3054_v46 = vmul.f32 16.0, %v2670_v41 }
 0x421   :  { %v2923_v1 = vmul.f32 %v2859_v14, %v2859_v14  ;;  %v3307_v36 = vmul.f32 %v6558_v56, %v6558_v56  ;;  %6567 = vpow2.f32 %v4555_v4  ;;  %v3175_v60 = vmul.f32 1.442695, %v3053_v5  ;;  %v2408_v14 = vpop.f32.mrf.mxu3 }
 0x422   :  { %v6560_v48 = vpop.eup %6559  ;;  %v5390_v23 = vadd.f32 %v5326_v13, %v5198_v38  ;;  %6569 = vpow2.f32 %v4939_v19  ;;  %v3177_v58 = vmul.f32 1.442695, %v3054_v46  ;;  %v8368_v12 = vadd.f32 %v4305_v63, %v7988_v39 }
 0x423   :  { %v6562_v50 = vpop.eup %6561  ;;  %v2987_v53 = vadd.f32 %v6556_v28, %v2923_v1  ;;  %v3371_v3 = vmul.f32 %v3307_v36, %v3307_v36  ;;  %v2860_v2 = vmul.f32 %v6560_v48, %v6560_v48  ;;  %6571 = vpow2.f32 %v2791_v32 }
 0x424   :  { %5454 = vst [vmem:[#allocation6 + $0x1c8] sm:$0xff] %v5390_v23  ;;  %v4623_v6 = vmul.f32 %v6562_v50, %v6562_v50  ;;  %6573 = vpow2.f32 %v3175_v60  ;;  %v4433_v17 = vmin.f32 %v8368_v12, 0.0  ;;  %v8371_v10 = vmul.f32 0.00390625, %v4015_v59 }
 0x425   :  { %v6564_v21 = vpop.eup %6563  ;;  %v3243_v44 = vadd.f32 %v6558_v56, %v2987_v53  ;;  %v3499_v24 = vmul.f32 %v3371_v3, %v3371_v3  ;;  %v2924_v43 = vmul.f32 %v2860_v2, %v2860_v2  ;;  %6575 = vpow2.f32 %v2793_v22 }
 0x426   :  { %v6566_v62 = vpop.eup %6565  ;;  %v3308_v0 = vmul.f32 %v6564_v21, %v6564_v21  ;;  %v4687_v34 = vmul.f32 %v4623_v6, %v4623_v6  ;;  %6577 = vpow2.f32 %v3177_v58  ;;  %v4557_v55 = vmul.f32 1.442695, %v4433_v17 }
 0x427   :  { %v6568_v31 = vpop.eup %6567  ;;  %v3435_v30 = vadd.f32 %v3371_v3, %v3243_v44  ;;  %v3563_v33 = vmul.f32 %v3499_v24, %v3499_v24  ;;  %v2988_v54 = vadd.f32 %v6560_v48, %v2924_v43  ;;  %v5071_v18 = vmul.f32 %v6566_v62, %v6566_v62 }
 0x428   :  { %v6570_v25 = vpop.eup %6569  ;;  %v3372_v63 = vmul.f32 %v3308_v0, %v3308_v0  ;;  %v4751_v42 = vadd.f32 %v6562_v50, %v4687_v34  ;;  %v4624_v40 = vmul.f32 %v6568_v31, %v6568_v31  ;;  %6579 = vpow2.f32 %v4557_v55  ;;  %v3905_v55 = vpop.f32.mrf.mxu0 }
 0x429   :  { %v6572_v61 = vpop.eup %6571  ;;  %v3627_v15 = vadd.f32 %v3563_v33, %v3435_v30  ;;  %v3244_v45 = vadd.f32 %v6564_v21, %v2988_v54  ;;  %v5135_v35 = vmul.f32 %v5071_v18, %v5071_v18  ;;  %v5072_v8 = vmul.f32 %v6570_v25, %v6570_v25  ;;  %v4018_v18 = vpop.f32.mrf.mxu1 }
 0x42a   :  { %v6574_v52 = vpop.eup %6573  ;;  %v3500_v26 = vmul.f32 %v3372_v63, %v3372_v63  ;;  %v5007_v57 = vadd.f32 %v6566_v62, %v4751_v42  ;;  %v4688_v20 = vmul.f32 %v4624_v40, %v4624_v40  ;;  %v2861_v37 = vmul.f32 %v6572_v61, %v6572_v61 }
 0x42b   :  { %v6576_v9 = vpop.eup %6575  ;;  %3691 = vst [vmem:[#allocation4 + $0x1c0] sm:$0xff] %v3627_v15  ;;  %v3436_v41 = vadd.f32 %v3372_v63, %v3244_v45  ;;  %v5263_v7 = vmul.f32 %v5135_v35, %v5135_v35  ;;  %v5136_v29 = vmul.f32 %v5072_v8, %v5072_v8  ;;  %v3309_v4 = vmul.f32 %v6574_v52, %v6574_v52  ;;  %v2411_v8 = vpop.f32.mrf.mxu3 }
 0x42c   :  { %v6578_v28 = vpop.eup %6577  ;;  %v3564_v38 = vmul.f32 %v3500_v26, %v3500_v26  ;;  %v5199_v27 = vadd.f32 %v5135_v35, %v5007_v57  ;;  %v4752_v11 = vadd.f32 %v6568_v31, %v4688_v20  ;;  %v2925_v32 = vmul.f32 %v2861_v37, %v2861_v37 }
 0x42d   :  { %v5327_v5 = vmul.f32 %v5263_v7, %v5263_v7  ;;  %v5264_v22 = vmul.f32 %v5136_v29, %v5136_v29  ;;  %v3373_v56 = vmul.f32 %v3309_v4, %v3309_v4  ;;  %v2862_v13 = vmul.f32 %v6576_v9, %v6576_v9  ;;  %v8435_v7 = vld [vmem:[#allocation13_spill] sm:$0xff] }
 0x42e   :  { %v6580_v19 = vpop.eup %6579  ;;  %v3628_v46 = vadd.f32 %v3564_v38, %v3436_v41  ;;  %v5008_v1 = vadd.f32 %v6570_v25, %v4752_v11  ;;  %v2989_v36 = vadd.f32 %v6572_v61, %v2925_v32  ;;  %v3310_v60 = vmul.f32 %v6578_v28, %v6578_v28  ;;  %v2298_v25 = vpop.f32.mrf.mxu2 }
 0x42f   :  { %v5391_v59 = vadd.f32 %v5327_v5, %v5199_v27  ;;  %v5328_v48 = vmul.f32 %v5264_v22, %v5264_v22  ;;  %v3501_v23 = vmul.f32 %v3373_v56, %v3373_v56  ;;  %v2926_v58 = vmul.f32 %v2862_v13, %v2862_v13 }
 0x430   :  { %3692 = vst [vmem:[#allocation4 + $0x1c8] sm:$0xff] %v3628_v46  ;;  %v5200_v50 = vadd.f32 %v5136_v29, %v5008_v1  ;;  %v3245_v53 = vadd.f32 %v6574_v52, %v2989_v36  ;;  %v3374_v3 = vmul.f32 %v3310_v60, %v3310_v60  ;;  %v4625_v2 = vmul.f32 %v6580_v19, %v6580_v19 }
 0x431   :  { %5455 = vst [vmem:[#allocation6 + $0x1d0] sm:$0xff] %v5391_v59  ;;  %v3565_v6 = vmul.f32 %v3501_v23, %v3501_v23  ;;  %v2990_v21 = vadd.f32 %v6576_v9, %v2926_v58  ;;  %v4817_v44 = vmul.f32 16.0, %v4433_v17  ;;  %v4306_v24 = vadd.f32 %v8358_v16, %v8371_v10 }
 0x432   :  { %v5392_v43 = vadd.f32 %v5328_v48, %v5200_v50  ;;  %v3437_v62 = vadd.f32 %v3373_v56, %v3245_v53  ;;  %v3502_v0 = vmul.f32 %v3374_v3, %v3374_v3  ;;  %v4689_v34 = vmul.f32 %v4625_v2, %v4625_v2 }
 0x433   :  { %v3246_v31 = vadd.f32 %v6578_v28, %v2990_v21  ;;  %v4941_v30 = vmul.f32 1.442695, %v4817_v44  ;;  %v4370_v33 = vadd.f32 %v4306_v24, %v7990_v47  ;;  %v2474_v54 = vmul.f32 0.00390625, %v2295_v51  ;;  %v4243_v51 = vpop.permute.xlu0 %4242 }
 0x434   :  { %5456 = vst [vmem:[#allocation6 + $0x1d8] sm:$0xff] %v5392_v43  ;;  %v3629_v63 = vadd.f32 %v3565_v6, %v3437_v62  ;;  %v3566_v42 = vmul.f32 %v3502_v0, %v3502_v0  ;;  %v4753_v12 = vadd.f32 %v6580_v19, %v4689_v34  ;;  %v2475_v17 = vmul.f32 0.00390625, %v2408_v14 }
 0x435   :  { %v3438_v40 = vadd.f32 %v3374_v3, %v3246_v31  ;;  %6581 = vpow2.f32 %v4941_v30  ;;  %v4434_v16 = vmin.f32 %v4370_v33, 0.0  ;;  %v2538_v10 = vadd.f32 %v2474_v54, %v7930_v49 }
 0x436   :  { %3693 = vst [vmem:[#allocation4 + $0x1d0] sm:$0xff] %v3629_v63  ;;  %v2539_v61 = vadd.f32 %v2475_v17, %v7930_v49  ;;  %v4083_v15 = vmul.f32 0.00390625, %v3905_v55  ;;  %v4084_v45 = vmul.f32 0.00390625, %v4018_v18  ;;  %v2476_v35 = vmul.f32 0.00390625, %v2298_v25 }
 0x437   :  { %v3630_v52 = vadd.f32 %v3566_v42, %v3438_v40  ;;  %v4559_v26 = vmul.f32 1.442695, %v4434_v16  ;;  %v4818_v57 = vmul.f32 16.0, %v4434_v16  ;;  %v2607_v20 = vadd.f32 %v7988_v39, %v2538_v10 }
 0x438   :  { %v2608_v37 = vadd.f32 %v7990_v47, %v2539_v61  ;;  %v4307_v9 = vadd.f32 %v4243_v51, %v4083_v15  ;;  %v4308_v41 = vadd.f32 %v4243_v51, %v4084_v45  ;;  %v2540_v29 = vadd.f32 %v2476_v35, %v8435_v7 }
 0x439   :  { %3694 = vst [vmem:[#allocation4 + $0x1d8] sm:$0xff] %v3630_v52  ;;  %6583 = vpow2.f32 %v4559_v26  ;;  %v4943_v4 = vmul.f32 1.442695, %v4818_v57  ;;  %v2671_v49 = vmin.f32 %v2607_v20, 0.0  ;;  %v2477_v28 = vmul.f32 0.00390625, %v2411_v8 }
 0x43a   :  { %v2672_v38 = vmin.f32 %v2608_v37, 0.0  ;;  %v4371_v27 = vadd.f32 %v4307_v9, %v7988_v39  ;;  %v4372_v11 = vadd.f32 %v4308_v41, %v7990_v47  ;;  %v2609_v32 = vadd.f32 %v7988_v39, %v2540_v29 }
 0x43b   :  { %v6582_v14 = vpop.eup %6581  ;;  %6585 = vpow2.f32 %v4943_v4  ;;  %v2795_v5 = vmul.f32 1.442695, %v2671_v49  ;;  %v3055_v22 = vmul.f32 16.0, %v2671_v49  ;;  %v2541_v56 = vadd.f32 %v2477_v28, %v8435_v7 }
 0x43c   :  { %v5009_v13 = vadd.f32 %v6582_v14, %v4753_v12  ;;  %v5073_v19 = vmul.f32 %v6582_v14, %v6582_v14  ;;  %v2797_v46 = vmul.f32 1.442695, %v2672_v38  ;;  %v3056_v1 = vmul.f32 16.0, %v2672_v38 }
 0x43d   :  { %6587 = vpow2.f32 %v2795_v5  ;;  %v3179_v36 = vmul.f32 1.442695, %v3055_v22  ;;  %v4435_v60 = vmin.f32 %v4371_v27, 0.0  ;;  %v4436_v59 = vmin.f32 %v4372_v11, 0.0 }
 0x43e   :  { %v5137_v48 = vmul.f32 %v5073_v19, %v5073_v19  ;;  %6589 = vpow2.f32 %v2797_v46  ;;  %v3181_v23 = vmul.f32 1.442695, %v3056_v1  ;;  %v2673_v58 = vmin.f32 %v2609_v32, 0.0 }
 0x43f   :  { %v6584_v50 = vpop.eup %6583  ;;  %6591 = vpow2.f32 %v3179_v36  ;;  %v4561_v39 = vmul.f32 1.442695, %v4435_v60  ;;  %v4819_v53 = vmul.f32 16.0, %v4435_v60  ;;  %v4563_v3 = vmul.f32 1.442695, %v4436_v59 }
 0x440   :  { %v5201_v2 = vadd.f32 %v5137_v48, %v5009_v13  ;;  %v5265_v6 = vmul.f32 %v5137_v48, %v5137_v48  ;;  %v4626_v21 = vmul.f32 %v6584_v50, %v6584_v50  ;;  %6593 = vpow2.f32 %v3181_v23 }
 0x441   :  { %v6586_v44 = vpop.eup %6585  ;;  %6595 = vpow2.f32 %v4561_v39  ;;  %v4945_v24 = vmul.f32 1.442695, %v4819_v53  ;;  %v4820_v43 = vmul.f32 16.0, %v4436_v59  ;;  %v2799_v62 = vmul.f32 1.442695, %v2673_v58 }
 0x442   :  { %v5329_v0 = vmul.f32 %v5265_v6, %v5265_v6  ;;  %v4690_v34 = vmul.f32 %v4626_v21, %v4626_v21  ;;  %v5074_v55 = vmul.f32 %v6586_v44, %v6586_v44  ;;  %6597 = vpow2.f32 %v4563_v3 }
 0x443   :  { %v6588_v31 = vpop.eup %6587  ;;  %6599 = vpow2.f32 %v4945_v24  ;;  %v4947_v30 = vmul.f32 1.442695, %v4820_v43  ;;  %v3057_v33 = vmul.f32 16.0, %v2673_v58  ;;  %v8390_v54 = vadd.f32 %v7990_v47, %v2541_v56 }
 0x444   :  { %v6590_v18 = vpop.eup %6589  ;;  %v5393_v25 = vadd.f32 %v5329_v0, %v5201_v2  ;;  %v4754_v63 = vadd.f32 %v6584_v50, %v4690_v34  ;;  %v5138_v42 = vmul.f32 %v5074_v55, %v5074_v55  ;;  %v2863_v12 = vmul.f32 %v6588_v31, %v6588_v31 }
 0x445   :  { %v6592_v17 = vpop.eup %6591  ;;  %v2864_v40 = vmul.f32 %v6590_v18, %v6590_v18  ;;  %6601 = vpow2.f32 %v4947_v30  ;;  %v3183_v16 = vmul.f32 1.442695, %v3057_v33  ;;  %v2674_v10 = vmin.f32 %v8390_v54, 0.0 }
 0x446   :  { %v6594_v61 = vpop.eup %6593  ;;  %5457 = vst [vmem:[#allocation6 + $0x1e0] sm:$0xff] %v5393_v25  ;;  %v5010_v15 = vadd.f32 %v6586_v44, %v4754_v63  ;;  %v5266_v45 = vmul.f32 %v5138_v42, %v5138_v42  ;;  %v2927_v35 = vmul.f32 %v2863_v12, %v2863_v12  ;;  %v3311_v8 = vmul.f32 %v6592_v17, %v6592_v17 }
 0x447   :  { %v6596_v51 = vpop.eup %6595  ;;  %v2928_v47 = vmul.f32 %v2864_v40, %v2864_v40  ;;  %v3312_v52 = vmul.f32 %v6594_v61, %v6594_v61  ;;  %6603 = vpow2.f32 %v2799_v62  ;;  %v2801_v26 = vmul.f32 1.442695, %v2674_v10 }
 0x448   :  { %v6598_v57 = vpop.eup %6597  ;;  %v5202_v20 = vadd.f32 %v5138_v42, %v5010_v15  ;;  %v5330_v37 = vmul.f32 %v5266_v45, %v5266_v45  ;;  %v2991_v9 = vadd.f32 %v6588_v31, %v2927_v35  ;;  %v3375_v41 = vmul.f32 %v3311_v8, %v3311_v8 }
 0x449   :  { %v6600_v7 = vpop.eup %6599  ;;  %v2992_v29 = vadd.f32 %v6590_v18, %v2928_v47  ;;  %v3376_v4 = vmul.f32 %v3312_v52, %v3312_v52  ;;  %v4627_v49 = vmul.f32 %v6596_v51, %v6596_v51  ;;  %v4628_v28 = vmul.f32 %v6598_v57, %v6598_v57 }
 0x44a   :  { %v5394_v38 = vadd.f32 %v5330_v37, %v5202_v20  ;;  %v3247_v27 = vadd.f32 %v6592_v17, %v2991_v9  ;;  %v3503_v11 = vmul.f32 %v3375_v41, %v3375_v41  ;;  %v5075_v32 = vmul.f32 %v6600_v7, %v6600_v7 }
 0x44b   :  { %v6602_v14 = vpop.eup %6601  ;;  %v3248_v5 = vadd.f32 %v6594_v61, %v2992_v29  ;;  %v3504_v22 = vmul.f32 %v3376_v4, %v3376_v4  ;;  %v4691_v56 = vmul.f32 %v4627_v49, %v4627_v49  ;;  %v4692_v13 = vmul.f32 %v4628_v28, %v4628_v28 }
 0x44c   :  { %5458 = vst [vmem:[#allocation6 + $0x1e8] sm:$0xff] %v5394_v38  ;;  %v3439_v19 = vadd.f32 %v3375_v41, %v3247_v27  ;;  %v3567_v46 = vmul.f32 %v3503_v11, %v3503_v11  ;;  %v5139_v1 = vmul.f32 %v5075_v32, %v5075_v32  ;;  %v5076_v36 = vmul.f32 %v6602_v14, %v6602_v14 }
 0x44d   :  { %v6604_v60 = vpop.eup %6603  ;;  %v3440_v59 = vadd.f32 %v3376_v4, %v3248_v5  ;;  %v3568_v48 = vmul.f32 %v3504_v22, %v3504_v22  ;;  %v4755_v23 = vadd.f32 %v6596_v51, %v4691_v56  ;;  %v4756_v58 = vadd.f32 %v6598_v57, %v4692_v13 }
 0x44e   :  { %v3631_v50 = vadd.f32 %v3567_v46, %v3439_v19  ;;  %v5267_v39 = vmul.f32 %v5139_v1, %v5139_v1  ;;  %v5140_v53 = vmul.f32 %v5076_v36, %v5076_v36  ;;  %v2865_v3 = vmul.f32 %v6604_v60, %v6604_v60 }
 0x44f   :  { %v3632_v2 = vadd.f32 %v3568_v48, %v3440_v59  ;;  %v5011_v6 = vadd.f32 %v6600_v7, %v4755_v23  ;;  %v5012_v21 = vadd.f32 %v6602_v14, %v4756_v58  ;;  %6605 = vpow2.f32 %v3183_v16 }
 0x450   :  { %3695 = vst [vmem:[#allocation4 + $0x1e0] sm:$0xff] %v3631_v50  ;;  %v5331_v44 = vmul.f32 %v5267_v39, %v5267_v39  ;;  %v5268_v24 = vmul.f32 %v5140_v53, %v5140_v53  ;;  %v2929_v43 = vmul.f32 %v2865_v3, %v2865_v3  ;;  %6607 = vpow2.f32 %v2801_v26 }
 0x451   :  { %3696 = vst [vmem:[#allocation4 + $0x1e8] sm:$0xff] %v3632_v2  ;;  %v5203_v62 = vadd.f32 %v5139_v1, %v5011_v6  ;;  %v5204_v0 = vadd.f32 %v5140_v53, %v5012_v21  ;;  %v3058_v34 = vmul.f32 16.0, %v2674_v10 }
 0x452   :  { %v5332_v55 = vmul.f32 %v5268_v24, %v5268_v24  ;;  %v2993_v31 = vadd.f32 %v6604_v60, %v2929_v43 }
 0x453   :  { %v5395_v30 = vadd.f32 %v5331_v44, %v5203_v62  ;;  %v3185_v33 = vmul.f32 1.442695, %v3058_v34 }
 0x454   :  { %v5396_v54 = vadd.f32 %v5332_v55, %v5204_v0 }
 0x455   :  { %v6606_v18 = vpop.eup %6605  ;;  %5459 = vst [vmem:[#allocation6 + $0x1f0] sm:$0xff] %v5395_v30  ;;  %6609 = vpow2.f32 %v3185_v33 }
 0x456   :  { %v6608_v25 = vpop.eup %6607  ;;  %5460 = vst [vmem:[#allocation6 + $0x1f8] sm:$0xff] %v5396_v54  ;;  %v3249_v63 = vadd.f32 %v6606_v18, %v2993_v31  ;;  %v3313_v42 = vmul.f32 %v6606_v18, %v6606_v18 }
 0x457   :  { %v2866_v12 = vmul.f32 %v6608_v25, %v6608_v25 }
 0x458   :  { %v3377_v17 = vmul.f32 %v3313_v42, %v3313_v42 }
 0x459   :  { %v2930_v40 = vmul.f32 %v2866_v12, %v2866_v12 }
 0x45a   :  { %v3441_v16 = vadd.f32 %v3377_v17, %v3249_v63  ;;  %v3505_v61 = vmul.f32 %v3377_v17, %v3377_v17 }
 0x45b   :  { %v6610_v15 = vpop.eup %6609  ;;  %v2994_v45 = vadd.f32 %v6608_v25, %v2930_v40 }
 0x45c   :  { %v3569_v10 = vmul.f32 %v3505_v61, %v3505_v61  ;;  %v3314_v35 = vmul.f32 %v6610_v15, %v6610_v15 }
 0x45d   :  { %v3250_v8 = vadd.f32 %v6610_v15, %v2994_v45 }
 0x45e   :  { %v3633_v51 = vadd.f32 %v3569_v10, %v3441_v16  ;;  %v3378_v47 = vmul.f32 %v3314_v35, %v3314_v35 }
 0x460   :  { %3697 = vst [vmem:[#allocation4 + $0x1f0] sm:$0xff] %v3633_v51  ;;  %v3442_v52 = vadd.f32 %v3378_v47, %v3250_v8  ;;  %v3506_v26 = vmul.f32 %v3378_v47, %v3378_v47 }
 0x462   :  { %v3570_v57 = vmul.f32 %v3506_v26, %v3506_v26 }
 0x464   :  { %v3634_v20 = vadd.f32 %v3570_v57, %v3442_v52 }
 0x466   :  { %3698 = vst [vmem:[#allocation4 + $0x1f8] sm:$0xff] %v3634_v20 }
 0x467   :  { %5486 = dma.vmem_to_hbm [thread:$0]  %s5479_s26, 8192, %s5481_s28, [#allocation5], %s6711_s25, %s6711_s25, %s6712_s8  }
 0x468   :  { %5499 = dma.vmem_to_hbm [thread:$0]  %s5492_s0, 8192, %s5494_s7, [#allocation5], %s6711_s25, %s6711_s25, %s6712_s8  }
 0x469   :  { %6705 = dma.done.wait [#allocation3], 8192  }
 0x46a   :  { %6706 = vsyncadd [#allocation3], 4294959104 }
 0x46b   :  { %6707 = dma.done.wait [#allocation5], 16384  }
 0x46c   :  { %6708 = vsyncadd [#allocation5], 4294950912 }
 0x46d   :  { %5512 = vsyncpa [#allocation3], 1 }
 0x46e   :  { %5513 = vsyncpa [#allocation5], 1 }

</bundles_post_ra>
